<compile_context>
chip_gen: v6e
topology: v6e:2x2x1
jax: 0.10.0
libtpu: 0.0.40
codegen_flags: <defaults>
</compile_context>

<pallas_src>
import functools

import jax
import jax.numpy as jnp
from jax import lax
from jax.experimental import pallas as pl
from jax.experimental.pallas import tpu as pltpu

# ----------------------------- model hyperparameters -----------------------------
B = 2              # batch (sequences)
T = 16             # sequence length (stands in for ~1022)
D = 256            # hidden size (stands in for 1280) — lane-aligned
NUM_HEADS = 2      # attention heads (stands in for 20)
HEAD_DIM = D // NUM_HEADS   # 128 — lane-aligned head slices
FFN = 4 * D        # feed-forward width (stands in for 5120)
FFN_TILE = 512     # FFN reduction-tile width (re-derive per generation / VMEM budget)
KV_TILE = 8        # key-block size for the online-softmax loop (demo scale)
NUM_LAYERS = 2     # stands in for the 33 ESM-1b layers (repr_layers=[33] == final)
SEQ_PER_TILE = B   # sequences per row tile. TODO(synk): at real B, shrink so the
                   # parallel row-tile axis has >=2 tiles for v7x's two TensorCores.
VOCAB = 33         # ESM alphabet size
CATEGORY = 4       # classifier categories
CPAD = 128         # lane-padded classifier output width (dense vst; sliced in JAX)
CLS_IDX = 0        # ESM cls token id (forward takes representations[:, 0, :])
EPS = 1e-12        # ESM1bLayerNorm epsilon


# --------------------------------- small helpers ---------------------------------
def _vmem_limit_bytes():
    # ~48 MiB on v7x (64 MiB physical VMEM), ~96 MiB on v5e/v6e (128 MiB physical).
    try:
        cap = pltpu.get_tpu_info().vmem_capacity_bytes
    except Exception:
        cap = 128 * 1024 * 1024
    return min(int(cap * 3 // 4), 100 * 1024 * 1024)


def _layer_norm(x, g, b):
    mu = jnp.mean(x, axis=-1, keepdims=True)
    var = jnp.mean(jnp.square(x - mu), axis=-1, keepdims=True)
    return (x - mu) * lax.rsqrt(var + EPS) * g + b


def _gelu(x):
    # TODO(synk): ESM uses the exact erf-based GELU; tanh approximation used here
    # for guaranteed Mosaic lowering (precision deviation from the reference).
    return jax.nn.gelu(x, approximate=True)


# ------------------------------ fused transformer layer ------------------------------
# Grid = (row_tiles, FFN // FFN_TILE). The row-tile axis is "parallel"; the FFN-chunk
# axis is an "arbitrary" reduction axis: attention (plus optional fused embedding
# LayerNorm) runs once at f == 0, FFN chunks accumulate into an f32 VMEM scratch,
# and the layer output (or, for the final layer, the fused classifier-head logits)
# is stored at the last chunk.
def transformer_layer_kernel(x_ref, embg, embb, ln1g, ln1b,
                             wqkv, bqkv, wo, bo,
                             ln2g, ln2b, w1, b1, w2, b2,
                             *rest, num_heads, apply_emb_ln, fuse_head):
    if fuse_head:
        lnf_g, lnf_b, head_w, head_b, o_ref, h2_scr, acc_scr = rest
    else:
        o_ref, h2_scr, acc_scr = rest

    f = pl.program_id(1)

    @pl.when(f == 0)
    def _attention_and_init():
        s_seq, t, d = x_ref.shape                      # (S, T, D)
        hd = d // num_heads
        rows = s_seq * t

        # Fold batch*tokens into the MXU M dimension for every projection.
        x = x_ref[...].reshape(rows, d).astype(jnp.float32)
        if apply_emb_ln:                               # fused emb_layer_norm_before
            x = _layer_norm(x, embg[...], embb[...])

        # ---- self-attention block (pre-LN, residual) ----
        h = _layer_norm(x, ln1g[...], ln1b[...]).astype(jnp.bfloat16)
        # Fused QKV projection; 1/sqrt(head_dim) folded into the Q slice of wqkv.
        qkv = jnp.dot(h, wqkv[...], preferred_element_type=jnp.float32) + bqkv[...]
        q, k, v = qkv[:, 0:d], qkv[:, d:2 * d], qkv[:, 2 * d:3 * d]

        def to_heads(z):
            z = z.reshape(s_seq, t, num_heads, hd)
            z = jnp.transpose(z, (0, 2, 1, 3))         # (S, H, T, hd)
            return z.reshape(s_seq * num_heads, t, hd).astype(jnp.bfloat16)

        qh, kh, vh = to_heads(q), to_heads(k), to_heads(v)
        bh = s_seq * num_heads

        # ---- KV-tiled online softmax (flash) over key blocks ----
        # TODO(synk): real batched ESM inputs need a key-padding mask here.
        # TODO(synk): at real T (~1022) use pl.loop with K/V in VMEM scratch; the
        # static Python unroll below is only for the demo trip count.
        kv_tile = min(KV_TILE, t)
        n_kv = t // kv_tile
        m_i = jnp.full((bh, t, 1), -jnp.inf, jnp.float32)
        l_i = jnp.zeros((bh, t, 1), jnp.float32)
        ctx = jnp.zeros((bh, t, hd), jnp.float32)
        for kb in range(n_kv):
            ks = kh[:, kb * kv_tile:(kb + 1) * kv_tile, :]
            vs = vh[:, kb * kv_tile:(kb + 1) * kv_tile, :]
            sc = jnp.einsum('bqd,bkd->bqk', qh, ks,
                            preferred_element_type=jnp.float32)     # (BH, T, kv)
            m_new = jnp.maximum(m_i, jnp.max(sc, axis=-1, keepdims=True))
            alpha = jnp.exp(m_i - m_new)
            p = jnp.exp(sc - m_new)
            l_i = alpha * l_i + jnp.sum(p, axis=-1, keepdims=True)
            ctx = alpha * ctx + jnp.einsum('bqk,bkd->bqd',
                                           p.astype(jnp.bfloat16), vs,
                                           preferred_element_type=jnp.float32)
            m_i = m_new
        ctx = ctx * pl.reciprocal(l_i, approx=True)

        attn = ctx.reshape(s_seq, num_heads, t, hd)
        attn = jnp.transpose(attn, (0, 2, 1, 3)).reshape(rows, d).astype(jnp.bfloat16)
        attn = jnp.dot(attn, wo[...], preferred_element_type=jnp.float32) + bo[...]
        xa = x + attn                                  # residual 1

        # Stash pre-LN FFN input (bf16) and init the f32 accumulator with the
        # residual base + fc2 bias (added exactly once).
        h2_scr[...] = _layer_norm(xa, ln2g[...], ln2b[...]).astype(jnp.bfloat16)
        acc_scr[...] = xa + b2[...]

    # ---- feed-forward chunk f: acc += gelu(h2 @ w1[:, f] + b1[f]) @ w2[f, :] ----
    u = _gelu(jnp.dot(h2_scr[...], w1[...], preferred_element_type=jnp.float32)
              + b1[...])                               # (B*T, FFN_TILE)
    acc_scr[...] += jnp.dot(u.astype(jnp.bfloat16), w2[...],
                            preferred_element_type=jnp.float32)

    @pl.when(f == pl.num_programs(1) - 1)
    def _finalize():
        s_seq, t, d = x_ref.shape
        if fuse_head:
            # representations[final][:, 0, :] -> emb_layer_norm_after -> ReLU -> Linear
            xo = acc_scr[...].reshape(s_seq, t, d)
            cls = xo[:, 0, :]                                        # (S, D) CLS rows
            hcls = _layer_norm(cls, lnf_g[...], lnf_b[...])
            hcls = jnp.maximum(hcls, 0.0).astype(jnp.bfloat16)       # nn.ReLU()
            o_ref[...] = (jnp.dot(hcls, head_w[...],
                                  preferred_element_type=jnp.float32)
                          + head_b[...]).astype(o_ref.dtype)         # (S, CPAD)
        else:
            o_ref[...] = acc_scr[...].reshape(s_seq, t, d).astype(o_ref.dtype)


def transformer_layer(x, lp, emb_g, emb_b, head=None, *, apply_emb_ln):
    Bx, Tx, Dx = x.shape
    F = lp["w1"].shape[1]
    nF = F // FFN_TILE
    S = SEQ_PER_TILE
    nR = Bx // S
    vec = lambda p: p.reshape(1, -1)
    fuse_head = head is not None

    # Constant-index weight/bias specs: single-buffered (fixed block index -> no
    # benefit from double buffering, half the resident VMEM).
    def const(shp):
        return pl.BlockSpec(shp, lambda r, f, _n=len(shp): (0,) * _n,
                            pipeline_mode=pl.Buffered(1))

    kernel = functools.partial(transformer_layer_kernel,
                               num_heads=NUM_HEADS,
                               apply_emb_ln=apply_emb_ln,
                               fuse_head=fuse_head)

    in_specs = [
        pl.BlockSpec((S, Tx, Dx), lambda r, f: (r, 0, 0)),   # x row tile (all seqs by default)
        const((1, Dx)), const((1, Dx)),                      # emb LN gamma/beta (layer 0 only)
        const((1, Dx)), const((1, Dx)),                      # ln1 gamma/beta
        const((Dx, 3 * Dx)), const((1, 3 * Dx)),             # fused Wqkv, bqkv
        const((Dx, Dx)), const((1, Dx)),                     # Wo, bo
        const((1, Dx)), const((1, Dx)),                      # ln2 gamma/beta
        # Streamed FFN tiles (reduction axis). TODO(synk): on v6e consider
        # pipeline_mode=pl.Buffered(3) here once nF is large.
        pl.BlockSpec((Dx, FFN_TILE), lambda r, f: (0, f)),   # W_fc1 column tile
        pl.BlockSpec((1, FFN_TILE), lambda r, f: (0, f)),    # b_fc1 tile
        pl.BlockSpec((FFN_TILE, Dx), lambda r, f: (f, 0)),   # W_fc2 row tile
        const((1, Dx)),                                      # b_fc2
    ]
    inputs = [x,
              vec(emb_g), vec(emb_b),
              vec(lp["ln1_g"]), vec(lp["ln1_b"]),
              lp["wqkv"], vec(lp["bqkv"]),
              lp["wo"], vec(lp["bo"]),
              vec(lp["ln2_g"]), vec(lp["ln2_b"]),
              lp["w1"], vec(lp["b1"]),
              lp["w2"], vec(lp["b2"])]

    if fuse_head:
        in_specs += [const((1, Dx)), const((1, Dx)),
                     const((Dx, CPAD)), const((1, CPAD))]
        inputs += [vec(head["lnf_g"]), vec(head["lnf_b"]),
                   head["w"], vec(head["b"])]
        out_shape = jax.ShapeDtypeStruct((Bx, CPAD), jnp.float32)
        out_specs = pl.BlockSpec((S, CPAD), lambda r, f: (r, 0))
    else:
        # Inter-layer activations in bf16 (in-kernel math is f32).
        out_shape = jax.ShapeDtypeStruct((Bx, Tx, Dx), jnp.bfloat16)
        out_specs = pl.BlockSpec((S, Tx, Dx), lambda r, f: (r, 0, 0))

    return pl.pallas_call(
        kernel,
        out_shape=out_shape,
        grid=(nR, nF),
        in_specs=in_specs,
        out_specs=out_specs,
        scratch_shapes=[pltpu.VMEM((S * Tx, Dx), jnp.bfloat16),  # LN(x_after_attn)
                        pltpu.VMEM((S * Tx, Dx), jnp.float32)],  # f32 output accumulator
        compiler_params=pltpu.CompilerParams(
            dimension_semantics=("parallel", "arbitrary"),
            vmem_limit_bytes=_vmem_limit_bytes()),
    )(*inputs)


# --------------------------------- full forward pass ---------------------------------
@jax.jit
def fungenetyper_forward(tokens, params):
    # Embedding lookup + learned positional embeddings (gather stays in JAX).
    pos = jnp.arange(tokens.shape[1])
    x = params["embed_tokens"][tokens] + params["embed_positions"][pos][None, :, :]
    x = x.astype(jnp.bfloat16)   # bf16 inter-layer activations (v5e HBM-BW lever)

    layers = params["layers"]
    for li, lp in enumerate(layers[:-1]):
        x = transformer_layer(x, lp,
                              params["emb_ln_before_g"], params["emb_ln_before_b"],
                              apply_emb_ln=(li == 0))

    # Final layer: classifier head (emb_layer_norm_after -> ReLU -> Linear) fused
    # into its finalize; only lane-padded CLS logits are written back to HBM.
    head = {"lnf_g": params["emb_ln_after_g"], "lnf_b": params["emb_ln_after_b"],
            "w": params["head_w"], "b": params["head_b"]}
    logits_pad = transformer_layer(x, layers[-1],
                                   params["emb_ln_before_g"], params["emb_ln_before_b"],
                                   head=head,
                                   apply_emb_ln=(len(layers) == 1))
    return logits_pad[:, :CATEGORY]


# ------------------------------- deterministic init -------------------------------
def init_params(key):
    keys = iter(jax.random.split(key, 4 + NUM_LAYERS * 8))

    def nrm(shape, scale=0.02):
        return (scale * jax.random.normal(next(keys), shape)).astype(jnp.float32)

    ones = lambda s: jnp.ones(s, jnp.float32)
    zeros = lambda s: jnp.zeros(s, jnp.float32)
    bf16 = lambda a: a.astype(jnp.bfloat16)

    # Classifier head, pre-padded to CPAD=128 lanes (dense vst; sliced in JAX).
    head_w = jnp.zeros((D, CPAD), jnp.float32).at[:, :CATEGORY].set(nrm((D, CATEGORY)))
    head_b = jnp.zeros((CPAD,), jnp.float32)

    params = {
        "embed_tokens": nrm((VOCAB, D)),
        "embed_positions": nrm((T, D)),
        "emb_ln_before_g": ones((D,)), "emb_ln_before_b": zeros((D,)),
        "emb_ln_after_g": ones((D,)), "emb_ln_after_b": zeros((D,)),
        "head_w": bf16(head_w), "head_b": head_b,
        "layers": [],
    }
    qk_scale = 1.0 / float(HEAD_DIM) ** 0.5
    for _ in range(NUM_LAYERS):
        # 1/sqrt(head_dim) folded into the Q projection at parameter-prep time
        # (fold into bq as well when porting real non-zero-bias checkpoints).
        wq = nrm((D, D)) * qk_scale
        wk = nrm((D, D))
        wv = nrm((D, D))
        bq = zeros((D,)) * qk_scale
        bk = zeros((D,))
        bv = zeros((D,))
        params["layers"].append({
            "ln1_g": ones((D,)), "ln1_b": zeros((D,)),
            "wqkv": bf16(jnp.concatenate([wq, wk, wv], axis=1)),   # (D, 3D) fused QKV
            "bqkv": jnp.concatenate([bq, bk, bv]),
            "wo": bf16(nrm((D, D))), "bo": zeros((D,)),
            "ln2_g": ones((D,)), "ln2_b": zeros((D,)),
            "w1": bf16(nrm((D, FFN))), "b1": zeros((FFN,)),
            "w2": bf16(nrm((FFN, D))), "b2": zeros((D,)),
        })
    return params


if __name__ == "__main__":
    root = jax.random.PRNGKey(0)
    pkey, tkey = jax.random.split(root)

    params = init_params(pkey)
    tokens = jax.random.randint(tkey, (B, T), 0, VOCAB, dtype=jnp.int32)
    tokens = tokens.at[:, 0].set(CLS_IDX)   # ESM prepends the cls token

    out = fungenetyper_forward(tokens, params)
    out = jax.block_until_ready(out)

    assert out.shape == (B, CATEGORY), out.shape
    assert out.dtype == jnp.float32
    assert bool(jnp.all(jnp.isfinite(out)))
    print("KERNEL_OK")
</pallas_src>

<mosaic_0001>
module attributes {stable_mosaic.version = 11 : i64} {
  func.func @transformer_layer_kernel(%arg0: i32, %arg1: i32, %arg2: memref<2x16x256xbf16, #tpu.memory_space<vmem>>, %arg3: memref<1x256xf32, #tpu.memory_space<vmem>>, %arg4: memref<1x256xf32, #tpu.memory_space<vmem>>, %arg5: memref<1x256xf32, #tpu.memory_space<vmem>>, %arg6: memref<1x256xf32, #tpu.memory_space<vmem>>, %arg7: memref<256x768xbf16, #tpu.memory_space<vmem>>, %arg8: memref<1x768xf32, #tpu.memory_space<vmem>>, %arg9: memref<256x256xbf16, #tpu.memory_space<vmem>>, %arg10: memref<1x256xf32, #tpu.memory_space<vmem>>, %arg11: memref<1x256xf32, #tpu.memory_space<vmem>>, %arg12: memref<1x256xf32, #tpu.memory_space<vmem>>, %arg13: memref<256x512xbf16, #tpu.memory_space<vmem>>, %arg14: memref<1x512xf32, #tpu.memory_space<vmem>>, %arg15: memref<512x256xbf16, #tpu.memory_space<vmem>>, %arg16: memref<1x256xf32, #tpu.memory_space<vmem>>, %arg17: memref<2x16x256xbf16, #tpu.memory_space<vmem>>, %arg18: memref<32x256xbf16, #tpu.memory_space<vmem>>, %arg19: memref<32x256xf32, #tpu.memory_space<vmem>>) attributes {dimension_semantics = [#tpu.dimension_semantics<parallel>, #tpu.dimension_semantics<arbitrary>], iteration_bounds = array<i64: 1, 2>, scalar_prefetch = 0 : i64, scratch_operands = 2 : i64, tpu.core_type = #tpu.core_type<tc>, window_params = [{transform_indices = @transform_0, window_bounds = array<i64: 2, 16, 256>}, {pipeline_mode = #tpu.pipeline_mode<synchronous>, transform_indices = @transform_1, window_bounds = array<i64: 1, 256>}, {pipeline_mode = #tpu.pipeline_mode<synchronous>, transform_indices = @transform_2, window_bounds = array<i64: 1, 256>}, {pipeline_mode = #tpu.pipeline_mode<synchronous>, transform_indices = @transform_3, window_bounds = array<i64: 1, 256>}, {pipeline_mode = #tpu.pipeline_mode<synchronous>, transform_indices = @transform_4, window_bounds = array<i64: 1, 256>}, {pipeline_mode = #tpu.pipeline_mode<synchronous>, transform_indices = @transform_5, window_bounds = array<i64: 256, 768>}, {pipeline_mode = #tpu.pipeline_mode<synchronous>, transform_indices = @transform_6, window_bounds = array<i64: 1, 768>}, {pipeline_mode = #tpu.pipeline_mode<synchronous>, transform_indices = @transform_7, window_bounds = array<i64: 256, 256>}, {pipeline_mode = #tpu.pipeline_mode<synchronous>, transform_indices = @transform_8, window_bounds = array<i64: 1, 256>}, {pipeline_mode = #tpu.pipeline_mode<synchronous>, transform_indices = @transform_9, window_bounds = array<i64: 1, 256>}, {pipeline_mode = #tpu.pipeline_mode<synchronous>, transform_indices = @transform_10, window_bounds = array<i64: 1, 256>}, {transform_indices = @transform_11, window_bounds = array<i64: 256, 512>}, {transform_indices = @transform_12, window_bounds = array<i64: 1, 512>}, {transform_indices = @transform_13, window_bounds = array<i64: 512, 256>}, {pipeline_mode = #tpu.pipeline_mode<synchronous>, transform_indices = @transform_14, window_bounds = array<i64: 1, 256>}, {transform_indices = @transform_15, window_bounds = array<i64: 2, 16, 256>}]} {
    %c0_i32 = arith.constant 0 : i32
    %0 = arith.cmpi eq, %arg1, %c0_i32 : i32
    %1 = arith.extui %0 : i1 to i32
    %c0_i32_0 = arith.constant 0 : i32
    %2 = arith.cmpi ne, %1, %c0_i32_0 : i32
    scf.if %2 {
      %c0_18 = arith.constant 0 : index
      %c0_19 = arith.constant 0 : index
      %c0_20 = arith.constant 0 : index
      %31 = vector.load %arg2[%c0_18, %c0_19, %c0_20] : memref<2x16x256xbf16, #tpu.memory_space<vmem>>, vector<2x16x256xbf16>
      %32 = vector.shape_cast %31 : vector<2x16x256xbf16> to vector<32x256xbf16>
      %33 = arith.extf %32 : vector<32x256xbf16> to vector<32x256xf32>
      %c0_21 = arith.constant 0 : index
      %c0_22 = arith.constant 0 : index
      %34 = vector.load %arg3[%c0_21, %c0_22] : memref<1x256xf32, #tpu.memory_space<vmem>>, vector<1x256xf32>
      %c0_23 = arith.constant 0 : index
      %c0_24 = arith.constant 0 : index
      %35 = vector.load %arg4[%c0_23, %c0_24] : memref<1x256xf32, #tpu.memory_space<vmem>>, vector<1x256xf32>
      %cst_25 = arith.constant dense<0.000000e+00> : vector<32xf32>
      %36 = vector.multi_reduction <add>, %33, %cst_25 [1] : vector<32x256xf32> to vector<32xf32>
      %37 = vector.shape_cast %36 : vector<32xf32> to vector<32x1xf32>
      %cst_26 = arith.constant 2.560000e+02 : f32
      %38 = vector.broadcast %cst_26 : f32 to vector<32x1xf32>
      %39 = arith.divf %37, %38 : vector<32x1xf32>
      %40 = vector.broadcast %39 : vector<32x1xf32> to vector<32x256xf32>
      %41 = arith.subf %33, %40 : vector<32x256xf32>
      %42 = arith.mulf %41, %41 : vector<32x256xf32>
      %cst_27 = arith.constant dense<0.000000e+00> : vector<32xf32>
      %43 = vector.multi_reduction <add>, %42, %cst_27 [1] : vector<32x256xf32> to vector<32xf32>
      %44 = vector.shape_cast %43 : vector<32xf32> to vector<32x1xf32>
      %cst_28 = arith.constant 2.560000e+02 : f32
      %45 = vector.broadcast %cst_28 : f32 to vector<32x1xf32>
      %46 = arith.divf %44, %45 : vector<32x1xf32>
      %47 = vector.broadcast %39 : vector<32x1xf32> to vector<32x256xf32>
      %48 = arith.subf %33, %47 : vector<32x256xf32>
      %cst_29 = arith.constant 9.99999996E-13 : f32
      %49 = vector.broadcast %cst_29 : f32 to vector<32x1xf32>
      %50 = arith.addf %46, %49 : vector<32x1xf32>
      %51 = math.rsqrt %50 : vector<32x1xf32>
      %52 = vector.broadcast %51 : vector<32x1xf32> to vector<32x256xf32>
      %53 = arith.mulf %48, %52 : vector<32x256xf32>
      %54 = vector.broadcast %34 : vector<1x256xf32> to vector<32x256xf32>
      %55 = arith.mulf %53, %54 : vector<32x256xf32>
      %56 = vector.broadcast %35 : vector<1x256xf32> to vector<32x256xf32>
      %57 = arith.addf %55, %56 : vector<32x256xf32>
      %c0_30 = arith.constant 0 : index
      %c0_31 = arith.constant 0 : index
      %58 = vector.load %arg5[%c0_30, %c0_31] : memref<1x256xf32, #tpu.memory_space<vmem>>, vector<1x256xf32>
      %c0_32 = arith.constant 0 : index
      %c0_33 = arith.constant 0 : index
      %59 = vector.load %arg6[%c0_32, %c0_33] : memref<1x256xf32, #tpu.memory_space<vmem>>, vector<1x256xf32>
      %cst_34 = arith.constant dense<0.000000e+00> : vector<32xf32>
      %60 = vector.multi_reduction <add>, %57, %cst_34 [1] : vector<32x256xf32> to vector<32xf32>
      %61 = vector.shape_cast %60 : vector<32xf32> to vector<32x1xf32>
      %cst_35 = arith.constant 2.560000e+02 : f32
      %62 = vector.broadcast %cst_35 : f32 to vector<32x1xf32>
      %63 = arith.divf %61, %62 : vector<32x1xf32>
      %64 = vector.broadcast %63 : vector<32x1xf32> to vector<32x256xf32>
      %65 = arith.subf %57, %64 : vector<32x256xf32>
      %66 = arith.mulf %65, %65 : vector<32x256xf32>
      %cst_36 = arith.constant dense<0.000000e+00> : vector<32xf32>
      %67 = vector.multi_reduction <add>, %66, %cst_36 [1] : vector<32x256xf32> to vector<32xf32>
      %68 = vector.shape_cast %67 : vector<32xf32> to vector<32x1xf32>
      %cst_37 = arith.constant 2.560000e+02 : f32
      %69 = vector.broadcast %cst_37 : f32 to vector<32x1xf32>
      %70 = arith.divf %68, %69 : vector<32x1xf32>
      %71 = vector.broadcast %63 : vector<32x1xf32> to vector<32x256xf32>
      %72 = arith.subf %57, %71 : vector<32x256xf32>
      %cst_38 = arith.constant 9.99999996E-13 : f32
      %73 = vector.broadcast %cst_38 : f32 to vector<32x1xf32>
      %74 = arith.addf %70, %73 : vector<32x1xf32>
      %75 = math.rsqrt %74 : vector<32x1xf32>
      %76 = vector.broadcast %75 : vector<32x1xf32> to vector<32x256xf32>
      %77 = arith.mulf %72, %76 : vector<32x256xf32>
      %78 = vector.broadcast %58 : vector<1x256xf32> to vector<32x256xf32>
      %79 = arith.mulf %77, %78 : vector<32x256xf32>
      %80 = vector.broadcast %59 : vector<1x256xf32> to vector<32x256xf32>
      %81 = arith.addf %79, %80 : vector<32x256xf32>
      %82 = arith.truncf %81 : vector<32x256xf32> to vector<32x256xbf16>
      %c0_39 = arith.constant 0 : index
      %c0_40 = arith.constant 0 : index
      %83 = vector.load %arg7[%c0_39, %c0_40] : memref<256x768xbf16, #tpu.memory_space<vmem>>, vector<256x768xbf16>
      %cst_41 = arith.constant dense<0.000000e+00> : vector<32x768xf32>
      %84 = tpu.matmul %82, %83, %cst_41 {dimension_numbers = #tpu.dot_dimension_numbers<[1], [0], [0], [1], [0, 0, 1, 1], [], []>} : vector<32x256xbf16>, vector<256x768xbf16>, vector<32x768xf32> -> vector<32x768xf32>
      %c0_42 = arith.constant 0 : index
      %c0_43 = arith.constant 0 : index
      %85 = vector.load %arg8[%c0_42, %c0_43] : memref<1x768xf32, #tpu.memory_space<vmem>>, vector<1x768xf32>
      %86 = vector.broadcast %85 : vector<1x768xf32> to vector<32x768xf32>
      %87 = arith.addf %84, %86 : vector<32x768xf32>
      %88 = vector.extract_strided_slice %87 {offsets = [0, 0], sizes = [32, 256], strides = [1, 1]} : vector<32x768xf32> to vector<32x256xf32>
      %89 = vector.extract_strided_slice %87 {offsets = [0, 256], sizes = [32, 256], strides = [1, 1]} : vector<32x768xf32> to vector<32x256xf32>
      %90 = vector.extract_strided_slice %87 {offsets = [0, 512], sizes = [32, 256], strides = [1, 1]} : vector<32x768xf32> to vector<32x256xf32>
      %91 = vector.shape_cast %88 : vector<32x256xf32> to vector<2x16x2x128xf32>
      %92 = tpu.transpose %91, [0, 2, 1, 3] : vector<2x16x2x128xf32> -> vector<2x2x16x128xf32>
      %93 = vector.shape_cast %92 : vector<2x2x16x128xf32> to vector<4x16x128xf32>
      %94 = arith.truncf %93 : vector<4x16x128xf32> to vector<4x16x128xbf16>
      %95 = vector.shape_cast %89 : vector<32x256xf32> to vector<2x16x2x128xf32>
      %96 = tpu.transpose %95, [0, 2, 1, 3] : vector<2x16x2x128xf32> -> vector<2x2x16x128xf32>
      %97 = vector.shape_cast %96 : vector<2x2x16x128xf32> to vector<4x16x128xf32>
      %98 = arith.truncf %97 : vector<4x16x128xf32> to vector<4x16x128xbf16>
      %99 = vector.shape_cast %90 : vector<32x256xf32> to vector<2x16x2x128xf32>
      %100 = tpu.transpose %99, [0, 2, 1, 3] : vector<2x16x2x128xf32> -> vector<2x2x16x128xf32>
      %101 = vector.shape_cast %100 : vector<2x2x16x128xf32> to vector<4x16x128xf32>
      %102 = arith.truncf %101 : vector<4x16x128xf32> to vector<4x16x128xbf16>
      %cst_44 = arith.constant 0xFF800000 : f32
      %103 = vector.broadcast %cst_44 : f32 to vector<4x16x1xf32>
      %cst_45 = arith.constant 0.000000e+00 : f32
      %104 = vector.broadcast %cst_45 : f32 to vector<4x16x1xf32>
      %cst_46 = arith.constant 0.000000e+00 : f32
      %105 = vector.broadcast %cst_46 : f32 to vector<4x16x128xf32>
      %106 = vector.extract_strided_slice %98 {offsets = [0, 0, 0], sizes = [4, 8, 128], strides = [1, 1, 1]} : vector<4x16x128xbf16> to vector<4x8x128xbf16>
      %107 = vector.extract_strided_slice %102 {offsets = [0, 0, 0], sizes = [4, 8, 128], strides = [1, 1, 1]} : vector<4x16x128xbf16> to vector<4x8x128xbf16>
      "tpu.trace_start"() <{level = 10 : i32, message = "bqd,bkd->bqk"}> : () -> ()
      %cst_47 = arith.constant dense<0.000000e+00> : vector<4x16x8xf32>
      %108 = tpu.matmul %94, %106, %cst_47 {dimension_numbers = #tpu.dot_dimension_numbers<[2], [2], [1], [1], [0, 0, 0, 1, 1, 1], [0], [0]>} : vector<4x16x128xbf16>, vector<4x8x128xbf16>, vector<4x16x8xf32> -> vector<4x16x8xf32>
      "tpu.trace_stop"() : () -> ()
      %cst_48 = arith.constant dense<0xFF800000> : vector<4x16xf32>
      %109 = vector.multi_reduction <maximumf>, %108, %cst_48 [2] : vector<4x16x8xf32> to vector<4x16xf32>
      %110 = vector.shape_cast %109 : vector<4x16xf32> to vector<4x16x1xf32>
      %111 = arith.maximumf %103, %110 : vector<4x16x1xf32>
      %112 = arith.subf %103, %111 : vector<4x16x1xf32>
      %113 = math.exp %112 : vector<4x16x1xf32>
      %114 = vector.broadcast %111 : vector<4x16x1xf32> to vector<4x16x8xf32>
      %115 = arith.subf %108, %114 : vector<4x16x8xf32>
      %116 = math.exp %115 : vector<4x16x8xf32>
      %117 = arith.mulf %113, %104 : vector<4x16x1xf32>
      %cst_49 = arith.constant dense<0.000000e+00> : vector<4x16xf32>
      %118 = vector.multi_reduction <add>, %116, %cst_49 [2] : vector<4x16x8xf32> to vector<4x16xf32>
      %119 = vector.shape_cast %118 : vector<4x16xf32> to vector<4x16x1xf32>
      %120 = arith.addf %117, %119 : vector<4x16x1xf32>
      %121 = vector.broadcast %113 : vector<4x16x1xf32> to vector<4x16x128xf32>
      %122 = arith.mulf %121, %105 : vector<4x16x128xf32>
      %123 = arith.truncf %116 : vector<4x16x8xf32> to vector<4x16x8xbf16>
      "tpu.trace_start"() <{level = 10 : i32, message = "bqk,bkd->bqd"}> : () -> ()
      %cst_50 = arith.constant dense<0.000000e+00> : vector<4x16x128xf32>
      %124 = tpu.matmul %123, %107, %cst_50 {dimension_numbers = #tpu.dot_dimension_numbers<[2], [1], [1], [2], [0, 0, 0, 1, 1, 2], [0], [0]>} : vector<4x16x8xbf16>, vector<4x8x128xbf16>, vector<4x16x128xf32> -> vector<4x16x128xf32>
      "tpu.trace_stop"() : () -> ()
      %125 = arith.addf %122, %124 : vector<4x16x128xf32>
      %126 = vector.extract_strided_slice %98 {offsets = [0, 8, 0], sizes = [4, 8, 128], strides = [1, 1, 1]} : vector<4x16x128xbf16> to vector<4x8x128xbf16>
      %127 = vector.extract_strided_slice %102 {offsets = [0, 8, 0], sizes = [4, 8, 128], strides = [1, 1, 1]} : vector<4x16x128xbf16> to vector<4x8x128xbf16>
      "tpu.trace_start"() <{level = 10 : i32, message = "bqd,bkd->bqk"}> : () -> ()
      %cst_51 = arith.constant dense<0.000000e+00> : vector<4x16x8xf32>
      %128 = tpu.matmul %94, %126, %cst_51 {dimension_numbers = #tpu.dot_dimension_numbers<[2], [2], [1], [1], [0, 0, 0, 1, 1, 1], [0], [0]>} : vector<4x16x128xbf16>, vector<4x8x128xbf16>, vector<4x16x8xf32> -> vector<4x16x8xf32>
      "tpu.trace_stop"() : () -> ()
      %cst_52 = arith.constant dense<0xFF800000> : vector<4x16xf32>
      %129 = vector.multi_reduction <maximumf>, %128, %cst_52 [2] : vector<4x16x8xf32> to vector<4x16xf32>
      %130 = vector.shape_cast %129 : vector<4x16xf32> to vector<4x16x1xf32>
      %131 = arith.maximumf %111, %130 : vector<4x16x1xf32>
      %132 = arith.subf %111, %131 : vector<4x16x1xf32>
      %133 = math.exp %132 : vector<4x16x1xf32>
      %134 = vector.broadcast %131 : vector<4x16x1xf32> to vector<4x16x8xf32>
      %135 = arith.subf %128, %134 : vector<4x16x8xf32>
      %136 = math.exp %135 : vector<4x16x8xf32>
      %137 = arith.mulf %133, %120 : vector<4x16x1xf32>
      %cst_53 = arith.constant dense<0.000000e+00> : vector<4x16xf32>
      %138 = vector.multi_reduction <add>, %136, %cst_53 [2] : vector<4x16x8xf32> to vector<4x16xf32>
      %139 = vector.shape_cast %138 : vector<4x16xf32> to vector<4x16x1xf32>
      %140 = arith.addf %137, %139 : vector<4x16x1xf32>
      %141 = vector.broadcast %133 : vector<4x16x1xf32> to vector<4x16x128xf32>
      %142 = arith.mulf %141, %125 : vector<4x16x128xf32>
      %143 = arith.truncf %136 : vector<4x16x8xf32> to vector<4x16x8xbf16>
      "tpu.trace_start"() <{level = 10 : i32, message = "bqk,bkd->bqd"}> : () -> ()
      %cst_54 = arith.constant dense<0.000000e+00> : vector<4x16x128xf32>
      %144 = tpu.matmul %143, %127, %cst_54 {dimension_numbers = #tpu.dot_dimension_numbers<[2], [1], [1], [2], [0, 0, 0, 1, 1, 2], [0], [0]>} : vector<4x16x8xbf16>, vector<4x8x128xbf16>, vector<4x16x128xf32> -> vector<4x16x128xf32>
      "tpu.trace_stop"() : () -> ()
      %145 = arith.addf %142, %144 : vector<4x16x128xf32>
      %146 = tpu.reciprocal %140 {approx = true} : vector<4x16x1xf32> -> vector<4x16x1xf32>
      %147 = vector.broadcast %146 : vector<4x16x1xf32> to vector<4x16x128xf32>
      %148 = arith.mulf %145, %147 : vector<4x16x128xf32>
      %149 = vector.shape_cast %148 : vector<4x16x128xf32> to vector<2x2x16x128xf32>
      %150 = tpu.transpose %149, [0, 2, 1, 3] : vector<2x2x16x128xf32> -> vector<2x16x2x128xf32>
      %151 = vector.shape_cast %150 : vector<2x16x2x128xf32> to vector<32x256xf32>
      %152 = arith.truncf %151 : vector<32x256xf32> to vector<32x256xbf16>
      %c0_55 = arith.constant 0 : index
      %c0_56 = arith.constant 0 : index
      %153 = vector.load %arg9[%c0_55, %c0_56] : memref<256x256xbf16, #tpu.memory_space<vmem>>, vector<256x256xbf16>
      %cst_57 = arith.constant dense<0.000000e+00> : vector<32x256xf32>
      %154 = tpu.matmul %152, %153, %cst_57 {dimension_numbers = #tpu.dot_dimension_numbers<[1], [0], [0], [1], [0, 0, 1, 1], [], []>} : vector<32x256xbf16>, vector<256x256xbf16>, vector<32x256xf32> -> vector<32x256xf32>
      %c0_58 = arith.constant 0 : index
      %c0_59 = arith.constant 0 : index
      %155 = vector.load %arg10[%c0_58, %c0_59] : memref<1x256xf32, #tpu.memory_space<vmem>>, vector<1x256xf32>
      %156 = vector.broadcast %155 : vector<1x256xf32> to vector<32x256xf32>
      %157 = arith.addf %154, %156 : vector<32x256xf32>
      %158 = arith.addf %57, %157 : vector<32x256xf32>
      %c0_60 = arith.constant 0 : index
      %c0_61 = arith.constant 0 : index
      %159 = vector.load %arg11[%c0_60, %c0_61] : memref<1x256xf32, #tpu.memory_space<vmem>>, vector<1x256xf32>
      %c0_62 = arith.constant 0 : index
      %c0_63 = arith.constant 0 : index
      %160 = vector.load %arg12[%c0_62, %c0_63] : memref<1x256xf32, #tpu.memory_space<vmem>>, vector<1x256xf32>
      %cst_64 = arith.constant dense<0.000000e+00> : vector<32xf32>
      %161 = vector.multi_reduction <add>, %158, %cst_64 [1] : vector<32x256xf32> to vector<32xf32>
      %162 = vector.shape_cast %161 : vector<32xf32> to vector<32x1xf32>
      %cst_65 = arith.constant 2.560000e+02 : f32
      %163 = vector.broadcast %cst_65 : f32 to vector<32x1xf32>
      %164 = arith.divf %162, %163 : vector<32x1xf32>
      %165 = vector.broadcast %164 : vector<32x1xf32> to vector<32x256xf32>
      %166 = arith.subf %158, %165 : vector<32x256xf32>
      %167 = arith.mulf %166, %166 : vector<32x256xf32>
      %cst_66 = arith.constant dense<0.000000e+00> : vector<32xf32>
      %168 = vector.multi_reduction <add>, %167, %cst_66 [1] : vector<32x256xf32> to vector<32xf32>
      %169 = vector.shape_cast %168 : vector<32xf32> to vector<32x1xf32>
      %cst_67 = arith.constant 2.560000e+02 : f32
      %170 = vector.broadcast %cst_67 : f32 to vector<32x1xf32>
      %171 = arith.divf %169, %170 : vector<32x1xf32>
      %172 = vector.broadcast %164 : vector<32x1xf32> to vector<32x256xf32>
      %173 = arith.subf %158, %172 : vector<32x256xf32>
      %cst_68 = arith.constant 9.99999996E-13 : f32
      %174 = vector.broadcast %cst_68 : f32 to vector<32x1xf32>
      %175 = arith.addf %171, %174 : vector<32x1xf32>
      %176 = math.rsqrt %175 : vector<32x1xf32>
      %177 = vector.broadcast %176 : vector<32x1xf32> to vector<32x256xf32>
      %178 = arith.mulf %173, %177 : vector<32x256xf32>
      %179 = vector.broadcast %159 : vector<1x256xf32> to vector<32x256xf32>
      %180 = arith.mulf %178, %179 : vector<32x256xf32>
      %181 = vector.broadcast %160 : vector<1x256xf32> to vector<32x256xf32>
      %182 = arith.addf %180, %181 : vector<32x256xf32>
      %183 = arith.truncf %182 : vector<32x256xf32> to vector<32x256xbf16>
      %c0_69 = arith.constant 0 : index
      %c0_70 = arith.constant 0 : index
      %184 = vector.load %arg18[%c0_69, %c0_70] : memref<32x256xbf16, #tpu.memory_space<vmem>>, vector<32x256xbf16>
      tpu.vector_store %arg18[%c0_69, %c0_70], %183 {strides = array<i32>} : memref<32x256xbf16, #tpu.memory_space<vmem>>, vector<32x256xbf16>,
      %c0_71 = arith.constant 0 : index
      %c0_72 = arith.constant 0 : index
      %185 = vector.load %arg16[%c0_71, %c0_72] : memref<1x256xf32, #tpu.memory_space<vmem>>, vector<1x256xf32>
      %186 = vector.broadcast %185 : vector<1x256xf32> to vector<32x256xf32>
      %187 = arith.addf %158, %186 : vector<32x256xf32>
      %c0_73 = arith.constant 0 : index
      %c0_74 = arith.constant 0 : index
      %188 = vector.load %arg19[%c0_73, %c0_74] : memref<32x256xf32, #tpu.memory_space<vmem>>, vector<32x256xf32>
      tpu.vector_store %arg19[%c0_73, %c0_74], %187 {strides = array<i32>} : memref<32x256xf32, #tpu.memory_space<vmem>>, vector<32x256xf32>,
    } else {
    }
    %c0 = arith.constant 0 : index
    %c0_1 = arith.constant 0 : index
    %3 = vector.load %arg18[%c0, %c0_1] : memref<32x256xbf16, #tpu.memory_space<vmem>>, vector<32x256xbf16>
    %c0_2 = arith.constant 0 : index
    %c0_3 = arith.constant 0 : index
    %4 = vector.load %arg13[%c0_2, %c0_3] : memref<256x512xbf16, #tpu.memory_space<vmem>>, vector<256x512xbf16>
    %cst = arith.constant dense<0.000000e+00> : vector<32x512xf32>
    %5 = tpu.matmul %3, %4, %cst {dimension_numbers = #tpu.dot_dimension_numbers<[1], [0], [0], [1], [0, 0, 1, 1], [], []>} : vector<32x256xbf16>, vector<256x512xbf16>, vector<32x512xf32> -> vector<32x512xf32>
    %c0_4 = arith.constant 0 : index
    %c0_5 = arith.constant 0 : index
    %6 = vector.load %arg14[%c0_4, %c0_5] : memref<1x512xf32, #tpu.memory_space<vmem>>, vector<1x512xf32>
    %7 = vector.broadcast %6 : vector<1x512xf32> to vector<32x512xf32>
    %8 = arith.addf %5, %7 : vector<32x512xf32>
    %9 = arith.mulf %8, %8 : vector<32x512xf32>
    %10 = arith.mulf %8, %9 : vector<32x512xf32>
    %cst_6 = arith.constant 4.471500e-02 : f32
    %11 = vector.broadcast %cst_6 : f32 to vector<32x512xf32>
    %12 = arith.mulf %11, %10 : vector<32x512xf32>
    %13 = arith.addf %8, %12 : vector<32x512xf32>
    %cst_7 = arith.constant 0.797884583 : f32
    %14 = vector.broadcast %cst_7 : f32 to vector<32x512xf32>
    %15 = arith.mulf %14, %13 : vector<32x512xf32>
    %16 = math.tanh %15 : vector<32x512xf32>
    %cst_8 = arith.constant 1.000000e+00 : f32
    %17 = vector.broadcast %cst_8 : f32 to vector<32x512xf32>
    %18 = arith.addf %17, %16 : vector<32x512xf32>
    %cst_9 = arith.constant 5.000000e-01 : f32
    %19 = vector.broadcast %cst_9 : f32 to vector<32x512xf32>
    %20 = arith.mulf %19, %18 : vector<32x512xf32>
    %21 = arith.mulf %8, %20 : vector<32x512xf32>
    %c0_10 = arith.constant 0 : index
    %c0_11 = arith.constant 0 : index
    %22 = vector.load %arg19[%c0_10, %c0_11] : memref<32x256xf32, #tpu.memory_space<vmem>>, vector<32x256xf32>
    %23 = arith.truncf %21 : vector<32x512xf32> to vector<32x512xbf16>
    %c0_12 = arith.constant 0 : index
    %c0_13 = arith.constant 0 : index
    %24 = vector.load %arg15[%c0_12, %c0_13] : memref<512x256xbf16, #tpu.memory_space<vmem>>, vector<512x256xbf16>
    %cst_14 = arith.constant dense<0.000000e+00> : vector<32x256xf32>
    %25 = tpu.matmul %23, %24, %cst_14 {dimension_numbers = #tpu.dot_dimension_numbers<[1], [0], [0], [1], [0, 0, 1, 1], [], []>} : vector<32x512xbf16>, vector<512x256xbf16>, vector<32x256xf32> -> vector<32x256xf32>
    %26 = arith.addf %22, %25 : vector<32x256xf32>
    %c0_15 = arith.constant 0 : index
    %c0_16 = arith.constant 0 : index
    %27 = vector.load %arg19[%c0_15, %c0_16] : memref<32x256xf32, #tpu.memory_space<vmem>>, vector<32x256xf32>
    tpu.vector_store %arg19[%c0_15, %c0_16], %26 {strides = array<i32>} : memref<32x256xf32, #tpu.memory_space<vmem>>, vector<32x256xf32>,
    %c1_i32 = arith.constant 1 : i32
    %28 = arith.cmpi eq, %arg1, %c1_i32 : i32
    %29 = arith.extui %28 : i1 to i32
    %c0_i32_17 = arith.constant 0 : i32
    %30 = arith.cmpi ne, %29, %c0_i32_17 : i32
    scf.if %30 {
      %c0_18 = arith.constant 0 : index
      %c0_19 = arith.constant 0 : index
      %31 = vector.load %arg19[%c0_18, %c0_19] : memref<32x256xf32, #tpu.memory_space<vmem>>, vector<32x256xf32>
      %32 = vector.shape_cast %31 : vector<32x256xf32> to vector<2x16x256xf32>
      %33 = arith.truncf %32 : vector<2x16x256xf32> to vector<2x16x256xbf16>
      %c0_20 = arith.constant 0 : index
      %c0_21 = arith.constant 0 : index
      %c0_22 = arith.constant 0 : index
      %34 = vector.load %arg17[%c0_20, %c0_21, %c0_22] : memref<2x16x256xbf16, #tpu.memory_space<vmem>>, vector<2x16x256xbf16>
      tpu.vector_store %arg17[%c0_20, %c0_21, %c0_22], %33 {strides = array<i32>} : memref<2x16x256xbf16, #tpu.memory_space<vmem>>, vector<2x16x256xbf16>,
    } else {
    }
    return
  }
  func.func @transform_0(%arg0: i32, %arg1: i32) -> (i32, i32, i32) {
    %c0_i32 = arith.constant 0 : i32
    %c0_i32_0 = arith.constant 0 : i32
    %c0_i32_1 = arith.constant 0 : i32
    return %arg0, %c0_i32, %c0_i32_0 : i32, i32, i32
  }
  func.func @transform_1(%arg0: i32, %arg1: i32) -> (i32, i32) {
    %c0_i32 = arith.constant 0 : i32
    %c0_i32_0 = arith.constant 0 : i32
    %c0_i32_1 = arith.constant 0 : i32
    return %c0_i32, %c0_i32_0 : i32, i32
  }
  func.func @transform_2(%arg0: i32, %arg1: i32) -> (i32, i32) {
    %c0_i32 = arith.constant 0 : i32
    %c0_i32_0 = arith.constant 0 : i32
    %c0_i32_1 = arith.constant 0 : i32
    return %c0_i32, %c0_i32_0 : i32, i32
  }
  func.func @transform_3(%arg0: i32, %arg1: i32) -> (i32, i32) {
    %c0_i32 = arith.constant 0 : i32
    %c0_i32_0 = arith.constant 0 : i32
    %c0_i32_1 = arith.constant 0 : i32
    return %c0_i32, %c0_i32_0 : i32, i32
  }
  func.func @transform_4(%arg0: i32, %arg1: i32) -> (i32, i32) {
    %c0_i32 = arith.constant 0 : i32
    %c0_i32_0 = arith.constant 0 : i32
    %c0_i32_1 = arith.constant 0 : i32
    return %c0_i32, %c0_i32_0 : i32, i32
  }
  func.func @transform_5(%arg0: i32, %arg1: i32) -> (i32, i32) {
    %c0_i32 = arith.constant 0 : i32
    %c0_i32_0 = arith.constant 0 : i32
    %c0_i32_1 = arith.constant 0 : i32
    return %c0_i32, %c0_i32_0 : i32, i32
  }
  func.func @transform_6(%arg0: i32, %arg1: i32) -> (i32, i32) {
    %c0_i32 = arith.constant 0 : i32
    %c0_i32_0 = arith.constant 0 : i32
    %c0_i32_1 = arith.constant 0 : i32
    return %c0_i32, %c0_i32_0 : i32, i32
  }
  func.func @transform_7(%arg0: i32, %arg1: i32) -> (i32, i32) {
    %c0_i32 = arith.constant 0 : i32
    %c0_i32_0 = arith.constant 0 : i32
    %c0_i32_1 = arith.constant 0 : i32
    return %c0_i32, %c0_i32_0 : i32, i32
  }
  func.func @transform_8(%arg0: i32, %arg1: i32) -> (i32, i32) {
    %c0_i32 = arith.constant 0 : i32
    %c0_i32_0 = arith.constant 0 : i32
    %c0_i32_1 = arith.constant 0 : i32
    return %c0_i32, %c0_i32_0 : i32, i32
  }
  func.func @transform_9(%arg0: i32, %arg1: i32) -> (i32, i32) {
    %c0_i32 = arith.constant 0 : i32
    %c0_i32_0 = arith.constant 0 : i32
    %c0_i32_1 = arith.constant 0 : i32
    return %c0_i32, %c0_i32_0 : i32, i32
  }
  func.func @transform_10(%arg0: i32, %arg1: i32) -> (i32, i32) {
    %c0_i32 = arith.constant 0 : i32
    %c0_i32_0 = arith.constant 0 : i32
    %c0_i32_1 = arith.constant 0 : i32
    return %c0_i32, %c0_i32_0 : i32, i32
  }
  func.func @transform_11(%arg0: i32, %arg1: i32) -> (i32, i32) {
    %c0_i32 = arith.constant 0 : i32
    %c0_i32_0 = arith.constant 0 : i32
    return %c0_i32, %arg1 : i32, i32
  }
  func.func @transform_12(%arg0: i32, %arg1: i32) -> (i32, i32) {
    %c0_i32 = arith.constant 0 : i32
    %c0_i32_0 = arith.constant 0 : i32
    return %c0_i32, %arg1 : i32, i32
  }
  func.func @transform_13(%arg0: i32, %arg1: i32) -> (i32, i32) {
    %c0_i32 = arith.constant 0 : i32
    %c0_i32_0 = arith.constant 0 : i32
    return %arg1, %c0_i32 : i32, i32
  }
  func.func @transform_14(%arg0: i32, %arg1: i32) -> (i32, i32) {
    %c0_i32 = arith.constant 0 : i32
    %c0_i32_0 = arith.constant 0 : i32
    %c0_i32_1 = arith.constant 0 : i32
    return %c0_i32, %c0_i32_0 : i32, i32
  }
  func.func @transform_15(%arg0: i32, %arg1: i32) -> (i32, i32, i32) {
    %c0_i32 = arith.constant 0 : i32
    %c0_i32_0 = arith.constant 0 : i32
    %c0_i32_1 = arith.constant 0 : i32
    return %arg0, %c0_i32, %c0_i32_0 : i32, i32, i32
  }
}

module attributes {stable_mosaic.version = 11 : i64} {
  func.func @transformer_layer_kernel(%arg0: i32, %arg1: i32, %arg2: memref<2x16x256xbf16, #tpu.memory_space<vmem>>, %arg3: memref<1x256xf32, #tpu.memory_space<vmem>>, %arg4: memref<1x256xf32, #tpu.memory_space<vmem>>, %arg5: memref<1x256xf32, #tpu.memory_space<vmem>>, %arg6: memref<1x256xf32, #tpu.memory_space<vmem>>, %arg7: memref<256x768xbf16, #tpu.memory_space<vmem>>, %arg8: memref<1x768xf32, #tpu.memory_space<vmem>>, %arg9: memref<256x256xbf16, #tpu.memory_space<vmem>>, %arg10: memref<1x256xf32, #tpu.memory_space<vmem>>, %arg11: memref<1x256xf32, #tpu.memory_space<vmem>>, %arg12: memref<1x256xf32, #tpu.memory_space<vmem>>, %arg13: memref<256x512xbf16, #tpu.memory_space<vmem>>, %arg14: memref<1x512xf32, #tpu.memory_space<vmem>>, %arg15: memref<512x256xbf16, #tpu.memory_space<vmem>>, %arg16: memref<1x256xf32, #tpu.memory_space<vmem>>, %arg17: memref<1x256xf32, #tpu.memory_space<vmem>>, %arg18: memref<1x256xf32, #tpu.memory_space<vmem>>, %arg19: memref<256x128xbf16, #tpu.memory_space<vmem>>, %arg20: memref<1x128xf32, #tpu.memory_space<vmem>>, %arg21: memref<2x128xf32, #tpu.memory_space<vmem>>, %arg22: memref<32x256xbf16, #tpu.memory_space<vmem>>, %arg23: memref<32x256xf32, #tpu.memory_space<vmem>>) attributes {dimension_semantics = [#tpu.dimension_semantics<parallel>, #tpu.dimension_semantics<arbitrary>], iteration_bounds = array<i64: 1, 2>, scalar_prefetch = 0 : i64, scratch_operands = 2 : i64, tpu.core_type = #tpu.core_type<tc>, window_params = [{transform_indices = @transform_0, window_bounds = array<i64: 2, 16, 256>}, {pipeline_mode = #tpu.pipeline_mode<synchronous>, transform_indices = @transform_1, window_bounds = array<i64: 1, 256>}, {pipeline_mode = #tpu.pipeline_mode<synchronous>, transform_indices = @transform_2, window_bounds = array<i64: 1, 256>}, {pipeline_mode = #tpu.pipeline_mode<synchronous>, transform_indices = @transform_3, window_bounds = array<i64: 1, 256>}, {pipeline_mode = #tpu.pipeline_mode<synchronous>, transform_indices = @transform_4, window_bounds = array<i64: 1, 256>}, {pipeline_mode = #tpu.pipeline_mode<synchronous>, transform_indices = @transform_5, window_bounds = array<i64: 256, 768>}, {pipeline_mode = #tpu.pipeline_mode<synchronous>, transform_indices = @transform_6, window_bounds = array<i64: 1, 768>}, {pipeline_mode = #tpu.pipeline_mode<synchronous>, transform_indices = @transform_7, window_bounds = array<i64: 256, 256>}, {pipeline_mode = #tpu.pipeline_mode<synchronous>, transform_indices = @transform_8, window_bounds = array<i64: 1, 256>}, {pipeline_mode = #tpu.pipeline_mode<synchronous>, transform_indices = @transform_9, window_bounds = array<i64: 1, 256>}, {pipeline_mode = #tpu.pipeline_mode<synchronous>, transform_indices = @transform_10, window_bounds = array<i64: 1, 256>}, {transform_indices = @transform_11, window_bounds = array<i64: 256, 512>}, {transform_indices = @transform_12, window_bounds = array<i64: 1, 512>}, {transform_indices = @transform_13, window_bounds = array<i64: 512, 256>}, {pipeline_mode = #tpu.pipeline_mode<synchronous>, transform_indices = @transform_14, window_bounds = array<i64: 1, 256>}, {pipeline_mode = #tpu.pipeline_mode<synchronous>, transform_indices = @transform_15, window_bounds = array<i64: 1, 256>}, {pipeline_mode = #tpu.pipeline_mode<synchronous>, transform_indices = @transform_16, window_bounds = array<i64: 1, 256>}, {pipeline_mode = #tpu.pipeline_mode<synchronous>, transform_indices = @transform_17, window_bounds = array<i64: 256, 128>}, {pipeline_mode = #tpu.pipeline_mode<synchronous>, transform_indices = @transform_18, window_bounds = array<i64: 1, 128>}, {transform_indices = @transform_19, window_bounds = array<i64: 2, 128>}]} {
    %c0_i32 = arith.constant 0 : i32
    %0 = arith.cmpi eq, %arg1, %c0_i32 : i32
    %1 = arith.extui %0 : i1 to i32
    %c0_i32_0 = arith.constant 0 : i32
    %2 = arith.cmpi ne, %1, %c0_i32_0 : i32
    scf.if %2 {
      %c0_18 = arith.constant 0 : index
      %c0_19 = arith.constant 0 : index
      %c0_20 = arith.constant 0 : index
      %31 = vector.load %arg2[%c0_18, %c0_19, %c0_20] : memref<2x16x256xbf16, #tpu.memory_space<vmem>>, vector<2x16x256xbf16>
      %32 = vector.shape_cast %31 : vector<2x16x256xbf16> to vector<32x256xbf16>
      %33 = arith.extf %32 : vector<32x256xbf16> to vector<32x256xf32>
      %c0_21 = arith.constant 0 : index
      %c0_22 = arith.constant 0 : index
      %34 = vector.load %arg5[%c0_21, %c0_22] : memref<1x256xf32, #tpu.memory_space<vmem>>, vector<1x256xf32>
      %c0_23 = arith.constant 0 : index
      %c0_24 = arith.constant 0 : index
      %35 = vector.load %arg6[%c0_23, %c0_24] : memref<1x256xf32, #tpu.memory_space<vmem>>, vector<1x256xf32>
      %cst_25 = arith.constant dense<0.000000e+00> : vector<32xf32>
      %36 = vector.multi_reduction <add>, %33, %cst_25 [1] : vector<32x256xf32> to vector<32xf32>
      %37 = vector.shape_cast %36 : vector<32xf32> to vector<32x1xf32>
      %cst_26 = arith.constant 2.560000e+02 : f32
      %38 = vector.broadcast %cst_26 : f32 to vector<32x1xf32>
      %39 = arith.divf %37, %38 : vector<32x1xf32>
      %40 = vector.broadcast %39 : vector<32x1xf32> to vector<32x256xf32>
      %41 = arith.subf %33, %40 : vector<32x256xf32>
      %42 = arith.mulf %41, %41 : vector<32x256xf32>
      %cst_27 = arith.constant dense<0.000000e+00> : vector<32xf32>
      %43 = vector.multi_reduction <add>, %42, %cst_27 [1] : vector<32x256xf32> to vector<32xf32>
      %44 = vector.shape_cast %43 : vector<32xf32> to vector<32x1xf32>
      %cst_28 = arith.constant 2.560000e+02 : f32
      %45 = vector.broadcast %cst_28 : f32 to vector<32x1xf32>
      %46 = arith.divf %44, %45 : vector<32x1xf32>
      %47 = vector.broadcast %39 : vector<32x1xf32> to vector<32x256xf32>
      %48 = arith.subf %33, %47 : vector<32x256xf32>
      %cst_29 = arith.constant 9.99999996E-13 : f32
      %49 = vector.broadcast %cst_29 : f32 to vector<32x1xf32>
      %50 = arith.addf %46, %49 : vector<32x1xf32>
      %51 = math.rsqrt %50 : vector<32x1xf32>
      %52 = vector.broadcast %51 : vector<32x1xf32> to vector<32x256xf32>
      %53 = arith.mulf %48, %52 : vector<32x256xf32>
      %54 = vector.broadcast %34 : vector<1x256xf32> to vector<32x256xf32>
      %55 = arith.mulf %53, %54 : vector<32x256xf32>
      %56 = vector.broadcast %35 : vector<1x256xf32> to vector<32x256xf32>
      %57 = arith.addf %55, %56 : vector<32x256xf32>
      %58 = arith.truncf %57 : vector<32x256xf32> to vector<32x256xbf16>
      %c0_30 = arith.constant 0 : index
      %c0_31 = arith.constant 0 : index
      %59 = vector.load %arg7[%c0_30, %c0_31] : memref<256x768xbf16, #tpu.memory_space<vmem>>, vector<256x768xbf16>
      %cst_32 = arith.constant dense<0.000000e+00> : vector<32x768xf32>
      %60 = tpu.matmul %58, %59, %cst_32 {dimension_numbers = #tpu.dot_dimension_numbers<[1], [0], [0], [1], [0, 0, 1, 1], [], []>} : vector<32x256xbf16>, vector<256x768xbf16>, vector<32x768xf32> -> vector<32x768xf32>
      %c0_33 = arith.constant 0 : index
      %c0_34 = arith.constant 0 : index
      %61 = vector.load %arg8[%c0_33, %c0_34] : memref<1x768xf32, #tpu.memory_space<vmem>>, vector<1x768xf32>
      %62 = vector.broadcast %61 : vector<1x768xf32> to vector<32x768xf32>
      %63 = arith.addf %60, %62 : vector<32x768xf32>
      %64 = vector.extract_strided_slice %63 {offsets = [0, 0], sizes = [32, 256], strides = [1, 1]} : vector<32x768xf32> to vector<32x256xf32>
      %65 = vector.extract_strided_slice %63 {offsets = [0, 256], sizes = [32, 256], strides = [1, 1]} : vector<32x768xf32> to vector<32x256xf32>
      %66 = vector.extract_strided_slice %63 {offsets = [0, 512], sizes = [32, 256], strides = [1, 1]} : vector<32x768xf32> to vector<32x256xf32>
      %67 = vector.shape_cast %64 : vector<32x256xf32> to vector<2x16x2x128xf32>
      %68 = tpu.transpose %67, [0, 2, 1, 3] : vector<2x16x2x128xf32> -> vector<2x2x16x128xf32>
      %69 = vector.shape_cast %68 : vector<2x2x16x128xf32> to vector<4x16x128xf32>
      %70 = arith.truncf %69 : vector<4x16x128xf32> to vector<4x16x128xbf16>
      %71 = vector.shape_cast %65 : vector<32x256xf32> to vector<2x16x2x128xf32>
      %72 = tpu.transpose %71, [0, 2, 1, 3] : vector<2x16x2x128xf32> -> vector<2x2x16x128xf32>
      %73 = vector.shape_cast %72 : vector<2x2x16x128xf32> to vector<4x16x128xf32>
      %74 = arith.truncf %73 : vector<4x16x128xf32> to vector<4x16x128xbf16>
      %75 = vector.shape_cast %66 : vector<32x256xf32> to vector<2x16x2x128xf32>
      %76 = tpu.transpose %75, [0, 2, 1, 3] : vector<2x16x2x128xf32> -> vector<2x2x16x128xf32>
      %77 = vector.shape_cast %76 : vector<2x2x16x128xf32> to vector<4x16x128xf32>
      %78 = arith.truncf %77 : vector<4x16x128xf32> to vector<4x16x128xbf16>
      %cst_35 = arith.constant 0xFF800000 : f32
      %79 = vector.broadcast %cst_35 : f32 to vector<4x16x1xf32>
      %cst_36 = arith.constant 0.000000e+00 : f32
      %80 = vector.broadcast %cst_36 : f32 to vector<4x16x1xf32>
      %cst_37 = arith.constant 0.000000e+00 : f32
      %81 = vector.broadcast %cst_37 : f32 to vector<4x16x128xf32>
      %82 = vector.extract_strided_slice %74 {offsets = [0, 0, 0], sizes = [4, 8, 128], strides = [1, 1, 1]} : vector<4x16x128xbf16> to vector<4x8x128xbf16>
      %83 = vector.extract_strided_slice %78 {offsets = [0, 0, 0], sizes = [4, 8, 128], strides = [1, 1, 1]} : vector<4x16x128xbf16> to vector<4x8x128xbf16>
      "tpu.trace_start"() <{level = 10 : i32, message = "bqd,bkd->bqk"}> : () -> ()
      %cst_38 = arith.constant dense<0.000000e+00> : vector<4x16x8xf32>
      %84 = tpu.matmul %70, %82, %cst_38 {dimension_numbers = #tpu.dot_dimension_numbers<[2], [2], [1], [1], [0, 0, 0, 1, 1, 1], [0], [0]>} : vector<4x16x128xbf16>, vector<4x8x128xbf16>, vector<4x16x8xf32> -> vector<4x16x8xf32>
      "tpu.trace_stop"() : () -> ()
      %cst_39 = arith.constant dense<0xFF800000> : vector<4x16xf32>
      %85 = vector.multi_reduction <maximumf>, %84, %cst_39 [2] : vector<4x16x8xf32> to vector<4x16xf32>
      %86 = vector.shape_cast %85 : vector<4x16xf32> to vector<4x16x1xf32>
      %87 = arith.maximumf %79, %86 : vector<4x16x1xf32>
      %88 = arith.subf %79, %87 : vector<4x16x1xf32>
      %89 = math.exp %88 : vector<4x16x1xf32>
      %90 = vector.broadcast %87 : vector<4x16x1xf32> to vector<4x16x8xf32>
      %91 = arith.subf %84, %90 : vector<4x16x8xf32>
      %92 = math.exp %91 : vector<4x16x8xf32>
      %93 = arith.mulf %89, %80 : vector<4x16x1xf32>
      %cst_40 = arith.constant dense<0.000000e+00> : vector<4x16xf32>
      %94 = vector.multi_reduction <add>, %92, %cst_40 [2] : vector<4x16x8xf32> to vector<4x16xf32>
      %95 = vector.shape_cast %94 : vector<4x16xf32> to vector<4x16x1xf32>
      %96 = arith.addf %93, %95 : vector<4x16x1xf32>
      %97 = vector.broadcast %89 : vector<4x16x1xf32> to vector<4x16x128xf32>
      %98 = arith.mulf %97, %81 : vector<4x16x128xf32>
      %99 = arith.truncf %92 : vector<4x16x8xf32> to vector<4x16x8xbf16>
      "tpu.trace_start"() <{level = 10 : i32, message = "bqk,bkd->bqd"}> : () -> ()
      %cst_41 = arith.constant dense<0.000000e+00> : vector<4x16x128xf32>
      %100 = tpu.matmul %99, %83, %cst_41 {dimension_numbers = #tpu.dot_dimension_numbers<[2], [1], [1], [2], [0, 0, 0, 1, 1, 2], [0], [0]>} : vector<4x16x8xbf16>, vector<4x8x128xbf16>, vector<4x16x128xf32> -> vector<4x16x128xf32>
      "tpu.trace_stop"() : () -> ()
      %101 = arith.addf %98, %100 : vector<4x16x128xf32>
      %102 = vector.extract_strided_slice %74 {offsets = [0, 8, 0], sizes = [4, 8, 128], strides = [1, 1, 1]} : vector<4x16x128xbf16> to vector<4x8x128xbf16>
      %103 = vector.extract_strided_slice %78 {offsets = [0, 8, 0], sizes = [4, 8, 128], strides = [1, 1, 1]} : vector<4x16x128xbf16> to vector<4x8x128xbf16>
      "tpu.trace_start"() <{level = 10 : i32, message = "bqd,bkd->bqk"}> : () -> ()
      %cst_42 = arith.constant dense<0.000000e+00> : vector<4x16x8xf32>
      %104 = tpu.matmul %70, %102, %cst_42 {dimension_numbers = #tpu.dot_dimension_numbers<[2], [2], [1], [1], [0, 0, 0, 1, 1, 1], [0], [0]>} : vector<4x16x128xbf16>, vector<4x8x128xbf16>, vector<4x16x8xf32> -> vector<4x16x8xf32>
      "tpu.trace_stop"() : () -> ()
      %cst_43 = arith.constant dense<0xFF800000> : vector<4x16xf32>
      %105 = vector.multi_reduction <maximumf>, %104, %cst_43 [2] : vector<4x16x8xf32> to vector<4x16xf32>
      %106 = vector.shape_cast %105 : vector<4x16xf32> to vector<4x16x1xf32>
      %107 = arith.maximumf %87, %106 : vector<4x16x1xf32>
      %108 = arith.subf %87, %107 : vector<4x16x1xf32>
      %109 = math.exp %108 : vector<4x16x1xf32>
      %110 = vector.broadcast %107 : vector<4x16x1xf32> to vector<4x16x8xf32>
      %111 = arith.subf %104, %110 : vector<4x16x8xf32>
      %112 = math.exp %111 : vector<4x16x8xf32>
      %113 = arith.mulf %109, %96 : vector<4x16x1xf32>
      %cst_44 = arith.constant dense<0.000000e+00> : vector<4x16xf32>
      %114 = vector.multi_reduction <add>, %112, %cst_44 [2] : vector<4x16x8xf32> to vector<4x16xf32>
      %115 = vector.shape_cast %114 : vector<4x16xf32> to vector<4x16x1xf32>
      %116 = arith.addf %113, %115 : vector<4x16x1xf32>
      %117 = vector.broadcast %109 : vector<4x16x1xf32> to vector<4x16x128xf32>
      %118 = arith.mulf %117, %101 : vector<4x16x128xf32>
      %119 = arith.truncf %112 : vector<4x16x8xf32> to vector<4x16x8xbf16>
      "tpu.trace_start"() <{level = 10 : i32, message = "bqk,bkd->bqd"}> : () -> ()
      %cst_45 = arith.constant dense<0.000000e+00> : vector<4x16x128xf32>
      %120 = tpu.matmul %119, %103, %cst_45 {dimension_numbers = #tpu.dot_dimension_numbers<[2], [1], [1], [2], [0, 0, 0, 1, 1, 2], [0], [0]>} : vector<4x16x8xbf16>, vector<4x8x128xbf16>, vector<4x16x128xf32> -> vector<4x16x128xf32>
      "tpu.trace_stop"() : () -> ()
      %121 = arith.addf %118, %120 : vector<4x16x128xf32>
      %122 = tpu.reciprocal %116 {approx = true} : vector<4x16x1xf32> -> vector<4x16x1xf32>
      %123 = vector.broadcast %122 : vector<4x16x1xf32> to vector<4x16x128xf32>
      %124 = arith.mulf %121, %123 : vector<4x16x128xf32>
      %125 = vector.shape_cast %124 : vector<4x16x128xf32> to vector<2x2x16x128xf32>
      %126 = tpu.transpose %125, [0, 2, 1, 3] : vector<2x2x16x128xf32> -> vector<2x16x2x128xf32>
      %127 = vector.shape_cast %126 : vector<2x16x2x128xf32> to vector<32x256xf32>
      %128 = arith.truncf %127 : vector<32x256xf32> to vector<32x256xbf16>
      %c0_46 = arith.constant 0 : index
      %c0_47 = arith.constant 0 : index
      %129 = vector.load %arg9[%c0_46, %c0_47] : memref<256x256xbf16, #tpu.memory_space<vmem>>, vector<256x256xbf16>
      %cst_48 = arith.constant dense<0.000000e+00> : vector<32x256xf32>
      %130 = tpu.matmul %128, %129, %cst_48 {dimension_numbers = #tpu.dot_dimension_numbers<[1], [0], [0], [1], [0, 0, 1, 1], [], []>} : vector<32x256xbf16>, vector<256x256xbf16>, vector<32x256xf32> -> vector<32x256xf32>
      %c0_49 = arith.constant 0 : index
      %c0_50 = arith.constant 0 : index
      %131 = vector.load %arg10[%c0_49, %c0_50] : memref<1x256xf32, #tpu.memory_space<vmem>>, vector<1x256xf32>
      %132 = vector.broadcast %131 : vector<1x256xf32> to vector<32x256xf32>
      %133 = arith.addf %130, %132 : vector<32x256xf32>
      %134 = arith.addf %33, %133 : vector<32x256xf32>
      %c0_51 = arith.constant 0 : index
      %c0_52 = arith.constant 0 : index
      %135 = vector.load %arg11[%c0_51, %c0_52] : memref<1x256xf32, #tpu.memory_space<vmem>>, vector<1x256xf32>
      %c0_53 = arith.constant 0 : index
      %c0_54 = arith.constant 0 : index
      %136 = vector.load %arg12[%c0_53, %c0_54] : memref<1x256xf32, #tpu.memory_space<vmem>>, vector<1x256xf32>
      %cst_55 = arith.constant dense<0.000000e+00> : vector<32xf32>
      %137 = vector.multi_reduction <add>, %134, %cst_55 [1] : vector<32x256xf32> to vector<32xf32>
      %138 = vector.shape_cast %137 : vector<32xf32> to vector<32x1xf32>
      %cst_56 = arith.constant 2.560000e+02 : f32
      %139 = vector.broadcast %cst_56 : f32 to vector<32x1xf32>
      %140 = arith.divf %138, %139 : vector<32x1xf32>
      %141 = vector.broadcast %140 : vector<32x1xf32> to vector<32x256xf32>
      %142 = arith.subf %134, %141 : vector<32x256xf32>
      %143 = arith.mulf %142, %142 : vector<32x256xf32>
      %cst_57 = arith.constant dense<0.000000e+00> : vector<32xf32>
      %144 = vector.multi_reduction <add>, %143, %cst_57 [1] : vector<32x256xf32> to vector<32xf32>
      %145 = vector.shape_cast %144 : vector<32xf32> to vector<32x1xf32>
      %cst_58 = arith.constant 2.560000e+02 : f32
      %146 = vector.broadcast %cst_58 : f32 to vector<32x1xf32>
      %147 = arith.divf %145, %146 : vector<32x1xf32>
      %148 = vector.broadcast %140 : vector<32x1xf32> to vector<32x256xf32>
      %149 = arith.subf %134, %148 : vector<32x256xf32>
      %cst_59 = arith.constant 9.99999996E-13 : f32
      %150 = vector.broadcast %cst_59 : f32 to vector<32x1xf32>
      %151 = arith.addf %147, %150 : vector<32x1xf32>
      %152 = math.rsqrt %151 : vector<32x1xf32>
      %153 = vector.broadcast %152 : vector<32x1xf32> to vector<32x256xf32>
      %154 = arith.mulf %149, %153 : vector<32x256xf32>
      %155 = vector.broadcast %135 : vector<1x256xf32> to vector<32x256xf32>
      %156 = arith.mulf %154, %155 : vector<32x256xf32>
      %157 = vector.broadcast %136 : vector<1x256xf32> to vector<32x256xf32>
      %158 = arith.addf %156, %157 : vector<32x256xf32>
      %159 = arith.truncf %158 : vector<32x256xf32> to vector<32x256xbf16>
      %c0_60 = arith.constant 0 : index
      %c0_61 = arith.constant 0 : index
      %160 = vector.load %arg22[%c0_60, %c0_61] : memref<32x256xbf16, #tpu.memory_space<vmem>>, vector<32x256xbf16>
      tpu.vector_store %arg22[%c0_60, %c0_61], %159 {strides = array<i32>} : memref<32x256xbf16, #tpu.memory_space<vmem>>, vector<32x256xbf16>,
      %c0_62 = arith.constant 0 : index
      %c0_63 = arith.constant 0 : index
      %161 = vector.load %arg16[%c0_62, %c0_63] : memref<1x256xf32, #tpu.memory_space<vmem>>, vector<1x256xf32>
      %162 = vector.broadcast %161 : vector<1x256xf32> to vector<32x256xf32>
      %163 = arith.addf %134, %162 : vector<32x256xf32>
      %c0_64 = arith.constant 0 : index
      %c0_65 = arith.constant 0 : index
      %164 = vector.load %arg23[%c0_64, %c0_65] : memref<32x256xf32, #tpu.memory_space<vmem>>, vector<32x256xf32>
      tpu.vector_store %arg23[%c0_64, %c0_65], %163 {strides = array<i32>} : memref<32x256xf32, #tpu.memory_space<vmem>>, vector<32x256xf32>,
    } else {
    }
    %c0 = arith.constant 0 : index
    %c0_1 = arith.constant 0 : index
    %3 = vector.load %arg22[%c0, %c0_1] : memref<32x256xbf16, #tpu.memory_space<vmem>>, vector<32x256xbf16>
    %c0_2 = arith.constant 0 : index
    %c0_3 = arith.constant 0 : index
    %4 = vector.load %arg13[%c0_2, %c0_3] : memref<256x512xbf16, #tpu.memory_space<vmem>>, vector<256x512xbf16>
    %cst = arith.constant dense<0.000000e+00> : vector<32x512xf32>
    %5 = tpu.matmul %3, %4, %cst {dimension_numbers = #tpu.dot_dimension_numbers<[1], [0], [0], [1], [0, 0, 1, 1], [], []>} : vector<32x256xbf16>, vector<256x512xbf16>, vector<32x512xf32> -> vector<32x512xf32>
    %c0_4 = arith.constant 0 : index
    %c0_5 = arith.constant 0 : index
    %6 = vector.load %arg14[%c0_4, %c0_5] : memref<1x512xf32, #tpu.memory_space<vmem>>, vector<1x512xf32>
    %7 = vector.broadcast %6 : vector<1x512xf32> to vector<32x512xf32>
    %8 = arith.addf %5, %7 : vector<32x512xf32>
    %9 = arith.mulf %8, %8 : vector<32x512xf32>
    %10 = arith.mulf %8, %9 : vector<32x512xf32>
    %cst_6 = arith.constant 4.471500e-02 : f32
    %11 = vector.broadcast %cst_6 : f32 to vector<32x512xf32>
    %12 = arith.mulf %11, %10 : vector<32x512xf32>
    %13 = arith.addf %8, %12 : vector<32x512xf32>
    %cst_7 = arith.constant 0.797884583 : f32
    %14 = vector.broadcast %cst_7 : f32 to vector<32x512xf32>
    %15 = arith.mulf %14, %13 : vector<32x512xf32>
    %16 = math.tanh %15 : vector<32x512xf32>
    %cst_8 = arith.constant 1.000000e+00 : f32
    %17 = vector.broadcast %cst_8 : f32 to vector<32x512xf32>
    %18 = arith.addf %17, %16 : vector<32x512xf32>
    %cst_9 = arith.constant 5.000000e-01 : f32
    %19 = vector.broadcast %cst_9 : f32 to vector<32x512xf32>
    %20 = arith.mulf %19, %18 : vector<32x512xf32>
    %21 = arith.mulf %8, %20 : vector<32x512xf32>
    %c0_10 = arith.constant 0 : index
    %c0_11 = arith.constant 0 : index
    %22 = vector.load %arg23[%c0_10, %c0_11] : memref<32x256xf32, #tpu.memory_space<vmem>>, vector<32x256xf32>
    %23 = arith.truncf %21 : vector<32x512xf32> to vector<32x512xbf16>
    %c0_12 = arith.constant 0 : index
    %c0_13 = arith.constant 0 : index
    %24 = vector.load %arg15[%c0_12, %c0_13] : memref<512x256xbf16, #tpu.memory_space<vmem>>, vector<512x256xbf16>
    %cst_14 = arith.constant dense<0.000000e+00> : vector<32x256xf32>
    %25 = tpu.matmul %23, %24, %cst_14 {dimension_numbers = #tpu.dot_dimension_numbers<[1], [0], [0], [1], [0, 0, 1, 1], [], []>} : vector<32x512xbf16>, vector<512x256xbf16>, vector<32x256xf32> -> vector<32x256xf32>
    %26 = arith.addf %22, %25 : vector<32x256xf32>
    %c0_15 = arith.constant 0 : index
    %c0_16 = arith.constant 0 : index
    %27 = vector.load %arg23[%c0_15, %c0_16] : memref<32x256xf32, #tpu.memory_space<vmem>>, vector<32x256xf32>
    tpu.vector_store %arg23[%c0_15, %c0_16], %26 {strides = array<i32>} : memref<32x256xf32, #tpu.memory_space<vmem>>, vector<32x256xf32>,
    %c1_i32 = arith.constant 1 : i32
    %28 = arith.cmpi eq, %arg1, %c1_i32 : i32
    %29 = arith.extui %28 : i1 to i32
    %c0_i32_17 = arith.constant 0 : i32
    %30 = arith.cmpi ne, %29, %c0_i32_17 : i32
    scf.if %30 {
      %c0_18 = arith.constant 0 : index
      %c0_19 = arith.constant 0 : index
      %31 = vector.load %arg23[%c0_18, %c0_19] : memref<32x256xf32, #tpu.memory_space<vmem>>, vector<32x256xf32>
      %32 = vector.shape_cast %31 : vector<32x256xf32> to vector<2x16x256xf32>
      %33 = vector.extract_strided_slice %32 {offsets = [0, 0, 0], sizes = [2, 1, 256], strides = [1, 1, 1]} : vector<2x16x256xf32> to vector<2x1x256xf32>
      %34 = vector.shape_cast %33 : vector<2x1x256xf32> to vector<2x256xf32>
      %c0_20 = arith.constant 0 : index
      %c0_21 = arith.constant 0 : index
      %35 = vector.load %arg17[%c0_20, %c0_21] : memref<1x256xf32, #tpu.memory_space<vmem>>, vector<1x256xf32>
      %c0_22 = arith.constant 0 : index
      %c0_23 = arith.constant 0 : index
      %36 = vector.load %arg18[%c0_22, %c0_23] : memref<1x256xf32, #tpu.memory_space<vmem>>, vector<1x256xf32>
      %cst_24 = arith.constant dense<0.000000e+00> : vector<2xf32>
      %37 = vector.multi_reduction <add>, %34, %cst_24 [1] : vector<2x256xf32> to vector<2xf32>
      %38 = vector.shape_cast %37 : vector<2xf32> to vector<2x1xf32>
      %cst_25 = arith.constant 2.560000e+02 : f32
      %39 = vector.broadcast %cst_25 : f32 to vector<2x1xf32>
      %40 = arith.divf %38, %39 : vector<2x1xf32>
      %41 = vector.broadcast %40 : vector<2x1xf32> to vector<2x256xf32>
      %42 = arith.subf %34, %41 : vector<2x256xf32>
      %43 = arith.mulf %42, %42 : vector<2x256xf32>
      %cst_26 = arith.constant dense<0.000000e+00> : vector<2xf32>
      %44 = vector.multi_reduction <add>, %43, %cst_26 [1] : vector<2x256xf32> to vector<2xf32>
      %45 = vector.shape_cast %44 : vector<2xf32> to vector<2x1xf32>
      %cst_27 = arith.constant 2.560000e+02 : f32
      %46 = vector.broadcast %cst_27 : f32 to vector<2x1xf32>
      %47 = arith.divf %45, %46 : vector<2x1xf32>
      %48 = vector.broadcast %40 : vector<2x1xf32> to vector<2x256xf32>
      %49 = arith.subf %34, %48 : vector<2x256xf32>
      %cst_28 = arith.constant 9.99999996E-13 : f32
      %50 = vector.broadcast %cst_28 : f32 to vector<2x1xf32>
      %51 = arith.addf %47, %50 : vector<2x1xf32>
      %52 = math.rsqrt %51 : vector<2x1xf32>
      %53 = vector.broadcast %52 : vector<2x1xf32> to vector<2x256xf32>
      %54 = arith.mulf %49, %53 : vector<2x256xf32>
      %55 = vector.broadcast %35 : vector<1x256xf32> to vector<2x256xf32>
      %56 = arith.mulf %54, %55 : vector<2x256xf32>
      %57 = vector.broadcast %36 : vector<1x256xf32> to vector<2x256xf32>
      %58 = arith.addf %56, %57 : vector<2x256xf32>
      %cst_29 = arith.constant 0.000000e+00 : f32
      %59 = vector.broadcast %cst_29 : f32 to vector<2x256xf32>
      %60 = arith.maximumf %58, %59 : vector<2x256xf32>
      %61 = arith.truncf %60 : vector<2x256xf32> to vector<2x256xbf16>
      %c0_30 = arith.constant 0 : index
      %c0_31 = arith.constant 0 : index
      %62 = vector.load %arg19[%c0_30, %c0_31] : memref<256x128xbf16, #tpu.memory_space<vmem>>, vector<256x128xbf16>
      %cst_32 = arith.constant dense<0.000000e+00> : vector<2x128xf32>
      %63 = tpu.matmul %61, %62, %cst_32 {dimension_numbers = #tpu.dot_dimension_numbers<[1], [0], [0], [1], [0, 0, 1, 1], [], []>} : vector<2x256xbf16>, vector<256x128xbf16>, vector<2x128xf32> -> vector<2x128xf32>
      %c0_33 = arith.constant 0 : index
      %c0_34 = arith.constant 0 : index
      %64 = vector.load %arg20[%c0_33, %c0_34] : memref<1x128xf32, #tpu.memory_space<vmem>>, vector<1x128xf32>
      %65 = vector.broadcast %64 : vector<1x128xf32> to vector<2x128xf32>
      %66 = arith.addf %63, %65 : vector<2x128xf32>
      %c0_35 = arith.constant 0 : index
      %c0_36 = arith.constant 0 : index
      %67 = vector.load %arg21[%c0_35, %c0_36] : memref<2x128xf32, #tpu.memory_space<vmem>>, vector<2x128xf32>
      tpu.vector_store %arg21[%c0_35, %c0_36], %66 {strides = array<i32>} : memref<2x128xf32, #tpu.memory_space<vmem>>, vector<2x128xf32>,
    } else {
    }
    return
  }
  func.func @transform_0(%arg0: i32, %arg1: i32) -> (i32, i32, i32) {
    %c0_i32 = arith.constant 0 : i32
    %c0_i32_0 = arith.constant 0 : i32
    %c0_i32_1 = arith.constant 0 : i32
    return %arg0, %c0_i32, %c0_i32_0 : i32, i32, i32
  }
  func.func @transform_1(%arg0: i32, %arg1: i32) -> (i32, i32) {
    %c0_i32 = arith.constant 0 : i32
    %c0_i32_0 = arith.constant 0 : i32
    %c0_i32_1 = arith.constant 0 : i32
    return %c0_i32, %c0_i32_0 : i32, i32
  }
  func.func @transform_2(%arg0: i32, %arg1: i32) -> (i32, i32) {
    %c0_i32 = arith.constant 0 : i32
    %c0_i32_0 = arith.constant 0 : i32
    %c0_i32_1 = arith.constant 0 : i32
    return %c0_i32, %c0_i32_0 : i32, i32
  }
  func.func @transform_3(%arg0: i32, %arg1: i32) -> (i32, i32) {
    %c0_i32 = arith.constant 0 : i32
    %c0_i32_0 = arith.constant 0 : i32
    %c0_i32_1 = arith.constant 0 : i32
    return %c0_i32, %c0_i32_0 : i32, i32
  }
  func.func @transform_4(%arg0: i32, %arg1: i32) -> (i32, i32) {
    %c0_i32 = arith.constant 0 : i32
    %c0_i32_0 = arith.constant 0 : i32
    %c0_i32_1 = arith.constant 0 : i32
    return %c0_i32, %c0_i32_0 : i32, i32
  }
  func.func @transform_5(%arg0: i32, %arg1: i32) -> (i32, i32) {
    %c0_i32 = arith.constant 0 : i32
    %c0_i32_0 = arith.constant 0 : i32
    %c0_i32_1 = arith.constant 0 : i32
    return %c0_i32, %c0_i32_0 : i32, i32
  }
  func.func @transform_6(%arg0: i32, %arg1: i32) -> (i32, i32) {
    %c0_i32 = arith.constant 0 : i32
    %c0_i32_0 = arith.constant 0 : i32
    %c0_i32_1 = arith.constant 0 : i32
    return %c0_i32, %c0_i32_0 : i32, i32
  }
  func.func @transform_7(%arg0: i32, %arg1: i32) -> (i32, i32) {
    %c0_i32 = arith.constant 0 : i32
    %c0_i32_0 = arith.constant 0 : i32
    %c0_i32_1 = arith.constant 0 : i32
    return %c0_i32, %c0_i32_0 : i32, i32
  }
  func.func @transform_8(%arg0: i32, %arg1: i32) -> (i32, i32) {
    %c0_i32 = arith.constant 0 : i32
    %c0_i32_0 = arith.constant 0 : i32
    %c0_i32_1 = arith.constant 0 : i32
    return %c0_i32, %c0_i32_0 : i32, i32
  }
  func.func @transform_9(%arg0: i32, %arg1: i32) -> (i32, i32) {
    %c0_i32 = arith.constant 0 : i32
    %c0_i32_0 = arith.constant 0 : i32
    %c0_i32_1 = arith.constant 0 : i32
    return %c0_i32, %c0_i32_0 : i32, i32
  }
  func.func @transform_10(%arg0: i32, %arg1: i32) -> (i32, i32) {
    %c0_i32 = arith.constant 0 : i32
    %c0_i32_0 = arith.constant 0 : i32
    %c0_i32_1 = arith.constant 0 : i32
    return %c0_i32, %c0_i32_0 : i32, i32
  }
  func.func @transform_11(%arg0: i32, %arg1: i32) -> (i32, i32) {
    %c0_i32 = arith.constant 0 : i32
    %c0_i32_0 = arith.constant 0 : i32
    return %c0_i32, %arg1 : i32, i32
  }
  func.func @transform_12(%arg0: i32, %arg1: i32) -> (i32, i32) {
    %c0_i32 = arith.constant 0 : i32
    %c0_i32_0 = arith.constant 0 : i32
    return %c0_i32, %arg1 : i32, i32
  }
  func.func @transform_13(%arg0: i32, %arg1: i32) -> (i32, i32) {
    %c0_i32 = arith.constant 0 : i32
    %c0_i32_0 = arith.constant 0 : i32
    return %arg1, %c0_i32 : i32, i32
  }
  func.func @transform_14(%arg0: i32, %arg1: i32) -> (i32, i32) {
    %c0_i32 = arith.constant 0 : i32
    %c0_i32_0 = arith.constant 0 : i32
    %c0_i32_1 = arith.constant 0 : i32
    return %c0_i32, %c0_i32_0 : i32, i32
  }
  func.func @transform_15(%arg0: i32, %arg1: i32) -> (i32, i32) {
    %c0_i32 = arith.constant 0 : i32
    %c0_i32_0 = arith.constant 0 : i32
    %c0_i32_1 = arith.constant 0 : i32
    return %c0_i32, %c0_i32_0 : i32, i32
  }
  func.func @transform_16(%arg0: i32, %arg1: i32) -> (i32, i32) {
    %c0_i32 = arith.constant 0 : i32
    %c0_i32_0 = arith.constant 0 : i32
    %c0_i32_1 = arith.constant 0 : i32
    return %c0_i32, %c0_i32_0 : i32, i32
  }
  func.func @transform_17(%arg0: i32, %arg1: i32) -> (i32, i32) {
    %c0_i32 = arith.constant 0 : i32
    %c0_i32_0 = arith.constant 0 : i32
    %c0_i32_1 = arith.constant 0 : i32
    return %c0_i32, %c0_i32_0 : i32, i32
  }
  func.func @transform_18(%arg0: i32, %arg1: i32) -> (i32, i32) {
    %c0_i32 = arith.constant 0 : i32
    %c0_i32_0 = arith.constant 0 : i32
    %c0_i32_1 = arith.constant 0 : i32
    return %c0_i32, %c0_i32_0 : i32, i32
  }
  func.func @transform_19(%arg0: i32, %arg1: i32) -> (i32, i32) {
    %c0_i32 = arith.constant 0 : i32
    %c0_i32_0 = arith.constant 0 : i32
    return %arg0, %c0_i32 : i32, i32
  }
}

</mosaic_0001>

<bundles_post_ra>
// kernel: fungenetyper_forward.2
= control target key start
LH: loop header
LB: loop body
LE: loop exit
PB: predicated region body
PF: predicated region fallthrough
CT: control target
= control target key end

     0   :  { %s9354_s0 = inlined_call_operand.vmem [shape: bf16[2,16,256], index: 0, kind: input, shape index: {}]   ;;  %s9355_s1 = inlined_call_operand.vmem [shape: f32[1,256], index: 1, kind: input, shape index: {}]   ;;  %s9356_s2 = inlined_call_operand.vmem [shape: f32[1,256], index: 2, kind: input, shape index: {}]   ;;  %s9357_s3 = inlined_call_operand.vmem [shape: f32[1,256], index: 3, kind: input, shape index: {}]   ;;  %s9358_s4 = inlined_call_operand.vmem [shape: f32[1,256], index: 4, kind: input, shape index: {}]   ;;  %s9359_s5 = inlined_call_operand.vmem [shape: bf16[256,768], index: 5, kind: input, shape index: {}]   ;;  %s9360_s6 = inlined_call_operand.vmem [shape: f32[1,768], index: 6, kind: input, shape index: {}]   ;;  %s9361_s7 = inlined_call_operand.vmem [shape: bf16[256,256], index: 7, kind: input, shape index: {}]   ;;  %s9362_s8 = inlined_call_operand.vmem [shape: f32[1,256], index: 8, kind: input, shape index: {}]   ;;  %s9363_s9 = inlined_call_operand.vmem [shape: f32[1,256], index: 9, kind: input, shape index: {}]   ;;  %s9364_s10 = inlined_call_operand.vmem [shape: f32[1,256], index: 10, kind: input, shape index: {}]   ;;  %s9365_s11 = inlined_call_operand.hbm [shape: bf16[256,1024], index: 11, kind: input, shape index: {}]   ;;  %s9366_s12 = inlined_call_operand.vmem [shape: f32[1,1024], index: 12, kind: input, shape index: {}]   ;;  %s9367_s13 = inlined_call_operand.hbm [shape: bf16[1024,256], index: 13, kind: input, shape index: {}]   ;;  %s9368_s14 = inlined_call_operand.vmem [shape: f32[1,256], index: 14, kind: input, shape index: {}]   ;;  %s9369_s15 = inlined_call_operand.vmem [shape: bf16[2,16,256], index: 15, kind: output, shape index: {}]  }
   0x1   :  { %9383 = sst [smem:[#allocation19_spill]] %s9360_s6 }
   0x2   :  { %9384 = sst [smem:[#allocation20_spill]] %s9361_s7 }
   0x3   :  { %9385 = sst [smem:[#allocation21_spill]] %s9362_s8 }
   0x4   :  { %9386 = sst [smem:[#allocation22_spill]] %s9363_s9 }
   0x5   :  { %9387 = sst [smem:[#allocation23_spill]] %s9364_s10 }
   0x6   :  { %9388 = sst [smem:[#allocation24_spill]] %s9365_s11 }
   0x7   :  { %9389 = sst [smem:[#allocation25_spill]] %s9368_s14 }
   0x8   :  { %9390 = sst [smem:[#allocation26_spill]] %s9369_s15 }
   0x9   :  { %20 = vsyncpa [#allocation5], 0 }
   0xa   :  { %22 = vsyncpa [#allocation5 + $0x1], 0 }
   0xb   :  { %23 = vsyncpa [#allocation7], 0 }
   0xc   :  { %25 = vsyncpa [#allocation7 + $0x1], 0  ;;  %s7547_s18 = smov 0   ;;  %s7549_s19 = smov 0  }
   0xd   :  { %s7551_s20 = smov 0   ;;  %s7553_s21 = smov 0  }
   0xe   :  { %s7555_s22 = smov 0   ;;  %s7557_s23 = smov 0  }
   0xf LB: > { %9391 = sst [smem:[#allocation10_spill]] %s7442_s20  ;;  %s6281_s24 = sadd.s32 4294967295, %s7454_s23   ;;  %s7454_s23 = sphi %s7557_s23, %s31_s23   ;;  %s7450_s22 = sphi %s7555_s22, %s9433_s22   ;;  %s7446_s21 = sphi %s7553_s21, %s9432_s21   ;;  %s7442_s20 = sphi %s7551_s20, %s9428_s20   ;;  %s7438_s19 = sphi %s7549_s19, %s9431_s19   ;;  %s7434_s18 = sphi %s7547_s18, %s9430_s18  }
  0x10   : > { %s40_s25 = sadd.s32 1, %s7450_s22  ;;  %s286_s26 = sadd.s32 1, %s7442_s20 }
  0x11   : > { %p41_p0 = scmp.ge.s32.totalorder %s40_s25, 2  ;;  %p293_p1 = scmp.ne.s32.totalorder %s7442_s20, %s7438_s19 }
  0x12   : > { %p294_p2 = scmp.eq.s32.totalorder %s7454_s23, 0  ;;  %p299_p4 = scmp.ne.s32.totalorder %s7438_s19, %s7434_s18 }
  0x13   : > { %s9435_s25 = smov (%p41_p0, %s40_s25), 0  ;;  %p300_p5 = scmp.eq.s32.totalorder %s6281_s24, 0 }
  0x14   : > { %9392 = sst [smem:[#allocation11_spill]] %s9435_s25  ;;  %p7583_p3 = por %p294_p2, %p293_p1 }
  0x15   : > { %s283_s28 = ssub.s32 %s7450_s22, %s9435_s25  ;;  %p7590_p7 = por %p300_p5, %p299_p4 }
  0x16   : > { %p284_p6 = scmp.eq.s32.totalorder %s283_s28, 0  ;;  %p6760_p8 = scmp.lt.s32.totalorder %s7454_s23, 2 }
  0x17   : > { %s7599_s16 = sand.u32 1, %s7442_s20   ;;  %s6610_s17 = sshll.u32 %s7450_s22, 8 }
  0x18   : > { %s7596_s30 = scalar_select %p284_p6, %s7442_s20, %s286_s26  }
  0x19   : > { %s9372_s15 = sshll.u32 %s7599_s16, 9  ;;  %s9396_s11 = sld [smem:[#allocation24_spill]] }
  0x1a   : > { %9395 = sst [smem:[#allocation12_spill]] %s7596_s30  ;;  %s469_s24 = scalar_lea.vmem [#allocation4], %s9372_s15 }
  0x1b   : > { %s476_s28 = sshll.u32 %s469_s24, 4  ;;  %p7610_p9 = pnand %p6760_p8, %p7583_p3  ;;  %s477_s28 = int_to_ptr.vmem [resolvable:$true] %s476_s28 }
  0x1c   : > { %p6292_p10 = scmp.ge.s32.totalorder %s7454_s23, 1  ;;  %s466_s26 = scalar_lea.sflag [#allocation5], %s7599_s16 }
  0x1d   : > { %p7346_p11 = pneg %p7610_p9  ;;  %s7357_s30 = scalar_lea.vmem %s477_s28, 8192 }
  0x1e   : > { %p7358_p12 = scmp.ne.s32.totalorder %s477_s28, %s7357_s30  ;;  %s7456_s9 = smov [#allocation4]  }
  0x1f   : > { %s475_s18 = scalar_lea.hbm %s9396_s11, %s6610_s17  ;;  %s7362_s10 = sshll.u32 %s7456_s9, 4  ;;  %s7363_s10 = int_to_ptr.vmem [resolvable:$false] %s7362_s10 }
  0x20   : > { %p7360_p13 = pnand %p7358_p12, %p7346_p11  ;;  %s7364_s27 = scalar_lea.vmem %s7363_s10, 16384 }
  0x21   : > { %p7365_p1 = scmp.lt.s32.totalorder %s477_s28, %s7363_s10  ;;  %p7366_p2 = scmp.lt.s32.totalorder %s7364_s27, %s7357_s30 }
  0x22   : > { %p7361_p0 = pneg %p7360_p13 }
  0x23   : > { %p7367_p3 = por %p7366_p2, %p7365_p1 }
  0x25   : > { %p7368_p4 = pnand %p7367_p3, %p7361_p0 }
  0x27   : > { %7371 = shalt.err (!%p7368_p4)
}
  0x28   : > { %s7457_s17 = smov 512   ;;  %s7458_s24 = smov 256  }
  0x29   : > { %s7459_s15 = smov 16   ;;  %p514_p5 = scmp.lt.s32.totalorder %s7454_s23, 3 }
  0x2a   : > { %6756 = dma.hbm_to_vmem [thread:$0]  (!%p7610_p9), %s475_s18, 8192, %s477_s28, %s466_s26, %s7457_s17, %s7458_s24, %s7459_s15  }
  0x2b   : > { %s6612_s9 = sshll.u32 %s7450_s22, 13  ;;  %p7627_p6 = pnand %p6292_p10, %p514_p5 }
  0x2c   : > { %s505_s11 = scalar_lea.hbm %s9367_s13, %s6612_s9  ;;  %s9399_s20 = sshll.u32 %s7599_s16, 9 }
  0x2d   : > { %s498_s14 = scalar_lea.vmem [#allocation6], %s9399_s20  ;;  %s495_s7 = scalar_lea.sflag [#allocation7], %s7599_s16 }
  0x2e   : > { %s506_s8 = sshll.u32 %s498_s14, 4  ;;  %s7460_s15 = smov [#allocation6]   ;;  %s507_s8 = int_to_ptr.vmem [resolvable:$true] %s506_s8 }
  0x2f   : > { %s7385_s6 = scalar_lea.vmem %s507_s8, 8192  ;;  %s7390_s18 = sshll.u32 %s7460_s15, 4  ;;  %s7391_s18 = int_to_ptr.vmem [resolvable:$false] %s7390_s18 }
  0x30   : > { %p7386_p8 = scmp.ne.s32.totalorder %s507_s8, %s7385_s6  ;;  %s7392_s28 = scalar_lea.vmem %s7391_s18, 16384 }
  0x31   : > { %p7393_p10 = scmp.lt.s32.totalorder %s507_s8, %s7391_s18  ;;  %p7394_p0 = scmp.lt.s32.totalorder %s7392_s28, %s7385_s6 }
  0x32   : > { %p7388_p12 = pnand %p7386_p8, %p7346_p11 }
  0x33   : > { %p7395_p1 = por %p7394_p0, %p7393_p10 }
  0x34   : > { %p7389_p13 = pneg %p7388_p12 }
  0x36   : > { %p7396_p2 = pnand %p7395_p1, %p7389_p13 }
  0x38   : > { %7399 = shalt.err (!%p7396_p2)
}
  0x39   : > { %s7461_s26 = smov 128   ;;  %s7462_s14 = smov 8  }
  0x3a   : > { %6759 = dma.hbm_to_vmem [thread:$0]  (!%p7610_p9), %s505_s11, 8192, %s507_s8, %s495_s7, %s7461_s26, %s7461_s26, %s7462_s14  }
  0x3b   : > { %518 = sbr.rel (%p7627_p6) target bundleno = 3040 (0xbe0), region = 80  ;;  %s520_s20 = sand.u32 (!%p7627_p6), 1, %s7438_s19  }
  0x3c   : > { %s6293_s16 = sshll.u32 (!%p7627_p6), %s520_s20, 9  ;;  %s521_s17 = scalar_lea.sflag (!%p7627_p6), [#allocation5], %s520_s20 }
  0x3d   : > { %s7645_s24 = scalar_lea.vmem (!%p7627_p6), [#allocation4], %s6293_s16 }
  0x40   : > { %7425 = dma.done.wait (%p7590_p7), %s521_s17, 8192  }
  0x41   : > { %7427 = vsyncadd (%p7590_p7), %s521_s17, 4294959104  ;;  %s530_s6 = scalar_lea.sflag [#allocation7], %s520_s20  ;;  %s7651_s9 = scalar_lea.vmem [#allocation6], %s6293_s16 }
  0x42   : > { %7429 = dma.done.wait (%p7590_p7), %s530_s6, 8192  }
  0x43   : > { %7431 = vsyncadd (%p7590_p7), %s530_s6, 4294959104  ;;  %s6295_s7 = sshll.u32 %s7446_s21, 2  ;;  %p6296_p11 = scmp.ne.s32.totalorder %s7446_s21, 0 }
  0x44   : > { %p605_p9 = scmp.lt.s32.totalorder %s6295_s7, 7 }
  0x45   : > { %621 = sbr.rel (%p6296_p11) target bundleno = 2510 (0x9ce), region = 92 }
  0x46   : > { %s9437_s7 = smov (!%p605_p9, %s6295_s7), 7 }
  0x47   : > { %s607_s25 = scalar_lea.vmem %s9366_s12, %s9437_s7 }
  0x4a   : > { %v622_v0 = vld [vmem:[%s9354_s0] sm:$0xff]  ;;  %v624_v1 = vld [vmem:[%s9354_s0 + $0x10] sm:$0xff]  ;;  %v623_v2 = vld [vmem:[%s9354_s0 + $0x8] sm:$0xff]  ;;  %v702_v51 = vlaneseq  ;;  %vm7464_vm0 = vmmov 0   ;;  %s9406_s30 = sld [smem:[#allocation19_spill]]  ;;  %vm3302_vm1 = vcmask 1043456  }
  0x4b   : > { %v626_v3 = vunpack.c.l.bf16 %v622_v0  ;;  %v627_v4 = vunpack.c.h.bf16 %v622_v0  ;;  %v630_v5 = vunpack.c.l.bf16 %v624_v1  ;;  %v631_v6 = vunpack.c.h.bf16 %v624_v1  ;;  %v625_v7 = vld [vmem:[%s9354_s0 + $0x18] sm:$0xff]  ;;  %v634_v60 = vld [vmem:[%s9355_s1] sm:$0x3]  ;;  %s9415_s29 = sld [smem:[#allocation20_spill]] }
  0x4c   : > { %v628_v8 = vunpack.c.l.bf16 %v623_v2  ;;  %v629_v9 = vunpack.c.h.bf16 %v623_v2  ;;  %v632_v10 = vunpack.c.l.bf16 %v625_v7  ;;  %v633_v11 = vunpack.c.h.bf16 %v625_v7  ;;  %v635_v61 = vld [vmem:[%s9356_s2] sm:$0x3]  ;;  %s9416_s6 = sld [smem:[#allocation21_spill]] }
  0x4d   : > { %v636_v12 = vadd.f32 %v627_v4, %v626_v3  ;;  %v642_v13 = vadd.f32 %v631_v6, %v630_v5  ;;  %v7685_v56 = vshrl.u32 %v702_v51, 7  ;;  %v6845_v51 = vld [vmem:[%s9359_s5 + $0xa4] ss:$24 sps:$4 sm:$0xff]   ;;  %vm3182_vm2 = vcmask 64512   ;;  %s9424_s15 = sld [smem:[#allocation22_spill]] }
  0x4e   : > { %v639_v14 = vadd.f32 %v629_v9, %v628_v8  ;;  %v645_v15 = vadd.f32 %v633_v11, %v632_v10  ;;  %s9425_s26 = sld [smem:[#allocation23_spill]] }
  0x4f   : > { %637 = vadd.xlane.f32.xlu0 %v636_v12  ;;  %643 = vadd.xlane.f32.xlu1 %v642_v13  ;;  %v7688_v58 = vsub.s32 0, %v7685_v56  ;;  %v7691_v59 = vsub.s32 1, %v7685_v56 }
  0x51   : > { %v705_v62 = vrot.slane %v634_v60, %v7688_v58  ;;  %v709_v63 = vrot.slane %v634_v60, %v7691_v59  ;;  %v6853_v60 = vld [vmem:[%s9359_s5 + $0x70] ss:$24 sps:$4 sm:$0xff]  }
  0x53   : > { %640 = vadd.xlane.f32.xlu0 %v639_v14  ;;  %646 = vadd.xlane.f32.xlu1 %v645_v15 }
  0xd8   : > { %v638_v16 = vpop.xlane.xlu0 %637  ;;  %v644_v17 = vpop.xlane.xlu1 %643 }
  0xd9   : > { %v649_v18 = vmul.f32 0.00390625, %v638_v16  ;;  %v651_v19 = vmul.f32 0.00390625, %v644_v17 }
  0xdb   : > { %v653_v20 = vsub.f32 %v626_v3, %v649_v18  ;;  %v654_v21 = vsub.f32 %v627_v4, %v649_v18  ;;  %v7677_v22 = vsub.f32 %v630_v5, %v651_v19  ;;  %v7679_v23 = vsub.f32 %v631_v6, %v651_v19 }
  0xdc   : > { %v641_v24 = vpop.xlane.xlu0 %640  ;;  %v647_v25 = vpop.xlane.xlu1 %646  ;;  %v724_v3 = vrot.slane %v635_v61, %v7688_v58  ;;  %v728_v4 = vrot.slane %v635_v61, %v7691_v59  ;;  %v6854_v61 = vld [vmem:[%s9359_s5 + $0x34] ss:$24 sps:$4 sm:$0xff]  }
  0xdd   : > { %v650_v26 = vmul.f32 0.00390625, %v641_v24  ;;  %v652_v27 = vmul.f32 0.00390625, %v647_v25  ;;  %v661_v28 = vmul.f32 %v653_v20, %v653_v20  ;;  %v662_v29 = vmul.f32 %v654_v21, %v654_v21 }
  0xde   : > { %v665_v30 = vmul.f32 %v7677_v22, %v7677_v22  ;;  %v666_v31 = vmul.f32 %v7679_v23, %v7679_v23 }
  0xdf   : > { %v655_v32 = vsub.f32 %v628_v8, %v650_v26  ;;  %v656_v33 = vsub.f32 %v629_v9, %v650_v26  ;;  %v659_v34 = vsub.f32 %v632_v10, %v652_v27  ;;  %v660_v35 = vsub.f32 %v633_v11, %v652_v27 }
  0xe0   : > { %v669_v36 = vadd.f32 %v662_v29, %v661_v28  ;;  %v675_v41 = vadd.f32 %v666_v31, %v665_v30 }
  0xe1   : > { %v663_v37 = vmul.f32 %v655_v32, %v655_v32  ;;  %v664_v38 = vmul.f32 %v656_v33, %v656_v33  ;;  %v667_v39 = vmul.f32 %v659_v34, %v659_v34  ;;  %v668_v40 = vmul.f32 %v660_v35, %v660_v35 }
  0xe2   : > { %670 = vadd.xlane.f32.xlu0 %v669_v36  ;;  %v6821_v36 = vld [vmem:[%s9359_s5 + $0x164] ss:$24 sps:$4 sm:$0xff]  }
  0xe3   : > { %v672_v42 = vadd.f32 %v664_v38, %v663_v37  ;;  %v678_v43 = vadd.f32 %v668_v40, %v667_v39  ;;  %v6823_v37 = vld [vmem:[%s9359_s5 + $0x160] ss:$24 sps:$4 sm:$0xff]   ;;  %v6824_v38 = vld [vmem:[%s9359_s5 + $0x124] ss:$24 sps:$4 sm:$0xff]   ;;  %1561 = vmatprep.subr.bf16.mxu0 %v6821_v36  ;;  %v6827_v39 = vld [vmem:[%s9359_s5 + $0x134] ss:$24 sps:$4 sm:$0xff]  }
  0xe4   : > { %1562 = vmatpush1.bf16.msra.mxu0 %v6823_v37  ;;  %v6826_v40 = vld [vmem:[%s9359_s5 + $0x120] ss:$24 sps:$4 sm:$0xff]  }
  0xe5   : > { %673 = vadd.xlane.f32.xlu1 %v672_v42  ;;  %1563 = vmatprep.subr.bf16.mxu0 %v6827_v39  ;;  %v6830_v42 = vld [vmem:[%s9359_s5 + $0xf4] ss:$24 sps:$4 sm:$0xff]  }
  0xe6   : > { %676 = vadd.xlane.f32.xlu0 %v675_v41  ;;  %v6829_v41 = vld [vmem:[%s9359_s5 + $0x130] ss:$24 sps:$4 sm:$0xff]  }
  0xe8   : > { %1564 = vmatpush1.bf16.msra.mxu0 %v6829_v41 }
  0xe9   : > { %679 = vadd.xlane.f32.xlu1 %v678_v43  ;;  %v6833_v43 = vld [vmem:[%s9359_s5 + $0x104] ss:$24 sps:$4 sm:$0xff]  }
  0xea   : > { %1565 = vmatprep.subr.bf16.mxu0 %v6833_v43 }
 0x16b   : > { %v671_v44 = vpop.xlane.xlu0 %670 }
 0x16c   : > { %v681_v45 = vmul.f32 0.00390625, %v671_v44  ;;  %v6832_v44 = vld [vmem:[%s9359_s5 + $0xf0] ss:$24 sps:$4 sm:$0xff]  }
 0x16e   : > { %v685_v46 = vadd.f32 1e-12, %v681_v45  ;;  %v674_v47 = vpop.xlane.xlu1 %673  ;;  %v6835_v45 = vld [vmem:[%s9359_s5 + $0x100] ss:$24 sps:$4 sm:$0xff]  }
 0x16f   : > { %v682_v48 = vmul.f32 0.00390625, %v674_v47  ;;  %v677_v49 = vpop.xlane.xlu0 %676  ;;  %v6839_v47 = vld [vmem:[%s9359_s5 + $0xd4] ss:$24 sps:$4 sm:$0xff]   ;;  %1566 = vmatpush1.bf16.msra.mxu0 %v6835_v45  ;;  %v6872_v45 = vld [vmem:[%s9359_s5 + $0x2a4] ss:$24 sps:$4 sm:$0xff]  }
 0x170   : > { %7010 = vrsqrt.f32 %v685_v46  ;;  %v683_v50 = vmul.f32 0.00390625, %v677_v49  ;;  %v6836_v46 = vld [vmem:[%s9359_s5 + $0xc4] ss:$24 sps:$4 sm:$0xff]   ;;  %v6841_v49 = vld [vmem:[%s9359_s5 + $0xd0] ss:$24 sps:$4 sm:$0xff]   ;;  %1567 = vmatprep.subr.bf16.mxu0 %v6839_v47 }
 0x171   : > { %v686_v52 = vadd.f32 1e-12, %v682_v48  ;;  %v6838_v48 = vld [vmem:[%s9359_s5 + $0xc0] ss:$24 sps:$4 sm:$0xff]   ;;  %v6875_v47 = vld [vmem:[%s9359_s5 + $0x2b4] ss:$24 sps:$4 sm:$0xff]  }
 0x172   : > { %v687_v53 = vadd.f32 1e-12, %v683_v50  ;;  %v680_v54 = vpop.xlane.xlu1 %679  ;;  %v6842_v50 = vld [vmem:[%s9359_s5 + $0x94] ss:$24 sps:$4 sm:$0xff]  }
 0x173   : > { %7012 = vrsqrt.f32 %v686_v52  ;;  %v684_v55 = vmul.f32 0.00390625, %v680_v54  ;;  %1568 = vmatpush1.bf16.msra.mxu0 %v6841_v49  ;;  %v6844_v52 = vld [vmem:[%s9359_s5 + $0x90] ss:$24 sps:$4 sm:$0xff]   ;;  %v6848_v54 = vld [vmem:[%s9359_s5 + $0x64] ss:$24 sps:$4 sm:$0xff]  }
 0x174   : > { %7014 = vrsqrt.f32 %v687_v53  ;;  %v6847_v53 = vld [vmem:[%s9359_s5 + $0xa0] ss:$24 sps:$4 sm:$0xff]   ;;  %1569 = vmatprep.subr.bf16.mxu0 %v6845_v51  ;;  %v6878_v49 = vld [vmem:[%s9359_s5 + $0x274] ss:$24 sps:$4 sm:$0xff]   ;;  %v6881_v51 = vld [vmem:[%s9359_s5 + $0x284] ss:$24 sps:$4 sm:$0xff]  }
 0x175   : > { %v688_v57 = vadd.f32 1e-12, %v684_v55  ;;  %v6851_v55 = vld [vmem:[%s9359_s5 + $0x74] ss:$24 sps:$4 sm:$0xff]  }
 0x177   : > { %7016 = vrsqrt.f32 %v688_v57  ;;  %1570 = vmatpush1.bf16.msra.mxu0 %v6847_v53  ;;  %v6850_v57 = vld [vmem:[%s9359_s5 + $0x60] ss:$24 sps:$4 sm:$0xff]   ;;  %v6884_v53 = vld [vmem:[%s9359_s5 + $0x244] ss:$24 sps:$4 sm:$0xff]  }
 0x178   : > { %1571 = vmatprep.subr.bf16.mxu0 %v6851_v55  ;;  %v6887_v55 = vld [vmem:[%s9359_s5 + $0x254] ss:$24 sps:$4 sm:$0xff]  }
 0x17b   : > { %1572 = vmatpush1.bf16.msra.mxu0 %v6853_v60  ;;  %v6890_v60 = vld [vmem:[%s9359_s5 + $0x214] ss:$24 sps:$4 sm:$0xff]  }
 0x17d   : > { %v7011_v0 = vpop.eup %7010 }
 0x17e   : > { %v693_v1 = vmul.f32 %v7011_v0, %v653_v20  ;;  %v694_v2 = vmul.f32 %v7011_v0, %v654_v21  ;;  %v6859_v0 = vld [vmem:[%s9359_s5 + $0x40] ss:$24 sps:$4 sm:$0xff]  }
 0x180   : > { %v7013_v5 = vpop.eup %7012  ;;  %v712_v6 = vmul.f32 %v705_v62, %v693_v1  ;;  %v713_v7 = vmul.f32 %v709_v63, %v694_v2  ;;  %v6860_v1 = vld [vmem:[%s9359_s5 + $0x4] ss:$24 sps:$4 sm:$0xff]   ;;  %v6863_v2 = vld [vmem:[%s9359_s5 + $0x14] ss:$24 sps:$4 sm:$0xff]  }
 0x181   : > { %v7015_v8 = vpop.eup %7014  ;;  %v695_v9 = vmul.f32 %v7013_v5, %v655_v32  ;;  %v696_v10 = vmul.f32 %v7013_v5, %v656_v33  ;;  %v6866_v5 = vld [vmem:[%s9359_s5 + $0x2d4] ss:$24 sps:$4 sm:$0xff]  }
 0x182   : > { %v7703_v11 = vadd.f32 %v724_v3, %v712_v6  ;;  %v7705_v12 = vadd.f32 %v728_v4, %v713_v7  ;;  %v697_v13 = vmul.f32 %v7015_v8, %v7677_v22  ;;  %v698_v14 = vmul.f32 %v7015_v8, %v7679_v23  ;;  %v6869_v6 = vld [vmem:[%s9359_s5 + $0x2e4] ss:$24 sps:$4 sm:$0xff]   ;;  %v6868_v7 = vld [vmem:[%s9359_s5 + $0x2d0] ss:$24 sps:$4 sm:$0xff]  }
 0x183   : > { %v714_v15 = vmul.f32 %v705_v62, %v695_v9  ;;  %v715_v16 = vmul.f32 %v709_v63, %v696_v10 }
 0x184   : > { %v7017_v17 = vpop.eup %7016  ;;  %v741_v18 = vadd.f32 %v7705_v12, %v7703_v11  ;;  %v716_v19 = vmul.f32 %v705_v62, %v697_v13  ;;  %v717_v20 = vmul.f32 %v709_v63, %v698_v14 }
 0x185   : > { %v7711_v21 = vadd.f32 %v724_v3, %v714_v15  ;;  %v7713_v24 = vadd.f32 %v728_v4, %v715_v16  ;;  %v699_v25 = vmul.f32 %v7017_v17, %v659_v34  ;;  %v700_v26 = vmul.f32 %v7017_v17, %v660_v35  ;;  %v6818_v34 = vld [vmem:[%s9359_s5 + $0x154] ss:$24 sps:$4 sm:$0xff]   ;;  %v6820_v35 = vld [vmem:[%s9359_s5 + $0x150] ss:$24 sps:$4 sm:$0xff]  }
 0x186   : > { %742 = vadd.xlane.f32.xlu0 %v741_v18  ;;  %v7715_v27 = vadd.f32 %v724_v3, %v716_v19  ;;  %v7717_v22 = vadd.f32 %v728_v4, %v717_v20  ;;  %1455 = vmatprep.subr.bf16.mxu1 %v6818_v34 }
 0x187   : > { %9400 = vst [vmem:[#allocation13_spill] sm:$0xff] %v7711_v21  ;;  %9401 = vst [vmem:[#allocation14_spill] sm:$0xff] %v7713_v24  ;;  %v744_v23 = vadd.f32 %v7713_v24, %v7711_v21  ;;  %v718_v28 = vmul.f32 %v705_v62, %v699_v25  ;;  %v719_v29 = vmul.f32 %v709_v63, %v700_v26  ;;  %1456 = vmatpush1.bf16.msra.mxu1 %v6820_v35  ;;  %v6857_v62 = vld [vmem:[%s9359_s5 + $0x44] ss:$24 sps:$4 sm:$0xff]   ;;  %v6856_v63 = vld [vmem:[%s9359_s5 + $0x30] ss:$24 sps:$4 sm:$0xff]  }
 0x188   : > { %9402 = vst [vmem:[#allocation15_spill] sm:$0xff] %v7715_v27  ;;  %9403 = vst [vmem:[#allocation16_spill] sm:$0xff] %v7717_v22  ;;  %v747_v30 = vadd.f32 %v7717_v22, %v7715_v27  ;;  %1457 = vmatprep.subr.bf16.mxu1 %v6824_v38  ;;  %1573 = vmatprep.subr.bf16.mxu0 %v6857_v62  ;;  %v6893_v62 = vld [vmem:[%s9359_s5 + $0x224] ss:$24 sps:$4 sm:$0xff]  }
 0x189   : > { %745 = vadd.xlane.f32.xlu1 %v744_v23  ;;  %v7723_v31 = vadd.f32 %v724_v3, %v718_v28  ;;  %v7725_v32 = vadd.f32 %v728_v4, %v719_v29  ;;  %1574 = vmatpush1.bf16.msra.mxu0 %v6859_v0  ;;  %v6862_v3 = vld [vmem:[%s9359_s5] ss:$24 sps:$4 sm:$0xff]   ;;  %v6865_v4 = vld [vmem:[%s9359_s5 + $0x10] ss:$24 sps:$4 sm:$0xff]   ;;  %v6896_v0 = vld [vmem:[%s9359_s5 + $0x1e4] ss:$24 sps:$4 sm:$0xff]  }
 0x18a   : > { %748 = vadd.xlane.f32.xlu0 %v747_v30  ;;  %1575 = vmatprep.subr.bf16.mxu0 %v6863_v2  ;;  %v6898_v2 = vld [vmem:[%s9359_s5 + $0x1e0] ss:$24 sps:$4 sm:$0xff]  }
 0x18b   : > { %9404 = vst [vmem:[#allocation17_spill] sm:$0xff] %v7723_v31  ;;  %9405 = vst [vmem:[#allocation18_spill] sm:$0xff] %v7725_v32  ;;  %v750_v33 = vadd.f32 %v7725_v32, %v7723_v31  ;;  %1458 = vmatpush1.bf16.msra.mxu1 %v6826_v40 }
 0x18c   : > { %1459 = vmatprep.subr.bf16.mxu1 %v6830_v42 }
 0x18d   : > { %751 = vadd.xlane.f32.xlu1 %v750_v33  ;;  %1576 = vmatpush1.bf16.msra.mxu0 %v6865_v4  ;;  %v6902_v4 = vld [vmem:[%s9359_s5 + $0x1b4] ss:$24 sps:$4 sm:$0xff]  }
 0x18e   : > { %1577 = vmatprep.subr.bf16.mxu0 %v6869_v6  ;;  %v6904_v6 = vld [vmem:[%s9359_s5 + $0x1b0] ss:$24 sps:$4 sm:$0xff]  }
 0x18f   : > { %1460 = vmatpush1.bf16.msra.mxu1 %v6832_v44  ;;  %v6871_v44 = vld [vmem:[%s9359_s5 + $0x2e0] ss:$24 sps:$4 sm:$0xff]  }
 0x190   : > { %1461 = vmatprep.subr.bf16.mxu1 %v6836_v46  ;;  %v6874_v46 = vld [vmem:[%s9359_s5 + $0x2a0] ss:$24 sps:$4 sm:$0xff]  }
 0x191   : > { %1578 = vmatpush2.bf16.msra.mxu0 %v6871_v44 }
 0x192   : > { %1579 = vmatprep.subr.bf16.mxu0 %v6875_v47 }
 0x193   : > { %1462 = vmatpush1.bf16.msra.mxu1 %v6838_v48  ;;  %v6877_v48 = vld [vmem:[%s9359_s5 + $0x2b0] ss:$24 sps:$4 sm:$0xff]  }
 0x194   : > { %1463 = vmatprep.subr.bf16.mxu1 %v6842_v50  ;;  %v6880_v50 = vld [vmem:[%s9359_s5 + $0x270] ss:$24 sps:$4 sm:$0xff]  }
 0x195   : > { %1580 = vmatpush2.bf16.msra.mxu0 %v6877_v48 }
 0x196   : > { %1581 = vmatprep.subr.bf16.mxu0 %v6881_v51 }
 0x197   : > { %1464 = vmatpush1.bf16.msra.mxu1 %v6844_v52  ;;  %v6883_v52 = vld [vmem:[%s9359_s5 + $0x280] ss:$24 sps:$4 sm:$0xff]  }
 0x198   : > { %1465 = vmatprep.subr.bf16.mxu1 %v6848_v54  ;;  %v6886_v54 = vld [vmem:[%s9359_s5 + $0x240] ss:$24 sps:$4 sm:$0xff]  }
 0x199   : > { %1582 = vmatpush2.bf16.msra.mxu0 %v6883_v52 }
 0x19a   : > { %1583 = vmatprep.subr.bf16.mxu0 %v6887_v55 }
 0x19b   : > { %1466 = vmatpush1.bf16.msra.mxu1 %v6850_v57  ;;  %v6889_v57 = vld [vmem:[%s9359_s5 + $0x250] ss:$24 sps:$4 sm:$0xff]  }
 0x19c   : > { %1467 = vmatprep.subr.bf16.mxu1 %v6854_v61  ;;  %v6892_v61 = vld [vmem:[%s9359_s5 + $0x210] ss:$24 sps:$4 sm:$0xff]  }
 0x19d   : > { %1584 = vmatpush2.bf16.msra.mxu0 %v6889_v57 }
 0x19e   : > { %1585 = vmatprep.subr.bf16.mxu0 %v6893_v62 }
 0x19f   : > { %1468 = vmatpush1.bf16.msra.mxu1 %v6856_v63  ;;  %v6895_v63 = vld [vmem:[%s9359_s5 + $0x220] ss:$24 sps:$4 sm:$0xff]  }
 0x1a0   : > { %1469 = vmatprep.subr.bf16.mxu1 %v6860_v1  ;;  %v6899_v1 = vld [vmem:[%s9359_s5 + $0x1f4] ss:$24 sps:$4 sm:$0xff]  }
 0x1a1   : > { %1586 = vmatpush2.bf16.msra.mxu0 %v6895_v63 }
 0x1a2   : > { %1587 = vmatprep.subr.bf16.mxu0 %v6899_v1 }
 0x1a3   : > { %1470 = vmatpush1.bf16.msra.mxu1 %v6862_v3  ;;  %v6901_v3 = vld [vmem:[%s9359_s5 + $0x1f0] ss:$24 sps:$4 sm:$0xff]  }
 0x1a4   : > { %1471 = vmatprep.subr.bf16.mxu1 %v6866_v5  ;;  %v6905_v5 = vld [vmem:[%s9359_s5 + $0x1c4] ss:$24 sps:$4 sm:$0xff]  }
 0x1a5   : > { %1588 = vmatpush2.bf16.msra.mxu0 %v6901_v3 }
 0x1a6   : > { %1589 = vmatprep.subr.bf16.mxu0 %v6905_v5 }
 0x1a7   : > { %1472 = vmatpush2.bf16.msra.mxu1 %v6868_v7  ;;  %v6907_v7 = vld [vmem:[%s9359_s5 + $0x1c0] ss:$24 sps:$4 sm:$0xff]  }
 0x1a8   : > { %1473 = vmatprep.subr.bf16.mxu1 %v6872_v45  ;;  %v740_v45 = vld [vmem:[%s9358_s4] sm:$0x3] }
 0x1a9   : > { %1590 = vmatpush2.bf16.msra.mxu0 %v6907_v7  ;;  %v828_v52 = vrot.slane %v740_v45, %v7688_v58 }
 0x1ab   : > { %1474 = vmatpush2.bf16.msra.mxu1 %v6874_v46 }
 0x1ac   : > { %1475 = vmatprep.subr.bf16.mxu1 %v6878_v49 }
 0x1af   : > { %1476 = vmatpush2.bf16.msra.mxu1 %v6880_v50  ;;  %v832_v50 = vrot.slane %v740_v45, %v7691_v59  ;;  %v6946_v45 = vld [vmem:[%s9359_s5 + $0x27c] ss:$24 sps:$4 sm:$0xff]  }
 0x1b0   : > { %1477 = vmatprep.subr.bf16.mxu1 %v6884_v53 }
 0x1b3   : > { %1478 = vmatpush2.bf16.msra.mxu1 %v6886_v54 }
 0x1b4   : > { %1479 = vmatprep.subr.bf16.mxu1 %v6890_v60 }
 0x1b7   : > { %1480 = vmatpush2.bf16.msra.mxu1 %v6892_v61 }
 0x1b8   : > { %1481 = vmatprep.subr.bf16.mxu1 %v6896_v0 }
 0x1bb   : > { %1482 = vmatpush2.bf16.msra.mxu1 %v6898_v2 }
 0x1bc   : > { %1483 = vmatprep.subr.bf16.mxu1 %v6902_v4 }
 0x1bf   : > { %1484 = vmatpush2.bf16.msra.mxu1 %v6904_v6  ;;  %v6919_v6 = vld [vmem:[%s9359_s5 + $0x12c] ss:$24 sps:$4 sm:$0xff]  }
 0x20f   : > { %v743_v8 = vpop.xlane.xlu0 %742 }
 0x210   : > { %v753_v9 = vmul.f32 0.00390625, %v743_v8  ;;  %v6908_v8 = vld [vmem:[%s9359_s5 + $0x184] ss:$24 sps:$4 sm:$0xff]  }
 0x211   : > { %1485 = vmatprep.subr.bf16.mxu1 %v6908_v8 }
 0x212   : > { %v7835_v10 = vsub.f32 %v7703_v11, %v753_v9  ;;  %v7838_v13 = vsub.f32 %v7705_v12, %v753_v9  ;;  %v746_v14 = vpop.xlane.xlu1 %745  ;;  %v6911_v9 = vld [vmem:[%s9359_s5 + $0x194] ss:$24 sps:$4 sm:$0xff]  }
 0x213   : > { %v754_v15 = vmul.f32 0.00390625, %v746_v14  ;;  %v749_v16 = vpop.xlane.xlu0 %748  ;;  %v6910_v14 = vld [vmem:[%s9359_s5 + $0x180] ss:$24 sps:$4 sm:$0xff]   ;;  %1591 = vmatprep.subr.bf16.mxu0 %v6911_v9 }
 0x214   : > { %v755_v17 = vmul.f32 0.00390625, %v749_v16  ;;  %v765_v18 = vmul.f32 %v7835_v10, %v7835_v10  ;;  %v766_v19 = vmul.f32 %v7838_v13, %v7838_v13  ;;  %1486 = vmatpush2.bf16.msra.mxu1 %v6910_v14  ;;  %v6916_v16 = vld [vmem:[%s9359_s5 + $0x15c] ss:$24 sps:$4 sm:$0xff]   ;;  %v6917_v9 = vld [vmem:[%s9359_s5 + $0x128] ss:$24 sps:$4 sm:$0xff]  }
 0x215   : > { %v7845_v20 = vsub.f32 %v7711_v21, %v754_v15  ;;  %v7848_v25 = vsub.f32 %v7713_v24, %v754_v15  ;;  %v6913_v15 = vld [vmem:[%s9359_s5 + $0x190] ss:$24 sps:$4 sm:$0xff]   ;;  %1508 = vmatprep.subr.bf16.mxu1 %v6916_v16  ;;  %v6922_v14 = vld [vmem:[%s9359_s5 + $0xfc] ss:$24 sps:$4 sm:$0xff]  }
 0x216   : > { %v7851_v26 = vsub.f32 %v7715_v27, %v755_v17  ;;  %v7854_v23 = vsub.f32 %v7717_v22, %v755_v17  ;;  %v752_v28 = vpop.xlane.xlu1 %751  ;;  %v773_v29 = vadd.f32 %v766_v19, %v765_v18  ;;  %1592 = vmatpush2.bf16.msra.mxu0 %v6913_v15 }
 0x217   : > { %v756_v30 = vmul.f32 0.00390625, %v752_v28  ;;  %v767_v33 = vmul.f32 %v7845_v20, %v7845_v20  ;;  %v768_v34 = vmul.f32 %v7848_v25, %v7848_v25 }
 0x218   : > { %774 = vadd.xlane.f32.xlu0 %v773_v29  ;;  %v769_v35 = vmul.f32 %v7851_v26, %v7851_v26  ;;  %v770_v36 = vmul.f32 %v7854_v23, %v7854_v23 }
 0x219   : > { %v7865_v37 = vsub.f32 %v7723_v31, %v756_v30  ;;  %v7868_v38 = vsub.f32 %v7725_v32, %v756_v30  ;;  %v776_v39 = vadd.f32 %v768_v34, %v767_v33 }
 0x21a   : > { %v779_v40 = vadd.f32 %v770_v36, %v769_v35 }
 0x21b   : > { %777 = vadd.xlane.f32.xlu1 %v776_v39  ;;  %v771_v41 = vmul.f32 %v7865_v37, %v7865_v37  ;;  %v772_v42 = vmul.f32 %v7868_v38, %v7868_v38 }
 0x21c   : > { %780 = vadd.xlane.f32.xlu0 %v779_v40 }
 0x21d   : > { %v782_v43 = vadd.f32 %v772_v42, %v771_v41  ;;  %v739_v41 = vld [vmem:[%s9357_s3] sm:$0x3] }
 0x21e   : > { %v813_v42 = vrot.slane %v739_v41, %v7691_v59 }
 0x21f   : > { %783 = vadd.xlane.f32.xlu1 %v782_v43  ;;  %v809_v43 = vrot.slane %v739_v41, %v7688_v58  ;;  %v6940_v41 = vld [vmem:[%s9359_s5 + $0x2dc] ss:$24 sps:$4 sm:$0xff]  }
 0x2a1   : > { %v775_v17 = vpop.xlane.xlu0 %774 }
 0x2a2   : > { %v785_v18 = vmul.f32 0.00390625, %v775_v17  ;;  %v6920_v17 = vld [vmem:[%s9359_s5 + $0xf8] ss:$24 sps:$4 sm:$0xff]  }
 0x2a4   : > { %v789_v19 = vadd.f32 1e-12, %v785_v18  ;;  %v778_v28 = vpop.xlane.xlu1 %777 }
 0x2a5   : > { %v786_v29 = vmul.f32 0.00390625, %v778_v28  ;;  %v781_v30 = vpop.xlane.xlu0 %780  ;;  %v6923_v28 = vld [vmem:[%s9359_s5 + $0xc8] ss:$24 sps:$4 sm:$0xff]  }
 0x2a6   : > { %7018 = vrsqrt.f32 %v789_v19  ;;  %v787_v33 = vmul.f32 0.00390625, %v781_v30  ;;  %v6925_v19 = vld [vmem:[%s9359_s5 + $0xcc] ss:$24 sps:$4 sm:$0xff]   ;;  %v6926_v30 = vld [vmem:[%s9359_s5 + $0x98] ss:$24 sps:$4 sm:$0xff]  }
 0x2a7   : > { %v790_v34 = vadd.f32 1e-12, %v786_v29  ;;  %v6928_v29 = vld [vmem:[%s9359_s5 + $0x9c] ss:$24 sps:$4 sm:$0xff]  }
 0x2a8   : > { %v791_v35 = vadd.f32 1e-12, %v787_v33  ;;  %v784_v36 = vpop.xlane.xlu1 %783  ;;  %v6931_v33 = vld [vmem:[%s9359_s5 + $0x6c] ss:$24 sps:$4 sm:$0xff]  }
 0x2a9   : > { %7020 = vrsqrt.f32 %v790_v34  ;;  %v788_v39 = vmul.f32 0.00390625, %v784_v36  ;;  %v6929_v34 = vld [vmem:[%s9359_s5 + $0x68] ss:$24 sps:$4 sm:$0xff]   ;;  %v6932_v36 = vld [vmem:[%s9359_s5 + $0x38] ss:$24 sps:$4 sm:$0xff]  }
 0x2aa   : > { %7022 = vrsqrt.f32 %v791_v35  ;;  %v6934_v35 = vld [vmem:[%s9359_s5 + $0x3c] ss:$24 sps:$4 sm:$0xff]  }
 0x2ab   : > { %v792_v40 = vadd.f32 1e-12, %v788_v39  ;;  %v6937_v39 = vld [vmem:[%s9359_s5 + $0xc] ss:$24 sps:$4 sm:$0xff]  }
 0x2ad   : > { %7024 = vrsqrt.f32 %v792_v40  ;;  %v6935_v40 = vld [vmem:[%s9359_s5 + $0x8] ss:$24 sps:$4 sm:$0xff]  }
 0x2b3   : > { %v7019_v44 = vpop.eup %7018 }
 0x2b4   : > { %v798_v46 = vmul.f32 %v7019_v44, %v7838_v13  ;;  %v797_v47 = vmul.f32 %v7019_v44, %v7835_v10  ;;  %v6941_v44 = vld [vmem:[%s9359_s5 + $0x2a8] ss:$24 sps:$4 sm:$0xff]  }
 0x2b6   : > { %v7021_v48 = vpop.eup %7020  ;;  %v817_v49 = vmul.f32 %v813_v42, %v798_v46  ;;  %v816_v51 = vmul.f32 %v809_v43, %v797_v47  ;;  %v6944_v46 = vld [vmem:[%s9359_s5 + $0x278] ss:$24 sps:$4 sm:$0xff]   ;;  %v6949_v47 = vld [vmem:[%s9359_s5 + $0x24c] ss:$24 sps:$4 sm:$0xff]  }
 0x2b7   : > { %v7023_v53 = vpop.eup %7022  ;;  %v800_v54 = vmul.f32 %v7021_v48, %v7848_v25  ;;  %v799_v55 = vmul.f32 %v7021_v48, %v7845_v20  ;;  %v6914_v20 = vld [vmem:[%s9359_s5 + $0x158] ss:$24 sps:$4 sm:$0xff]   ;;  %v6947_v48 = vld [vmem:[%s9359_s5 + $0x248] ss:$24 sps:$4 sm:$0xff]  }
 0x2b8   : > { %v802_v57 = vmul.f32 %v7023_v53, %v7854_v23  ;;  %v836_v13 = vadd.f32 %v832_v50, %v817_v49  ;;  %v835_v63 = vadd.f32 %v828_v52, %v816_v51  ;;  %v801_v4 = vmul.f32 %v7023_v53, %v7851_v26  ;;  %v6952_v49 = vld [vmem:[%s9359_s5 + $0x21c] ss:$24 sps:$4 sm:$0xff]   ;;  %v6955_v51 = vld [vmem:[%s9359_s5 + $0x1ec] ss:$24 sps:$4 sm:$0xff]  }
 0x2b9   : > { %v819_v60 = vmul.f32 %v813_v42, %v800_v54  ;;  %v818_v61 = vmul.f32 %v809_v43, %v799_v55  ;;  %v6958_v53 = vld [vmem:[%s9359_s5 + $0x1bc] ss:$24 sps:$4 sm:$0xff]   ;;  %v6956_v54 = vld [vmem:[%s9359_s5 + $0x1b8] ss:$24 sps:$4 sm:$0xff]   ;;  %v6961_v55 = vld [vmem:[%s9359_s5 + $0x18c] ss:$24 sps:$4 sm:$0xff]  }
 0x2ba   : > { %v7025_v62 = vpop.eup %7024  ;;  %v821_v10 = vmul.f32 %v813_v42, %v802_v57  ;;  %v820_v26 = vmul.f32 %v809_v43, %v801_v4  ;;  %v6959_v57 = vld [vmem:[%s9359_s5 + $0x188] ss:$24 sps:$4 sm:$0xff]  }
 0x2bb   : > { %v838_v0 = vadd.f32 %v832_v50, %v819_v60  ;;  %v837_v1 = vadd.f32 %v828_v52, %v818_v61  ;;  %v804_v2 = vmul.f32 %v7025_v62, %v7868_v38  ;;  %v803_v3 = vmul.f32 %v7025_v62, %v7865_v37  ;;  %v8095_v62 = vld [vmem:[%s9406_s30] sm:$0x3f]  ;;  %s9417_s30 = sld [smem:[#allocation25_spill]] }
 0x2bc   : > { %v840_v38 = vadd.f32 %v832_v50, %v821_v10  ;;  %v839_v16 = vadd.f32 %v828_v52, %v820_v26  ;;  %v9376_v60 = vmov 0.0   ;;  %v967_v61 = vsub.s32 5, %v7685_v56 }
 0x2bd   : > { %v844_v5 = vpack.c.bf16 %v838_v0, %v836_v13  ;;  %v7985_v25 = vpack.c.bf16 %v837_v1, %v835_v63  ;;  %v823_v23 = vmul.f32 %v813_v42, %v804_v2  ;;  %v822_v7 = vmul.f32 %v809_v43, %v803_v3  ;;  %v6938_v42 = vld [vmem:[%s9359_s5 + $0x2d8] ss:$24 sps:$4 sm:$0xff]   ;;  %v6943_v43 = vld [vmem:[%s9359_s5 + $0x2ac] ss:$24 sps:$4 sm:$0xff]   ;;  %6653 = vmatprep.subr.bf16.mxu0 %v9376_v60 }
 0x2be   : > { %v963_v63 = vsub.s32 4, %v7685_v56  ;;  %v8100_v0 = vrot.slane %v8095_v62, %v7691_v59  ;;  %v7465_v1 = vmov 1983009808   ;;  %v8104_v3 = vrot.slane %v8095_v62, %v7688_v58 }
 0x2bf   : > { %1487 = vmatprep.mubr.bf16.mxu1 %v844_v5  ;;  %1593 = vmatprep.mubr.bf16.mxu0 %v844_v5  ;;  %v842_v8 = vadd.f32 %v832_v50, %v823_v23  ;;  %v841_v15 = vadd.f32 %v828_v52, %v822_v7  ;;  %v6950_v50 = vld [vmem:[%s9359_s5 + $0x218] ss:$24 sps:$4 sm:$0xff]   ;;  %v6953_v52 = vld [vmem:[%s9359_s5 + $0x1e8] ss:$24 sps:$4 sm:$0xff]   ;;  %v1616_v2 = vunpack.c.l.s4 %v7465_v1  ;;  %v7466_v7 = vmov 1934713408  }
 0x2c0   : > { %1488 = vmatmul.mubr.bf16.vlgmr.msra.gmra.mxu1 %v7985_v25  ;;  %1594 = vmatmul.mubr.bf16.vlgmr.msra.gmra.mxu0 %v7985_v25 }
 0x2c1   : > { %1509 = vmatpush1.bf16.msra.mxu1 %v6914_v20  ;;  %v7992_v37 = vpack.c.bf16 %v842_v8, %v840_v38  ;;  %v845_v18 = vpack.c.bf16 %v841_v15, %v839_v16  ;;  %v1647_v38 = vunpack.c.l.s4 %v7466_v7 }
 0x2c2   : > { %1510 = vmatprep.subr.bf16.mxu1 %v6919_v6  ;;  %v1617_v6 = vunpack.c.0.s8 %v1616_v2 }
 0x2c3   : > { %1497 = vmatprep.mubr.bf16.mxu1 %v7992_v37  ;;  %1603 = vmatprep.mubr.bf16.mxu0 %v7992_v37  ;;  %v1648_v16 = vunpack.c.0.s8 %v1647_v38 }
 0x2c5   : > { %1511 = vmatpush1.bf16.msra.mxu1 %v6917_v9 }
 0x2c6   : > { %1512 = vmatprep.subr.bf16.mxu1 %v6922_v14  ;;  %v8118_v14 = vsub.s32 %v1617_v6, %v7685_v56 }
 0x2c8   : > { %1498 = vmatmul.mubr.bf16.gmra.mxu1 %v845_v18  ;;  %1604 = vmatmul.mubr.bf16.gmra.mxu0 %v845_v18 }
 0x2c9   : > { %1513 = vmatpush1.bf16.msra.mxu1 %v6920_v17  ;;  %1540 = vmatprep.mubr.bf16.mxu1 %v844_v5  ;;  %v8107_v5 = vrot.slane %v8095_v62, %v967_v61 }
 0x2ca   : > { %1514 = vmatprep.subr.bf16.mxu1 %v6925_v19  ;;  %6655 = vmatprep.mubr.msk.bf16.mxu0 %vm7464_vm0, %v9376_v60 }
 0x2cd   : > { %1515 = vmatpush1.bf16.msra.mxu1 %v6923_v28 }
 0x2ce   : > { %1516 = vmatprep.subr.bf16.mxu1 %v6928_v29 }
 0x2d1   : > { %1517 = vmatpush1.bf16.msra.mxu1 %v6926_v30 }
 0x2d2   : > { %1518 = vmatprep.subr.bf16.mxu1 %v6931_v33 }
 0x2d5   : > { %1519 = vmatpush1.bf16.msra.mxu1 %v6929_v34 }
 0x2d6   : > { %1520 = vmatprep.subr.bf16.mxu1 %v6934_v35 }
 0x2d9   : > { %1521 = vmatpush1.bf16.msra.mxu1 %v6932_v36 }
 0x2da   : > { %1522 = vmatprep.subr.bf16.mxu1 %v6937_v39  ;;  %v8129_v39 = vsub.s32 %v1648_v16, %v7685_v56 }
 0x2dd   : > { %1523 = vmatpush1.bf16.msra.mxu1 %v6935_v40 }
 0x2de   : > { %1524 = vmatprep.subr.bf16.mxu1 %v6940_v41 }
 0x2e1   : > { %1525 = vmatpush2.bf16.msra.mxu1 %v6938_v42 }
 0x2e2   : > { %1526 = vmatprep.subr.bf16.mxu1 %v6943_v43 }
 0x2e5   : > { %1527 = vmatpush2.bf16.msra.mxu1 %v6941_v44 }
 0x2e6   : > { %1528 = vmatprep.subr.bf16.mxu1 %v6946_v45 }
 0x2e9   : > { %1529 = vmatpush2.bf16.msra.mxu1 %v6944_v46 }
 0x2ea   : > { %1530 = vmatprep.subr.bf16.mxu1 %v6949_v47 }
 0x2ed   : > { %1531 = vmatpush2.bf16.msra.mxu1 %v6947_v48 }
 0x2ee   : > { %1532 = vmatprep.subr.bf16.mxu1 %v6952_v49 }
 0x2f1   : > { %1533 = vmatpush2.bf16.msra.mxu1 %v6950_v50 }
 0x2f2   : > { %1534 = vmatprep.subr.bf16.mxu1 %v6955_v51  ;;  %v955_v51 = vsub.s32 2, %v7685_v56 }
 0x2f5   : > { %1535 = vmatpush2.bf16.msra.mxu1 %v6953_v52  ;;  %v959_v52 = vsub.s32 3, %v7685_v56 }
 0x2f6   : > { %1536 = vmatprep.subr.bf16.mxu1 %v6958_v53 }
 0x2f9   : > { %1537 = vmatpush2.bf16.msra.mxu1 %v6956_v54 }
 0x2fa   : > { %1538 = vmatprep.subr.bf16.mxu1 %v6961_v55 }
 0x2fd   : > { %1539 = vmatpush2.bf16.msra.mxu1 %v6959_v57 }
 0x2fe   : > { %6671 = vmatprep.subr.bf16.mxu1 %v9376_v60 }
 0x300   : > { %1541 = vmatmul.mubr.bf16.vlgmr.msra.gmra.mxu1 %v7985_v25  ;;  %v8110_v25 = vrot.slane %v8095_v62, %v963_v63 }
 0x301   : > { %1550 = vmatprep.mubr.bf16.mxu1 %v7992_v37 }
 0x308   : > { %1551 = vmatmul.mubr.bf16.gmra.mxu1 %v845_v18 }
 0x309   : > { %6673 = vmatprep.mubr.msk.bf16.mxu1 %vm7464_vm0, %v9376_v60 }
 0x380   : > { %v1489_v13 = vpop.f32.mrf.mxu1  ;;  %v1595_v10 = vpop.f32.mrf.mxu0 }
 0x381   : > { %v1490_v8 = vadd.f32 %v1489_v13, %v8104_v3  ;;  %v1596_v37 = vadd.f32 %v1595_v10, %v8110_v25 }
 0x382   : > { %v1491_v4 = vpop.f32.mrf.mxu1  ;;  %v1597_v20 = vpop.f32.mrf.mxu0 }
 0x383   : > { %v1492_v23 = vadd.f32 %v1491_v4, %v8100_v0  ;;  %v1598_v26 = vadd.f32 %v1597_v20, %v8107_v5  ;;  %v1614_v17 = vcombine.high %v1490_v8, %v9376_v60  ;;  %v2550_v29 = vcombine.high %v1596_v37, %v9376_v60 }
 0x384   : > { %v1599_v15 = vpop.f32.mrf.mxu0  ;;  %v1621_v33 = vrot.slane %v1490_v8, %v8118_v14  ;;  %v2557_v34 = vrot.slane %v1596_v37, %v8118_v14  ;;  %v1493_v35 = vpop.f32.mrf.mxu1 }
 0x385   : > { %v1629_v9 = vcombine.high %v1492_v23, %v9376_v60  ;;  %v2565_v18 = vcombine.high %v1598_v26, %v9376_v60  ;;  %v1636_v19 = vrot.slane %v1492_v23, %v8118_v14  ;;  %v2572_v28 = vrot.slane %v1598_v26, %v8118_v14 }
 0x386   : > { %v1601_v36 = vpop.f32.mrf.mxu0  ;;  %v1628_v40 = vrot.slane %v1614_v17, %v8118_v14  ;;  %v2564_v46 = vrot.slane %v2550_v29, %v8118_v14  ;;  %v1495_v49 = vpop.f32.mrf.mxu1  ;;  %v1494_v55 = vadd.f32 %v1493_v35, %v8104_v3  ;;  %v1600_v57 = vadd.f32 %v1599_v15, %v8110_v25 }
 0x387   : > { %v1643_v30 = vrot.slane %v1629_v9, %v8118_v14  ;;  %v2579_v41 = vrot.slane %v2565_v18, %v8118_v14  ;;  %v1644_v42 = vcombine.low %v1621_v33, %v1636_v19  ;;  %v1645_v43 = vcombine.high %v1621_v33, %v1636_v19 }
 0x388   : > { %v2580_v44 = vcombine.low %v2557_v34, %v2572_v28  ;;  %v2581_v45 = vcombine.high %v2557_v34, %v2572_v28  ;;  %v1605_v50 = vpop.f32.mrf.mxu0  ;;  %v1496_v56 = vadd.f32 %v1495_v49, %v8100_v0  ;;  %v1602_v20 = vadd.f32 %v1601_v36, %v8107_v5  ;;  %v1499_v28 = vpop.f32.mrf.mxu1 }
 0x389   : > { %v1660_v47 = vcombine.low %v1628_v40, %v1643_v30  ;;  %v1661_v48 = vcombine.high %v1628_v40, %v1643_v30  ;;  %v2596_v53 = vcombine.low %v2564_v46, %v2579_v41  ;;  %v2597_v54 = vcombine.high %v2564_v46, %v2579_v41 }
 0x38a   : > { %v1652_v61 = vrot.slane %v1644_v42, %v8129_v39  ;;  %v1659_v13 = vrot.slane %v1645_v43, %v8129_v39  ;;  %v2588_v63 = vrot.slane %v2580_v44, %v8129_v39  ;;  %v2595_v10 = vrot.slane %v2581_v45, %v8129_v39  ;;  %v1607_v29 = vpop.f32.mrf.mxu0 }
 0x38b   : > { %v1668_v1 = vrot.slane %v1660_v47, %v8129_v39  ;;  %v1675_v2 = vrot.slane %v1661_v48, %v8129_v39  ;;  %v1606_v4 = vadd.f32 %v1605_v50, %v8110_v25  ;;  %v8148_v23 = vrot.slane %v8095_v62, %v955_v51 }
 0x38c   : > { %v2604_v6 = vrot.slane %v2596_v53, %v8129_v39  ;;  %v2611_v7 = vrot.slane %v2597_v54, %v8129_v39  ;;  %v1680_v38 = vcombine.high %v1494_v55, %v9376_v60  ;;  %v2616_v8 = vcombine.high %v1600_v57, %v9376_v60  ;;  %v1609_v50 = vpop.f32.mrf.mxu0 }
 0x38d   : > { %v1878_v26 = vcombine.low %v1652_v61, %v1659_v13  ;;  %v6393_v37 = vcombine.high %v1652_v61, %v1659_v13  ;;  %v1687_v9 = vrot.slane %v1494_v55, %v8118_v14  ;;  %v8156_v15 = vrot.slane %v8095_v62, %v959_v52 }
 0x38e   : > { %v1894_v16 = vcombine.low %v1668_v1, %v1675_v2  ;;  %v2814_v17 = vcombine.low %v2588_v63, %v2595_v10  ;;  %v6409_v18 = vcombine.high %v2588_v63, %v2595_v10  ;;  %v1702_v19 = vrot.slane %v1496_v56, %v8118_v14 }
 0x38f   : > { %v6394_v30 = vcombine.high %v1668_v1, %v1675_v2  ;;  %v2623_v33 = vrot.slane %v1600_v57, %v8118_v14  ;;  %v1695_v34 = vcombine.high %v1496_v56, %v9376_v60  ;;  %v2638_v35 = vrot.slane %v1602_v20, %v8118_v14 }
 0x390   : > { %v2830_v36 = vcombine.low %v2604_v6, %v2611_v7  ;;  %v6410_v40 = vcombine.high %v2604_v6, %v2611_v7  ;;  %v1694_v41 = vrot.slane %v1680_v38, %v8118_v14  ;;  %v8164_v62 = vrot.slane %v2616_v8, %v8118_v14  ;;  %v1501_v6 = vpop.f32.mrf.mxu1 }
 0x391   : > { %v8167_v42 = vrot.slane %v1878_v26, %v8118_v14  ;;  %v8170_v43 = vrot.slane %v6393_v37, %v8118_v14  ;;  %v2631_v44 = vcombine.high %v1602_v20, %v9376_v60  ;;  %v1500_v45 = vadd.f32 %v1499_v28, %v8104_v3 }
 0x392   : > { %v8175_v46 = vrot.slane %v1894_v16, %v8118_v14  ;;  %v8178_v47 = vrot.slane %v2814_v17, %v8118_v14  ;;  %v8181_v48 = vrot.slane %v6409_v18, %v8118_v14  ;;  %v1710_v49 = vcombine.low %v1687_v9, %v1702_v19 }
 0x393   : > { %v8184_v51 = vrot.slane %v6394_v30, %v8118_v14  ;;  %v1709_v52 = vrot.slane %v1695_v34, %v8118_v14  ;;  %v1711_v53 = vcombine.high %v1687_v9, %v1702_v19  ;;  %v2646_v54 = vcombine.low %v2623_v33, %v2638_v35 }
 0x394   : > { %v8188_v55 = vrot.slane %v2830_v36, %v8118_v14  ;;  %v8191_v57 = vrot.slane %v6410_v40, %v8118_v14  ;;  %v2682_v61 = vcombine.high %v1606_v4, %v9376_v60  ;;  %v1608_v13 = vadd.f32 %v1607_v29, %v8107_v5 }
 0x395   : > { %v2645_v63 = vrot.slane %v2631_v44, %v8118_v14  ;;  %v2647_v10 = vcombine.high %v2623_v33, %v2638_v35  ;;  %v1746_v1 = vcombine.high %v1500_v45, %v9376_v60  ;;  %v1610_v2 = vadd.f32 %v1609_v50, %v8110_v25 }
 0x396   : > { %v1718_v56 = vrot.slane %v1710_v49, %v8129_v39  ;;  %v2689_v20 = vrot.slane %v1606_v4, %v8118_v14  ;;  %v2697_v7 = vcombine.high %v1608_v13, %v9376_v60  ;;  %v2704_v38 = vrot.slane %v1608_v13, %v8118_v14  ;;  %v1611_v49 = vpop.f32.mrf.mxu0 }
 0x397   : > { %v1725_v8 = vrot.slane %v1711_v53, %v8129_v39  ;;  %v1726_v26 = vcombine.low %v1694_v41, %v1709_v52  ;;  %v1727_v37 = vcombine.high %v1694_v41, %v1709_v52  ;;  %v2654_v9 = vrot.slane %v2646_v54, %v8129_v39  ;;  %v1503_v54 = vpop.f32.mrf.mxu1 }
 0x398   : > { %v2696_v16 = vrot.slane %v2682_v61, %v8118_v14  ;;  %v2711_v17 = vrot.slane %v2697_v7, %v8118_v14  ;;  %v2712_v25 = vcombine.low %v2689_v20, %v2704_v38  ;;  %v2713_v18 = vcombine.high %v2689_v20, %v2704_v38 }
 0x399   : > { %v2661_v19 = vrot.slane %v2647_v10, %v8129_v39  ;;  %v2662_v4 = vcombine.low %v8164_v62, %v2645_v63  ;;  %v2663_v28 = vcombine.high %v8164_v62, %v2645_v63  ;;  %v1502_v29 = vadd.f32 %v1501_v6, %v8100_v0 }
 0x39a   : > { %v8211_v30 = vrot.slane %v2712_v25, %v8129_v39  ;;  %v8214_v33 = vrot.slane %v2713_v18, %v8129_v39  ;;  %v2728_v34 = vcombine.low %v2696_v16, %v2711_v17  ;;  %v2729_v35 = vcombine.high %v2696_v16, %v2711_v17  ;;  %v1505_v25 = vpop.f32.mrf.mxu1 }
 0x39b   : > { %v1734_v36 = vrot.slane %v1726_v26, %v8129_v39  ;;  %v1741_v40 = vrot.slane %v1727_v37, %v8129_v39  ;;  %v1928_v41 = vcombine.low %v1718_v56, %v1725_v8  ;;  %v6395_v44 = vcombine.high %v1718_v56, %v1725_v8 }
 0x39c   : > { %v8219_v50 = vrot.slane %v2728_v34, %v8129_v39  ;;  %v8222_v62 = vrot.slane %v2729_v35, %v8129_v39  ;;  %v2914_v52 = vcombine.low %v8211_v30, %v8214_v33  ;;  %v6413_v53 = vcombine.high %v8211_v30, %v8214_v33 }
 0x39d   : > { %v2864_v13 = vcombine.low %v2654_v9, %v2661_v19  ;;  %v1753_v63 = vrot.slane %v1500_v45, %v8118_v14  ;;  %v1768_v10 = vrot.slane %v1502_v29, %v8118_v14  ;;  %v6411_v56 = vcombine.high %v2654_v9, %v2661_v19 }
 0x39e   : > { %v2930_v20 = vcombine.low %v8219_v50, %v8222_v62  ;;  %v6414_v6 = vcombine.high %v8219_v50, %v8222_v62  ;;  %v1612_v7 = vadd.f32 %v1611_v49, %v8107_v5  ;;  %v2670_v38 = vrot.slane %v2662_v4, %v8129_v39 }
 0x39f   : > { %v2677_v8 = vrot.slane %v2663_v28, %v8129_v39  ;;  %v1760_v26 = vrot.slane %v1746_v1, %v8118_v14  ;;  %v1761_v37 = vcombine.high %v1502_v29, %v9376_v60  ;;  %v8242_v45 = vrot.slane %v1928_v41, %v8118_v14 }
 0x3a0   : > { %v8245_v9 = vrot.slane %v6395_v44, %v8118_v14  ;;  %v1944_v16 = vcombine.low %v1734_v36, %v1741_v40  ;;  %v2748_v17 = vcombine.high %v1610_v2, %v9376_v60  ;;  %v6396_v18 = vcombine.high %v1734_v36, %v1741_v40 }
 0x3a1   : > { %v8249_v5 = vrot.slane %v2864_v13, %v8118_v14  ;;  %v1776_v19 = vcombine.low %v1753_v63, %v1768_v10  ;;  %v1504_v4 = vadd.f32 %v1503_v54, %v8104_v3  ;;  %v8253_v1 = vrot.slane %v6411_v56, %v8118_v14 }
 0x3a2   : > { %v2755_v28 = vrot.slane %v1610_v2, %v8118_v14  ;;  %v2763_v29 = vcombine.high %v1612_v7, %v9376_v60  ;;  %v2770_v34 = vrot.slane %v1612_v7, %v8118_v14  ;;  %v2880_v35 = vcombine.low %v2670_v38, %v2677_v8 }
 0x3a3   : > { %v1775_v41 = vrot.slane %v1761_v37, %v8118_v14  ;;  %v1777_v44 = vcombine.high %v1753_v63, %v1768_v10  ;;  %v1506_v36 = vadd.f32 %v1505_v25, %v8100_v0  ;;  %v2762_v40 = vrot.slane %v2748_v17, %v8118_v14 }
 0x3a4   : > { %v2777_v49 = vrot.slane %v2763_v29, %v8118_v14  ;;  %v2778_v3 = vcombine.low %v2755_v28, %v2770_v34  ;;  %v2779_v50 = vcombine.high %v2755_v28, %v2770_v34  ;;  %v8263_v62 = vrot.slane %v1944_v16, %v8118_v14 }
 0x3a5   : > { %v6412_v2 = vcombine.high %v2670_v38, %v2677_v8  ;;  %v1784_v54 = vrot.slane %v1776_v19, %v8129_v39  ;;  %v1812_v13 = vcombine.high %v1504_v4, %v9376_v60  ;;  %v1791_v7 = vrot.slane %v1777_v44, %v8129_v39 }
 0x3a6   : > { %v2786_v56 = vrot.slane %v2778_v3, %v8129_v39  ;;  %v2793_v63 = vrot.slane %v2779_v50, %v8129_v39  ;;  %v2794_v10 = vcombine.low %v2762_v40, %v2777_v49  ;;  %v2795_v0 = vcombine.high %v2762_v40, %v2777_v49 }
 0x3a7   : > { %v1792_v37 = vcombine.low %v1760_v26, %v1775_v41  ;;  %v1793_v17 = vcombine.high %v1760_v26, %v1775_v41  ;;  %v1827_v25 = vcombine.high %v1506_v36, %v9376_v60  ;;  %v8274_v28 = vrot.slane %v6396_v18, %v8118_v14 }
 0x3a8   : > { %v2802_v16 = vrot.slane %v2794_v10, %v8129_v39  ;;  %v2809_v38 = vrot.slane %v2795_v0, %v8129_v39  ;;  %v2964_v8 = vcombine.low %v2786_v56, %v2793_v63  ;;  %v6415_v19 = vcombine.high %v2786_v56, %v2793_v63 }
 0x3a9   : > { %v2887_v34 = vrot.slane %v2880_v35, %v8118_v14  ;;  %v1834_v44 = vrot.slane %v1506_v36, %v8118_v14  ;;  %v2895_v26 = vrot.slane %v6412_v2, %v8118_v14  ;;  %v1819_v41 = vrot.slane %v1504_v4, %v8118_v14 }
 0x3aa   : > { %v2980_v40 = vcombine.low %v2802_v16, %v2809_v38  ;;  %v6416_v49 = vcombine.high %v2802_v16, %v2809_v38  ;;  %v8283_v3 = vrot.slane %v1792_v37, %v8129_v39  ;;  %v8286_v50 = vrot.slane %v1793_v17, %v8129_v39 }
 0x3ab   : > { %v1978_v18 = vcombine.low %v1784_v54, %v1791_v7  ;;  %v1841_v56 = vrot.slane %v1827_v25, %v8118_v14  ;;  %v6397_v63 = vcombine.high %v1784_v54, %v1791_v7  ;;  %v2921_v35 = vrot.slane %v2914_v52, %v8118_v14 }
 0x3ac   : > { %v2929_v4 = vrot.slane %v6413_v53, %v8118_v14  ;;  %v1826_v36 = vrot.slane %v1812_v13, %v8118_v14  ;;  %v2937_v2 = vrot.slane %v2930_v20, %v8118_v14  ;;  %v2945_v10 = vrot.slane %v6414_v6, %v8118_v14 }
 0x3ad   : > { %v1842_v0 = vcombine.low %v1819_v41, %v1834_v44  ;;  %v2971_v54 = vrot.slane %v2964_v8, %v8118_v14  ;;  %v2979_v7 = vrot.slane %v6415_v19, %v8118_v14  ;;  %v2846_v52 = vcombine.low %v8178_v47, %v8181_v48 }
 0x3ae   : > { %v2854_v37 = vcombine.low %v8188_v55, %v8191_v57  ;;  %v2896_v30 = vcombine.low %v8249_v5, %v8253_v1  ;;  %v1843_v33 = vcombine.high %v1819_v41, %v1834_v44  ;;  %v1858_v53 = vcombine.low %v1826_v36, %v1841_v56 }
 0x3af   : > { %v2987_v20 = vrot.slane %v2980_v40, %v8118_v14  ;;  %v2904_v13 = vcombine.low %v2887_v34, %v2895_v26  ;;  %v2995_v6 = vrot.slane %v6416_v49, %v8118_v14  ;;  %v8311_v17 = vrot.slane %v2846_v52, %v8129_v39 }
 0x3b0   : > { %v8314_v25 = vrot.slane %v2854_v37, %v8129_v39  ;;  %v2946_v47 = vcombine.low %v2921_v35, %v2929_v4  ;;  %v1859_v48 = vcombine.high %v1826_v36, %v1841_v56  ;;  %v8317_v55 = vrot.slane %v2896_v30, %v8129_v39 }
 0x3b1   : > { %v8320_v57 = vrot.slane %v2904_v13, %v8129_v39  ;;  %v2954_v5 = vcombine.low %v2937_v2, %v2945_v10  ;;  %v8325_v16 = vrot.slane %v1978_v18, %v8118_v14  ;;  %v2996_v8 = vcombine.low %v2971_v54, %v2979_v7 }
 0x3b2   : > { %v2863_v38 = vcombine.high %v8311_v17, %v8314_v25  ;;  %v1994_v19 = vcombine.low %v8283_v3, %v8286_v50  ;;  %v8332_v34 = vrot.slane %v1842_v0, %v8129_v39  ;;  %v8335_v44 = vrot.slane %v1843_v33, %v8129_v39 }
 0x3b3   : > { %v2913_v26 = vcombine.high %v8317_v55, %v8320_v57  ;;  %v8340_v41 = vrot.slane %v6397_v63, %v8118_v14  ;;  %v2953_v40 = vrot.slane %v2946_v47, %v8129_v39  ;;  %v2961_v49 = vrot.slane %v2954_v5, %v8129_v39 }
 0x3b4   : > { %v3004_v18 = vcombine.low %v2987_v20, %v2995_v6  ;;  %v8347_v35 = vrot.slane %v1858_v53, %v8129_v39  ;;  %v8350_v4 = vrot.slane %v1859_v48, %v8129_v39  ;;  %v3003_v63 = vrot.slane %v2996_v8, %v8129_v39 }
 0x3b5   : > { %v3015_v36 = vpack.c.bf16 %v2913_v26, %v2863_v38  ;;  %v2962_v10 = vcombine.low %v2953_v40, %v2961_v49  ;;  %v2963_v54 = vcombine.high %v2953_v40, %v2961_v49  ;;  %v8355_v7 = vrot.slane %v1994_v19, %v8118_v14 }
 0x3b6   : > { %v3011_v0 = vrot.slane %v3004_v18, %v8129_v39  ;;  %v2044_v47 = vcombine.low %v8347_v35, %v8350_v4  ;;  %v6400_v48 = vcombine.high %v8347_v35, %v8350_v4 }
 0x3b7   : > { %v8361_v30 = vsel %vm3302_vm1, %v3015_v36, 0  ;;  %v3854_v6 = vrot.slane %v3015_v36, 4 }
 0x3b8   : > { %v3012_v20 = vcombine.low %v3003_v63, %v3011_v0  ;;  %v3013_v13 = vcombine.high %v3003_v63, %v3011_v0 }
 0x3b9   : > { %v8373_v49 = vsel %vm3302_vm1, %v3854_v6, 0 }
 0x3ba   : > { %v3016_v26 = vpack.c.bf16 %v3012_v20, %v2962_v10  ;;  %v3017_v40 = vpack.c.bf16 %v3013_v13, %v2963_v54 }
 0x3bc   : > { %v8380_v63 = vsel %vm3302_vm1, %v3016_v26, 0  ;;  %v8383_v0 = vsel %vm3302_vm1, %v3017_v40, 0  ;;  %v3903_v10 = vrot.slane %v3016_v26, 4  ;;  %v3952_v54 = vrot.slane %v3017_v40, 4 }
 0x3be   : > { %v8393_v61 = vsel %vm3302_vm1, %v3952_v54, 0 }
 0x3c0   : > { %v1542_v2 = vpop.f32.mrf.mxu1 }
 0x3c1   : > { %v1543_v37 = vadd.f32 %v1542_v2, %v8148_v23 }
 0x3c2   : > { %v1544_v53 = vpop.f32.mrf.mxu1 }
 0x3c3   : > { %v2082_v5 = vcombine.high %v1543_v37, %v9376_v60  ;;  %v1545_v38 = vadd.f32 %v1544_v53, %v8156_v15  ;;  %v2089_v8 = vrot.slane %v1543_v37, %v8118_v14 }
 0x3c4   : > { %v1546_v19 = vpop.f32.mrf.mxu1 }
 0x3c5   : > { %v2096_v18 = vrot.slane %v2082_v5, %v8118_v14  ;;  %v2097_v36 = vcombine.high %v1545_v38, %v9376_v60  ;;  %v2104_v2 = vrot.slane %v1545_v38, %v8118_v14  ;;  %v1547_v35 = vadd.f32 %v1546_v19, %v8148_v23 }
 0x3c6   : > { %v1548_v4 = vpop.f32.mrf.mxu1  ;;  %v8390_v19 = vsel %vm3302_vm1, %v3903_v10, 0 }
 0x3c7   : > { %v2111_v37 = vrot.slane %v2097_v36, %v8118_v14  ;;  %v2112_v53 = vcombine.low %v2089_v8, %v2104_v2  ;;  %v2113_v20 = vcombine.high %v2089_v8, %v2104_v2  ;;  %v2148_v13 = vcombine.high %v1547_v35, %v9376_v60 }
 0x3c8   : > { %v2155_v6 = vrot.slane %v1547_v35, %v8118_v14  ;;  %v1549_v5 = vadd.f32 %v1548_v4, %v8156_v15  ;;  %v1552_v38 = vpop.f32.mrf.mxu1 }
 0x3c9   : > { %v2120_v26 = vrot.slane %v2112_v53, %v8129_v39  ;;  %v2127_v40 = vrot.slane %v2113_v20, %v8129_v39  ;;  %v2128_v36 = vcombine.low %v2096_v18, %v2111_v37  ;;  %v2129_v29 = vcombine.high %v2096_v18, %v2111_v37 }
 0x3ca   : > { %v2162_v8 = vrot.slane %v2148_v13, %v8118_v14  ;;  %v2163_v2 = vcombine.high %v1549_v5, %v9376_v60  ;;  %v2170_v35 = vrot.slane %v1549_v5, %v8118_v14  ;;  %v1553_v4 = vadd.f32 %v1552_v38, %v8148_v23  ;;  %v1554_v1 = vpop.f32.mrf.mxu1 }
 0x3cb   : > { %v2136_v10 = vrot.slane %v2128_v36, %v8129_v39  ;;  %v2143_v54 = vrot.slane %v2129_v29, %v8129_v39  ;;  %v2346_v33 = vcombine.low %v2120_v26, %v2127_v40  ;;  %v6401_v52 = vcombine.high %v2120_v26, %v2127_v40 }
 0x3cc   : > { %v2177_v53 = vrot.slane %v2163_v2, %v8118_v14  ;;  %v2178_v20 = vcombine.low %v2155_v6, %v2170_v35  ;;  %v2179_v56 = vcombine.high %v2155_v6, %v2170_v35  ;;  %v2214_v18 = vcombine.high %v1553_v4, %v9376_v60  ;;  %v1556_v37 = vpop.f32.mrf.mxu1 }
 0x3cd   : > { %v8406_v13 = vrot.slane %v2346_v33, %v8118_v14  ;;  %v8409_v5 = vrot.slane %v6401_v52, %v8118_v14  ;;  %v2362_v38 = vcombine.low %v2136_v10, %v2143_v54  ;;  %v6402_v32 = vcombine.high %v2136_v10, %v2143_v54 }
 0x3ce   : > { %v2186_v36 = vrot.slane %v2178_v20, %v8129_v39  ;;  %v2193_v29 = vrot.slane %v2179_v56, %v8129_v39  ;;  %v2194_v26 = vcombine.low %v2162_v8, %v2177_v53  ;;  %v2195_v40 = vcombine.high %v2162_v8, %v2177_v53  ;;  %v1558_v2 = vpop.f32.mrf.mxu1 }
 0x3cf   : > { %v8414_v6 = vrot.slane %v2044_v47, %v8118_v14  ;;  %v8417_v35 = vrot.slane %v6400_v48, %v8118_v14  ;;  %v8420_v33 = vrot.slane %v2362_v38, %v8118_v14  ;;  %v8423_v52 = vrot.slane %v6402_v32, %v8118_v14 }
 0x3d0   : > { %v2202_v10 = vrot.slane %v2194_v26, %v8129_v39  ;;  %v2209_v54 = vrot.slane %v2195_v40, %v8129_v39  ;;  %v2396_v56 = vcombine.low %v2186_v36, %v2193_v29  ;;  %v6403_v20 = vcombine.high %v2186_v36, %v2193_v29 }
 0x3d1   : > { %v1555_v47 = vadd.f32 %v1554_v1, %v8156_v15  ;;  %v1557_v48 = vadd.f32 %v1556_v37, %v8148_v23  ;;  %v1559_v53 = vadd.f32 %v1558_v2, %v8156_v15  ;;  %v2221_v32 = vrot.slane %v1553_v4, %v8118_v14 }
 0x3d2   : > { %v2412_v38 = vcombine.low %v2202_v10, %v2209_v54  ;;  %v6404_v60 = vcombine.high %v2202_v10, %v2209_v54  ;;  %v2228_v31 = vrot.slane %v2214_v18, %v8118_v14  ;;  %v2403_v26 = vrot.slane %v2396_v56, %v8118_v14 }
 0x3d3   : > { %v9407_v40 = vmov 0.0   ;;  %v2236_v36 = vrot.slane %v1555_v47, %v8118_v14  ;;  %v2411_v1 = vrot.slane %v6403_v20, %v8118_v14  ;;  %v2287_v15 = vrot.slane %v1557_v48, %v8118_v14 }
 0x3d4   : > { %v2229_v22 = vcombine.high %v1555_v47, %v9407_v40  ;;  %v2280_v29 = vcombine.high %v1557_v48, %v9407_v40  ;;  %v2419_v23 = vrot.slane %v2412_v38, %v8118_v14  ;;  %v2295_v37 = vcombine.high %v1559_v53, %v9407_v40 }
 0x3d5   : > { %v2427_v4 = vrot.slane %v6404_v60, %v8118_v14  ;;  %v2244_v2 = vcombine.low %v2221_v32, %v2236_v36  ;;  %v2245_v10 = vcombine.high %v2221_v32, %v2236_v36  ;;  %v2302_v56 = vrot.slane %v1559_v53, %v8118_v14 }
 0x3d6   : > { %v2243_v18 = vrot.slane %v2229_v22, %v8118_v14  ;;  %v2294_v54 = vrot.slane %v2280_v29, %v8118_v14  ;;  %v2309_v47 = vrot.slane %v2295_v37, %v8118_v14  ;;  %v2386_v20 = vcombine.low %v8420_v33, %v8423_v52 }
 0x3d7   : > { %v2252_v38 = vrot.slane %v2244_v2, %v8129_v39  ;;  %v2259_v48 = vrot.slane %v2245_v10, %v8129_v39  ;;  %v2310_v60 = vcombine.low %v2287_v15, %v2302_v56  ;;  %v2311_v24 = vcombine.high %v2287_v15, %v2302_v56 }
 0x3d8   : > { %v2260_v8 = vcombine.low %v2228_v31, %v2243_v18  ;;  %v2261_v27 = vcombine.high %v2228_v31, %v2243_v18  ;;  %v2326_v22 = vcombine.low %v2294_v54, %v2309_v47  ;;  %v2327_v21 = vcombine.high %v2294_v54, %v2309_v47 }
 0x3d9   : > { %v2446_v53 = vcombine.low %v2252_v38, %v2259_v48  ;;  %v6405_v29 = vcombine.high %v2252_v38, %v2259_v48  ;;  %v2318_v37 = vrot.slane %v2310_v60, %v8129_v39  ;;  %v2325_v33 = vrot.slane %v2311_v24, %v8129_v39 }
 0x3da   : > { %v2268_v32 = vrot.slane %v2260_v8, %v8129_v39  ;;  %v2275_v36 = vrot.slane %v2261_v27, %v8129_v39  ;;  %v2334_v52 = vrot.slane %v2326_v22, %v8129_v39  ;;  %v2341_v2 = vrot.slane %v2327_v21, %v8129_v39 }
 0x3db   : > { %v2453_v31 = vrot.slane %v2446_v53, %v8118_v14  ;;  %v2461_v15 = vrot.slane %v6405_v29, %v8118_v14  ;;  %v2496_v54 = vcombine.low %v2318_v37, %v2325_v33  ;;  %v6407_v8 = vcombine.high %v2318_v37, %v2325_v33 }
 0x3dc   : > { %v2462_v18 = vcombine.low %v2268_v32, %v2275_v36  ;;  %v6406_v10 = vcombine.high %v2268_v32, %v2275_v36  ;;  %v2512_v56 = vcombine.low %v2334_v52, %v2341_v2  ;;  %v6408_v27 = vcombine.high %v2334_v52, %v2341_v2 }
 0x3dd   : > { %v2428_v47 = vcombine.low %v2403_v26, %v2411_v1  ;;  %v2478_v24 = vcombine.low %v2453_v31, %v2461_v15  ;;  %v2503_v60 = vrot.slane %v2496_v54, %v8118_v14  ;;  %v2511_v21 = vrot.slane %v6407_v8, %v8118_v14 }
 0x3de   : > { %v2469_v38 = vrot.slane %v2462_v18, %v8118_v14  ;;  %v2477_v48 = vrot.slane %v6406_v10, %v8118_v14  ;;  %v2519_v22 = vrot.slane %v2512_v56, %v8118_v14  ;;  %v2527_v53 = vrot.slane %v6408_v27, %v8118_v14 }
 0x3df   : > { %v9408_v32 = vcombine.high %v8283_v3, %v8286_v50  ;;  %v9409_v26 = vcombine.low %v8332_v34, %v8335_v44  ;;  %v2393_v29 = vrot.slane %v2386_v20, %v8129_v39  ;;  %v2436_v37 = vcombine.low %v2419_v23, %v2427_v4 }
 0x3e0   : > { %v9410_v33 = vcombine.high %v8332_v34, %v8335_v44  ;;  %v2528_v2 = vcombine.low %v2503_v60, %v2511_v21  ;;  %v2486_v31 = vcombine.low %v2469_v38, %v2477_v48  ;;  %v2536_v15 = vcombine.low %v2519_v22, %v2527_v53 }
 0x3e1   : > { %v2009_v36 = vrot.slane %v9408_v32, %v8118_v14  ;;  %v2035_v1 = vrot.slane %v9409_v26, %v8118_v14  ;;  %v2068_v3 = vcombine.low %v8414_v6, %v8417_v35  ;;  %v9411_v50 = vcombine.low %v8406_v13, %v8409_v5 }
 0x3e2   : > { %v2043_v52 = vrot.slane %v9410_v33, %v8118_v14  ;;  %v2435_v10 = vrot.slane %v2428_v47, %v8129_v39  ;;  %v2443_v23 = vrot.slane %v2436_v37, %v8129_v39  ;;  %v2485_v4 = vrot.slane %v2478_v24, %v8129_v39 }
 0x3e3   : > { %v2385_v18 = vrot.slane %v9411_v50, %v8129_v39  ;;  %v2493_v34 = vrot.slane %v2486_v31, %v8129_v39  ;;  %v2535_v44 = vrot.slane %v2528_v2, %v8129_v39  ;;  %v2543_v20 = vrot.slane %v2536_v15, %v8129_v39 }
 0x3e4   : > { %v1910_v6 = vcombine.low %v8167_v42, %v8170_v43  ;;  %v2444_v54 = vcombine.low %v2435_v10, %v2443_v23  ;;  %v9412_v13 = vcombine.low %v8263_v62, %v8274_v28  ;;  %v2018_v8 = vcombine.low %v8355_v7, %v2009_v36 }
 0x3e5   : > { %v2394_v35 = vcombine.low %v2385_v18, %v2393_v29  ;;  %v2060_v56 = vcombine.low %v2035_v1, %v2043_v52  ;;  %v2495_v27 = vcombine.high %v2485_v4, %v2493_v34  ;;  %v2545_v47 = vcombine.high %v2535_v44, %v2543_v20 }
 0x3e6   : > { %v1975_v5 = vrot.slane %v9412_v13, %v8129_v39  ;;  %v9413_v38 = vcombine.low %v8242_v45, %v8245_v9  ;;  %v2010_v42 = vcombine.low %v8325_v16, %v8340_v41  ;;  %v9414_v43 = vcombine.low %v8175_v46, %v8184_v51 }
 0x3e7   : > { %v2546_v24 = vpack.c.bf16 %v2444_v54, %v2394_v35  ;;  %v8507_v28 = vpack.c.bf16 %v2545_v47, %v2495_v27  ;;  %v2075_v7 = vrot.slane %v2068_v3, %v8129_v39  ;;  %v1917_v60 = vrot.slane %v1910_v6, %v8129_v39 }
 0x3e8   : > { %v1967_v48 = vrot.slane %v9413_v38, %v8129_v39  ;;  %v1925_v62 = vrot.slane %v9414_v43, %v8129_v39  ;;  %v2067_v45 = vrot.slane %v2060_v56, %v8129_v39  ;;  %v2025_v9 = vrot.slane %v2018_v8, %v8129_v39 }
 0x3e9   : > { %6654 = vmatpush3.bf16.xpose.msra.mxu0 %v2546_v24  ;;  %6672 = vmatpush3.bf16.xpose.msra.mxu1 %v8507_v28  ;;  %v2912_v46 = vcombine.low %v8317_v55, %v8320_v57  ;;  %v2445_v51 = vcombine.high %v2435_v10, %v2443_v23  ;;  %v2017_v16 = vrot.slane %v2010_v42, %v8129_v39  ;;  %v3497_v50 = vrot.slane %v2546_v24, 4 }
 0x3ea   : > { %v1976_v21 = vcombine.low %v1967_v48, %v1975_v5  ;;  %6659 = vmatprep.subr.bf16.mxu0 %v9407_v40  ;;  %6677 = vmatprep.subr.bf16.mxu1 %v9407_v40  ;;  %v1926_v41 = vcombine.low %v1917_v60, %v1925_v62  ;;  %v2077_v22 = vcombine.high %v2067_v45, %v2075_v7 }
 0x3eb   : > { %v2862_v53 = vcombine.low %v8311_v17, %v8314_v25  ;;  %v2395_v32 = vcombine.high %v2385_v18, %v2393_v29  ;;  %v2027_v26 = vcombine.high %v2017_v16, %v2025_v9  ;;  %v1977_v55 = vcombine.high %v1967_v48, %v1975_v5 }
 0x3ec   : > { %v2078_v36 = vpack.c.bf16 %v1976_v21, %v1926_v41  ;;  %v2544_v25 = vcombine.low %v2535_v44, %v2543_v20  ;;  %v1927_v57 = vcombine.high %v1917_v60, %v1925_v62  ;;  %v2494_v29 = vcombine.low %v2485_v4, %v2493_v34 }
 0x3ed   : > { %v3014_v1 = vpack.c.bf16 %v2912_v46, %v2862_v53  ;;  %v8521_v37 = vpack.c.bf16 %v2445_v51, %v2395_v32  ;;  %v8523_v33 = vpack.c.bf16 %v2077_v22, %v2027_v26  ;;  %v2076_v31 = vcombine.low %v2067_v45, %v2075_v7 }
 0x3ee   : > { %v8534_v52 = vpack.c.bf16 %v1977_v55, %v1927_v57  ;;  %v2548_v2 = vpack.c.bf16 %v2544_v25, %v2494_v29  ;;  %v2026_v15 = vcombine.low %v2017_v16, %v2025_v9 }
 0x3ef   : > { %v3304_v17 = vsel %vm3302_vm1, %v3014_v1, 0  ;;  %v3805_v10 = vrot.slane %v3014_v1, 4 }
 0x3f0   : > { %6656 = vmatmul.mubr.bf16.vlgmr.msra.gmra.mxu0 %v2078_v36  ;;  %6674 = vmatmul.mubr.bf16.vlgmr.msra.gmra.mxu1 %v8523_v33  ;;  %v2080_v3 = vpack.c.bf16 %v2076_v31, %v2026_v15  ;;  %v3585_v18 = vrot.slane %v2548_v2, 4 }
 0x3f1   : > { %6660 = vmatpush3.bf16.xpose.msra.mxu0 %v8521_v37  ;;  %6661 = vmatprep.mubr.msk.bf16.mxu0 %vm7464_vm0, %v9407_v40  ;;  %v3810_v23 = vsel %vm3302_vm1, %v3805_v10, 0 }
 0x3f2   : > { %6665 = vmatprep.subr.bf16.mxu0 %v9407_v40  ;;  %6678 = vmatpush3.bf16.msra.mxu1 %v3304_v17 }
 0x3f3   : > { %6679 = vmatprep.mubr.msk.bf16.mxu1 %vm7464_vm0, %v9407_v40  ;;  %6683 = vmatprep.subr.bf16.mxu1 %v9407_v40 }
 0x3f8   : > { %6662 = vmatmul.mubr.bf16.vlgmr.msra.gmra.mxu0 %v8534_v52 }
 0x3f9   : > { %6666 = vmatpush3.bf16.xpose.msra.mxu0 %v2548_v2  ;;  %6667 = vmatprep.mubr.msk.bf16.mxu0 %vm7464_vm0, %v9407_v40 }
 0x3fa   : > { %6701 = vmatprep.subr.bf16.mxu0 %v9407_v40 }
 0x400   : > { %6668 = vmatmul.mubr.bf16.vlgmr.msra.gmra.mxu0 %v2080_v3 }
 0x401   : > { %6702 = vmatpush3.bf16.xpose.msra.mxu0 %v3497_v50  ;;  %6703 = vmatprep.mubr.msk.bf16.mxu0 %vm7464_vm0, %v9407_v40 }
 0x402   : > { %6713 = vmatprep.subr.bf16.mxu0 %v9407_v40 }
 0x408   : > { %6704 = vmatmul.mubr.bf16.vlgmr.msra.gmra.mxu0 %v2078_v36 }
 0x409   : > { %6714 = vmatpush3.bf16.xpose.msra.mxu0 %v3585_v18  ;;  %6715 = vmatprep.mubr.msk.bf16.mxu0 %vm7464_vm0, %v9407_v40 }
 0x40a   : > { %6725 = vmatprep.subr.bf16.mxu0 %v9407_v40 }
 0x410   : > { %6716 = vmatmul.mubr.bf16.vlgmr.msra.gmra.mxu0 %v2080_v3 }
 0x411   : > { %6726 = vmatpush3.bf16.msra.mxu0 %v3810_v23  ;;  %6727 = vmatprep.mubr.msk.bf16.mxu0 %vm7464_vm0, %v9407_v40 }
 0x412   : > { %6737 = vmatprep.subr.bf16.mxu0 %v9407_v40 }
 0x4b0   : > { %v3052_v4 = vpop.f32.mrf.mxu0  ;;  %v8551_v20 = vpop.f32.mrf.mxu1 }
 0x4b1   : > { %v3183_v34 = vsel %vm3182_vm2, %v3052_v4, -inf  ;;  %v3201_v60 = vsel %vm3182_vm2, %v8551_v20, -inf }
 0x4b2   : > { %3184 = vmax.xlane.f32.xlu0 %v3183_v34  ;;  %v6657_v44 = vpop.f32.mrf.mxu0  ;;  %v6675_v35 = vpop.f32.mrf.mxu1 }
 0x4b4   : > { %v3055_v6 = vpop.f32.mrf.mxu0  ;;  %v8554_v5 = vpop.f32.mrf.mxu1 }
 0x4b5   : > { %v3186_v54 = vsel %vm3182_vm2, %v3055_v6, -inf  ;;  %v3204_v46 = vsel %vm3182_vm2, %v8554_v5, -inf }
 0x4b6   : > { %3187 = vmax.xlane.f32.xlu1 %v3186_v54  ;;  %v6658_v13 = vpop.f32.mrf.mxu0  ;;  %v6676_v56 = vpop.f32.mrf.mxu1 }
 0x4b8   : > { %v3093_v8 = vpop.f32.mrf.mxu0 }
 0x4b9   : > { %v3189_v27 = vsel %vm3182_vm2, %v3093_v8, -inf }
 0x4ba   : > { %3190 = vmax.xlane.f32.xlu0 %v3189_v27  ;;  %v6663_v47 = vpop.f32.mrf.mxu0 }
 0x4bc   : > { %v3096_v38 = vpop.f32.mrf.mxu0 }
 0x4bd   : > { %v3192_v48 = vsel %vm3182_vm2, %v3096_v38, -inf }
 0x4be   : > { %3193 = vmax.xlane.f32.xlu1 %v3192_v48  ;;  %v6664_v24 = vpop.f32.mrf.mxu0 }
 0x4c0   : > { %v3134_v42 = vpop.f32.mrf.mxu0 }
 0x4c1   : > { %v3195_v43 = vsel %vm3182_vm2, %v3134_v42, -inf }
 0x4c2   : > { %3196 = vmax.xlane.f32.xlu0 %v3195_v43  ;;  %v6669_v62 = vpop.f32.mrf.mxu0 }
 0x4c4   : > { %v3137_v7 = vpop.f32.mrf.mxu0 }
 0x4c5   : > { %v3198_v21 = vsel %vm3182_vm2, %v3137_v7, -inf }
 0x4c6   : > { %3202 = vmax.xlane.f32.xlu0 %v3201_v60  ;;  %3199 = vmax.xlane.f32.xlu1 %v3198_v21  ;;  %v6670_v45 = vpop.f32.mrf.mxu0 }
 0x4c8   : > { %v3533_v9 = vpop.f32.mrf.mxu0 }
 0x4c9   : > { %v3672_v51 = vsel %vm3182_vm2, %v3533_v9, -inf }
 0x4ca   : > { %3205 = vmax.xlane.f32.xlu1 %v3204_v46  ;;  %3673 = vmax.xlane.f32.xlu0 %v3672_v51  ;;  %v6705_v16 = vpop.f32.mrf.mxu0 }
 0x4cc   : > { %v3536_v41 = vpop.f32.mrf.mxu0 }
 0x4cd   : > { %v3675_v22 = vsel %vm3182_vm2, %v3536_v41, -inf }
 0x4ce   : > { %3676 = vmax.xlane.f32.xlu1 %v3675_v22  ;;  %v6706_v53 = vpop.f32.mrf.mxu0 }
 0x4d0   : > { %v8566_v32 = vpop.f32.mrf.mxu0 }
 0x4d2   : > { %v6717_v36 = vpop.f32.mrf.mxu0 }
 0x4d4   : > { %v8568_v26 = vpop.f32.mrf.mxu0 }
 0x4d6   : > { %v6718_v1 = vpop.f32.mrf.mxu0 }
 0x53b   : > { %v8570_v55 = vpop.xlane.xlu0 %3184 }
 0x53c   : > { %v3231_v17 = vsub.f32 %v3052_v4, %v8570_v55 }
 0x53e   : > { %v3239_v25 = vmul.f32 1.442695, %v3231_v17 }
 0x53f   : > { %v8573_v57 = vpop.xlane.xlu1 %3187 }
 0x540   : > { %v3232_v29 = vsub.f32 %v3055_v6, %v8573_v57  ;;  %7026 = vpow2.f32 %v3239_v25  ;;  %v3541_v25 = vrot.slane %v8521_v37, 4  ;;  %v3629_v37 = vrot.slane %v8507_v28, 4 }
 0x542   : > { %v3241_v2 = vmul.f32 1.442695, %v3232_v29 }
 0x543   : > { %v8576_v31 = vpop.xlane.xlu0 %3190 }
 0x544   : > { %7028 = vpow2.f32 %v3241_v2  ;;  %v3233_v15 = vsub.f32 %v3093_v8, %v8576_v31 }
 0x546   : > { %v3243_v3 = vmul.f32 1.442695, %v3233_v15 }
 0x547   : > { %v8579_v50 = vpop.xlane.xlu1 %3193 }
 0x548   : > { %v3234_v18 = vsub.f32 %v3096_v38, %v8579_v50  ;;  %7030 = vpow2.f32 %v3243_v3 }
 0x54a   : > { %v3245_v10 = vmul.f32 1.442695, %v3234_v18 }
 0x54b   : > { %v8582_v23 = vpop.xlane.xlu0 %3196 }
 0x54c   : > { %7032 = vpow2.f32 %v3245_v10  ;;  %v3235_v4 = vsub.f32 %v3134_v42, %v8582_v23 }
 0x54d   : > { %v8589_v6 = vpop.eup %7026 }
 0x54e   : > { %v3247_v35 = vmul.f32 1.442695, %v3235_v4 }
 0x54f   : > { %v8585_v34 = vpop.xlane.xlu0 %3202  ;;  %v8587_v44 = vpop.xlane.xlu1 %3199 }
 0x550   : > { %v3236_v13 = vsub.f32 %v3137_v7, %v8587_v44  ;;  %7034 = vpow2.f32 %v3247_v35  ;;  %v3237_v24 = vsub.f32 %v8551_v20, %v8585_v34 }
 0x551   : > { %v8591_v54 = vpop.eup %7028 }
 0x552   : > { %v3295_v8 = vpack.c.bf16 %v8591_v54, %v8589_v6  ;;  %v3249_v56 = vmul.f32 1.442695, %v3236_v13  ;;  %v3251_v21 = vmul.f32 1.442695, %v3237_v24 }
 0x553   : > { %v8596_v27 = vpop.xlane.xlu1 %3205  ;;  %v3674_v47 = vpop.xlane.xlu0 %3673 }
 0x554   : > { %v3238_v38 = vsub.f32 %v8554_v5, %v8596_v27  ;;  %v8601_v48 = vmax.f32 %v8570_v55, %v3674_v47  ;;  %6680 = vmatmul.mubr.msk.bf16.vlgmr.msra.gmra.mxu1 %vm3182_vm2, %v3295_v8  ;;  %7036 = vpow2.f32 %v3249_v56 }
 0x555   : > { %6684 = vmatpush3.bf16.msra.mxu1 %v8361_v30  ;;  %6685 = vmatprep.mubr.msk.bf16.mxu1 %vm7464_vm0, %v9407_v40  ;;  %v8613_v7 = vpop.eup %7030 }
 0x556   : > { %v3704_v42 = vsub.f32 %v8570_v55, %v8601_v48  ;;  %v3728_v43 = vsub.f32 %v3533_v9, %v8601_v48  ;;  %6689 = vmatprep.subr.bf16.mxu1 %v9407_v40  ;;  %v3253_v5 = vmul.f32 1.442695, %v3238_v38 }
 0x557   : > { %v3677_v62 = vpop.xlane.xlu1 %3676 }
 0x558   : > { %v3697_v60 = vmax.f32 %v8573_v57, %v3677_v62  ;;  %v3736_v30 = vmul.f32 1.442695, %v3728_v43  ;;  %7038 = vpow2.f32 %v3253_v5  ;;  %v3712_v2 = vmul.f32 1.442695, %v3704_v42 }
 0x559   : > { %v8616_v20 = vpop.eup %7032  ;;  %7040 = vpow2.f32 %v3251_v21 }
 0x55a   : > { %v3705_v45 = vsub.f32 %v8573_v57, %v3697_v60  ;;  %v3729_v46 = vsub.f32 %v3536_v41, %v3697_v60  ;;  %v3296_v51 = vpack.c.bf16 %v8616_v20, %v8613_v7  ;;  %7042 = vpow2.f32 %v3736_v30 }
 0x55c   : > { %v3738_v9 = vmul.f32 1.442695, %v3729_v46  ;;  %6686 = vmatmul.mubr.msk.bf16.vlgmr.msra.gmra.mxu1 %vm3182_vm2, %v3296_v51  ;;  %v3714_v15 = vmul.f32 1.442695, %v3705_v45 }
 0x55d   : > { %6690 = vmatpush3.bf16.msra.mxu1 %v8380_v63  ;;  %6691 = vmatprep.mubr.msk.bf16.mxu1 %vm7464_vm0, %v9407_v40  ;;  %v8626_v16 = vpop.eup %7034 }
 0x55e   : > { %6695 = vmatprep.subr.bf16.mxu1 %v9407_v40  ;;  %7044 = vpow2.f32 %v3738_v9 }
 0x561   : > { %v8628_v41 = vpop.eup %7036 }
 0x562   : > { %v3297_v22 = vpack.c.bf16 %v8628_v41, %v8626_v16 }
 0x564   : > { %6692 = vmatmul.mubr.msk.bf16.vlgmr.msra.gmra.mxu1 %vm3182_vm2, %v3297_v22 }
 0x565   : > { %6696 = vmatpush3.bf16.msra.mxu1 %v8383_v0  ;;  %6697 = vmatprep.mubr.msk.bf16.mxu1 %vm7464_vm0, %v9407_v40  ;;  %v8637_v63 = vpop.eup %7038 }
 0x566   : > { %6707 = vmatprep.subr.bf16.mxu1 %v9407_v40  ;;  %v8639_v53 = vpop.eup %7040 }
 0x567   : > { %v8641_v36 = vpop.eup %7042  ;;  %v3298_v1 = vpack.c.bf16 %v8637_v63, %v8639_v53 }
 0x56b   : > { %v8645_v17 = vpop.eup %7044 }
 0x56c   : > { %6698 = vmatmul.mubr.msk.bf16.vlgmr.msra.gmra.mxu1 %vm3182_vm2, %v3298_v1  ;;  %v3800_v0 = vpack.c.bf16 %v8645_v17, %v8641_v36 }
 0x56d   : > { %6708 = vmatpush3.bf16.xpose.msra.mxu1 %v3541_v25  ;;  %6709 = vmatprep.mubr.msk.bf16.mxu1 %vm7464_vm0, %v9407_v40 }
 0x56e   : > { %6728 = vmatmul.mubr.msk.bf16.vlgmr.msra.gmra.mxu0 %vm3182_vm2, %v3800_v0  ;;  %6719 = vmatprep.subr.bf16.mxu1 %v9407_v40 }
 0x56f   : > { %6738 = vmatpush3.bf16.msra.mxu0 %v8390_v19  ;;  %6739 = vmatprep.mubr.msk.bf16.mxu0 %vm7464_vm0, %v9407_v40  ;;  %v3207_v19 = vsub.f32 -inf, %v8570_v55 }
 0x571   : > { %v3215_v28 = vmul.f32 1.442695, %v3207_v19 }
 0x573   : > { %7046 = vpow2.f32 %v3215_v28 }
 0x574   : > { %6710 = vmatmul.mubr.bf16.vlgmr.msra.gmra.mxu1 %v8534_v52  ;;  %v3208_v52 = vsub.f32 -inf, %v8573_v57 }
 0x575   : > { %6720 = vmatpush3.bf16.xpose.msra.mxu1 %v3629_v37  ;;  %6721 = vmatprep.mubr.msk.bf16.mxu1 %vm7464_vm0, %v9407_v40 }
 0x576   : > { %6731 = vmatprep.subr.bf16.mxu1 %v9407_v40  ;;  %v3217_v29 = vmul.f32 1.442695, %v3208_v52 }
 0x578   : > { %7048 = vpow2.f32 %v3217_v29 }
 0x579   : > { %7050 = vpow2.f32 %v3712_v2 }
 0x57a   : > { %7052 = vpow2.f32 %v3714_v15  ;;  %v3684_v15 = vsel %vm3182_vm2, %v8566_v32, -inf }
 0x57c   : > { %6722 = vmatmul.mubr.bf16.vlgmr.msra.gmra.mxu1 %v8523_v33 }
 0x57d   : > { %6732 = vmatpush3.bf16.msra.mxu1 %v8373_v49  ;;  %6733 = vmatprep.mubr.msk.bf16.mxu1 %vm7464_vm0, %v9407_v40 }
 0x57e   : > { %6743 = vmatprep.subr.bf16.mxu1 %v9407_v40 }
 0x580   : > { %v7047_v33 = vpop.eup %7046 }
 0x581   : > { %v8670_v3 = vmul.f32 0.0, %v7047_v33 }
 0x585   : > { %v7049_v49 = vpop.eup %7048 }
 0x586   : > { %v8673_v4 = vpop.eup %7050  ;;  %v8675_v35 = vmul.f32 0.0, %v7049_v49 }
 0x587   : > { %v8679_v56 = vpop.eup %7052 }
 0x614   : > { %v3340_v18 = vpop.f32.mrf.mxu1 }
 0x615   : > { %v3488_v10 = vadd.f32 %v3340_v18, %v8670_v3 }
 0x616   : > { %v6681_v55 = vpop.f32.mrf.mxu1 }
 0x617   : > { %v3792_v57 = vmul.f32 %v8673_v4, %v3488_v10  ;;  %v3687_v10 = vsel %vm3182_vm2, %v8568_v26, -inf }
 0x618   : > { %v3343_v13 = vpop.f32.mrf.mxu1 }
 0x619   : > { %v3489_v8 = vadd.f32 %v3343_v13, %v8675_v35  ;;  %v3263_v13 = vsel %vm3182_vm2, %v8589_v6, 0.0  ;;  %v3272_v6 = vsel %vm3182_vm2, %v8616_v20, 0.0  ;;  %v3284_v20 = vsel %vm3182_vm2, %v8637_v63, 0.0 }
 0x61a   : > { %v6682_v47 = vpop.f32.mrf.mxu1 }
 0x61b   : > { %v3793_v38 = vmul.f32 %v8679_v56, %v3489_v8 }
 0x61c   : > { %v8682_v48 = vpop.f32.mrf.mxu1 }
 0x61e   : > { %v6687_v24 = vpop.f32.mrf.mxu1 }
 0x61f   : > { %v3266_v24 = vsel %vm3182_vm2, %v8591_v54, 0.0  ;;  %v3281_v54 = vsel %vm3182_vm2, %v8639_v53, 0.0  ;;  %v3213_v53 = vsub.f32 -inf, %v8585_v34 }
 0x620   : > { %v8684_v42 = vpop.f32.mrf.mxu1 }
 0x621   : > { %v3227_v63 = vmul.f32 1.442695, %v3213_v53 }
 0x622   : > { %v6688_v43 = vpop.f32.mrf.mxu1 }
 0x623   : > { %v3760_v43 = vsel %vm3182_vm2, %v8641_v36, 0.0  ;;  %v3209_v36 = vsub.f32 -inf, %v8576_v31 }
 0x624   : > { %v8686_v5 = vpop.f32.mrf.mxu1 }
 0x626   : > { %v6693_v62 = vpop.f32.mrf.mxu1 }
 0x627   : > { %v3275_v62 = vsel %vm3182_vm2, %v8626_v16, 0.0  ;;  %v3210_v16 = vsub.f32 -inf, %v8579_v50 }
 0x628   : > { %v8688_v60 = vpop.f32.mrf.mxu1 }
 0x62a   : > { %v6694_v21 = vpop.f32.mrf.mxu1 }
 0x62b   : > { %v3763_v21 = vsel %vm3182_vm2, %v8645_v17, 0.0  ;;  %v3211_v17 = vsub.f32 -inf, %v8582_v23 }
 0x62c   : > { %v8690_v30 = vpop.f32.mrf.mxu1 }
 0x62e   : > { %v6699_v45 = vpop.f32.mrf.mxu1  ;;  %v3846_v46 = vpop.f32.mrf.mxu0 }
 0x62f   : > { %v8692_v51 = vadd.f32 %v3846_v46, %v3792_v57  ;;  %v3212_v45 = vsub.f32 -inf, %v8587_v44  ;;  %v3219_v46 = vmul.f32 1.442695, %v3209_v36 }
 0x630   : > { %v8694_v9 = vpop.f32.mrf.mxu1  ;;  %v6729_v22 = vpop.f32.mrf.mxu0 }
 0x631   : > { %v3221_v22 = vmul.f32 1.442695, %v3210_v16  ;;  %7054 = vpow2.f32 %v3219_v46 }
 0x632   : > { %v6700_v1 = vpop.f32.mrf.mxu1  ;;  %v3849_v25 = vpop.f32.mrf.mxu0 }
 0x633   : > { %v8696_v0 = vadd.f32 %v3849_v25, %v3793_v38  ;;  %v3269_v38 = vsel %vm3182_vm2, %v8613_v7, 0.0  ;;  %v3278_v7 = vsel %vm3182_vm2, %v8628_v41, 0.0  ;;  %v3223_v1 = vmul.f32 1.442695, %v3211_v17 }
 0x634   : > { %v8698_v37 = vpop.f32.mrf.mxu1  ;;  %v6730_v19 = vpop.f32.mrf.mxu0  ;;  %v3225_v41 = vmul.f32 1.442695, %v3212_v45  ;;  %7056 = vpow2.f32 %v3221_v22 }
 0x635   : > { %v3678_v28 = vsel %vm3182_vm2, %v8698_v37, -inf  ;;  %7058 = vpow2.f32 %v3223_v1 }
 0x636   : > { %v6711_v52 = vpop.f32.mrf.mxu1  ;;  %3679 = vmax.xlane.f32.xlu0 %v3678_v28  ;;  %v3214_v28 = vsub.f32 -inf, %v8596_v27  ;;  %7060 = vpow2.f32 %v3225_v41 }
 0x637   : > { %7062 = vpow2.f32 %v3227_v63 }
 0x638   : > { %v8702_v29 = vpop.f32.mrf.mxu1 }
 0x639   : > { %v3681_v2 = vsel %vm3182_vm2, %v8702_v29, -inf }
 0x63a   : > { %v6712_v33 = vpop.f32.mrf.mxu1  ;;  %3682 = vmax.xlane.f32.xlu1 %v3681_v2  ;;  %3685 = vmax.xlane.f32.xlu0 %v3684_v15 }
 0x63c   : > { %v8708_v49 = vpop.f32.mrf.mxu1 }
 0x63d   : > { %v3690_v18 = vsel %vm3182_vm2, %v8708_v49, -inf }
 0x63e   : > { %v6723_v55 = vpop.f32.mrf.mxu1  ;;  %3691 = vmax.xlane.f32.xlu0 %v3690_v18  ;;  %3688 = vmax.xlane.f32.xlu1 %v3687_v10  ;;  %v7055_v22 = vpop.eup %7054 }
 0x640   : > { %v8714_v57 = vpop.f32.mrf.mxu1 }
 0x641   : > { %v3693_v8 = vsel %vm3182_vm2, %v8714_v57, -inf  ;;  %v7057_v41 = vpop.eup %7056 }
 0x642   : > { %v6724_v47 = vpop.f32.mrf.mxu1  ;;  %3264 = vadd.xlane.f32.xlu0 %v3263_v13  ;;  %3694 = vmax.xlane.f32.xlu1 %v3693_v8  ;;  %v3229_v8 = vmul.f32 1.442695, %v3214_v28 }
 0x646   : > { %3270 = vadd.xlane.f32.xlu0 %v3269_v38  ;;  %3267 = vadd.xlane.f32.xlu1 %v3266_v24 }
 0x64a   : > { %3761 = vadd.xlane.f32.xlu0 %v3760_v43  ;;  %3273 = vadd.xlane.f32.xlu1 %v3272_v6 }
 0x64e   : > { %3276 = vadd.xlane.f32.xlu0 %v3275_v62  ;;  %3764 = vadd.xlane.f32.xlu1 %v3763_v21 }
 0x652   : > { %3282 = vadd.xlane.f32.xlu0 %v3281_v54  ;;  %3279 = vadd.xlane.f32.xlu1 %v3278_v7 }
 0x656   : > { %3285 = vadd.xlane.f32.xlu1 %v3284_v20 }
 0x6bf   : > { %v3680_v25 = vpop.xlane.xlu0 %3679 }
 0x6c0   : > { %v3698_v19 = vmax.f32 %v8576_v31, %v3680_v25 }
 0x6c2   : > { %v3706_v52 = vsub.f32 %v8576_v31, %v3698_v19  ;;  %v3730_v2 = vsub.f32 %v8698_v37, %v3698_v19 }
 0x6c3   : > { %v3683_v15 = vpop.xlane.xlu1 %3682  ;;  %v3686_v33 = vpop.xlane.xlu0 %3685 }
 0x6c4   : > { %v3716_v18 = vmul.f32 1.442695, %v3706_v52  ;;  %v3740_v10 = vmul.f32 1.442695, %v3730_v2  ;;  %v3699_v55 = vmax.f32 %v8579_v50, %v3683_v15  ;;  %v3700_v13 = vmax.f32 %v8582_v23, %v3686_v33 }
 0x6c5   : > { %v8767_v52 = vmul.f32 0.0, %v7055_v22 }
 0x6c6   : > { %7064 = vpow2.f32 %v3716_v18  ;;  %v3707_v47 = vsub.f32 %v8579_v50, %v3699_v55  ;;  %v3731_v38 = vsub.f32 %v8702_v29, %v3699_v55  ;;  %v3708_v31 = vsub.f32 %v8582_v23, %v3700_v13 }
 0x6c7   : > { %7066 = vpow2.f32 %v3740_v10  ;;  %v3732_v37 = vsub.f32 %v8566_v32, %v3700_v13  ;;  %v3692_v24 = vpop.xlane.xlu0 %3691  ;;  %v3689_v43 = vpop.xlane.xlu1 %3688  ;;  %v8776_v13 = vmul.f32 0.0, %v7057_v41 }
 0x6c8   : > { %v3718_v6 = vmul.f32 1.442695, %v3707_v47  ;;  %v3742_v62 = vmul.f32 1.442695, %v3731_v38  ;;  %v3720_v21 = vmul.f32 1.442695, %v3708_v31  ;;  %v3702_v54 = vmax.f32 %v8585_v34, %v3692_v24 }
 0x6c9   : > { %7068 = vpow2.f32 %v3229_v8  ;;  %v3744_v7 = vmul.f32 1.442695, %v3732_v37  ;;  %v3701_v20 = vmax.f32 %v8587_v44, %v3689_v43  ;;  %v3491_v38 = vadd.f32 %v8684_v42, %v8776_v13 }
 0x6ca   : > { %7070 = vpow2.f32 %v3718_v6  ;;  %v3710_v50 = vsub.f32 %v8585_v34, %v3702_v54  ;;  %v3734_v29 = vsub.f32 %v8708_v49, %v3702_v54 }
 0x6cb   : > { %7072 = vpow2.f32 %v3742_v62  ;;  %v3709_v23 = vsub.f32 %v8587_v44, %v3701_v20  ;;  %v3733_v32 = vsub.f32 %v8568_v26, %v3701_v20  ;;  %v3265_v36 = vpop.xlane.xlu0 %3264  ;;  %v3695_v16 = vpop.xlane.xlu1 %3694 }
 0x6cc   : > { %7074 = vpow2.f32 %v3720_v21  ;;  %v3724_v17 = vmul.f32 1.442695, %v3710_v50  ;;  %v3748_v45 = vmul.f32 1.442695, %v3734_v29  ;;  %v3287_v46 = vadd.f32 %v3265_v36, %v8670_v3  ;;  %v7059_v44 = vpop.eup %7058 }
 0x6cd   : > { %7076 = vpow2.f32 %v3744_v7  ;;  %v3722_v53 = vmul.f32 1.442695, %v3709_v23  ;;  %v3746_v1 = vmul.f32 1.442695, %v3733_v32  ;;  %v3703_v34 = vmax.f32 %v8596_v27, %v3695_v16  ;;  %v7061_v3 = vpop.eup %7060 }
 0x6ce   : > { %7078 = vpow2.f32 %v3724_v17  ;;  %v3752_v49 = vmul.f32 %v8673_v4, %v3287_v46  ;;  %v7063_v33 = vpop.eup %7062  ;;  %v8784_v31 = vmul.f32 0.0, %v7059_v44  ;;  %v8798_v50 = vmul.f32 0.0, %v7061_v3 }
 0x6cf   : > { %7080 = vpow2.f32 %v3748_v45  ;;  %v3711_v26 = vsub.f32 %v8596_v27, %v3703_v34  ;;  %v3735_v25 = vsub.f32 %v8714_v57, %v3703_v34  ;;  %v8764_v19 = vpop.xlane.xlu0 %3270  ;;  %v3268_v63 = vpop.xlane.xlu1 %3267  ;;  %v3490_v27 = vadd.f32 %v8682_v48, %v8767_v52 }
 0x6d0   : > { %7082 = vpow2.f32 %v3722_v53  ;;  %v3288_v28 = vadd.f32 %v3268_v63, %v8675_v35  ;;  %v3492_v43 = vadd.f32 %v8686_v5, %v8784_v31  ;;  %v8790_v6 = vmul.f32 0.0, %v7063_v33  ;;  %v6968_v33 = vld [vmem:[%s9415_s29 + $0x50] ss:$8 sps:$4 sm:$0xff]  }
 0x6d1   : > { %7084 = vpow2.f32 %v3746_v1  ;;  %v3726_v2 = vmul.f32 1.442695, %v3711_v26  ;;  %v3750_v15 = vmul.f32 1.442695, %v3735_v25  ;;  %v3493_v16 = vadd.f32 %v8688_v60, %v8798_v50 }
 0x6d2   : > { %v3753_v4 = vmul.f32 %v8679_v56, %v3288_v28  ;;  %v3494_v29 = vadd.f32 %v8690_v30, %v8790_v6  ;;  %v6962_v28 = vld [vmem:[%s9415_s29 + $0x70] ss:$8 sps:$4 sm:$0xff]  }
 0x6d3   : > { %v8770_v18 = vpop.eup %7064  ;;  %7086 = vpow2.f32 %v3726_v2  ;;  %v3762_v57 = vpop.xlane.xlu0 %3761  ;;  %v6964_v2 = vld [vmem:[%s9415_s29 + $0x74] ss:$8 sps:$4 sm:$0xff]  }
 0x6d4   : > { %v8774_v10 = vpop.xlane.xlu1 %3273  ;;  %v7067_v55 = vpop.eup %7066  ;;  %7088 = vpow2.f32 %v3750_v15  ;;  %v3784_v35 = vadd.f32 %v3762_v57, %v3752_v49  ;;  %v8780_v47 = vmul.f32 %v8770_v18, %v3490_v27  ;;  %v6967_v15 = vld [vmem:[%s9415_s29 + $0x64] ss:$8 sps:$4 sm:$0xff]   ;;  %4696 = vmatprep.subr.bf16.mxu0 %v6964_v2  ;;  %v6971_v27 = vld [vmem:[%s9415_s29 + $0x40] ss:$8 sps:$4 sm:$0xff]   ;;  %v6976_v57 = vld [vmem:[%s9415_s29 + $0x34] ss:$8 sps:$4 sm:$0xff]  }
 0x6d5   : > { %v3766_v8 = vsel %vm3182_vm2, %v7067_v55, 0.0 }
 0x6d6   : > { %v7069_v56 = vpop.eup %7068  ;;  %7090 = vrcp.f32 %v3784_v35  ;;  %3767 = vadd.xlane.f32.xlu0 %v3766_v8  ;;  %v6979_v35 = vld [vmem:[%s9415_s29 + $0x24] ss:$8 sps:$4 sm:$0xff]   ;;  %v6977_v8 = vld [vmem:[%s9415_s29 + $0x20] ss:$8 sps:$4 sm:$0xff]  }
 0x6d7   : > { %v8786_v48 = vpop.eup %7070  ;;  %v8817_v45 = vmul.f32 0.0, %v7069_v56  ;;  %v6982_v56 = vld [vmem:[%s9415_s29 + $0x14] ss:$8 sps:$4 sm:$0xff]  }
 0x6d8   : > { %v3765_v37 = vpop.xlane.xlu1 %3764  ;;  %v7073_v24 = vpop.eup %7072  ;;  %v8793_v21 = vmul.f32 %v8786_v48, %v3491_v38  ;;  %v6980_v38 = vld [vmem:[%s9415_s29 + $0x10] ss:$8 sps:$4 sm:$0xff]  }
 0x6d9   : > { %v3785_v62 = vadd.f32 %v3765_v37, %v3753_v4  ;;  %v8795_v54 = vpop.eup %7074  ;;  %v3769_v42 = vsel %vm3182_vm2, %v7073_v24, 0.0  ;;  %v3801_v7 = vpack.c.bf16 %v7073_v24, %v7067_v55  ;;  %v3495_v60 = vadd.f32 %v8694_v9, %v8817_v45  ;;  %v6973_v4 = vld [vmem:[%s9415_s29 + $0x44] ss:$8 sps:$4 sm:$0xff]   ;;  %v6974_v55 = vld [vmem:[%s9415_s29 + $0x30] ss:$8 sps:$4 sm:$0xff]  }
 0x6da   : > { %v7077_v20 = vpop.eup %7076  ;;  %3770 = vadd.xlane.f32.xlu1 %v3769_v42  ;;  %v8803_v5 = vmul.f32 %v8795_v54, %v3492_v43  ;;  %v6985_v37 = vld [vmem:[%s9415_s29 + $0x4] ss:$8 sps:$4 sm:$0xff]   ;;  %v6983_v24 = vld [vmem:[%s9415_s29] ss:$8 sps:$4 sm:$0xff]   ;;  %v6988_v43 = vld [vmem:[%s9415_s29 + $0xf4] ss:$8 sps:$4 sm:$0xff]  }
 0x6db   : > { %7092 = vrcp.f32 %v3785_v62  ;;  %v8805_v23 = vpop.eup %7078  ;;  %v3772_v32 = vsel %vm3182_vm2, %v7077_v20, 0.0  ;;  %6734 = vmatmul.mubr.msk.bf16.vlgmr.msra.gmra.mxu1 %vm3182_vm2, %v3801_v7  ;;  %v6986_v62 = vld [vmem:[%s9415_s29 + $0xf0] ss:$8 sps:$4 sm:$0xff]   ;;  %v6989_v42 = vld [vmem:[%s9415_s29 + $0xe0] ss:$8 sps:$4 sm:$0xff]  }
 0x6dc   : > { %v7081_v36 = vpop.eup %7080  ;;  %3773 = vadd.xlane.f32.xlu0 %v3772_v32  ;;  %6744 = vmatpush3.bf16.msra.mxu1 %v8393_v61  ;;  %v8813_v30 = vmul.f32 %v8805_v23, %v3494_v29  ;;  %v6991_v7 = vld [vmem:[%s9415_s29 + $0xe4] ss:$8 sps:$4 sm:$0xff]   ;;  %v6994_v29 = vld [vmem:[%s9415_s29 + $0xd4] ss:$8 sps:$4 sm:$0xff]   ;;  %v6995_v32 = vld [vmem:[%s9415_s29 + $0xc0] ss:$8 sps:$4 sm:$0xff]  }
 0x6dd   : > { %v8815_v17 = vpop.eup %7082  ;;  %v3778_v46 = vsel %vm3182_vm2, %v7081_v36, 0.0  ;;  %6745 = vmatprep.mubr.msk.bf16.mxu1 %vm7464_vm0, %v9407_v40 }
 0x6de   : > { %v7085_v22 = vpop.eup %7084  ;;  %v8823_v53 = vmul.f32 %v8815_v17, %v3493_v16  ;;  %v6998_v16 = vld [vmem:[%s9415_s29 + $0xb0] ss:$8 sps:$4 sm:$0xff]  }
 0x6df   : > { %v3775_v61 = vsel %vm3182_vm2, %v7085_v22, 0.0  ;;  %v3802_v1 = vpack.c.bf16 %v7085_v22, %v7077_v20  ;;  %v6992_v20 = vld [vmem:[%s9415_s29 + $0xd0] ss:$8 sps:$4 sm:$0xff]   ;;  %v7003_v22 = vld [vmem:[%s9415_s29 + $0xa4] ss:$8 sps:$4 sm:$0xff]  }
 0x6e0   : > { %v8828_v34 = vpop.eup %7086  ;;  %3779 = vadd.xlane.f32.xlu0 %v3778_v46  ;;  %3776 = vadd.xlane.f32.xlu1 %v3775_v61  ;;  %v7000_v46 = vld [vmem:[%s9415_s29 + $0xb4] ss:$8 sps:$4 sm:$0xff]  }
 0x6e1   : > { %v7089_v41 = vpop.eup %7088  ;;  %6740 = vmatmul.mubr.msk.bf16.vlgmr.msra.gmra.mxu0 %vm3182_vm2, %v3802_v1  ;;  %v8832_v49 = vmul.f32 %v8828_v34, %v3495_v60  ;;  %v7001_v60 = vld [vmem:[%s9415_s29 + $0xa0] ss:$8 sps:$4 sm:$0xff]   ;;  %v7006_v61 = vld [vmem:[%s9415_s29 + $0x94] ss:$8 sps:$4 sm:$0xff]   ;;  %v7004_v1 = vld [vmem:[%s9415_s29 + $0x90] ss:$8 sps:$4 sm:$0xff]  }
 0x6e2   : > { %v3781_v44 = vsel %vm3182_vm2, %v7089_v41, 0.0  ;;  %v3803_v26 = vpack.c.bf16 %v7089_v41, %v7081_v36  ;;  %4697 = vmatpush1.bf16.msra.mxu0 %v6962_v28  ;;  %v6997_v36 = vld [vmem:[%s9415_s29 + $0xc4] ss:$8 sps:$4 sm:$0xff]   ;;  %v3289_v28 = vadd.f32 %v8764_v19, %v8767_v52 }
 0x6e3   : > { %v7091_v25 = vpop.eup %7090  ;;  %4698 = vmatprep.subr.bf16.mxu0 %v6967_v15  ;;  %v7009_v41 = vld [vmem:[%s9415_s29 + $0x84] ss:$8 sps:$4 sm:$0xff]  }
 0x6e4   : > { %3782 = vadd.xlane.f32.xlu1 %v3781_v44  ;;  %6746 = vmatmul.mubr.msk.bf16.vlgmr.msra.gmra.mxu1 %vm3182_vm2, %v3803_v26  ;;  %v8837_v9 = vmul.f32 %v7091_v25, %v8692_v51  ;;  %v6965_v51 = vld [vmem:[%s9415_s29 + $0x60] ss:$8 sps:$4 sm:$0xff]   ;;  %v3277_v26 = vpop.xlane.xlu0 %3276  ;;  %v3280_v25 = vpop.xlane.xlu1 %3279 }
 0x6e5   : > { %v7007_v44 = vld [vmem:[%s9415_s29 + $0x80] ss:$8 sps:$4 sm:$0xff]   ;;  %v3292_v52 = vadd.f32 %v3280_v25, %v8798_v50 }
 0x6e6   : > { %4699 = vmatpush1.bf16.msra.mxu0 %v6965_v51  ;;  %v3754_v51 = vmul.f32 %v8770_v18, %v3289_v28 }
 0x6e8   : > { %v7093_v63 = vpop.eup %7092  ;;  %v3286_v2 = vpop.xlane.xlu1 %3285 }
 0x6e9   : > { %v8840_v3 = vmul.f32 %v7093_v63, %v8696_v0  ;;  %v6970_v0 = vld [vmem:[%s9415_s29 + $0x54] ss:$8 sps:$4 sm:$0xff]   ;;  %v3283_v63 = vpop.xlane.xlu0 %3282 }
 0x6ea   : > { %4700 = vmatprep.subr.bf16.mxu0 %v6970_v0  ;;  %v3290_v0 = vadd.f32 %v8774_v10, %v8776_v13  ;;  %v3294_v10 = vadd.f32 %v3286_v2, %v8817_v45  ;;  %v4024_v45 = vcombine.high %v8837_v9, %v9407_v40 }
 0x6eb   : > { %4701 = vmatpush1.bf16.msra.mxu0 %v6968_v33 }
 0x6ec   : > { %4702 = vmatprep.subr.bf16.mxu0 %v6973_v4 }
 0x6ef   : > { %4703 = vmatpush1.bf16.msra.mxu0 %v6971_v27  ;;  %v3291_v27 = vadd.f32 %v3277_v26, %v8784_v31  ;;  %v3757_v31 = vmul.f32 %v8815_v17, %v3292_v52 }
 0x6f0   : > { %4704 = vmatprep.subr.bf16.mxu0 %v6976_v57 }
 0x6f1   : > { %v3756_v19 = vmul.f32 %v8795_v54, %v3291_v27 }
 0x6f3   : > { %4705 = vmatpush1.bf16.msra.mxu0 %v6974_v55  ;;  %v3755_v55 = vmul.f32 %v8786_v48, %v3290_v0 }
 0x6f4   : > { %4706 = vmatprep.subr.bf16.mxu0 %v6979_v35 }
 0x6f7   : > { %4707 = vmatpush1.bf16.msra.mxu0 %v6977_v8  ;;  %v3293_v8 = vadd.f32 %v3283_v63, %v8790_v6  ;;  %v3759_v6 = vmul.f32 %v8828_v34, %v3294_v10  ;;  %v4031_v34 = vrot.slane %v8837_v9, %v8118_v14 }
 0x6f8   : > { %4708 = vmatprep.subr.bf16.mxu0 %v6982_v56 }
 0x6f9   : > { %v3758_v13 = vmul.f32 %v8805_v23, %v3293_v8 }
 0x6fb   : > { %4709 = vmatpush1.bf16.msra.mxu0 %v6980_v38 }
 0x6fc   : > { %4710 = vmatprep.subr.bf16.mxu0 %v6985_v37 }
 0x6ff   : > { %4711 = vmatpush1.bf16.msra.mxu0 %v6983_v24 }
 0x700   : > { %4712 = vmatprep.subr.bf16.mxu0 %v6988_v43 }
 0x703   : > { %4713 = vmatpush2.bf16.msra.mxu0 %v6986_v62 }
 0x704   : > { %4714 = vmatprep.subr.bf16.mxu0 %v6991_v7  ;;  %v4090_v7 = vcombine.high %v8840_v3, %v9407_v40 }
 0x706   : > { %v4104_v9 = vrot.slane %v4090_v7, %v8118_v14 }
 0x707   : > { %4715 = vmatpush2.bf16.msra.mxu0 %v6989_v42 }
 0x708   : > { %4716 = vmatprep.subr.bf16.mxu0 %v6994_v29 }
 0x70b   : > { %4717 = vmatpush2.bf16.msra.mxu0 %v6992_v20 }
 0x70c   : > { %4718 = vmatprep.subr.bf16.mxu0 %v6997_v36  ;;  %v4038_v36 = vrot.slane %v4024_v45, %v8118_v14 }
 0x70f   : > { %4719 = vmatpush2.bf16.msra.mxu0 %v6995_v32 }
 0x710   : > { %4720 = vmatprep.subr.bf16.mxu0 %v7000_v46 }
 0x713   : > { %4721 = vmatpush2.bf16.msra.mxu0 %v6998_v16 }
 0x714   : > { %4722 = vmatprep.subr.bf16.mxu0 %v7003_v22 }
 0x717   : > { %4723 = vmatpush2.bf16.msra.mxu0 %v7001_v60 }
 0x718   : > { %4724 = vmatprep.subr.bf16.mxu0 %v7006_v61 }
 0x71b   : > { %4725 = vmatpush2.bf16.msra.mxu0 %v7004_v1 }
 0x71c   : > { %4726 = vmatprep.subr.bf16.mxu0 %v7009_v41  ;;  %v4097_v41 = vrot.slane %v8840_v3, %v8118_v14 }
 0x71f   : > { %4727 = vmatpush2.bf16.msra.mxu0 %v7007_v44 }
 0x75f   : > { %v3768_v15 = vpop.xlane.xlu0 %3767 }
 0x760   : > { %v3786_v33 = vadd.f32 %v3768_v15, %v3754_v51 }
 0x762   : > { %7094 = vrcp.f32 %v3786_v33 }
 0x763   : > { %v3771_v4 = vpop.xlane.xlu1 %3770 }
 0x764   : > { %v3787_v35 = vadd.f32 %v3771_v4, %v3755_v55 }
 0x765   : > { %v3774_v57 = vpop.xlane.xlu0 %3773 }
 0x766   : > { %v3788_v18 = vadd.f32 %v3774_v57, %v3756_v19  ;;  %7096 = vrcp.f32 %v3787_v35 }
 0x768   : > { %7098 = vrcp.f32 %v3788_v18 }
 0x769   : > { %v3777_v56 = vpop.xlane.xlu1 %3776  ;;  %v3780_v38 = vpop.xlane.xlu0 %3779 }
 0x76a   : > { %v3790_v48 = vadd.f32 %v3780_v38, %v3758_v13  ;;  %v3789_v37 = vadd.f32 %v3777_v56, %v3757_v31 }
 0x76c   : > { %7100 = vrcp.f32 %v3790_v48 }
 0x76d   : > { %v3783_v24 = vpop.xlane.xlu1 %3782  ;;  %7102 = vrcp.f32 %v3789_v37 }
 0x76e   : > { %v3791_v54 = vadd.f32 %v3783_v24, %v3759_v6 }
 0x76f   : > { %v7095_v62 = vpop.eup %7094 }
 0x770   : > { %7104 = vrcp.f32 %v3791_v54 }
 0x773   : > { %v7097_v32 = vpop.eup %7096 }
 0x775   : > { %v7099_v25 = vpop.eup %7098 }
 0x779   : > { %v7101_v38 = vpop.eup %7100 }
 0x77a   : > { %v7103_v37 = vpop.eup %7102 }
 0x79b   : > { %v3895_v43 = vpop.f32.mrf.mxu1 }
 0x79c   : > { %v4002_v50 = vadd.f32 %v3895_v43, %v8780_v47 }
 0x79d   : > { %v6735_v42 = vpop.f32.mrf.mxu1 }
 0x79e   : > { %v4018_v23 = vmul.f32 %v7095_v62, %v4002_v50 }
 0x79f   : > { %v3898_v17 = vpop.f32.mrf.mxu1 }
 0x7a0   : > { %v4039_v20 = vcombine.high %v4018_v23, %v9407_v40  ;;  %v4046_v29 = vrot.slane %v4018_v23, %v8118_v14  ;;  %v4003_v47 = vadd.f32 %v3898_v17, %v8793_v21 }
 0x7a1   : > { %v3944_v16 = vpop.f32.mrf.mxu0  ;;  %v6736_v46 = vpop.f32.mrf.mxu1 }
 0x7a2   : > { %v4053_v22 = vrot.slane %v4039_v20, %v8118_v14  ;;  %v4054_v60 = vcombine.low %v4031_v34, %v4046_v29  ;;  %v4055_v61 = vcombine.high %v4031_v34, %v4046_v29  ;;  %v4019_v1 = vmul.f32 %v7097_v32, %v4003_v47  ;;  %v7105_v20 = vpop.eup %7104 }
 0x7a3   : > { %v4004_v44 = vadd.f32 %v3944_v16, %v8803_v5  ;;  %v6741_v26 = vpop.f32.mrf.mxu0 }
 0x7a4   : > { %v4062_v21 = vrot.slane %v4054_v60, %v8129_v39  ;;  %v4069_v63 = vrot.slane %v4055_v61, %v8129_v39  ;;  %v4070_v28 = vcombine.low %v4038_v36, %v4053_v22  ;;  %v4071_v2 = vcombine.high %v4038_v36, %v4053_v22  ;;  %v3993_v15 = vpop.f32.mrf.mxu1 }
 0x7a5   : > { %v4105_v51 = vcombine.high %v4019_v1, %v9407_v40  ;;  %v4112_v0 = vrot.slane %v4019_v1, %v8118_v14  ;;  %v4020_v33 = vmul.f32 %v7099_v25, %v4004_v44  ;;  %v3947_v4 = vpop.f32.mrf.mxu0  ;;  %v4006_v3 = vadd.f32 %v3993_v15, %v8813_v30 }
 0x7a6   : > { %v4078_v27 = vrot.slane %v4070_v28, %v8129_v39  ;;  %v4085_v5 = vrot.slane %v4071_v2, %v8129_v39  ;;  %v4288_v57 = vcombine.low %v4062_v21, %v4069_v63  ;;  %v6425_v55 = vcombine.high %v4062_v21, %v4069_v63  ;;  %v6747_v35 = vpop.f32.mrf.mxu1 }
 0x7a7   : > { %v4119_v8 = vrot.slane %v4105_v51, %v8118_v14  ;;  %v4120_v19 = vcombine.low %v4097_v41, %v4112_v0  ;;  %v4121_v52 = vcombine.high %v4097_v41, %v4112_v0  ;;  %v4156_v56 = vcombine.high %v4020_v33, %v9407_v40  ;;  %v6742_v18 = vpop.f32.mrf.mxu0 }
 0x7a8   : > { %v4304_v10 = vcombine.low %v4078_v27, %v4085_v5  ;;  %v6426_v13 = vcombine.high %v4078_v27, %v4085_v5  ;;  %v4163_v31 = vrot.slane %v4020_v33, %v8118_v14  ;;  %v4005_v30 = vadd.f32 %v3947_v4, %v8823_v53  ;;  %v3996_v48 = vpop.f32.mrf.mxu1 }
 0x7a9   : > { %v4128_v24 = vrot.slane %v4120_v19, %v8129_v39  ;;  %v4135_v6 = vrot.slane %v4121_v52, %v8129_v39  ;;  %v4136_v54 = vcombine.low %v4104_v9, %v4119_v8  ;;  %v4137_v43 = vcombine.high %v4104_v9, %v4119_v8 }
 0x7aa   : > { %v4170_v50 = vrot.slane %v4156_v56, %v8118_v14  ;;  %v4021_v62 = vmul.f32 %v7103_v37, %v4005_v30  ;;  %v4022_v45 = vmul.f32 %v7101_v38, %v4006_v3  ;;  %v4007_v42 = vadd.f32 %v3996_v48, %v8832_v49  ;;  %v6748_v23 = vpop.f32.mrf.mxu1 }
 0x7ab   : > { %v4144_v17 = vrot.slane %v4136_v54, %v8129_v39  ;;  %v4151_v7 = vrot.slane %v4137_v43, %v8129_v39  ;;  %v4338_v53 = vcombine.low %v4128_v24, %v4135_v6  ;;  %v6427_v34 = vcombine.high %v4128_v24, %v4135_v6 }
 0x7ac   : > { %v4222_v29 = vcombine.high %v4021_v62, %v9407_v40  ;;  %v4229_v47 = vrot.slane %v4021_v62, %v8118_v14  ;;  %v4171_v32 = vcombine.high %v4022_v45, %v9407_v40  ;;  %v4178_v36 = vrot.slane %v4022_v45, %v8118_v14 }
 0x7ad   : > { %v4354_v16 = vcombine.low %v4144_v17, %v4151_v7  ;;  %v6428_v46 = vcombine.high %v4144_v17, %v4151_v7  ;;  %v4023_v22 = vmul.f32 %v7105_v20, %v4007_v42  ;;  %v4295_v49 = vrot.slane %v4288_v57, %v8118_v14 }
 0x7ae   : > { %v4236_v60 = vrot.slane %v4222_v29, %v8118_v14  ;;  %v4185_v61 = vrot.slane %v4171_v32, %v8118_v14  ;;  %v4186_v1 = vcombine.low %v4163_v31, %v4178_v36  ;;  %v4187_v41 = vcombine.high %v4163_v31, %v4178_v36 }
 0x7af   : > { %v4237_v9 = vcombine.high %v4023_v22, %v9407_v40  ;;  %v4244_v44 = vrot.slane %v4023_v22, %v8118_v14  ;;  %v4303_v26 = vrot.slane %v6425_v55, %v8118_v14  ;;  %v4311_v25 = vrot.slane %v4304_v10, %v8118_v14 }
 0x7b0   : > { %v4194_v21 = vrot.slane %v4186_v1, %v8129_v39  ;;  %v4201_v63 = vrot.slane %v4187_v41, %v8129_v39  ;;  %v4202_v28 = vcombine.low %v4170_v50, %v4185_v61  ;;  %v4203_v2 = vcombine.high %v4170_v50, %v4185_v61 }
 0x7b1   : > { %v4251_v15 = vrot.slane %v4237_v9, %v8118_v14  ;;  %v4252_v51 = vcombine.low %v4229_v47, %v4244_v44  ;;  %v4253_v0 = vcombine.high %v4229_v47, %v4244_v44  ;;  %v4319_v33 = vrot.slane %v6426_v13, %v8118_v14 }
 0x7b2   : > { %v4210_v40 = vrot.slane %v4202_v28, %v8129_v39  ;;  %v4217_v4 = vrot.slane %v4203_v2, %v8129_v39  ;;  %v4388_v3 = vcombine.low %v4194_v21, %v4201_v63  ;;  %v6429_v27 = vcombine.high %v4194_v21, %v4201_v63 }
 0x7b3   : > { %v4260_v5 = vrot.slane %v4252_v51, %v8129_v39  ;;  %v4267_v57 = vrot.slane %v4253_v0, %v8129_v39  ;;  %v4268_v55 = vcombine.low %v4236_v60, %v4251_v15  ;;  %v4269_v35 = vcombine.high %v4236_v60, %v4251_v15  ;;  %v4524_v51 = vld [vmem:[%s9416_s6] sm:$0x3] }
 0x7b4   : > { %v4404_v8 = vcombine.low %v4210_v40, %v4217_v4  ;;  %v6430_v19 = vcombine.high %v4210_v40, %v4217_v4  ;;  %v4320_v52 = vcombine.low %v4295_v49, %v4303_v26  ;;  %v4328_v56 = vcombine.low %v4311_v25, %v4319_v33  ;;  %v4889_v33 = vld [vmem:[%s9417_s30] sm:$0x3] }
 0x7b5   : > { %v4276_v18 = vrot.slane %v4268_v55, %v8129_v39  ;;  %v4283_v38 = vrot.slane %v4269_v35, %v8129_v39  ;;  %v4438_v10 = vcombine.low %v4260_v5, %v4267_v57  ;;  %v6431_v13 = vcombine.high %v4260_v5, %v4267_v57 }
 0x7b6   : > { %v4327_v31 = vrot.slane %v4320_v52, %v8129_v39  ;;  %v4335_v30 = vrot.slane %v4328_v56, %v8129_v39  ;;  %v4345_v48 = vrot.slane %v4338_v53, %v8118_v14  ;;  %v4353_v37 = vrot.slane %v6427_v34, %v8118_v14 }
 0x7b7   : > { %v4454_v24 = vcombine.low %v4276_v18, %v4283_v38  ;;  %v6432_v6 = vcombine.high %v4276_v18, %v4283_v38  ;;  %v4361_v54 = vrot.slane %v4354_v16, %v8118_v14  ;;  %v4369_v43 = vrot.slane %v6428_v46, %v8118_v14  ;;  %v9418_v38 = vld [vmem:[#allocation13_spill] sm:$0xff] }
 0x7b8   : > { %v4337_v50 = vcombine.high %v4327_v31, %v4335_v30  ;;  %v4370_v62 = vcombine.low %v4345_v48, %v4353_v37  ;;  %v4336_v45 = vcombine.low %v4327_v31, %v4335_v30  ;;  %v4395_v42 = vrot.slane %v4388_v3, %v8118_v14  ;;  %v9419_v37 = vld [vmem:[#allocation14_spill] sm:$0xff] }
 0x7b9   : > { %v4378_v23 = vcombine.low %v4361_v54, %v4369_v43  ;;  %v4403_v17 = vrot.slane %v6429_v27, %v8118_v14  ;;  %v4411_v7 = vrot.slane %v4404_v8, %v8118_v14  ;;  %v4419_v53 = vrot.slane %v6430_v19, %v8118_v14  ;;  %v9420_v43 = vld [vmem:[#allocation15_spill] sm:$0xff] }
 0x7ba   : > { %v4377_v34 = vrot.slane %v4370_v62, %v8129_v39  ;;  %v4445_v20 = vrot.slane %v4438_v10, %v8118_v14  ;;  %v4453_v29 = vrot.slane %v6431_v13, %v8118_v14  ;;  %v4461_v47 = vrot.slane %v4454_v24, %v8118_v14 }
 0x7bb   : > { %v4385_v32 = vrot.slane %v4378_v23, %v8129_v39  ;;  %v4420_v36 = vcombine.low %v4395_v42, %v4403_v17  ;;  %v4428_v16 = vcombine.low %v4411_v7, %v4419_v53  ;;  %v4469_v46 = vrot.slane %v6432_v6, %v8118_v14  ;;  %v9421_v23 = vld [vmem:[#allocation16_spill] sm:$0xff] }
 0x7bc   : > { %v4470_v22 = vcombine.low %v4445_v20, %v4453_v29  ;;  %v4529_v0 = vrot.slane %v4524_v51, %v7688_v58  ;;  %v4894_v3 = vrot.slane %v4889_v33, %v7688_v58  ;;  %v4898_v55 = vrot.slane %v4889_v33, %v7691_v59  ;;  %v9422_v20 = vld [vmem:[#allocation17_spill] sm:$0xff] }
 0x7bd   : > { %v4387_v49 = vcombine.high %v4377_v34, %v4385_v32  ;;  %v4386_v60 = vcombine.low %v4377_v34, %v4385_v32  ;;  %v4427_v61 = vrot.slane %v4420_v36, %v8129_v39  ;;  %v4435_v1 = vrot.slane %v4428_v16, %v8129_v39  ;;  %v9423_v16 = vld [vmem:[#allocation18_spill] sm:$0xff] }
 0x7be   : > { %v4478_v41 = vcombine.low %v4461_v47, %v4469_v46  ;;  %v4477_v21 = vrot.slane %v4470_v22, %v8129_v39 }
 0x7bf   : > { %v4489_v9 = vpack.c.bf16 %v4387_v49, %v4337_v50  ;;  %v4488_v44 = vpack.c.bf16 %v4386_v60, %v4336_v45  ;;  %v4437_v26 = vcombine.high %v4427_v61, %v4435_v1  ;;  %v4436_v25 = vcombine.low %v4427_v61, %v4435_v1 }
 0x7c0   : > { %v4485_v63 = vrot.slane %v4478_v41, %v8129_v39  ;;  %v4533_v39 = vrot.slane %v4524_v51, %v7691_v59 }
 0x7c1   : > { %4728 = vmatprep.mubr.bf16.mxu0 %v4489_v9 }
 0x7c2   : > { %4729 = vmatmul.mubr.bf16.vlgmr.msra.gmra.mxu0 %v4488_v44  ;;  %v4487_v28 = vcombine.high %v4477_v21, %v4485_v63  ;;  %v4486_v14 = vcombine.low %v4477_v21, %v4485_v63 }
 0x7c4   : > { %v4491_v2 = vpack.c.bf16 %v4487_v28, %v4437_v26  ;;  %v4490_v15 = vpack.c.bf16 %v4486_v14, %v4436_v25 }
 0x7c6   : > { %4738 = vmatprep.mubr.bf16.mxu0 %v4491_v2 }
 0x7ca   : > { %4739 = vmatmul.mubr.bf16.gmra.mxu0 %v4490_v15 }
 0x882   : > { %v4730_v40 = vpop.f32.mrf.mxu0 }
 0x883   : > { %v4731_v4 = vadd.f32 %v4730_v40, %v4529_v0 }
 0x884   : > { %v4732_v27 = vpop.f32.mrf.mxu0 }
 0x885   : > { %v4749_v5 = vadd.f32 %v4731_v4, %v7703_v11  ;;  %v4733_v57 = vadd.f32 %v4732_v27, %v4533_v39 }
 0x886   : > { %v4734_v35 = vpop.f32.mrf.mxu0 }
 0x887   : > { %v4901_v8 = vadd.f32 %v4894_v3, %v4749_v5  ;;  %v4750_v19 = vadd.f32 %v4733_v57, %v7705_v12  ;;  %v4735_v52 = vadd.f32 %v4734_v35, %v4529_v0 }
 0x888   : > { %v4736_v56 = vpop.f32.mrf.mxu0 }
 0x889   : > { %4909 = vst [vmem:[#allocation3] sm:$0xff] %v4901_v8  ;;  %v4902_v18 = vadd.f32 %v4898_v55, %v4750_v19  ;;  %v4751_v10 = vadd.f32 %v4735_v52, %v9418_v38  ;;  %v4737_v13 = vadd.f32 %v4736_v56, %v4533_v39  ;;  %v4759_v31 = vadd.f32 %v4750_v19, %v4749_v5 }
 0x88a   : > { %v4740_v30 = vpop.f32.mrf.mxu0 }
 0x88b   : > { %4910 = vst [vmem:[#allocation3 + $0x38] sm:$0xff] %v4902_v18  ;;  %v4903_v48 = vadd.f32 %v4894_v3, %v4751_v10  ;;  %v4752_v11 = vadd.f32 %v4737_v13, %v9419_v37  ;;  %v4741_v24 = vadd.f32 %v4740_v30, %v4529_v0  ;;  %4760 = vadd.xlane.f32.xlu0 %v4759_v31 }
 0x88c   : > { %v4742_v6 = vpop.f32.mrf.mxu0 }
 0x88d   : > { %4911 = vst [vmem:[#allocation3 + $0x8] sm:$0xff] %v4903_v48  ;;  %v4904_v54 = vadd.f32 %v4898_v55, %v4752_v11  ;;  %v4753_v12 = vadd.f32 %v4741_v24, %v9420_v43  ;;  %v4743_v50 = vadd.f32 %v4742_v6, %v4533_v39  ;;  %v4762_v62 = vadd.f32 %v4752_v11, %v4751_v10  ;;  %v4757_v24 = vld [vmem:[%s9424_s15] sm:$0x3] }
 0x88e   : > { %v4744_v45 = vpop.f32.mrf.mxu0  ;;  %v4827_v43 = vrot.slane %v4757_v24, %v7688_v58 }
 0x88f   : > { %4912 = vst [vmem:[#allocation3 + $0x18] sm:$0xff] %v4904_v54  ;;  %v4905_v42 = vadd.f32 %v4894_v3, %v4753_v12  ;;  %v4754_v17 = vadd.f32 %v4743_v50, %v9421_v23  ;;  %v4745_v7 = vadd.f32 %v4744_v45, %v4529_v0  ;;  %4763 = vadd.xlane.f32.xlu1 %v4762_v62  ;;  %v4758_v54 = vld [vmem:[%s9425_s26] sm:$0x3] }
 0x890   : > { %v4746_v53 = vpop.f32.mrf.mxu0  ;;  %v4846_v62 = vrot.slane %v4758_v54, %v7688_v58  ;;  %v4850_v45 = vrot.slane %v4758_v54, %v7691_v59 }
 0x891   : > { %4913 = vst [vmem:[#allocation3 + $0x20] sm:$0xff] %v4905_v42  ;;  %v4906_v34 = vadd.f32 %v4898_v55, %v4754_v17  ;;  %v4755_v29 = vadd.f32 %v4745_v7, %v9422_v20  ;;  %v4747_v47 = vadd.f32 %v4746_v53, %v4533_v39  ;;  %v4765_v32 = vadd.f32 %v4754_v17, %v4753_v12 }
 0x893   : > { %4914 = vst [vmem:[#allocation3 + $0x10] sm:$0xff] %v4906_v34  ;;  %v4907_v36 = vadd.f32 %v4894_v3, %v4755_v29  ;;  %v4756_v46 = vadd.f32 %v4747_v47, %v9423_v16  ;;  %4766 = vadd.xlane.f32.xlu0 %v4765_v32 }
 0x895   : > { %4915 = vst [vmem:[#allocation3 + $0x30] sm:$0xff] %v4907_v36  ;;  %v4908_v22 = vadd.f32 %v4898_v55, %v4756_v46  ;;  %v4768_v49 = vadd.f32 %v4756_v46, %v4755_v29 }
 0x897   : > { %4916 = vst [vmem:[#allocation3 + $0x28] sm:$0xff] %v4908_v22  ;;  %4769 = vadd.xlane.f32.xlu1 %v4768_v49 }
 0x914   : > { %v4761_v60 = vpop.xlane.xlu0 %4760 }
 0x915   : > { %v4771_v61 = vmul.f32 0.00390625, %v4761_v60 }
 0x917   : > { %v4775_v1 = vsub.f32 %v4749_v5, %v4771_v61  ;;  %v4776_v41 = vsub.f32 %v4750_v19, %v4771_v61 }
 0x918   : > { %v4764_v9 = vpop.xlane.xlu1 %4763 }
 0x919   : > { %v4772_v44 = vmul.f32 0.00390625, %v4764_v9  ;;  %v4783_v26 = vmul.f32 %v4775_v1, %v4775_v1  ;;  %v4784_v25 = vmul.f32 %v4776_v41, %v4776_v41 }
 0x91b   : > { %v4777_v21 = vsub.f32 %v4751_v10, %v4772_v44  ;;  %v4778_v63 = vsub.f32 %v4752_v11, %v4772_v44  ;;  %v4791_v28 = vadd.f32 %v4784_v25, %v4783_v26 }
 0x91c   : > { %v4767_v14 = vpop.xlane.xlu0 %4766 }
 0x91d   : > { %v4773_v2 = vmul.f32 0.00390625, %v4767_v14  ;;  %4792 = vadd.xlane.f32.xlu0 %v4791_v28  ;;  %v4785_v15 = vmul.f32 %v4777_v21, %v4777_v21  ;;  %v4786_v51 = vmul.f32 %v4778_v63, %v4778_v63 }
 0x91f   : > { %v4779_v0 = vsub.f32 %v4753_v12, %v4773_v2  ;;  %v4780_v33 = vsub.f32 %v4754_v17, %v4773_v2  ;;  %v4794_v39 = vadd.f32 %v4786_v51, %v4785_v15  ;;  %v4831_v12 = vrot.slane %v4757_v24, %v7691_v59 }
 0x920   : > { %v4770_v40 = vpop.xlane.xlu1 %4769 }
 0x921   : > { %v4774_v4 = vmul.f32 0.00390625, %v4770_v40  ;;  %4795 = vadd.xlane.f32.xlu1 %v4794_v39  ;;  %v4787_v3 = vmul.f32 %v4779_v0, %v4779_v0  ;;  %v4788_v27 = vmul.f32 %v4780_v33, %v4780_v33 }
 0x923   : > { %v4781_v5 = vsub.f32 %v4755_v29, %v4774_v4  ;;  %v4782_v57 = vsub.f32 %v4756_v46, %v4774_v4  ;;  %v4797_v55 = vadd.f32 %v4788_v27, %v4787_v3 }
 0x925   : > { %4798 = vadd.xlane.f32.xlu0 %v4797_v55  ;;  %v4789_v35 = vmul.f32 %v4781_v5, %v4781_v5  ;;  %v4790_v8 = vmul.f32 %v4782_v57, %v4782_v57 }
 0x927   : > { %v4800_v19 = vadd.f32 %v4790_v8, %v4789_v35 }
 0x929   : > { %4801 = vadd.xlane.f32.xlu1 %v4800_v19 }
 0x9a6   : > { %v4793_v52 = vpop.xlane.xlu0 %4792 }
 0x9a7   : > { %v4803_v56 = vmul.f32 0.00390625, %v4793_v52 }
 0x9a9   : > { %v4807_v18 = vadd.f32 1e-12, %v4803_v56 }
 0x9aa   : > { %v4796_v38 = vpop.xlane.xlu1 %4795 }
 0x9ab   : > { %7106 = vrsqrt.f32 %v4807_v18  ;;  %v4804_v10 = vmul.f32 0.00390625, %v4796_v38 }
 0x9ad   : > { %v4808_v13 = vadd.f32 1e-12, %v4804_v10 }
 0x9ae   : > { %v4799_v31 = vpop.xlane.xlu0 %4798 }
 0x9af   : > { %7108 = vrsqrt.f32 %v4808_v13  ;;  %v4805_v30 = vmul.f32 0.00390625, %v4799_v31 }
 0x9b1   : > { %v4809_v48 = vadd.f32 1e-12, %v4805_v30 }
 0x9b2   : > { %v4802_v37 = vpop.xlane.xlu1 %4801 }
 0x9b3   : > { %7110 = vrsqrt.f32 %v4809_v48  ;;  %v4806_v11 = vmul.f32 0.00390625, %v4802_v37 }
 0x9b5   : > { %v4810_v6 = vadd.f32 1e-12, %v4806_v11 }
 0x9b7   : > { %7112 = vrsqrt.f32 %v4810_v6 }
 0x9b8   : > { %v7107_v50 = vpop.eup %7106 }
 0x9b9   : > { %v4815_v42 = vmul.f32 %v7107_v50, %v4775_v1  ;;  %v4816_v23 = vmul.f32 %v7107_v50, %v4776_v41 }
 0x9bb   : > { %v4834_v17 = vmul.f32 %v4827_v43, %v4815_v42  ;;  %v4835_v7 = vmul.f32 %v4831_v12, %v4816_v23 }
 0x9bc   : > { %v7109_v53 = vpop.eup %7108 }
 0x9bd   : > { %v4853_v34 = vadd.f32 %v4846_v62, %v4834_v17  ;;  %v4854_v20 = vadd.f32 %v4850_v45, %v4835_v7  ;;  %v4817_v29 = vmul.f32 %v7109_v53, %v4777_v21  ;;  %v4818_v47 = vmul.f32 %v7109_v53, %v4778_v63 }
 0x9bf   : > { %v6613_v32 = vpack.c.bf16 %v4854_v20, %v4853_v34  ;;  %v4836_v36 = vmul.f32 %v4827_v43, %v4817_v29  ;;  %v4837_v16 = vmul.f32 %v4831_v12, %v4818_v47 }
 0x9c0   : > { %v7111_v46 = vpop.eup %7110 }
 0x9c1   : > { %4885 = vst [vmem:[#allocation2 + $0x10] sm:$0xff] %v6613_v32  ;;  %v4855_v22 = vadd.f32 %v4846_v62, %v4836_v36  ;;  %v4856_v49 = vadd.f32 %v4850_v45, %v4837_v16  ;;  %v4819_v60 = vmul.f32 %v7111_v46, %v4779_v0  ;;  %v4820_v58 = vmul.f32 %v7111_v46, %v4780_v33 }
 0x9c3   : > { %v6614_v61 = vpack.c.bf16 %v4856_v49, %v4855_v22  ;;  %v4838_v59 = vmul.f32 %v4827_v43, %v4819_v60  ;;  %v4839_v1 = vmul.f32 %v4831_v12, %v4820_v58 }
 0x9c4   : > { %v7113_v41 = vpop.eup %7112 }
 0x9c5   : > { %4886 = vst [vmem:[#allocation2] sm:$0xff] %v6614_v61  ;;  %v4857_v9 = vadd.f32 %v4846_v62, %v4838_v59  ;;  %v4858_v44 = vadd.f32 %v4850_v45, %v4839_v1  ;;  %v4821_v26 = vmul.f32 %v7113_v41, %v4781_v5  ;;  %v4822_v25 = vmul.f32 %v7113_v41, %v4782_v57 }
 0x9c7   : > { %v6615_v21 = vpack.c.bf16 %v4858_v44, %v4857_v9  ;;  %v4840_v63 = vmul.f32 %v4827_v43, %v4821_v26  ;;  %v4841_v28 = vmul.f32 %v4831_v12, %v4822_v25 }
 0x9c9   : > { %4887 = vst [vmem:[#allocation2 + $0x18] sm:$0xff] %v6615_v21  ;;  %v4859_v14 = vadd.f32 %v4846_v62, %v4840_v63  ;;  %v4860_v2 = vadd.f32 %v4850_v45, %v4841_v28 }
 0x9cb   : > { %v6616_v15 = vpack.c.bf16 %v4860_v2, %v4859_v14 }
 0x9cd   : > { %4888 = vst [vmem:[#allocation2 + $0x8] sm:$0xff] %v6616_v15 }
 0x9ce PF: > { %v7114_v51 = vld [vmem:[%s7645_s24 + $0xe4] ss:$16 sps:$4 sm:$0xff]   ;;  %v7116_v0 = vld [vmem:[%s7645_s24 + $0xec] ss:$16 sps:$4 sm:$0xff]   ;;  %v7118_v33 = vld [vmem:[%s7645_s24 + $0xe0] ss:$16 sps:$4 sm:$0xff]  }
 0x9cf   : > { %5347 = vmatprep.subr.bf16.mxu0 %v7114_v51  ;;  %v7119_v39 = vld [vmem:[%s7645_s24 + $0xe8] ss:$16 sps:$4 sm:$0xff]   ;;  %5400 = vmatprep.subr.bf16.mxu1 %v7116_v0  ;;  %v7120_v40 = vld [vmem:[%s7645_s24 + $0xc4] ss:$16 sps:$4 sm:$0xff]   ;;  %v7122_v4 = vld [vmem:[%s7645_s24 + $0xcc] ss:$16 sps:$4 sm:$0xff]  }
 0x9d0   : > { %5348 = vmatpush1.bf16.msra.mxu0 %v7118_v33  ;;  %5401 = vmatpush1.bf16.msra.mxu1 %v7119_v39  ;;  %v7124_v3 = vld [vmem:[%s7645_s24 + $0xc0] ss:$16 sps:$4 sm:$0xff]   ;;  %v7125_v27 = vld [vmem:[%s7645_s24 + $0xc8] ss:$16 sps:$4 sm:$0xff]   ;;  %v7126_v5 = vld [vmem:[%s7645_s24 + $0xa4] ss:$16 sps:$4 sm:$0xff]  }
 0x9d1   : > { %5349 = vmatprep.subr.bf16.mxu0 %v7120_v40  ;;  %5402 = vmatprep.subr.bf16.mxu1 %v7122_v4  ;;  %v7128_v57 = vld [vmem:[%s7645_s24 + $0xac] ss:$16 sps:$4 sm:$0xff]   ;;  %v7130_v55 = vld [vmem:[%s7645_s24 + $0xa0] ss:$16 sps:$4 sm:$0xff]   ;;  %v7131_v35 = vld [vmem:[%s7645_s24 + $0xa8] ss:$16 sps:$4 sm:$0xff]  }
 0x9d2   : > { %v7132_v8 = vld [vmem:[%s7645_s24 + $0x84] ss:$16 sps:$4 sm:$0xff]   ;;  %v7134_v19 = vld [vmem:[%s7645_s24 + $0x8c] ss:$16 sps:$4 sm:$0xff]   ;;  %v7136_v52 = vld [vmem:[%s7645_s24 + $0x80] ss:$16 sps:$4 sm:$0xff]  }
 0x9d3   : > { %v7137_v56 = vld [vmem:[%s7645_s24 + $0x88] ss:$16 sps:$4 sm:$0xff]   ;;  %v7138_v18 = vld [vmem:[%s7645_s24 + $0x64] ss:$16 sps:$4 sm:$0xff]   ;;  %v7140_v38 = vld [vmem:[%s7645_s24 + $0x6c] ss:$16 sps:$4 sm:$0xff]  }
 0x9d4   : > { %5350 = vmatpush1.bf16.msra.mxu0 %v7124_v3  ;;  %5403 = vmatpush1.bf16.msra.mxu1 %v7125_v27  ;;  %v7142_v10 = vld [vmem:[%s7645_s24 + $0x60] ss:$16 sps:$4 sm:$0xff]   ;;  %v7143_v13 = vld [vmem:[%s7645_s24 + $0x68] ss:$16 sps:$4 sm:$0xff]   ;;  %v7144_v31 = vld [vmem:[%s7645_s24 + $0x44] ss:$16 sps:$4 sm:$0xff]  }
 0x9d5   : > { %5351 = vmatprep.subr.bf16.mxu0 %v7126_v5  ;;  %5404 = vmatprep.subr.bf16.mxu1 %v7128_v57  ;;  %v7146_v30 = vld [vmem:[%s7645_s24 + $0x4c] ss:$16 sps:$4 sm:$0xff]   ;;  %v7148_v48 = vld [vmem:[%s7645_s24 + $0x40] ss:$16 sps:$4 sm:$0xff]   ;;  %v7149_v37 = vld [vmem:[%s7645_s24 + $0x48] ss:$16 sps:$4 sm:$0xff]  }
 0x9d6   : > { %v7150_v11 = vld [vmem:[%s7645_s24 + $0x24] ss:$16 sps:$4 sm:$0xff]   ;;  %v7152_v24 = vld [vmem:[%s7645_s24 + $0x2c] ss:$16 sps:$4 sm:$0xff]   ;;  %v7154_v6 = vld [vmem:[%s7645_s24 + $0x20] ss:$16 sps:$4 sm:$0xff]  }
 0x9d7   : > { %v7155_v54 = vld [vmem:[%s7645_s24 + $0x28] ss:$16 sps:$4 sm:$0xff]   ;;  %v7156_v43 = vld [vmem:[%s7645_s24 + $0x4] ss:$16 sps:$4 sm:$0xff]   ;;  %v7158_v12 = vld [vmem:[%s7645_s24 + $0xc] ss:$16 sps:$4 sm:$0xff]  }
 0x9d8   : > { %5352 = vmatpush1.bf16.msra.mxu0 %v7130_v55  ;;  %5405 = vmatpush1.bf16.msra.mxu1 %v7131_v35  ;;  %v7160_v50 = vld [vmem:[%s7645_s24] ss:$16 sps:$4 sm:$0xff]   ;;  %v7161_v62 = vld [vmem:[%s7645_s24 + $0x8] ss:$16 sps:$4 sm:$0xff]   ;;  %v7162_v45 = vld [vmem:[%s7645_s24 + $0x1e4] ss:$16 sps:$4 sm:$0xff]  }
 0x9d9   : > { %5353 = vmatprep.subr.bf16.mxu0 %v7132_v8  ;;  %5406 = vmatprep.subr.bf16.mxu1 %v7134_v19  ;;  %v7164_v42 = vld [vmem:[%s7645_s24 + $0x1ec] ss:$16 sps:$4 sm:$0xff]   ;;  %v7166_v23 = vld [vmem:[%s7645_s24 + $0x1e0] ss:$16 sps:$4 sm:$0xff]   ;;  %v7167_v17 = vld [vmem:[%s7645_s24 + $0x1e8] ss:$16 sps:$4 sm:$0xff]  }
 0x9da   : > { %v7168_v7 = vld [vmem:[%s7645_s24 + $0x1c4] ss:$16 sps:$4 sm:$0xff]   ;;  %v7170_v53 = vld [vmem:[%s7645_s24 + $0x1cc] ss:$16 sps:$4 sm:$0xff]   ;;  %v7172_v34 = vld [vmem:[%s7645_s24 + $0x1c0] ss:$16 sps:$4 sm:$0xff]  }
 0x9db   : > { %v7173_v20 = vld [vmem:[%s7645_s24 + $0x1c8] ss:$16 sps:$4 sm:$0xff]   ;;  %v7174_v29 = vld [vmem:[%s7645_s24 + $0x1a4] ss:$16 sps:$4 sm:$0xff]   ;;  %v7176_v47 = vld [vmem:[%s7645_s24 + $0x1ac] ss:$16 sps:$4 sm:$0xff]  }
 0x9dc   : > { %5354 = vmatpush1.bf16.msra.mxu0 %v7136_v52  ;;  %5407 = vmatpush1.bf16.msra.mxu1 %v7137_v56  ;;  %v7178_v32 = vld [vmem:[%s7645_s24 + $0x1a0] ss:$16 sps:$4 sm:$0xff]   ;;  %v7179_v36 = vld [vmem:[%s7645_s24 + $0x1a8] ss:$16 sps:$4 sm:$0xff]   ;;  %v7180_v16 = vld [vmem:[%s7645_s24 + $0x184] ss:$16 sps:$4 sm:$0xff]  }
 0x9dd   : > { %5355 = vmatprep.subr.bf16.mxu0 %v7138_v18  ;;  %5408 = vmatprep.subr.bf16.mxu1 %v7140_v38  ;;  %v7182_v46 = vld [vmem:[%s7645_s24 + $0x18c] ss:$16 sps:$4 sm:$0xff]   ;;  %v7184_v22 = vld [vmem:[%s7645_s24 + $0x180] ss:$16 sps:$4 sm:$0xff]   ;;  %v7185_v49 = vld [vmem:[%s7645_s24 + $0x188] ss:$16 sps:$4 sm:$0xff]  }
 0x9de   : > { %v7212_v60 = vld [vmem:[#allocation2 + $0x14] ss:$-16 sps:$4 sm:$0xff]   ;;  %v7188_v61 = vld [vmem:[%s7645_s24 + $0x16c] ss:$16 sps:$4 sm:$0xff]   ;;  %v7190_v59 = vld [vmem:[%s7645_s24 + $0x160] ss:$16 sps:$4 sm:$0xff]  }
 0x9df   : > { %v7186_v58 = vld [vmem:[%s7645_s24 + $0x164] ss:$16 sps:$4 sm:$0xff]   ;;  %5379 = vmatprep.mubr.bf16.mxu0 %v7212_v60  ;;  %5432 = vmatprep.mubr.bf16.mxu1 %v7212_v60  ;;  %v7191_v1 = vld [vmem:[%s7645_s24 + $0x168] ss:$16 sps:$4 sm:$0xff]   ;;  %v7194_v9 = vld [vmem:[%s7645_s24 + $0x14c] ss:$16 sps:$4 sm:$0xff]  }
 0x9e0   : > { %5356 = vmatpush1.bf16.msra.mxu0 %v7142_v10  ;;  %5409 = vmatpush1.bf16.msra.mxu1 %v7143_v13  ;;  %v7192_v41 = vld [vmem:[%s7645_s24 + $0x144] ss:$16 sps:$4 sm:$0xff]   ;;  %v7196_v44 = vld [vmem:[%s7645_s24 + $0x140] ss:$16 sps:$4 sm:$0xff]   ;;  %v7197_v26 = vld [vmem:[%s7645_s24 + $0x148] ss:$16 sps:$4 sm:$0xff]  }
 0x9e1   : > { %5357 = vmatprep.subr.bf16.mxu0 %v7144_v31  ;;  %5410 = vmatprep.subr.bf16.mxu1 %v7146_v30  ;;  %v7198_v25 = vld [vmem:[%s7645_s24 + $0x124] ss:$16 sps:$4 sm:$0xff]   ;;  %v7200_v21 = vld [vmem:[%s7645_s24 + $0x12c] ss:$16 sps:$4 sm:$0xff]   ;;  %v7202_v63 = vld [vmem:[%s7645_s24 + $0x120] ss:$16 sps:$4 sm:$0xff]  }
 0x9e2   : > { %v7203_v28 = vld [vmem:[%s7645_s24 + $0x128] ss:$16 sps:$4 sm:$0xff]   ;;  %v7204_v14 = vld [vmem:[%s7645_s24 + $0x104] ss:$16 sps:$4 sm:$0xff]   ;;  %v7206_v2 = vld [vmem:[%s7645_s24 + $0x10c] ss:$16 sps:$4 sm:$0xff]  }
 0x9e3   : > { %v7208_v15 = vld [vmem:[%s7645_s24 + $0x100] ss:$16 sps:$4 sm:$0xff]   ;;  %v7209_v51 = vld [vmem:[%s7645_s24 + $0x108] ss:$16 sps:$4 sm:$0xff]   ;;  %v7218_v33 = vld [vmem:[%s7651_s9 + $0x74] ss:$8 sps:$4 sm:$0xff]  }
 0x9e4   : > { %5358 = vmatpush1.bf16.msra.mxu0 %v7148_v48  ;;  %5411 = vmatpush1.bf16.msra.mxu1 %v7149_v37  ;;  %v7210_v0 = vld [vmem:[#allocation2 + $0x10] ss:$-16 sps:$4 sm:$0xff]   ;;  %v7221_v39 = vld [vmem:[%s7651_s9 + $0x174] ss:$8 sps:$4 sm:$0xff]   ;;  %v7224_v27 = vld [vmem:[%s7651_s9 + $0x64] ss:$8 sps:$4 sm:$0xff]  }
 0x9e5   : > { %5359 = vmatprep.subr.bf16.mxu0 %v7150_v11  ;;  %5412 = vmatprep.subr.bf16.mxu1 %v7152_v24  ;;  %v7213_v40 = vld [vmem:[#allocation2 + $0x1c] ss:$-16 sps:$4 sm:$0xff]   ;;  %v7216_v4 = vld [vmem:[%s7651_s9 + $0x70] ss:$8 sps:$4 sm:$0xff]   ;;  %v7222_v57 = vld [vmem:[%s7651_s9 + $0x60] ss:$8 sps:$4 sm:$0xff]  }
 0x9e6   : > { %v7219_v3 = vld [vmem:[%s7651_s9 + $0x170] ss:$8 sps:$4 sm:$0xff]   ;;  %v7227_v5 = vld [vmem:[%s7651_s9 + $0x164] ss:$8 sps:$4 sm:$0xff]   ;;  %v7225_v55 = vld [vmem:[%s7651_s9 + $0x160] ss:$8 sps:$4 sm:$0xff]  }
 0x9e7   : > { %v7230_v35 = vld [vmem:[%s7651_s9 + $0x54] ss:$8 sps:$4 sm:$0xff]   ;;  %v7215_v19 = vld [vmem:[#allocation2 + $0x18] ss:$-16 sps:$4 sm:$0xff]   ;;  %v7236_v18 = vld [vmem:[%s7651_s9 + $0x44] ss:$8 sps:$4 sm:$0xff]  }
 0x9e8   : > { %5360 = vmatpush1.bf16.msra.mxu0 %v7154_v6  ;;  %5413 = vmatpush1.bf16.msra.mxu1 %v7155_v54  ;;  %v7233_v8 = vld [vmem:[%s7651_s9 + $0x154] ss:$8 sps:$4 sm:$0xff]   ;;  %v7228_v52 = vld [vmem:[%s7651_s9 + $0x50] ss:$8 sps:$4 sm:$0xff]   ;;  %v7239_v38 = vld [vmem:[%s7651_s9 + $0x144] ss:$8 sps:$4 sm:$0xff]  }
 0x9e9   : > { %5361 = vmatprep.subr.bf16.mxu0 %v7156_v43  ;;  %5414 = vmatprep.subr.bf16.mxu1 %v7158_v12  ;;  %v7231_v56 = vld [vmem:[%s7651_s9 + $0x150] ss:$8 sps:$4 sm:$0xff]   ;;  %v7234_v10 = vld [vmem:[%s7651_s9 + $0x40] ss:$8 sps:$4 sm:$0xff]   ;;  %v7242_v31 = vld [vmem:[%s7651_s9 + $0x34] ss:$8 sps:$4 sm:$0xff]  }
 0x9ea   : > { %v7237_v13 = vld [vmem:[%s7651_s9 + $0x140] ss:$8 sps:$4 sm:$0xff]   ;;  %v7245_v30 = vld [vmem:[%s7651_s9 + $0x134] ss:$8 sps:$4 sm:$0xff]   ;;  %v7240_v48 = vld [vmem:[%s7651_s9 + $0x30] ss:$8 sps:$4 sm:$0xff]  }
 0x9eb   : > { %v7243_v37 = vld [vmem:[%s7651_s9 + $0x130] ss:$8 sps:$4 sm:$0xff]   ;;  %v7248_v11 = vld [vmem:[%s7651_s9 + $0x24] ss:$8 sps:$4 sm:$0xff]   ;;  %v7246_v6 = vld [vmem:[%s7651_s9 + $0x20] ss:$8 sps:$4 sm:$0xff]  }
 0x9ec   : > { %5362 = vmatpush1.bf16.msra.mxu0 %v7160_v50  ;;  %5415 = vmatpush1.bf16.msra.mxu1 %v7161_v62  ;;  %v7251_v24 = vld [vmem:[%s7651_s9 + $0x124] ss:$8 sps:$4 sm:$0xff]   ;;  %v7249_v54 = vld [vmem:[%s7651_s9 + $0x120] ss:$8 sps:$4 sm:$0xff]   ;;  %v7254_v43 = vld [vmem:[%s7651_s9 + $0x14] ss:$8 sps:$4 sm:$0xff]  }
 0x9ed   : > { %5363 = vmatprep.subr.bf16.mxu0 %v7162_v45  ;;  %5416 = vmatprep.subr.bf16.mxu1 %v7164_v42  ;;  %v7257_v12 = vld [vmem:[%s7651_s9 + $0x114] ss:$8 sps:$4 sm:$0xff]   ;;  %v7252_v50 = vld [vmem:[%s7651_s9 + $0x10] ss:$8 sps:$4 sm:$0xff]   ;;  %v7260_v45 = vld [vmem:[%s7651_s9 + $0x4] ss:$8 sps:$4 sm:$0xff]  }
 0x9ee   : > { %v7255_v62 = vld [vmem:[%s7651_s9 + $0x110] ss:$8 sps:$4 sm:$0xff]   ;;  %v7263_v42 = vld [vmem:[%s7651_s9 + $0x104] ss:$8 sps:$4 sm:$0xff]   ;;  %p6601_p7 = scmp.ne.s32.totalorder %s7446_s21, 1 }
 0x9ef   : > { %v7284_v60 = vld [vmem:[%s7651_s9 + $0xc4] ss:$8 sps:$4 sm:$0xff]  }
 0x9f0   : > { %5364 = vmatpush2.bf16.msra.mxu0 %v7166_v23  ;;  %5417 = vmatpush2.bf16.msra.mxu1 %v7167_v17  ;;  %v7258_v23 = vld [vmem:[%s7651_s9] ss:$8 sps:$4 sm:$0xff]  }
 0x9f1   : > { %5365 = vmatprep.subr.bf16.mxu0 %v7168_v7  ;;  %5418 = vmatprep.subr.bf16.mxu1 %v7170_v53  ;;  %v7261_v17 = vld [vmem:[%s7651_s9 + $0x100] ss:$8 sps:$4 sm:$0xff]   ;;  %v7266_v7 = vld [vmem:[%s7651_s9 + $0xf4] ss:$8 sps:$4 sm:$0xff]  }
 0x9f2   : > { %v7269_v53 = vld [vmem:[%s7651_s9 + $0x1f4] ss:$8 sps:$4 sm:$0xff]  }
 0x9f4   : > { %5366 = vmatpush2.bf16.msra.mxu0 %v7172_v34  ;;  %5419 = vmatpush2.bf16.msra.mxu1 %v7173_v20  ;;  %v7264_v34 = vld [vmem:[%s7651_s9 + $0xf0] ss:$8 sps:$4 sm:$0xff]  }
 0x9f5   : > { %5367 = vmatprep.subr.bf16.mxu0 %v7174_v29  ;;  %5420 = vmatprep.subr.bf16.mxu1 %v7176_v47  ;;  %v7267_v20 = vld [vmem:[%s7651_s9 + $0x1f0] ss:$8 sps:$4 sm:$0xff]   ;;  %v7272_v29 = vld [vmem:[%s7651_s9 + $0xe4] ss:$8 sps:$4 sm:$0xff]  }
 0x9f6   : > { %v7275_v47 = vld [vmem:[%s7651_s9 + $0x1e4] ss:$8 sps:$4 sm:$0xff]  }
 0x9f8   : > { %5368 = vmatpush2.bf16.msra.mxu0 %v7178_v32  ;;  %5421 = vmatpush2.bf16.msra.mxu1 %v7179_v36  ;;  %v7270_v32 = vld [vmem:[%s7651_s9 + $0xe0] ss:$8 sps:$4 sm:$0xff]  }
 0x9f9   : > { %5369 = vmatprep.subr.bf16.mxu0 %v7180_v16  ;;  %5422 = vmatprep.subr.bf16.mxu1 %v7182_v46  ;;  %v7273_v36 = vld [vmem:[%s7651_s9 + $0x1e0] ss:$8 sps:$4 sm:$0xff]   ;;  %v7278_v16 = vld [vmem:[%s7651_s9 + $0xd4] ss:$8 sps:$4 sm:$0xff]  }
 0x9fa   : > { %v7281_v46 = vld [vmem:[%s7651_s9 + $0x1d4] ss:$8 sps:$4 sm:$0xff]  }
 0x9fc   : > { %5370 = vmatpush2.bf16.msra.mxu0 %v7184_v22  ;;  %5423 = vmatpush2.bf16.msra.mxu1 %v7185_v49  ;;  %v7276_v22 = vld [vmem:[%s7651_s9 + $0xd0] ss:$8 sps:$4 sm:$0xff]  }
 0x9fd   : > { %5371 = vmatprep.subr.bf16.mxu0 %v7186_v58  ;;  %5424 = vmatprep.subr.bf16.mxu1 %v7188_v61  ;;  %v7279_v49 = vld [vmem:[%s7651_s9 + $0x1d0] ss:$8 sps:$4 sm:$0xff]   ;;  %v7287_v58 = vld [vmem:[%s7651_s9 + $0x1c4] ss:$8 sps:$4 sm:$0xff]   ;;  %v7282_v61 = vld [vmem:[%s7651_s9 + $0xc0] ss:$8 sps:$4 sm:$0xff]  }
 0xa00   : > { %5372 = vmatpush2.bf16.msra.mxu0 %v7190_v59  ;;  %5425 = vmatpush2.bf16.msra.mxu1 %v7191_v1  ;;  %v7285_v59 = vld [vmem:[%s7651_s9 + $0x1c0] ss:$8 sps:$4 sm:$0xff]   ;;  %v7290_v1 = vld [vmem:[%s7651_s9 + $0xb4] ss:$8 sps:$4 sm:$0xff]  }
 0xa01   : > { %5373 = vmatprep.subr.bf16.mxu0 %v7192_v41  ;;  %5426 = vmatprep.subr.bf16.mxu1 %v7194_v9  ;;  %v7293_v41 = vld [vmem:[%s7651_s9 + $0x1b4] ss:$8 sps:$4 sm:$0xff]   ;;  %v7288_v9 = vld [vmem:[%s7651_s9 + $0xb0] ss:$8 sps:$4 sm:$0xff]  }
 0xa04   : > { %5374 = vmatpush2.bf16.msra.mxu0 %v7196_v44  ;;  %5427 = vmatpush2.bf16.msra.mxu1 %v7197_v26  ;;  %v7291_v44 = vld [vmem:[%s7651_s9 + $0x1b0] ss:$8 sps:$4 sm:$0xff]   ;;  %v7296_v26 = vld [vmem:[%s7651_s9 + $0xa4] ss:$8 sps:$4 sm:$0xff]  }
 0xa05   : > { %5375 = vmatprep.subr.bf16.mxu0 %v7198_v25  ;;  %5428 = vmatprep.subr.bf16.mxu1 %v7200_v21  ;;  %v7299_v25 = vld [vmem:[%s7651_s9 + $0x1a4] ss:$8 sps:$4 sm:$0xff]   ;;  %v7294_v21 = vld [vmem:[%s7651_s9 + $0xa0] ss:$8 sps:$4 sm:$0xff]  }
 0xa08   : > { %5376 = vmatpush2.bf16.msra.mxu0 %v7202_v63  ;;  %5429 = vmatpush2.bf16.msra.mxu1 %v7203_v28  ;;  %v7297_v63 = vld [vmem:[%s7651_s9 + $0x1a0] ss:$8 sps:$4 sm:$0xff]   ;;  %v7302_v28 = vld [vmem:[%s7651_s9 + $0x94] ss:$8 sps:$4 sm:$0xff]  }
 0xa09   : > { %5377 = vmatprep.subr.bf16.mxu0 %v7204_v14  ;;  %5430 = vmatprep.subr.bf16.mxu1 %v7206_v2  ;;  %v7300_v14 = vld [vmem:[%s7651_s9 + $0x90] ss:$8 sps:$4 sm:$0xff]  }
 0xa0a   : > { %v7303_v2 = vld [vmem:[%s7651_s9 + $0x190] ss:$8 sps:$4 sm:$0xff]  }
 0xa0c   : > { %5378 = vmatpush2.bf16.msra.mxu0 %v7208_v15  ;;  %5431 = vmatpush2.bf16.msra.mxu1 %v7209_v51  ;;  %v7305_v15 = vld [vmem:[%s7651_s9 + $0x194] ss:$8 sps:$4 sm:$0xff]   ;;  %v7308_v51 = vld [vmem:[%s7651_s9 + $0x84] ss:$8 sps:$4 sm:$0xff]  }
 0xa0d   : > { %5997 = vmatprep.subr.bf16.mxu0 %v7218_v33  ;;  %6050 = vmatprep.subr.bf16.mxu1 %v7221_v39  ;;  %v7306_v33 = vld [vmem:[%s7651_s9 + $0x80] ss:$8 sps:$4 sm:$0xff]  }
 0xa0e   : > { %v7309_v39 = vld [vmem:[%s7651_s9 + $0x180] ss:$8 sps:$4 sm:$0xff]  }
 0xa0f   : > { %5380 = vmatmul.mubr.bf16.vlgmr.msra.gmra.mxu0 %v7210_v0  ;;  %5433 = vmatmul.mubr.bf16.vlgmr.msra.gmra.mxu1 %v7210_v0  ;;  %v7311_v0 = vld [vmem:[%s7651_s9 + $0x184] ss:$8 sps:$4 sm:$0xff]  }
 0xa10   : > { %5389 = vmatprep.mubr.bf16.mxu0 %v7213_v40  ;;  %5442 = vmatprep.mubr.bf16.mxu1 %v7213_v40  ;;  %v4987_v40 = vlaneseq }
 0xa11   : > { %5998 = vmatpush1.bf16.msra.mxu0 %v7216_v4  ;;  %6051 = vmatpush1.bf16.msra.mxu1 %v7219_v3 }
 0xa12   : > { %5999 = vmatprep.subr.bf16.mxu0 %v7224_v27  ;;  %6052 = vmatprep.subr.bf16.mxu1 %v7227_v5  ;;  %v4988_v4 = vshrl.u32 %v4987_v40, 7  ;;  %v4985_v5 = vld [vmem:[%s607_s25] sm:$0xf]  ;;  %s9426_s25 = sld [smem:[#allocation26_spill]] (!%p6601_p7) }
 0xa14   : > { %v4989_v3 = vsub.s32 0, %v4988_v4  ;;  %v4997_v27 = vsub.s32 2, %v4988_v4 }
 0xa15   : > { %6000 = vmatpush1.bf16.msra.mxu0 %v7222_v57  ;;  %6053 = vmatpush1.bf16.msra.mxu1 %v7225_v55  ;;  %v4993_v57 = vsub.s32 1, %v4988_v4  ;;  %v5001_v55 = vsub.s32 3, %v4988_v4 }
 0xa16   : > { %6001 = vmatprep.subr.bf16.mxu0 %v7230_v35  ;;  %6054 = vmatprep.subr.bf16.mxu1 %v7233_v8  ;;  %v9187_v35 = vrot.slane %v4985_v5, %v4989_v3  ;;  %v9189_v8 = vrot.slane %v4985_v5, %v4997_v27 }
 0xa17   : > { %5390 = vmatmul.mubr.bf16.gmra.mxu0 %v7215_v19  ;;  %5443 = vmatmul.mubr.bf16.gmra.mxu1 %v7215_v19  ;;  %v9191_v19 = vrot.slane %v4985_v5, %v4993_v57 }
 0xa19   : > { %6002 = vmatpush1.bf16.msra.mxu0 %v7228_v52  ;;  %6055 = vmatpush1.bf16.msra.mxu1 %v7231_v56  ;;  %v9193_v52 = vrot.slane %v4985_v5, %v5001_v55 }
 0xa1a   : > { %6003 = vmatprep.subr.bf16.mxu0 %v7236_v18  ;;  %6056 = vmatprep.subr.bf16.mxu1 %v7239_v38 }
 0xa1d   : > { %6004 = vmatpush1.bf16.msra.mxu0 %v7234_v10  ;;  %6057 = vmatpush1.bf16.msra.mxu1 %v7237_v13 }
 0xa1e   : > { %6005 = vmatprep.subr.bf16.mxu0 %v7242_v31  ;;  %6058 = vmatprep.subr.bf16.mxu1 %v7245_v30 }
 0xa21   : > { %6006 = vmatpush1.bf16.msra.mxu0 %v7240_v48  ;;  %6059 = vmatpush1.bf16.msra.mxu1 %v7243_v37 }
 0xa22   : > { %6007 = vmatprep.subr.bf16.mxu0 %v7248_v11  ;;  %6060 = vmatprep.subr.bf16.mxu1 %v7251_v24 }
 0xa25   : > { %6008 = vmatpush1.bf16.msra.mxu0 %v7246_v6  ;;  %6061 = vmatpush1.bf16.msra.mxu1 %v7249_v54 }
 0xa26   : > { %6009 = vmatprep.subr.bf16.mxu0 %v7254_v43  ;;  %6062 = vmatprep.subr.bf16.mxu1 %v7257_v12 }
 0xa29   : > { %6010 = vmatpush1.bf16.msra.mxu0 %v7252_v50  ;;  %6063 = vmatpush1.bf16.msra.mxu1 %v7255_v62 }
 0xa2a   : > { %6011 = vmatprep.subr.bf16.mxu0 %v7260_v45  ;;  %6064 = vmatprep.subr.bf16.mxu1 %v7263_v42 }
 0xa2d   : > { %6012 = vmatpush1.bf16.msra.mxu0 %v7258_v23  ;;  %6065 = vmatpush1.bf16.msra.mxu1 %v7261_v17 }
 0xa2e   : > { %6013 = vmatprep.subr.bf16.mxu0 %v7266_v7  ;;  %6066 = vmatprep.subr.bf16.mxu1 %v7269_v53 }
 0xa31   : > { %6014 = vmatpush2.bf16.msra.mxu0 %v7264_v34  ;;  %6067 = vmatpush2.bf16.msra.mxu1 %v7267_v20 }
 0xa32   : > { %6015 = vmatprep.subr.bf16.mxu0 %v7272_v29  ;;  %6068 = vmatprep.subr.bf16.mxu1 %v7275_v47 }
 0xa35   : > { %6016 = vmatpush2.bf16.msra.mxu0 %v7270_v32  ;;  %6069 = vmatpush2.bf16.msra.mxu1 %v7273_v36 }
 0xa36   : > { %6017 = vmatprep.subr.bf16.mxu0 %v7278_v16  ;;  %6070 = vmatprep.subr.bf16.mxu1 %v7281_v46 }
 0xa39   : > { %6018 = vmatpush2.bf16.msra.mxu0 %v7276_v22  ;;  %6071 = vmatpush2.bf16.msra.mxu1 %v7279_v49 }
 0xa3a   : > { %6019 = vmatprep.subr.bf16.mxu0 %v7284_v60  ;;  %6072 = vmatprep.subr.bf16.mxu1 %v7287_v58 }
 0xa3d   : > { %6020 = vmatpush2.bf16.msra.mxu0 %v7282_v61  ;;  %6073 = vmatpush2.bf16.msra.mxu1 %v7285_v59 }
 0xa3e   : > { %6021 = vmatprep.subr.bf16.mxu0 %v7290_v1  ;;  %6074 = vmatprep.subr.bf16.mxu1 %v7293_v41 }
 0xa41   : > { %6022 = vmatpush2.bf16.msra.mxu0 %v7288_v9  ;;  %6075 = vmatpush2.bf16.msra.mxu1 %v7291_v44 }
 0xa42   : > { %6023 = vmatprep.subr.bf16.mxu0 %v7296_v26  ;;  %6076 = vmatprep.subr.bf16.mxu1 %v7299_v25 }
 0xa45   : > { %6024 = vmatpush2.bf16.msra.mxu0 %v7294_v21  ;;  %6077 = vmatpush2.bf16.msra.mxu1 %v7297_v63 }
 0xa46   : > { %6025 = vmatprep.subr.bf16.mxu0 %v7302_v28  ;;  %6078 = vmatprep.subr.bf16.mxu1 %v7305_v15 }
 0xa49   : > { %6026 = vmatpush2.bf16.msra.mxu0 %v7300_v14  ;;  %6079 = vmatpush2.bf16.msra.mxu1 %v7303_v2 }
 0xa4a   : > { %6027 = vmatprep.subr.bf16.mxu0 %v7308_v51  ;;  %6080 = vmatprep.subr.bf16.mxu1 %v7311_v0 }
 0xa4d   : > { %6028 = vmatpush2.bf16.msra.mxu0 %v7306_v33  ;;  %6081 = vmatpush2.bf16.msra.mxu1 %v7309_v39 }
 0xacf   : > { %v5381_v56 = vpop.f32.mrf.mxu0  ;;  %v5434_v18 = vpop.f32.mrf.mxu1 }
 0xad0   : > { %v9196_v38 = vadd.f32 %v5381_v56, %v9187_v35  ;;  %v9199_v10 = vadd.f32 %v5434_v18, %v9189_v8 }
 0xad1   : > { %v5383_v13 = vpop.f32.mrf.mxu0  ;;  %v5436_v31 = vpop.f32.mrf.mxu1 }
 0xad2   : > { %v5453_v30 = vmul.f32 %v9196_v38, %v9196_v38  ;;  %v5455_v48 = vmul.f32 %v9199_v10, %v9199_v10  ;;  %v9206_v37 = vadd.f32 %v5383_v13, %v9191_v19  ;;  %v9209_v11 = vadd.f32 %v5436_v31, %v9193_v52 }
 0xad3   : > { %v5385_v24 = vpop.f32.mrf.mxu0  ;;  %v5438_v6 = vpop.f32.mrf.mxu1 }
 0xad4   : > { %v5469_v54 = vmul.f32 %v5453_v30, %v9196_v38  ;;  %v5471_v43 = vmul.f32 %v5455_v48, %v9199_v10  ;;  %v5454_v12 = vmul.f32 %v9206_v37, %v9206_v37  ;;  %v5456_v50 = vmul.f32 %v9209_v11, %v9209_v11 }
 0xad5   : > { %v9218_v62 = vadd.f32 %v5385_v24, %v9187_v35  ;;  %v9221_v45 = vadd.f32 %v5438_v6, %v9189_v8  ;;  %v5387_v42 = vpop.f32.mrf.mxu0  ;;  %v5440_v23 = vpop.f32.mrf.mxu1 }
 0xad6   : > { %v5485_v17 = vmul.f32 0.044715, %v5469_v54  ;;  %v5487_v7 = vmul.f32 0.044715, %v5471_v43  ;;  %v5470_v53 = vmul.f32 %v5454_v12, %v9206_v37  ;;  %v5472_v34 = vmul.f32 %v5456_v50, %v9209_v11 }
 0xad7   : > { %v5457_v20 = vmul.f32 %v9218_v62, %v9218_v62  ;;  %v5459_v29 = vmul.f32 %v9221_v45, %v9221_v45  ;;  %v9230_v47 = vadd.f32 %v5387_v42, %v9191_v19  ;;  %v9233_v32 = vadd.f32 %v5440_v23, %v9193_v52  ;;  %v5391_v36 = vpop.f32.mrf.mxu0  ;;  %v5444_v16 = vpop.f32.mrf.mxu1 }
 0xad8   : > { %v5501_v46 = vadd.f32 %v5485_v17, %v9196_v38  ;;  %v5503_v22 = vadd.f32 %v5487_v7, %v9199_v10  ;;  %v5486_v49 = vmul.f32 0.044715, %v5470_v53  ;;  %v5488_v60 = vmul.f32 0.044715, %v5472_v34 }
 0xad9   : > { %v5473_v58 = vmul.f32 %v5457_v20, %v9218_v62  ;;  %v5475_v61 = vmul.f32 %v5459_v29, %v9221_v45  ;;  %v5458_v59 = vmul.f32 %v9230_v47, %v9230_v47  ;;  %v5460_v1 = vmul.f32 %v9233_v32, %v9233_v32  ;;  %v5393_v25 = vpop.f32.mrf.mxu0  ;;  %v5446_v2 = vpop.f32.mrf.mxu1 }
 0xada   : > { %v5517_v41 = vmul.f32 0.7978846, %v5501_v46  ;;  %v5519_v9 = vmul.f32 0.7978846, %v5503_v22  ;;  %v5502_v44 = vadd.f32 %v5486_v49, %v9206_v37  ;;  %v5504_v26 = vadd.f32 %v5488_v60, %v9209_v11 }
 0xadb   : > { %v5489_v21 = vmul.f32 0.044715, %v5473_v58  ;;  %v5491_v63 = vmul.f32 0.044715, %v5475_v61  ;;  %v5474_v28 = vmul.f32 %v5458_v59, %v9230_v47  ;;  %v5476_v14 = vmul.f32 %v5460_v1, %v9233_v32  ;;  %v5395_v5 = vpop.f32.mrf.mxu0  ;;  %v5448_v18 = vpop.f32.mrf.mxu1 }
 0xadc   : > { %7312 = vtanh.f32 %v5517_v41  ;;  %v5518_v15 = vmul.f32 0.7978846, %v5502_v44  ;;  %v5520_v51 = vmul.f32 0.7978846, %v5504_v26  ;;  %v9248_v0 = vadd.f32 %v5391_v36, %v9187_v35 }
 0xadd   : > { %7314 = vtanh.f32 %v5519_v9  ;;  %v5505_v33 = vadd.f32 %v5489_v21, %v9218_v62  ;;  %v5507_v39 = vadd.f32 %v5491_v63, %v9221_v45  ;;  %v5490_v40 = vmul.f32 0.044715, %v5474_v28  ;;  %v5397_v42 = vpop.f32.mrf.mxu0  ;;  %v5450_v53 = vpop.f32.mrf.mxu1 }
 0xade   : > { %7316 = vtanh.f32 %v5518_v15  ;;  %v5492_v4 = vmul.f32 0.044715, %v5476_v14  ;;  %v5461_v3 = vmul.f32 %v9248_v0, %v9248_v0  ;;  %v9255_v27 = vadd.f32 %v5444_v16, %v9189_v8 }
 0xadf   : > { %7318 = vtanh.f32 %v5520_v51  ;;  %v5521_v57 = vmul.f32 0.7978846, %v5505_v33  ;;  %v5523_v55 = vmul.f32 0.7978846, %v5507_v39  ;;  %v5506_v56 = vadd.f32 %v5490_v40, %v9230_v47 }
 0xae0   : > { %v5508_v13 = vadd.f32 %v5492_v4, %v9233_v32  ;;  %v5477_v31 = vmul.f32 %v5461_v3, %v9248_v0  ;;  %v5463_v30 = vmul.f32 %v9255_v27, %v9255_v27  ;;  %v9263_v48 = vadd.f32 %v5393_v25, %v9191_v19 }
 0xae1   : > { %7320 = vtanh.f32 %v5521_v57  ;;  %v5522_v24 = vmul.f32 0.7978846, %v5506_v56  ;;  %v9266_v6 = vadd.f32 %v5446_v2, %v9193_v52  ;;  %v9269_v54 = vadd.f32 %v5395_v5, %v9187_v35 }
 0xae2   : > { %7322 = vtanh.f32 %v5523_v55  ;;  %v5524_v43 = vmul.f32 0.7978846, %v5508_v13  ;;  %v5493_v12 = vmul.f32 0.044715, %v5477_v31  ;;  %v5479_v50 = vmul.f32 %v5463_v30, %v9255_v27 }
 0xae3   : > { %7324 = vtanh.f32 %v5522_v24  ;;  %v5462_v23 = vmul.f32 %v9263_v48, %v9263_v48  ;;  %v5464_v17 = vmul.f32 %v9266_v6, %v9266_v6  ;;  %v5465_v7 = vmul.f32 %v9269_v54, %v9269_v54 }
 0xae4   : > { %7326 = vtanh.f32 %v5524_v43  ;;  %v5509_v35 = vadd.f32 %v5493_v12, %v9248_v0  ;;  %v5495_v34 = vmul.f32 0.044715, %v5479_v50  ;;  %v9280_v20 = vadd.f32 %v5448_v18, %v9189_v8 }
 0xae5   : > { %v5478_v29 = vmul.f32 %v5462_v23, %v9263_v48  ;;  %v5480_v36 = vmul.f32 %v5464_v17, %v9266_v6  ;;  %v5481_v16 = vmul.f32 %v5465_v7, %v9269_v54  ;;  %v9286_v46 = vadd.f32 %v5397_v42, %v9191_v19 }
 0xae6   : > { %v5525_v22 = vmul.f32 0.7978846, %v5509_v35  ;;  %v5511_v49 = vadd.f32 %v5495_v34, %v9255_v27  ;;  %v5467_v60 = vmul.f32 %v9280_v20, %v9280_v20  ;;  %v9292_v58 = vadd.f32 %v5450_v53, %v9193_v52 }
 0xae7   : > { %v5494_v8 = vmul.f32 0.044715, %v5478_v29  ;;  %v5496_v61 = vmul.f32 0.044715, %v5480_v36  ;;  %v5497_v59 = vmul.f32 0.044715, %v5481_v16  ;;  %v5466_v1 = vmul.f32 %v9286_v46, %v9286_v46 }
 0xae8   : > { %v5527_v41 = vmul.f32 0.7978846, %v5511_v49  ;;  %v5483_v9 = vmul.f32 %v5467_v60, %v9280_v20  ;;  %v5468_v19 = vmul.f32 %v9292_v58, %v9292_v58  ;;  %7328 = vtanh.f32 %v5525_v22 }
 0xae9   : > { %v7313_v44 = vpop.eup %7312  ;;  %v5510_v26 = vadd.f32 %v5494_v8, %v9263_v48  ;;  %v5512_v25 = vadd.f32 %v5496_v61, %v9266_v6  ;;  %v5513_v52 = vadd.f32 %v5497_v59, %v9269_v54  ;;  %v5482_v21 = vmul.f32 %v5466_v1, %v9286_v46 }
 0xaea   : > { %v7315_v63 = vpop.eup %7314  ;;  %v5499_v28 = vmul.f32 0.044715, %v5483_v9  ;;  %v5484_v14 = vmul.f32 %v5468_v19, %v9292_v58  ;;  %7330 = vtanh.f32 %v5527_v41  ;;  %v5549_v55 = vadd.f32 1.0, %v7313_v44 }
 0xaeb   : > { %v7317_v2 = vpop.eup %7316  ;;  %v5526_v15 = vmul.f32 0.7978846, %v5510_v26  ;;  %v5528_v51 = vmul.f32 0.7978846, %v5512_v25  ;;  %v5529_v39 = vmul.f32 0.7978846, %v5513_v52 }
 0xaec   : > { %v7319_v33 = vpop.eup %7318  ;;  %v5515_v40 = vadd.f32 %v5499_v28, %v9280_v20  ;;  %v5498_v4 = vmul.f32 0.044715, %v5482_v21  ;;  %v5500_v3 = vmul.f32 0.044715, %v5484_v14  ;;  %v5550_v5 = vadd.f32 1.0, %v7317_v2 }
 0xaed   : > { %7332 = vtanh.f32 %v5526_v15  ;;  %v5551_v31 = vadd.f32 1.0, %v7315_v63  ;;  %v5552_v35 = vadd.f32 1.0, %v7319_v33  ;;  %v5565_v34 = vmul.f32 0.5, %v5549_v55 }
 0xaee   : > { %v7321_v57 = vpop.eup %7320  ;;  %7334 = vtanh.f32 %v5528_v51  ;;  %v5531_v56 = vmul.f32 0.7978846, %v5515_v40  ;;  %v5514_v18 = vadd.f32 %v5498_v4, %v9286_v46  ;;  %v5516_v24 = vadd.f32 %v5500_v3, %v9292_v58 }
 0xaef   : > { %v7323_v13 = vpop.eup %7322  ;;  %v5553_v30 = vadd.f32 1.0, %v7321_v57  ;;  %7336 = vtanh.f32 %v5529_v39  ;;  %v5566_v42 = vmul.f32 0.5, %v5550_v5  ;;  %v5567_v16 = vmul.f32 0.5, %v5551_v31 }
 0xaf0   : > { %v7325_v43 = vpop.eup %7324  ;;  %v5555_v12 = vadd.f32 1.0, %v7323_v13  ;;  %7338 = vtanh.f32 %v5531_v56  ;;  %v5530_v50 = vmul.f32 0.7978846, %v5514_v18  ;;  %v5532_v7 = vmul.f32 0.7978846, %v5516_v24 }
 0xaf1   : > { %v7327_v23 = vpop.eup %7326  ;;  %v5569_v17 = vmul.f32 0.5, %v5553_v30  ;;  %v5554_v53 = vadd.f32 1.0, %v7325_v43  ;;  %v5568_v49 = vmul.f32 0.5, %v5552_v35  ;;  %v5582_v59 = vmul.f32 %v5566_v42, %v9206_v37 }
 0xaf2   : > { %v5571_v29 = vmul.f32 0.5, %v5555_v12  ;;  %7340 = vtanh.f32 %v5530_v50  ;;  %v5556_v36 = vadd.f32 1.0, %v7327_v23  ;;  %v5581_v41 = vmul.f32 %v5565_v34, %v9196_v38 }
 0xaf3   : > { %7342 = vtanh.f32 %v5532_v7  ;;  %v5570_v22 = vmul.f32 0.5, %v5554_v53  ;;  %v5585_v60 = vmul.f32 %v5569_v17, %v9218_v62  ;;  %v5584_v9 = vmul.f32 %v5568_v49, %v9209_v11 }
 0xaf4   : > { %v5572_v8 = vmul.f32 0.5, %v5556_v36  ;;  %v5587_v61 = vmul.f32 %v5571_v29, %v9221_v45  ;;  %v5583_v44 = vmul.f32 %v5567_v16, %v9199_v10  ;;  %v5599_v36 = vld [vmem:[#allocation3 + $0x8] sm:$0xff] }
 0xaf5   : > { %v5586_v1 = vmul.f32 %v5570_v22, %v9230_v47  ;;  %v7329_v25 = vpop.eup %7328  ;;  %v5605_v52 = vpack.c.bf16 %v5585_v60, %v5581_v41  ;;  %v5600_v60 = vld [vmem:[#allocation3 + $0x18] sm:$0xff] }
 0xaf6   : > { %v5588_v19 = vmul.f32 %v5572_v8, %v9233_v32  ;;  %v5607_v63 = vpack.c.bf16 %v5587_v61, %v5583_v44  ;;  %v5557_v14 = vadd.f32 1.0, %v7329_v25  ;;  %v5602_v25 = vld [vmem:[#allocation3 + $0x10] sm:$0xff] }
 0xaf7   : > { %v5606_v26 = vpack.c.bf16 %v5586_v1, %v5582_v59  ;;  %v7331_v62 = vpop.eup %7330 }
 0xaf8   : > { %v5608_v21 = vpack.c.bf16 %v5588_v19, %v5584_v9  ;;  %v5559_v2 = vadd.f32 1.0, %v7331_v62  ;;  %v5573_v57 = vmul.f32 0.5, %v5557_v14  ;;  %v5601_v9 = vld [vmem:[#allocation3 + $0x20] sm:$0xff] }
 0xaf9   : > { %6029 = vmatprep.mubr.bf16.mxu0 %v5606_v26 }
 0xafa   : > { %v7333_v45 = vpop.eup %7332  ;;  %6082 = vmatprep.mubr.bf16.mxu1 %v5608_v21  ;;  %6030 = vmatmul.mubr.bf16.vlgmr.msra.gmra.mxu0 %v5605_v52  ;;  %v5575_v56 = vmul.f32 0.5, %v5559_v2  ;;  %v5589_v50 = vmul.f32 %v5573_v57, %v9248_v0 }
 0xafb   : > { %v7335_v37 = vpop.eup %7334  ;;  %6083 = vmatmul.mubr.bf16.vlgmr.msra.gmra.mxu1 %v5607_v63  ;;  %v5558_v38 = vadd.f32 1.0, %v7333_v45  ;;  %v5603_v45 = vld [vmem:[#allocation3 + $0x30] sm:$0xff] }
 0xafc   : > { %v7337_v47 = vpop.eup %7336  ;;  %v5560_v11 = vadd.f32 1.0, %v7335_v37  ;;  %v5591_v23 = vmul.f32 %v5575_v56, %v9255_v27 }
 0xafd   : > { %v7339_v28 = vpop.eup %7338  ;;  %v5561_v32 = vadd.f32 1.0, %v7337_v47  ;;  %v5574_v40 = vmul.f32 0.5, %v5558_v38 }
 0xafe   : > { %v5563_v10 = vadd.f32 1.0, %v7339_v28  ;;  %v5576_v5 = vmul.f32 0.5, %v5560_v11  ;;  %v5604_v11 = vld [vmem:[#allocation3 + $0x28] sm:$0xff] }
 0xaff   : > { %v7341_v15 = vpop.eup %7340  ;;  %v5577_v51 = vmul.f32 0.5, %v5561_v32  ;;  %v5590_v31 = vmul.f32 %v5574_v40, %v9263_v48 }
 0xb00   : > { %v7343_v33 = vpop.eup %7342  ;;  %v5562_v39 = vadd.f32 1.0, %v7341_v15  ;;  %v5579_v4 = vmul.f32 0.5, %v5563_v10  ;;  %v5592_v43 = vmul.f32 %v5576_v5, %v9266_v6  ;;  %v5598_v6 = vld [vmem:[#allocation3 + $0x38] sm:$0xff] }
 0xb01   : > { %v5564_v3 = vadd.f32 1.0, %v7343_v33  ;;  %v5593_v13 = vmul.f32 %v5577_v51, %v9269_v54  ;;  %v5597_v54 = vld [vmem:[#allocation3] sm:$0xff] }
 0xb02   : > { %v5578_v55 = vmul.f32 0.5, %v5562_v39  ;;  %v5595_v24 = vmul.f32 %v5579_v4, %v9280_v20 }
 0xb03   : > { %v5580_v18 = vmul.f32 0.5, %v5564_v3  ;;  %v5609_v7 = vpack.c.bf16 %v5593_v13, %v5589_v50 }
 0xb04   : > { %v5594_v30 = vmul.f32 %v5578_v55, %v9286_v46  ;;  %v5611_v53 = vpack.c.bf16 %v5595_v24, %v5591_v23 }
 0xb05   : > { %v5596_v12 = vmul.f32 %v5580_v18, %v9292_v58 }
 0xb06   : > { %v5610_v42 = vpack.c.bf16 %v5594_v30, %v5590_v31 }
 0xb07   : > { %v5612_v17 = vpack.c.bf16 %v5596_v12, %v5592_v43 }
 0xb08   : > { %6039 = vmatprep.mubr.bf16.mxu0 %v5610_v42 }
 0xb09   : > { %6092 = vmatprep.mubr.bf16.mxu1 %v5612_v17  ;;  %6040 = vmatmul.mubr.bf16.gmra.mxu0 %v5609_v7 }
 0xb0a   : > { %6093 = vmatmul.mubr.bf16.gmra.mxu1 %v5611_v53 }
 0xbba   : > { %v6031_v48 = vpop.f32.mrf.mxu0 }
 0xbbb   : > { %v6084_v46 = vpop.f32.mrf.mxu1 }
 0xbbc   : > { %v6085_v20 = vadd.f32 %v6084_v46, %v6031_v48  ;;  %v6033_v35 = vpop.f32.mrf.mxu0 }
 0xbbd   : > { %v6086_v34 = vpop.f32.mrf.mxu1 }
 0xbbe   : > { %v6103_v58 = vadd.f32 %v6085_v20, %v5597_v54  ;;  %v6087_v29 = vadd.f32 %v6086_v34, %v6033_v35  ;;  %v6035_v0 = vpop.f32.mrf.mxu0 }
 0xbbf   : > { %v6088_v16 = vpop.f32.mrf.mxu1 }
 0xbc0   : > { %6111 = vst [vmem:[#allocation3] sm:$0xff] %v6103_v58  ;;  %v6104_v27 = vadd.f32 %v6087_v29, %v5598_v6  ;;  %v6089_v22 = vadd.f32 %v6088_v16, %v6035_v0  ;;  %v6037_v49 = vpop.f32.mrf.mxu0 }
 0xbc1   : > { %v6090_v8 = vpop.f32.mrf.mxu1 }
 0xbc2   : > { %6112 = vst [vmem:[#allocation3 + $0x38] sm:$0xff] %v6104_v27  ;;  %v6105_v61 = vadd.f32 %v6089_v22, %v5599_v36  ;;  %v6091_v59 = vadd.f32 %v6090_v8, %v6037_v49 }
 0xbc4   : > { %6113 = vst [vmem:[#allocation3 + $0x8] sm:$0xff] %v6105_v61  ;;  %v6106_v1 = vadd.f32 %v6091_v59, %v5600_v60 }
 0xbc6   : > { %6114 = vst [vmem:[#allocation3 + $0x18] sm:$0xff] %v6106_v1 }
 0xbc9   : > { %v6041_v41 = vpop.f32.mrf.mxu0 }
 0xbca   : > { %v6094_v19 = vpop.f32.mrf.mxu1 }
 0xbcb   : > { %v6095_v44 = vadd.f32 %v6094_v19, %v6041_v41  ;;  %v6043_v26 = vpop.f32.mrf.mxu0 }
 0xbcc   : > { %v6096_v52 = vpop.f32.mrf.mxu1 }
 0xbcd   : > { %v6107_v21 = vadd.f32 %v6095_v44, %v5601_v9  ;;  %v6097_v62 = vadd.f32 %v6096_v52, %v6043_v26  ;;  %v6045_v63 = vpop.f32.mrf.mxu0 }
 0xbce   : > { %v6098_v37 = vpop.f32.mrf.mxu1 }
 0xbcf   : > { %6115 = vst [vmem:[#allocation3 + $0x20] sm:$0xff] %v6107_v21  ;;  %v6108_v47 = vadd.f32 %v6097_v62, %v5602_v25  ;;  %v6099_v38 = vadd.f32 %v6098_v37, %v6045_v63  ;;  %v6047_v28 = vpop.f32.mrf.mxu0 }
 0xbd0   : > { %v6100_v14 = vpop.f32.mrf.mxu1 }
 0xbd1   : > { %6116 = vst [vmem:[#allocation3 + $0x10] sm:$0xff] %v6108_v47  ;;  %v6109_v32 = vadd.f32 %v6099_v38, %v5603_v45  ;;  %v6101_v2 = vadd.f32 %v6100_v14, %v6047_v28  ;;  %6122 = sbr.rel (%p6601_p7) target bundleno = 3040 (0xbe0), region = 96 }
 0xbd3   : > { %6117 = vst [vmem:[#allocation3 + $0x30] sm:$0xff] %v6109_v32  ;;  %v6110_v10 = vadd.f32 %v6101_v2, %v5604_v11 }
 0xbd5   : > { %6118 = vst [vmem:[#allocation3 + $0x28] sm:$0xff] %v6110_v10 }
 0xbd6   : > { %v6123_v15 = vld [vmem:[#allocation3] sm:$0xff]  ;;  %v6124_v51 = vld [vmem:[#allocation3 + $0x38] sm:$0xff]  ;;  %v6125_v33 = vld [vmem:[#allocation3 + $0x8] sm:$0xff] }
 0xbd7   : > { %v6617_v39 = vpack.c.bf16 %v6124_v51, %v6123_v15  ;;  %v6126_v40 = vld [vmem:[#allocation3 + $0x18] sm:$0xff]  ;;  %v6127_v4 = vld [vmem:[#allocation3 + $0x20] sm:$0xff] }
 0xbd8   : > { %v6128_v3 = vld [vmem:[#allocation3 + $0x10] sm:$0xff]  ;;  %v6618_v5 = vpack.c.bf16 %v6126_v40, %v6125_v33 }
 0xbd9   : > { %v6619_v57 = vpack.c.bf16 %v6128_v3, %v6127_v4  ;;  %6155 = vst [vmem:[%s9426_s25] sm:$0xff] %v6617_v39 }
 0xbda   : > { %v6129_v55 = vld [vmem:[#allocation3 + $0x30] sm:$0xff]  ;;  %6156 = vst [vmem:[%s9426_s25 + $0x8] sm:$0xff] %v6618_v5 }
 0xbdb   : > { %6157 = vst [vmem:[%s9426_s25 + $0x10] sm:$0xff] %v6619_v57 }
 0xbdc   : > { %v6130_v56 = vld [vmem:[#allocation3 + $0x28] sm:$0xff] }
 0xbdd   : > { %v6620_v18 = vpack.c.bf16 %v6130_v56, %v6129_v55 }
 0xbdf   : > { %6158 = vst [vmem:[%s9426_s25 + $0x18] sm:$0xff] %v6620_v18 }
 0xbe0 PF: > { %s31_s23 = sadd.s32 1, %s7454_s23   ;;  %s9427_s11 = sld [smem:[#allocation10_spill]] }
 0xbe1   : > { %p28_p3 = scmp.ge.s32.totalorder %s31_s23, 4   ;;  %s9428_s20 = sld [smem:[#allocation12_spill]] }
 0xbe2   : > { %s9429_s30 = sld [smem:[#allocation11_spill]]  ;;  %s9430_s18 = smov %s7438_s19 }
 0xbe3   : > { %s9432_s21 = smov %s7450_s22 }
 0xbe4   :  { %30 = sbr.rel (!%p28_p3) target bundleno = 15 (0xf), region = 147 }
 0xbe6   : > { %s9431_s19 = smov %s9427_s11 }
 0xbe8   : > { %s9433_s22 = smov %s9429_s30 }
 0xbe9   :  { %6183 = vsyncpa [#allocation5], 1 }
 0xbea   :  { %6185 = vsyncpa [#allocation5 + $0x1], 1 }
 0xbeb   :  { %6186 = vsyncpa [#allocation7], 1 }
 0xbec   :  { %6188 = vsyncpa [#allocation7 + $0x1], 1 }

// kernel: fungenetyper_forward.3
= control target key start
LH: loop header
LB: loop body
LE: loop exit
PB: predicated region body
PF: predicated region fallthrough
CT: control target
= control target key end

     0   :  { %s10586_s0 = inlined_call_operand.vmem [shape: bf16[2,16,256], index: 0, kind: input, shape index: {}]   ;;  %s10587_s1 = inlined_call_operand.vmem [shape: f32[1,256], index: 1, kind: input, shape index: {}]   ;;  %s10588_s2 = inlined_call_operand.vmem [shape: f32[1,256], index: 2, kind: input, shape index: {}]   ;;  %s10589_s3 = inlined_call_operand.hbm [shape: f32[1,256], index: 3, kind: input, shape index: {}]   ;;  %s10590_s4 = inlined_call_operand.hbm [shape: f32[1,256], index: 4, kind: input, shape index: {}]   ;;  %s10591_s5 = inlined_call_operand.vmem [shape: bf16[256,768], index: 5, kind: input, shape index: {}]   ;;  %s10592_s6 = inlined_call_operand.vmem [shape: f32[1,768], index: 6, kind: input, shape index: {}]   ;;  %s10593_s7 = inlined_call_operand.vmem [shape: bf16[256,256], index: 7, kind: input, shape index: {}]   ;;  %s10594_s8 = inlined_call_operand.hbm [shape: f32[1,256], index: 8, kind: input, shape index: {}]   ;;  %s10595_s9 = inlined_call_operand.hbm [shape: f32[1,256], index: 9, kind: input, shape index: {}]   ;;  %s10596_s10 = inlined_call_operand.hbm [shape: f32[1,256], index: 10, kind: input, shape index: {}]   ;;  %s10597_s11 = inlined_call_operand.vmem [shape: bf16[256,1024], index: 11, kind: input, shape index: {}]   ;;  %s10598_s12 = inlined_call_operand.hbm [shape: f32[1,1024], index: 12, kind: input, shape index: {}]   ;;  %s10599_s13 = inlined_call_operand.vmem [shape: bf16[1024,256], index: 13, kind: input, shape index: {}]   ;;  %s10600_s14 = inlined_call_operand.hbm [shape: f32[1,256], index: 14, kind: input, shape index: {}]   ;;  %s10601_s15 = inlined_call_operand.hbm [shape: f32[1,256], index: 15, kind: input, shape index: {}]   ;;  %s10602_s16 = inlined_call_operand.hbm [shape: f32[1,256], index: 16, kind: input, shape index: {}]   ;;  %s10603_s17 = inlined_call_operand.vmem [shape: bf16[256,128], index: 17, kind: input, shape index: {}]   ;;  %s10604_s18 = inlined_call_operand.hbm [shape: f32[1,128], index: 18, kind: input, shape index: {}]   ;;  %s10605_s19 = inlined_call_operand.hbm [shape: f32[2,128], index: 19, kind: output, shape index: {}]  }
   0x1   :  { %10622 = sst [smem:[#allocation39_spill]] %s10586_s0 }
   0x2   :  { %10623 = sst [smem:[#allocation40_spill]] %s10589_s3 }
   0x3   :  { %10624 = sst [smem:[#allocation41_spill]] %s10590_s4 }
   0x4   :  { %10625 = sst [smem:[#allocation42_spill]] %s10592_s6 }
   0x5   :  { %10626 = sst [smem:[#allocation43_spill]] %s10593_s7 }
   0x6   :  { %10627 = sst [smem:[#allocation44_spill]] %s10594_s8 }
   0x7   :  { %10628 = sst [smem:[#allocation45_spill]] %s10595_s9 }
   0x8   :  { %10629 = sst [smem:[#allocation46_spill]] %s10596_s10 }
   0x9   :  { %10630 = sst [smem:[#allocation47_spill]] %s10603_s17 }
   0xa   :  { %10631 = sst [smem:[#allocation48_spill]] %s10605_s19 }
   0xb   :  { %24 = vsyncpa [#allocation5], 0 }
   0xc   :  { %25 = vsyncpa [#allocation8], 0 }
   0xd   :  { %26 = vsyncpa [#allocation11], 0 }
   0xe   :  { %27 = vsyncpa [#allocation15], 0 }
   0xf   :  { %29 = vsyncpa [#allocation15 + $0x1], 0 }
  0x10   :  { %30 = vsyncpa [#allocation18], 0 }
  0x11   :  { %31 = vsyncpa [#allocation21], 0 }
  0x12   :  { %32 = vsyncpa [#allocation6], 0  ;;  %s8538_s0 = smov 0   ;;  %s8540_s30 = smov 0  }
  0x13   :  { %s8542_s20 = smov 0   ;;  %s8544_s21 = smov 0  }
  0x14   :  { %s8546_s1 = smov 0   ;;  %s8548_s22 = smov 0  }
  0x15 LB: > { %s8567_s23 = sadd.s32 4294967295, %s8421_s22   ;;  %s47_s2 = sadd.s32 1, %s8417_s1  ;;  %s8421_s22 = sphi %s8548_s22, %s38_s22   ;;  %s8417_s1 = sphi %s8546_s1, %s10691_s1   ;;  %s8413_s21 = sphi %s8544_s21, %s10690_s21   ;;  %s8409_s20 = sphi %s8542_s20, %s10689_s20   ;;  %s8405_s30 = sphi %s8540_s30, %s10688_s30   ;;  %s8401_s0 = sphi %s8538_s0, %s10687_s0  }
  0x16   : > { %p48_p0 = scmp.ge.s32.totalorder %s47_s2, 2  ;;  %s293_s24 = sadd.s32 1, %s8409_s20 }
  0x17   : > { %p300_p1 = scmp.ne.s32.totalorder %s8409_s20, %s8405_s30  ;;  %p301_p2 = scmp.eq.s32.totalorder %s8421_s22, 0 }
  0x18   : > { %s10693_s2 = smov (%p48_p0, %s47_s2), 0  ;;  %p332_p4 = scmp.ne.s32.totalorder %s8405_s30, %s8401_s0 }
  0x19   : > { %10632 = sst [smem:[#allocation31_spill]] %s10693_s2  ;;  %p8576_p3 = por %p301_p2, %p300_p1 }
  0x1a   : > { %s290_s3 = ssub.s32 %s8417_s1, %s10693_s2  ;;  %p10610_p5 = scmp.eq.s32.totalorder %s8567_s23, 0 }
  0x1b   : > { %s10633_s25 = scalar_select %p8576_p3, 1, 0 }
  0x1c   : > { %p291_p6 = scmp.eq.s32.totalorder %s290_s3, 0  ;;  %p6854_p7 = scmp.ge.s32.totalorder %s8421_s22, 1 }
  0x1d   : > { %p8587_p8 = por %p10610_p5, %p332_p4  ;;  %p500_p9 = scmp.lt.s32.totalorder %s8421_s22, 3 }
  0x1e   : > { %s8593_s27 = scalar_select %p291_p6, %s8409_s20, %s293_s24  }
  0x1f   : > { %s10634_s26 = scalar_select %p8587_p8, 1, 0 }
  0x20   : > { %10635 = sst [smem:[#allocation32_spill]] %s8593_s27  ;;  %p8595_p10 = pnand %p6854_p7, %p500_p9 }
  0x21   : > { %s8423_s29 = smov [#allocation7]   ;;  %s8424_s3 = smov [#allocation10]  }
  0x22   : > { %s10636_s28 = scalar_select %p8595_p10, 1, 0 }
  0x23   : > { %p7413_p11 = pneg %p8595_p10  ;;  %s540_s0 = sshll.u32 %s8423_s29, 4  ;;  %s541_s0 = int_to_ptr.vmem [resolvable:$true] %s540_s0 }
  0x24   : > { %s571_s2 = sshll.u32 %s8424_s3, 4  ;;  %s8425_s24 = smov [#allocation17]   ;;  %s572_s2 = int_to_ptr.vmem [resolvable:$true] %s571_s2 }
  0x25   : > { %p8603_p12 = pnand %p7413_p11, %p10610_p5  ;;  %s604_s27 = sshll.u32 %s8425_s24, 4  ;;  %s605_s27 = int_to_ptr.vmem [resolvable:$true] %s604_s27 }
  0x26   : > { %s8070_s7 = scalar_lea.vmem %s541_s0, 32  ;;  %p8078_p4 = scmp.lt.s32.totalorder %s541_s0, %s541_s0 }
  0x27   : > { %p8609_p13 = pneg %p8603_p12  ;;  %p8071_p0 = scmp.ne.s32.totalorder %s541_s0, %s8070_s7 }
  0x28   : > { %p8079_p6 = scmp.lt.s32.totalorder %s8070_s7, %s8070_s7 }
  0x29   : > { %p8073_p1 = pnand %p8071_p0, %p8609_p13 }
  0x2a   : > { %p8080_p7 = por %p8079_p6, %p8078_p4 }
  0x2b   : > { %p8074_p2 = pneg %p8073_p1 }
  0x2d   : > { %p8081_p9 = pnand %p8080_p7, %p8074_p2 }
  0x2f   : > { %8084 = shalt.err (!%p8081_p9)
}
  0x30   : > { %s10639_s4 = sld [smem:[#allocation41_spill]]  ;;  %s8096_s24 = scalar_lea.vmem %s572_s2, 32 }
  0x31   : > { %p8097_p11 = scmp.ne.s32.totalorder %s572_s2, %s8096_s24  ;;  %p8104_p10 = scmp.lt.s32.totalorder %s572_s2, %s572_s2 }
  0x32   : > { %p8105_p0 = scmp.lt.s32.totalorder %s8096_s24, %s8096_s24 }
  0x33   : > { %p8099_p5 = pnand %p8097_p11, %p8609_p13 }
  0x34   : > { %p8106_p1 = por %p8105_p0, %p8104_p10 }
  0x35   : > { %p8100_p8 = pneg %p8099_p5 }
  0x36   : > { %7419 = dma.hbm_to_vmem [thread:$0]  (!%p8603_p12), %s10639_s4, 32, %s541_s0, [#allocation8]  }
  0x37   : > { %p8107_p3 = pnand %p8106_p1, %p8100_p8 }
  0x39   : > { %8110 = shalt.err (!%p8107_p3)
}
  0x3a   : > { %s10640_s9 = sld [smem:[#allocation45_spill]]  ;;  %s8122_s29 = scalar_lea.vmem %s605_s27, 32 }
  0x3b   : > { %p8123_p2 = scmp.ne.s32.totalorder %s605_s27, %s8122_s29  ;;  %p8130_p7 = scmp.lt.s32.totalorder %s605_s27, %s605_s27 }
  0x3c   : > { %p8131_p5 = scmp.lt.s32.totalorder %s8122_s29, %s8122_s29 }
  0x3d   : > { %p8125_p4 = pnand %p8123_p2, %p8609_p13 }
  0x3e   : > { %p8132_p9 = por %p8131_p5, %p8130_p7 }
  0x3f   : > { %p8126_p6 = pneg %p8125_p4 }
  0x40   : > { %7425 = dma.hbm_to_vmem [thread:$0]  (!%p8603_p12), %s10640_s9, 32, %s572_s2, [#allocation11]  }
  0x41   : > { %p8133_p11 = pnand %p8132_p9, %p8126_p6 }
  0x43   : > { %8136 = shalt.err (!%p8133_p11)
}
  0x44   : > { %7434 = dma.hbm_to_vmem [thread:$0]  (!%p8603_p12), %s10601_s15, 32, %s605_s27, [#allocation18]  }
  0x45   : > { %s8426_s6 = smov [#allocation4]   ;;  %s8427_s24 = smov [#allocation9]  }
  0x46   : > { %s529_s2 = sshll.u32 %s8426_s6, 4  ;;  %s560_s7 = sshll.u32 %s8427_s24, 4  ;;  %s530_s2 = int_to_ptr.vmem [resolvable:$true] %s529_s2  ;;  %s561_s7 = int_to_ptr.vmem [resolvable:$true] %s560_s7 }
  0x47   : > { %s8148_s4 = scalar_lea.vmem %s530_s2, 32  ;;  %p8156_p0 = scmp.lt.s32.totalorder %s530_s2, %s530_s2 }
  0x48   : > { %p8149_p3 = scmp.ne.s32.totalorder %s530_s2, %s8148_s4  ;;  %p8157_p1 = scmp.lt.s32.totalorder %s8148_s4, %s8148_s4 }
  0x4a   : > { %p8151_p8 = pnand %p8149_p3, %p8609_p13  ;;  %p8158_p2 = por %p8157_p1, %p8156_p0 }
  0x4c   : > { %p8152_p10 = pneg %p8151_p8 }
  0x4e   : > { %p8159_p4 = pnand %p8158_p2, %p8152_p10 }
  0x50   : > { %8162 = shalt.err (!%p8159_p4)
}
  0x51   : > { %s10641_s0 = sld [smem:[#allocation40_spill]]  ;;  %s8174_s3 = scalar_lea.vmem %s561_s7, 32 }
  0x52   : > { %p8175_p6 = scmp.ne.s32.totalorder %s561_s7, %s8174_s3  ;;  %p8182_p9 = scmp.lt.s32.totalorder %s561_s7, %s561_s7 }
  0x53   : > { %p8183_p11 = scmp.lt.s32.totalorder %s8174_s3, %s8174_s3 }
  0x54   : > { %p8177_p7 = pnand %p8175_p6, %p8609_p13 }
  0x55   : > { %p8184_p3 = por %p8183_p11, %p8182_p9 }
  0x56   : > { %p8178_p5 = pneg %p8177_p7 }
  0x57   : > { %7416 = dma.hbm_to_vmem [thread:$0]  (!%p8603_p12), %s10641_s0, 32, %s530_s2, [#allocation5]  }
  0x58   : > { %p8185_p8 = pnand %p8184_p3, %p8178_p5 }
  0x5a   : > { %8188 = shalt.err (!%p8185_p8)
}
  0x5b   : > { %s10642_s8 = sld [smem:[#allocation44_spill]]  ;;  %s8428_s24 = smov [#allocation12]  }
  0x5c   : > { %s582_s29 = sshll.u32 %s8428_s24, 4  ;;  %s8429_s2 = smov [#allocation16]   ;;  %s583_s29 = int_to_ptr.vmem [resolvable:$true] %s582_s29 }
  0x5d   : > { %s593_s27 = sshll.u32 %s8429_s2, 4  ;;  %s8200_s0 = scalar_lea.vmem %s583_s29, 32  ;;  %s594_s27 = int_to_ptr.vmem [resolvable:$true] %s593_s27 }
  0x5e   : > { %p8201_p10 = scmp.ne.s32.totalorder %s583_s29, %s8200_s0  ;;  %p8208_p2 = scmp.lt.s32.totalorder %s583_s29, %s583_s29 }
  0x5f   : > { %p8209_p4 = scmp.lt.s32.totalorder %s8200_s0, %s8200_s0 }
  0x60   : > { %p8203_p0 = pnand %p8201_p10, %p8609_p13 }
  0x61   : > { %7422 = dma.hbm_to_vmem [thread:$0]  (!%p8603_p12), %s10642_s8, 32, %s561_s7, [#allocation8]  }
  0x62   : > { %p8204_p1 = pneg %p8203_p0  ;;  %p8210_p6 = por %p8209_p4, %p8208_p2 }
  0x64   : > { %p8211_p7 = pnand %p8210_p6, %p8204_p1 }
  0x66   : > { %8214 = shalt.err (!%p8211_p7)
}
  0x67   : > { %s10643_s10 = sld [smem:[#allocation46_spill]]  ;;  %s8226_s4 = scalar_lea.vmem %s594_s27, 32 }
  0x68   : > { %p8227_p5 = scmp.ne.s32.totalorder %s594_s27, %s8226_s4  ;;  %p8234_p3 = scmp.lt.s32.totalorder %s594_s27, %s594_s27 }
  0x69   : > { %p8235_p8 = scmp.lt.s32.totalorder %s8226_s4, %s8226_s4 }
  0x6a   : > { %p8229_p9 = pnand %p8227_p5, %p8609_p13 }
  0x6b   : > { %p8236_p10 = por %p8235_p8, %p8234_p3 }
  0x6c   : > { %p8230_p11 = pneg %p8229_p9 }
  0x6d   : > { %7428 = dma.hbm_to_vmem [thread:$0]  (!%p8603_p12), %s10643_s10, 32, %s583_s29, [#allocation11]  }
  0x6e   : > { %p8237_p0 = pnand %p8236_p10, %p8230_p11 }
  0x70   : > { %8240 = shalt.err (!%p8237_p0)
}
  0x71   : > { %7431 = dma.hbm_to_vmem [thread:$0]  (!%p8603_p12), %s10600_s14, 32, %s594_s27, [#allocation15]  }
  0x72   : > { %s8430_s2 = smov [#allocation19]   ;;  %s8431_s29 = smov [#allocation20]  }
  0x73   : > { %s615_s0 = sshll.u32 %s8430_s2, 4  ;;  %s629_s3 = sshll.u32 %s8431_s29, 4  ;;  %s616_s0 = int_to_ptr.vmem [resolvable:$true] %s615_s0  ;;  %s630_s3 = int_to_ptr.vmem [resolvable:$true] %s629_s3 }
  0x74   : > { %s8252_s7 = scalar_lea.vmem %s616_s0, 32  ;;  %p8260_p6 = scmp.lt.s32.totalorder %s616_s0, %s616_s0 }
  0x75   : > { %p8253_p1 = scmp.ne.s32.totalorder %s616_s0, %s8252_s7  ;;  %p8261_p7 = scmp.lt.s32.totalorder %s8252_s7, %s8252_s7 }
  0x77   : > { %p8255_p2 = pnand %p8253_p1, %p8609_p13  ;;  %p8262_p5 = por %p8261_p7, %p8260_p6 }
  0x79   : > { %p8256_p4 = pneg %p8255_p2 }
  0x7b   : > { %p8263_p9 = pnand %p8262_p5, %p8256_p4 }
  0x7d   : > { %8266 = shalt.err (!%p8263_p9)
}
  0x7e   : > { %7437 = dma.hbm_to_vmem [thread:$0]  (!%p8603_p12), %s10602_s16, 32, %s616_s0, [#allocation18]  }
  0x7f   : > { %s8278_s6 = scalar_lea.vmem %s630_s3, 16  ;;  %s8285_s24 = scalar_lea.vmem %s630_s3, 32 }
  0x80   : > { %p8279_p11 = scmp.ne.s32.totalorder %s630_s3, %s8278_s6  ;;  %p8286_p10 = scmp.lt.s32.totalorder %s630_s3, %s630_s3 }
  0x81   : > { %p8287_p0 = scmp.lt.s32.totalorder %s8285_s24, %s8278_s6 }
  0x82   : > { %p8281_p3 = pnand %p8279_p11, %p8609_p13 }
  0x83   : > { %p8288_p1 = por %p8287_p0, %p8286_p10 }
  0x84   : > { %p8282_p8 = pneg %p8281_p3 }
  0x86   : > { %p8289_p2 = pnand %p8288_p1, %p8282_p8 }
  0x88   : > { %8292 = shalt.err (!%p8289_p2)
}
  0x89   : > { %7440 = dma.hbm_to_vmem [thread:$0]  (!%p8603_p12), %s10604_s18, 16, %s630_s3, [#allocation21]  }
  0x8a   : > { %p6865_p4 = scmp.ge.s32.totalorder %s8421_s22, 2 }
  0x8b   : > { %p10644_p6 = scmp.ne.s32.totalorder (!%p6865_p4), %s10633_s25, 0 }
  0x8c   : > { %636 = sbr.rel (%p6865_p4) target bundleno = 197 (0xc5), region = 80 }
  0x91   : > { %639 = sbr.rel (!%p10644_p6) target bundleno = 181 (0xb5), region = 84  ;;  %s641_s17 = sand.u32 (%p10644_p6), 1, %s8409_s20  }
  0x92   : > { %s7214_s0 = sshll.u32 (%p10644_p6), %s8417_s1, 4  ;;  %s6866_s7 = sshll.u32 (%p10644_p6), %s641_s17, 9 }
  0x93   : > { %s8684_s6 = scalar_lea.vmem (%p10644_p6), %s10597_s11, %s7214_s0  ;;  %s8689_s19 = scalar_lea.vmem (%p10644_p6), [#allocation13], %s6866_s7 }
  0x94   : > { %v659_v0 = vld [vmem:[%s8684_s6] sm:$0xff] (%p10644_p6)  ;;  %v661_v1 = vld [vmem:[%s8684_s6 + $0x8] sm:$0xff] (%p10644_p6) }
  0x95   : > { %v663_v2 = vld [vmem:[%s8684_s6 + $0x20] sm:$0xff] (%p10644_p6)  ;;  %660 = vst [vmem:[%s8689_s19] sm:$0xff] (%p10644_p6), %v659_v0  ;;  %662 = vst [vmem:[%s8689_s19 + $0x8] sm:$0xff] (%p10644_p6), %v661_v1  ;;  %v665_v3 = vld [vmem:[%s8684_s6 + $0x28] sm:$0xff] (%p10644_p6) }
  0x96   : > { %664 = vst [vmem:[%s8689_s19 + $0x10] sm:$0xff] %v663_v2  ;;  %v667_v4 = vld [vmem:[%s8684_s6 + $0x40] sm:$0xff]  ;;  %v669_v5 = vld [vmem:[%s8684_s6 + $0x48] sm:$0xff]  ;;  %666 = vst [vmem:[%s8689_s19 + $0x18] sm:$0xff] %v665_v3 }
  0x97   : > { %668 = vst [vmem:[%s8689_s19 + $0x20] sm:$0xff] %v667_v4  ;;  %670 = vst [vmem:[%s8689_s19 + $0x28] sm:$0xff] %v669_v5  ;;  %v671_v6 = vld [vmem:[%s8684_s6 + $0x60] sm:$0xff]  ;;  %v673_v7 = vld [vmem:[%s8684_s6 + $0x68] sm:$0xff] }
  0x98   : > { %v675_v8 = vld [vmem:[%s8684_s6 + $0x80] sm:$0xff]  ;;  %672 = vst [vmem:[%s8689_s19 + $0x30] sm:$0xff] %v671_v6  ;;  %674 = vst [vmem:[%s8689_s19 + $0x38] sm:$0xff] %v673_v7  ;;  %v677_v9 = vld [vmem:[%s8684_s6 + $0x88] sm:$0xff] }
  0x99   : > { %676 = vst [vmem:[%s8689_s19 + $0x40] sm:$0xff] %v675_v8  ;;  %v679_v10 = vld [vmem:[%s8684_s6 + $0xa0] sm:$0xff]  ;;  %v681_v11 = vld [vmem:[%s8684_s6 + $0xa8] sm:$0xff]  ;;  %678 = vst [vmem:[%s8689_s19 + $0x48] sm:$0xff] %v677_v9 }
  0x9a   : > { %680 = vst [vmem:[%s8689_s19 + $0x50] sm:$0xff] %v679_v10  ;;  %682 = vst [vmem:[%s8689_s19 + $0x58] sm:$0xff] %v681_v11  ;;  %v683_v12 = vld [vmem:[%s8684_s6 + $0xc0] sm:$0xff]  ;;  %v685_v13 = vld [vmem:[%s8684_s6 + $0xc8] sm:$0xff] }
  0x9b   : > { %v687_v14 = vld [vmem:[%s8684_s6 + $0xe0] sm:$0xff]  ;;  %684 = vst [vmem:[%s8689_s19 + $0x60] sm:$0xff] %v683_v12  ;;  %686 = vst [vmem:[%s8689_s19 + $0x68] sm:$0xff] %v685_v13  ;;  %v689_v15 = vld [vmem:[%s8684_s6 + $0xe8] sm:$0xff] }
  0x9c   : > { %688 = vst [vmem:[%s8689_s19 + $0x70] sm:$0xff] %v687_v14  ;;  %v691_v16 = vld [vmem:[%s8684_s6 + $0x100] sm:$0xff]  ;;  %v693_v17 = vld [vmem:[%s8684_s6 + $0x108] sm:$0xff]  ;;  %690 = vst [vmem:[%s8689_s19 + $0x78] sm:$0xff] %v689_v15 }
  0x9d   : > { %692 = vst [vmem:[%s8689_s19 + $0x80] sm:$0xff] %v691_v16  ;;  %694 = vst [vmem:[%s8689_s19 + $0x88] sm:$0xff] %v693_v17  ;;  %v695_v18 = vld [vmem:[%s8684_s6 + $0x120] sm:$0xff]  ;;  %v697_v19 = vld [vmem:[%s8684_s6 + $0x128] sm:$0xff] }
  0x9e   : > { %v699_v20 = vld [vmem:[%s8684_s6 + $0x140] sm:$0xff]  ;;  %696 = vst [vmem:[%s8689_s19 + $0x90] sm:$0xff] %v695_v18  ;;  %698 = vst [vmem:[%s8689_s19 + $0x98] sm:$0xff] %v697_v19  ;;  %v701_v21 = vld [vmem:[%s8684_s6 + $0x148] sm:$0xff] }
  0x9f   : > { %700 = vst [vmem:[%s8689_s19 + $0xa0] sm:$0xff] %v699_v20  ;;  %v703_v22 = vld [vmem:[%s8684_s6 + $0x160] sm:$0xff]  ;;  %v705_v23 = vld [vmem:[%s8684_s6 + $0x168] sm:$0xff]  ;;  %702 = vst [vmem:[%s8689_s19 + $0xa8] sm:$0xff] %v701_v21 }
  0xa0   : > { %704 = vst [vmem:[%s8689_s19 + $0xb0] sm:$0xff] %v703_v22  ;;  %706 = vst [vmem:[%s8689_s19 + $0xb8] sm:$0xff] %v705_v23  ;;  %v707_v24 = vld [vmem:[%s8684_s6 + $0x180] sm:$0xff]  ;;  %v709_v25 = vld [vmem:[%s8684_s6 + $0x188] sm:$0xff] }
  0xa1   : > { %v711_v26 = vld [vmem:[%s8684_s6 + $0x1a0] sm:$0xff]  ;;  %708 = vst [vmem:[%s8689_s19 + $0xc0] sm:$0xff] %v707_v24  ;;  %710 = vst [vmem:[%s8689_s19 + $0xc8] sm:$0xff] %v709_v25  ;;  %v713_v27 = vld [vmem:[%s8684_s6 + $0x1a8] sm:$0xff] }
  0xa2   : > { %712 = vst [vmem:[%s8689_s19 + $0xd0] sm:$0xff] %v711_v26  ;;  %v715_v28 = vld [vmem:[%s8684_s6 + $0x1c0] sm:$0xff]  ;;  %v717_v29 = vld [vmem:[%s8684_s6 + $0x1c8] sm:$0xff]  ;;  %714 = vst [vmem:[%s8689_s19 + $0xd8] sm:$0xff] %v713_v27 }
  0xa3   : > { %716 = vst [vmem:[%s8689_s19 + $0xe0] sm:$0xff] %v715_v28  ;;  %718 = vst [vmem:[%s8689_s19 + $0xe8] sm:$0xff] %v717_v29  ;;  %v719_v30 = vld [vmem:[%s8684_s6 + $0x1e0] sm:$0xff]  ;;  %v721_v31 = vld [vmem:[%s8684_s6 + $0x1e8] sm:$0xff] }
  0xa4   : > { %v723_v32 = vld [vmem:[%s8684_s6 + $0x200] sm:$0xff]  ;;  %720 = vst [vmem:[%s8689_s19 + $0xf0] sm:$0xff] %v719_v30  ;;  %722 = vst [vmem:[%s8689_s19 + $0xf8] sm:$0xff] %v721_v31  ;;  %v725_v33 = vld [vmem:[%s8684_s6 + $0x208] sm:$0xff] }
  0xa5   : > { %724 = vst [vmem:[%s8689_s19 + $0x100] sm:$0xff] %v723_v32  ;;  %v727_v34 = vld [vmem:[%s8684_s6 + $0x220] sm:$0xff]  ;;  %v729_v35 = vld [vmem:[%s8684_s6 + $0x228] sm:$0xff]  ;;  %726 = vst [vmem:[%s8689_s19 + $0x108] sm:$0xff] %v725_v33 }
  0xa6   : > { %728 = vst [vmem:[%s8689_s19 + $0x110] sm:$0xff] %v727_v34  ;;  %730 = vst [vmem:[%s8689_s19 + $0x118] sm:$0xff] %v729_v35  ;;  %v731_v36 = vld [vmem:[%s8684_s6 + $0x240] sm:$0xff]  ;;  %v733_v37 = vld [vmem:[%s8684_s6 + $0x248] sm:$0xff] }
  0xa7   : > { %v735_v38 = vld [vmem:[%s8684_s6 + $0x260] sm:$0xff]  ;;  %732 = vst [vmem:[%s8689_s19 + $0x120] sm:$0xff] %v731_v36  ;;  %734 = vst [vmem:[%s8689_s19 + $0x128] sm:$0xff] %v733_v37  ;;  %v737_v39 = vld [vmem:[%s8684_s6 + $0x268] sm:$0xff] }
  0xa8   : > { %736 = vst [vmem:[%s8689_s19 + $0x130] sm:$0xff] %v735_v38  ;;  %v739_v40 = vld [vmem:[%s8684_s6 + $0x280] sm:$0xff]  ;;  %v741_v41 = vld [vmem:[%s8684_s6 + $0x288] sm:$0xff]  ;;  %738 = vst [vmem:[%s8689_s19 + $0x138] sm:$0xff] %v737_v39 }
  0xa9   : > { %740 = vst [vmem:[%s8689_s19 + $0x140] sm:$0xff] %v739_v40  ;;  %742 = vst [vmem:[%s8689_s19 + $0x148] sm:$0xff] %v741_v41  ;;  %v743_v42 = vld [vmem:[%s8684_s6 + $0x2a0] sm:$0xff]  ;;  %v745_v43 = vld [vmem:[%s8684_s6 + $0x2a8] sm:$0xff] }
  0xaa   : > { %v747_v44 = vld [vmem:[%s8684_s6 + $0x2c0] sm:$0xff]  ;;  %744 = vst [vmem:[%s8689_s19 + $0x150] sm:$0xff] %v743_v42  ;;  %746 = vst [vmem:[%s8689_s19 + $0x158] sm:$0xff] %v745_v43  ;;  %v749_v45 = vld [vmem:[%s8684_s6 + $0x2c8] sm:$0xff] }
  0xab   : > { %748 = vst [vmem:[%s8689_s19 + $0x160] sm:$0xff] %v747_v44  ;;  %v751_v46 = vld [vmem:[%s8684_s6 + $0x2e0] sm:$0xff]  ;;  %v753_v47 = vld [vmem:[%s8684_s6 + $0x2e8] sm:$0xff]  ;;  %750 = vst [vmem:[%s8689_s19 + $0x168] sm:$0xff] %v749_v45 }
  0xac   : > { %752 = vst [vmem:[%s8689_s19 + $0x170] sm:$0xff] %v751_v46  ;;  %754 = vst [vmem:[%s8689_s19 + $0x178] sm:$0xff] %v753_v47  ;;  %v755_v48 = vld [vmem:[%s8684_s6 + $0x300] sm:$0xff]  ;;  %v757_v49 = vld [vmem:[%s8684_s6 + $0x308] sm:$0xff] }
  0xad   : > { %v759_v50 = vld [vmem:[%s8684_s6 + $0x320] sm:$0xff]  ;;  %756 = vst [vmem:[%s8689_s19 + $0x180] sm:$0xff] %v755_v48  ;;  %758 = vst [vmem:[%s8689_s19 + $0x188] sm:$0xff] %v757_v49  ;;  %v761_v51 = vld [vmem:[%s8684_s6 + $0x328] sm:$0xff] }
  0xae   : > { %760 = vst [vmem:[%s8689_s19 + $0x190] sm:$0xff] %v759_v50  ;;  %v763_v52 = vld [vmem:[%s8684_s6 + $0x340] sm:$0xff]  ;;  %v765_v53 = vld [vmem:[%s8684_s6 + $0x348] sm:$0xff]  ;;  %762 = vst [vmem:[%s8689_s19 + $0x198] sm:$0xff] %v761_v51 }
  0xaf   : > { %764 = vst [vmem:[%s8689_s19 + $0x1a0] sm:$0xff] %v763_v52  ;;  %766 = vst [vmem:[%s8689_s19 + $0x1a8] sm:$0xff] %v765_v53  ;;  %v767_v54 = vld [vmem:[%s8684_s6 + $0x360] sm:$0xff]  ;;  %v769_v55 = vld [vmem:[%s8684_s6 + $0x368] sm:$0xff] }
  0xb0   : > { %v771_v56 = vld [vmem:[%s8684_s6 + $0x380] sm:$0xff]  ;;  %768 = vst [vmem:[%s8689_s19 + $0x1b0] sm:$0xff] %v767_v54  ;;  %770 = vst [vmem:[%s8689_s19 + $0x1b8] sm:$0xff] %v769_v55  ;;  %v773_v57 = vld [vmem:[%s8684_s6 + $0x388] sm:$0xff] }
  0xb1   : > { %772 = vst [vmem:[%s8689_s19 + $0x1c0] sm:$0xff] %v771_v56  ;;  %v775_v58 = vld [vmem:[%s8684_s6 + $0x3a0] sm:$0xff]  ;;  %v777_v59 = vld [vmem:[%s8684_s6 + $0x3a8] sm:$0xff]  ;;  %774 = vst [vmem:[%s8689_s19 + $0x1c8] sm:$0xff] %v773_v57 }
  0xb2   : > { %776 = vst [vmem:[%s8689_s19 + $0x1d0] sm:$0xff] %v775_v58  ;;  %778 = vst [vmem:[%s8689_s19 + $0x1d8] sm:$0xff] %v777_v59  ;;  %v779_v60 = vld [vmem:[%s8684_s6 + $0x3c0] sm:$0xff]  ;;  %v781_v61 = vld [vmem:[%s8684_s6 + $0x3c8] sm:$0xff] }
  0xb3   : > { %v783_v62 = vld [vmem:[%s8684_s6 + $0x3e0] sm:$0xff]  ;;  %780 = vst [vmem:[%s8689_s19 + $0x1e0] sm:$0xff] %v779_v60  ;;  %782 = vst [vmem:[%s8689_s19 + $0x1e8] sm:$0xff] %v781_v61  ;;  %v785_v63 = vld [vmem:[%s8684_s6 + $0x3e8] sm:$0xff] }
  0xb4   : > { %784 = vst [vmem:[%s8689_s19 + $0x1f0] sm:$0xff] %v783_v62  ;;  %786 = vst [vmem:[%s8689_s19 + $0x1f8] sm:$0xff] %v785_v63 }
  0xb5 PF: > { %s793_s3 = sand.u32 1, %s8421_s22   ;;  %s795_s24 = sand.u32 1, %s8409_s20  }
  0xb6   : > { %s6869_s2 = sshll.u32 %s795_s24, 2  ;;  %s7215_s29 = sshll.u32 %s8417_s1, 6 }
  0xb7   : > { %s803_s7 = scalar_lea.hbm %s10598_s12, %s7215_s29  ;;  %s797_s4 = scalar_lea.vmem [#allocation14], %s6869_s2 }
  0xb8   : > { %s805_s27 = sshll.u32 %s797_s4, 4  ;;  %s794_s8 = scalar_lea.sflag [#allocation15], %s793_s3  ;;  %s806_s27 = int_to_ptr.vmem [resolvable:$true] %s805_s27 }
  0xb9   : > { %s8305_s9 = scalar_lea.vmem %s806_s27, 64  ;;  %p10645_p13 = scmp.ne.s32.totalorder %s10633_s25, 0 }
  0xba   : > { %p8306_p12 = scmp.ne.s32.totalorder %s806_s27, %s8305_s9  ;;  %s8432_s6 = smov [#allocation14]  }
  0xbb   : > { %s8309_s19 = sshll.u32 %s8432_s6, 4  ;;  %s8310_s19 = int_to_ptr.vmem [resolvable:$false] %s8309_s19 }
  0xbc   : > { %p8307_p7 = pnand %p8306_p12, %p10645_p13  ;;  %s8311_s10 = scalar_lea.vmem %s8310_s19, 128 }
  0xbd   : > { %p8312_p9 = scmp.lt.s32.totalorder %s806_s27, %s8310_s19  ;;  %p8313_p11 = scmp.lt.s32.totalorder %s8311_s10, %s8305_s9 }
  0xbe   : > { %p8308_p5 = pneg %p8307_p7 }
  0xbf   : > { %p8314_p3 = por %p8313_p11, %p8312_p9 }
  0xc1   : > { %p8315_p8 = pnand %p8314_p3, %p8308_p5 }
  0xc3   : > { %8318 = shalt.err (!%p8315_p8)
}
  0xc4   : > { %7389 = dma.hbm_to_vmem [thread:$0]  (%p10645_p13), %s803_s7, 64, %s806_s27, %s794_s8  }
  0xc5 PF: > { %p10646_p10 = scmp.ne.s32.totalorder %s10636_s28, 0 }
  0xc6   : > { %p10647_p0 = scmp.eq.s32.totalorder (!%p10646_p10), %s8567_s23, 0 }
  0xc7   : > { %824 = sbr.rel (%p10646_p10) target bundleno = 3443 (0xd73), region = 115 }
  0xcc   : > { %8368 = dma.done.wait (%p10647_p0), [#allocation5], 32   ;;  %p10648_p1 = pmov %p10647_p0 }
  0xcd   : > { %p10649_p2 = pmov %p10647_p0 }
  0xce   : > { %8370 = vsyncadd (%p10648_p1), [#allocation5], 4294967264 }
  0xcf   : > { %8372 = dma.done.wait (%p10649_p2), [#allocation8], 64   ;;  %p10650_p4 = pmov %p10647_p0 }
  0xd0   : > { %p10651_p6 = pmov %p10647_p0 }
  0xd1   : > { %8374 = vsyncadd (%p10650_p4), [#allocation8], 4294967232 }
  0xd2   : > { %8376 = dma.done.wait (%p10651_p6), [#allocation11], 64   ;;  %p10652_p12 = pmov %p10647_p0 }
  0xd3   : > { %s847_s8 = sand.u32 1, %s8405_s30   ;;  %s853_s9 = sand.u32 1, %s8567_s23  }
  0xd4   : > { %8378 = vsyncadd (%p10652_p12), [#allocation11], 4294967232  ;;  %s6878_s10 = sshll.u32 %s847_s8, 9  ;;  %s8842_s25 = sshll.u32 %s847_s8, 2 }
  0xd5   : > { %s8844_s28 = scalar_lea.vmem [#allocation13], %s6878_s10  ;;  %s854_s3 = scalar_lea.sflag [#allocation15], %s853_s9 }
  0xd6   : > { %s857_s24 = scalar_lea.vmem [#allocation14], %s8842_s25  ;;  %p10653_p13 = scmp.ne.s32.totalorder %s10634_s26, 0 }
  0xd8   : > { %8380 = dma.done.wait (%p10653_p13), %s854_s3, 64  }
  0xd9   : > { %8382 = vsyncadd (%p10653_p13), %s854_s3, 4294967232  ;;  %p10654_p7 = pmov %p10647_p0 }
  0xda   : > { %p10655_p5 = pmov %p10647_p0 }
  0xdb   : > { %8384 = dma.done.wait (%p10654_p7), [#allocation15], 32  }
  0xdc   : > { %8386 = vsyncadd (%p10655_p5), [#allocation15], 4294967264  ;;  %p10656_p9 = pmov %p10647_p0 }
  0xdd   : > { %p10657_p11 = pmov %p10647_p0 }
  0xde   : > { %8388 = dma.done.wait (%p10656_p9), [#allocation18], 64  }
  0xdf   : > { %8390 = vsyncadd (%p10657_p11), [#allocation18], 4294967232  ;;  %p10658_p3 = pmov %p10647_p0 }
  0xe0   : > { %p10659_p8 = pmov %p10647_p0 }
  0xe1   : > { %8392 = dma.done.wait (%p10658_p3), [#allocation21], 16  }
  0xe2   : > { %8394 = vsyncadd (%p10659_p8), [#allocation21], 4294967280  ;;  %s6884_s26 = sshll.u32 %s8413_s21, 6  ;;  %p6887_p0 = scmp.ne.s32.totalorder %s8413_s21, 0 }
  0xe3   : > { %p949_p10 = scmp.lt.s32.totalorder %s6884_s26, 127 }
  0xe4   : > { %959 = sbr.rel (%p6887_p0) target bundleno = 2365 (0x93d), region = 163 }
  0xe5   : > { %s10695_s26 = smov (!%p949_p10, %s6884_s26), 127 }
  0xe6   : > { %s7216_s2 = sshll.u32 %s10695_s26, 3 }
  0xe7   : > { %s8867_s0 = scalar_lea.vmem %s10599_s13, %s7216_s2 }
  0xe9   : > { %s10660_s27 = sld [smem:[#allocation39_spill]]  ;;  %v7523_v16 = vld [vmem:[%s10591_s5 + $0x154] ss:$24 sps:$4 sm:$0xff]   ;;  %v7525_v17 = vld [vmem:[%s10591_s5 + $0x150] ss:$24 sps:$4 sm:$0xff]   ;;  %vm8434_vm0 = vmmov 0  }
  0xea   : > { %v7526_v18 = vld [vmem:[%s10591_s5 + $0x164] ss:$24 sps:$4 sm:$0xff]   ;;  %v7528_v19 = vld [vmem:[%s10591_s5 + $0x160] ss:$24 sps:$4 sm:$0xff]   ;;  %1689 = vmatprep.subr.bf16.mxu1 %v7523_v16  ;;  %v7532_v21 = vld [vmem:[%s10591_s5 + $0x134] ss:$24 sps:$4 sm:$0xff]  }
  0xeb   : > { %v7529_v20 = vld [vmem:[%s10591_s5 + $0x124] ss:$24 sps:$4 sm:$0xff]   ;;  %1795 = vmatprep.subr.bf16.mxu0 %v7526_v18  ;;  %1690 = vmatpush1.bf16.msra.mxu1 %v7525_v17  ;;  %v7531_v22 = vld [vmem:[%s10591_s5 + $0x120] ss:$24 sps:$4 sm:$0xff]   ;;  %v7534_v23 = vld [vmem:[%s10591_s5 + $0x130] ss:$24 sps:$4 sm:$0xff]  }
  0xec   : > { %1796 = vmatpush1.bf16.msra.mxu0 %v7528_v19  ;;  %1691 = vmatprep.subr.bf16.mxu1 %v7529_v20  ;;  %v7535_v24 = vld [vmem:[%s10591_s5 + $0xf4] ss:$24 sps:$4 sm:$0xff]   ;;  %v7538_v25 = vld [vmem:[%s10591_s5 + $0x104] ss:$24 sps:$4 sm:$0xff]   ;;  %v7537_v26 = vld [vmem:[%s10591_s5 + $0xf0] ss:$24 sps:$4 sm:$0xff]  }
  0xed   : > { %1797 = vmatprep.subr.bf16.mxu0 %v7532_v21  ;;  %v7540_v27 = vld [vmem:[%s10591_s5 + $0x100] ss:$24 sps:$4 sm:$0xff]   ;;  %v7541_v28 = vld [vmem:[%s10591_s5 + $0xc4] ss:$24 sps:$4 sm:$0xff]   ;;  %v7544_v29 = vld [vmem:[%s10591_s5 + $0xd4] ss:$24 sps:$4 sm:$0xff]  }
  0xee   : > { %v7543_v30 = vld [vmem:[%s10591_s5 + $0xc0] ss:$24 sps:$4 sm:$0xff]   ;;  %v7546_v31 = vld [vmem:[%s10591_s5 + $0xd0] ss:$24 sps:$4 sm:$0xff]   ;;  %v7547_v32 = vld [vmem:[%s10591_s5 + $0x94] ss:$24 sps:$4 sm:$0xff]  }
  0xef   : > { %v960_v0 = vld [vmem:[%s10660_s27] sm:$0xff]  ;;  %v962_v1 = vld [vmem:[%s10660_s27 + $0x10] sm:$0xff]  ;;  %v961_v2 = vld [vmem:[%s10660_s27 + $0x8] sm:$0xff]  ;;  %1692 = vmatpush1.bf16.msra.mxu1 %v7531_v22  ;;  %s10667_s29 = sld [smem:[#allocation42_spill]]  ;;  %vm3536_vm1 = vcmask 1043456   ;;  %vm3416_vm2 = vcmask 64512  }
  0xf0   : > { %v8879_v3 = vunpack.c.l.bf16 %v960_v0  ;;  %v8881_v4 = vunpack.c.h.bf16 %v960_v0  ;;  %v8883_v5 = vunpack.c.l.bf16 %v962_v1  ;;  %v8885_v6 = vunpack.c.h.bf16 %v962_v1  ;;  %v963_v7 = vld [vmem:[%s10660_s27 + $0x18] sm:$0xff]  ;;  %1798 = vmatpush1.bf16.msra.mxu0 %v7534_v23  ;;  %1693 = vmatprep.subr.bf16.mxu1 %v7535_v24  ;;  %v7549_v34 = vld [vmem:[%s10591_s5 + $0x90] ss:$24 sps:$4 sm:$0xff]   ;;  %v7556_v37 = vld [vmem:[%s10591_s5 + $0x74] ss:$24 sps:$4 sm:$0xff]   ;;  %s10676_s4 = sld [smem:[#allocation43_spill]] }
  0xf1   : > { %v8890_v8 = vunpack.c.l.bf16 %v961_v2  ;;  %v8892_v9 = vunpack.c.h.bf16 %v961_v2  ;;  %v8894_v10 = vunpack.c.l.bf16 %v963_v7  ;;  %v8896_v11 = vunpack.c.h.bf16 %v963_v7  ;;  %1799 = vmatprep.subr.bf16.mxu0 %v7538_v25  ;;  %v7550_v33 = vld [vmem:[%s10591_s5 + $0xa4] ss:$24 sps:$4 sm:$0xff]   ;;  %v7552_v35 = vld [vmem:[%s10591_s5 + $0xa0] ss:$24 sps:$4 sm:$0xff]   ;;  %v7558_v39 = vld [vmem:[%s10591_s5 + $0x70] ss:$24 sps:$4 sm:$0xff]  }
  0xf2   : > { %10661 = vst [vmem:[#allocation33_spill] sm:$0xff] %v8883_v5  ;;  %10662 = vst [vmem:[#allocation34_spill] sm:$0xff] %v8885_v6  ;;  %v974_v12 = vadd.f32 %v8881_v4, %v8879_v3  ;;  %v980_v13 = vadd.f32 %v8885_v6, %v8883_v5  ;;  %v7553_v36 = vld [vmem:[%s10591_s5 + $0x64] ss:$24 sps:$4 sm:$0xff]   ;;  %v7555_v38 = vld [vmem:[%s10591_s5 + $0x60] ss:$24 sps:$4 sm:$0xff]  }
  0xf3   : > { %10663 = vst [vmem:[#allocation35_spill] sm:$0xff] %v8890_v8  ;;  %10664 = vst [vmem:[#allocation36_spill] sm:$0xff] %v8892_v9  ;;  %v977_v14 = vadd.f32 %v8892_v9, %v8890_v8  ;;  %v983_v15 = vadd.f32 %v8896_v11, %v8894_v10  ;;  %1694 = vmatpush1.bf16.msra.mxu1 %v7537_v26  ;;  %v7559_v40 = vld [vmem:[%s10591_s5 + $0x34] ss:$24 sps:$4 sm:$0xff]   ;;  %v7562_v41 = vld [vmem:[%s10591_s5 + $0x44] ss:$24 sps:$4 sm:$0xff]  }
  0xf4   : > { %10665 = vst [vmem:[#allocation37_spill] sm:$0xff] %v8894_v10  ;;  %10666 = vst [vmem:[#allocation38_spill] sm:$0xff] %v8896_v11  ;;  %975 = vadd.xlane.f32.xlu0 %v974_v12  ;;  %981 = vadd.xlane.f32.xlu1 %v980_v13  ;;  %v7561_v42 = vld [vmem:[%s10591_s5 + $0x30] ss:$24 sps:$4 sm:$0xff]   ;;  %v7564_v43 = vld [vmem:[%s10591_s5 + $0x40] ss:$24 sps:$4 sm:$0xff]  }
  0xf5   : > { %1800 = vmatpush1.bf16.msra.mxu0 %v7540_v27  ;;  %1695 = vmatprep.subr.bf16.mxu1 %v7541_v28  ;;  %v7565_v44 = vld [vmem:[%s10591_s5 + $0x4] ss:$24 sps:$4 sm:$0xff]   ;;  %v7568_v45 = vld [vmem:[%s10591_s5 + $0x14] ss:$24 sps:$4 sm:$0xff]   ;;  %v7567_v46 = vld [vmem:[%s10591_s5] ss:$24 sps:$4 sm:$0xff]  }
  0xf6   : > { %1801 = vmatprep.subr.bf16.mxu0 %v7544_v29  ;;  %v7570_v47 = vld [vmem:[%s10591_s5 + $0x10] ss:$24 sps:$4 sm:$0xff]   ;;  %v7571_v48 = vld [vmem:[%s10591_s5 + $0x2d4] ss:$24 sps:$4 sm:$0xff]   ;;  %v7574_v49 = vld [vmem:[%s10591_s5 + $0x2e4] ss:$24 sps:$4 sm:$0xff]  }
  0xf7   : > { %1696 = vmatpush1.bf16.msra.mxu1 %v7543_v30  ;;  %v7573_v50 = vld [vmem:[%s10591_s5 + $0x2d0] ss:$24 sps:$4 sm:$0xff]   ;;  %v7576_v23 = vld [vmem:[%s10591_s5 + $0x2e0] ss:$24 sps:$4 sm:$0xff]   ;;  %v7577_v24 = vld [vmem:[%s10591_s5 + $0x2a4] ss:$24 sps:$4 sm:$0xff]  }
  0xf8   : > { %978 = vadd.xlane.f32.xlu0 %v977_v14  ;;  %984 = vadd.xlane.f32.xlu1 %v983_v15  ;;  %v7579_v25 = vld [vmem:[%s10591_s5 + $0x2a0] ss:$24 sps:$4 sm:$0xff]   ;;  %v7580_v26 = vld [vmem:[%s10591_s5 + $0x2b4] ss:$24 sps:$4 sm:$0xff]   ;;  %v7582_v27 = vld [vmem:[%s10591_s5 + $0x2b0] ss:$24 sps:$4 sm:$0xff]  }
  0xf9   : > { %1802 = vmatpush1.bf16.msra.mxu0 %v7546_v31  ;;  %1697 = vmatprep.subr.bf16.mxu1 %v7547_v32  ;;  %v7583_v28 = vld [vmem:[%s10591_s5 + $0x274] ss:$24 sps:$4 sm:$0xff]   ;;  %v7585_v29 = vld [vmem:[%s10591_s5 + $0x270] ss:$24 sps:$4 sm:$0xff]   ;;  %v7586_v30 = vld [vmem:[%s10591_s5 + $0x284] ss:$24 sps:$4 sm:$0xff]  }
  0xfa   : > { %1803 = vmatprep.subr.bf16.mxu0 %v7550_v33  ;;  %v7588_v31 = vld [vmem:[%s10591_s5 + $0x280] ss:$24 sps:$4 sm:$0xff]   ;;  %v7589_v32 = vld [vmem:[%s10591_s5 + $0x244] ss:$24 sps:$4 sm:$0xff]  }
  0xfb   : > { %1698 = vmatpush1.bf16.msra.mxu1 %v7549_v34  ;;  %v7591_v33 = vld [vmem:[%s10591_s5 + $0x240] ss:$24 sps:$4 sm:$0xff]   ;;  %v7592_v34 = vld [vmem:[%s10591_s5 + $0x254] ss:$24 sps:$4 sm:$0xff]  }
  0xfc   : > { %1699 = vmatprep.subr.bf16.mxu1 %v7553_v36  ;;  %v7595_v36 = vld [vmem:[%s10591_s5 + $0x214] ss:$24 sps:$4 sm:$0xff]  }
  0xfd   : > { %1804 = vmatpush1.bf16.msra.mxu0 %v7552_v35  ;;  %v7594_v35 = vld [vmem:[%s10591_s5 + $0x250] ss:$24 sps:$4 sm:$0xff]  }
  0xfe   : > { %1805 = vmatprep.subr.bf16.mxu0 %v7556_v37  ;;  %v7597_v37 = vld [vmem:[%s10591_s5 + $0x210] ss:$24 sps:$4 sm:$0xff]  }
  0xff   : > { %1700 = vmatpush1.bf16.msra.mxu1 %v7555_v38  ;;  %v7598_v38 = vld [vmem:[%s10591_s5 + $0x224] ss:$24 sps:$4 sm:$0xff]  }
 0x100   : > { %1701 = vmatprep.subr.bf16.mxu1 %v7559_v40  ;;  %v7601_v40 = vld [vmem:[%s10591_s5 + $0x1e4] ss:$24 sps:$4 sm:$0xff]  }
 0x101   : > { %1806 = vmatpush1.bf16.msra.mxu0 %v7558_v39  ;;  %v7600_v39 = vld [vmem:[%s10591_s5 + $0x220] ss:$24 sps:$4 sm:$0xff]  }
 0x102   : > { %1807 = vmatprep.subr.bf16.mxu0 %v7562_v41  ;;  %v7604_v41 = vld [vmem:[%s10591_s5 + $0x1f4] ss:$24 sps:$4 sm:$0xff]  }
 0x103   : > { %1702 = vmatpush1.bf16.msra.mxu1 %v7561_v42  ;;  %v7603_v42 = vld [vmem:[%s10591_s5 + $0x1e0] ss:$24 sps:$4 sm:$0xff]  }
 0x104   : > { %1703 = vmatprep.subr.bf16.mxu1 %v7565_v44  ;;  %v7607_v44 = vld [vmem:[%s10591_s5 + $0x1b4] ss:$24 sps:$4 sm:$0xff]  }
 0x105   : > { %1808 = vmatpush1.bf16.msra.mxu0 %v7564_v43  ;;  %v7606_v43 = vld [vmem:[%s10591_s5 + $0x1f0] ss:$24 sps:$4 sm:$0xff]  }
 0x106   : > { %1809 = vmatprep.subr.bf16.mxu0 %v7568_v45  ;;  %v7610_v45 = vld [vmem:[%s10591_s5 + $0x1c4] ss:$24 sps:$4 sm:$0xff]  }
 0x107   : > { %1704 = vmatpush1.bf16.msra.mxu1 %v7567_v46  ;;  %v7609_v46 = vld [vmem:[%s10591_s5 + $0x1b0] ss:$24 sps:$4 sm:$0xff]  }
 0x108   : > { %1705 = vmatprep.subr.bf16.mxu1 %v7571_v48  ;;  %v7613_v48 = vld [vmem:[%s10591_s5 + $0x184] ss:$24 sps:$4 sm:$0xff]  }
 0x109   : > { %1810 = vmatpush1.bf16.msra.mxu0 %v7570_v47  ;;  %v7612_v47 = vld [vmem:[%s10591_s5 + $0x1c0] ss:$24 sps:$4 sm:$0xff]  }
 0x10a   : > { %1811 = vmatprep.subr.bf16.mxu0 %v7574_v49  ;;  %v7616_v49 = vld [vmem:[%s10591_s5 + $0x194] ss:$24 sps:$4 sm:$0xff]  }
 0x10b   : > { %1706 = vmatpush2.bf16.msra.mxu1 %v7573_v50  ;;  %v7615_v50 = vld [vmem:[%s10591_s5 + $0x180] ss:$24 sps:$4 sm:$0xff]  }
 0x10c   : > { %1707 = vmatprep.subr.bf16.mxu1 %v7577_v24 }
 0x10d   : > { %1812 = vmatpush2.bf16.msra.mxu0 %v7576_v23 }
 0x10e   : > { %1813 = vmatprep.subr.bf16.mxu0 %v7580_v26 }
 0x10f   : > { %1708 = vmatpush2.bf16.msra.mxu1 %v7579_v25  ;;  %v973_v25 = vld [vmem:[#allocation7] sm:$0x3] }
 0x110   : > { %1709 = vmatprep.subr.bf16.mxu1 %v7583_v28 }
 0x111   : > { %1814 = vmatpush2.bf16.msra.mxu0 %v7582_v27 }
 0x112   : > { %1815 = vmatprep.subr.bf16.mxu0 %v7586_v30 }
 0x113   : > { %1710 = vmatpush2.bf16.msra.mxu1 %v7585_v29 }
 0x114   : > { %1711 = vmatprep.subr.bf16.mxu1 %v7589_v32 }
 0x115   : > { %1816 = vmatpush2.bf16.msra.mxu0 %v7588_v31 }
 0x116   : > { %1817 = vmatprep.subr.bf16.mxu0 %v7592_v34 }
 0x117   : > { %1712 = vmatpush2.bf16.msra.mxu1 %v7591_v33 }
 0x118   : > { %1713 = vmatprep.subr.bf16.mxu1 %v7595_v36 }
 0x119   : > { %1818 = vmatpush2.bf16.msra.mxu0 %v7594_v35 }
 0x11a   : > { %1819 = vmatprep.subr.bf16.mxu0 %v7598_v38 }
 0x11b   : > { %1714 = vmatpush2.bf16.msra.mxu1 %v7597_v37 }
 0x11c   : > { %1715 = vmatprep.subr.bf16.mxu1 %v7601_v40 }
 0x11d   : > { %1820 = vmatpush2.bf16.msra.mxu0 %v7600_v39 }
 0x11e   : > { %1821 = vmatprep.subr.bf16.mxu0 %v7604_v41 }
 0x11f   : > { %1716 = vmatpush2.bf16.msra.mxu1 %v7603_v42 }
 0x120   : > { %1717 = vmatprep.subr.bf16.mxu1 %v7607_v44 }
 0x121   : > { %1822 = vmatpush2.bf16.msra.mxu0 %v7606_v43 }
 0x122   : > { %1823 = vmatprep.subr.bf16.mxu0 %v7610_v45 }
 0x123   : > { %1718 = vmatpush2.bf16.msra.mxu1 %v7609_v46 }
 0x124   : > { %1719 = vmatprep.subr.bf16.mxu1 %v7613_v48 }
 0x125   : > { %1824 = vmatpush2.bf16.msra.mxu0 %v7612_v47  ;;  %v7624_v47 = vld [vmem:[%s10591_s5 + $0x12c] ss:$24 sps:$4 sm:$0xff]  }
 0x126   : > { %1825 = vmatprep.subr.bf16.mxu0 %v7616_v49 }
 0x127   : > { %1720 = vmatpush2.bf16.msra.mxu1 %v7615_v50  ;;  %v7622_v50 = vld [vmem:[%s10591_s5 + $0x128] ss:$24 sps:$4 sm:$0xff]  }
 0x17d   : > { %v976_v51 = vpop.xlane.xlu0 %975  ;;  %v982_v52 = vpop.xlane.xlu1 %981 }
 0x17e   : > { %v987_v53 = vmul.f32 0.00390625, %v976_v51  ;;  %v989_v54 = vmul.f32 0.00390625, %v982_v52  ;;  %v7618_v51 = vld [vmem:[%s10591_s5 + $0x190] ss:$24 sps:$4 sm:$0xff]   ;;  %v7621_v52 = vld [vmem:[%s10591_s5 + $0x15c] ss:$24 sps:$4 sm:$0xff]  }
 0x17f   : > { %1826 = vmatpush2.bf16.msra.mxu0 %v7618_v51  ;;  %1742 = vmatprep.subr.bf16.mxu1 %v7621_v52  ;;  %v7627_v51 = vld [vmem:[%s10591_s5 + $0xfc] ss:$24 sps:$4 sm:$0xff]  }
 0x180   : > { %v9012_v55 = vsub.f32 %v8879_v3, %v987_v53  ;;  %v9015_v56 = vsub.f32 %v8881_v4, %v987_v53  ;;  %v9018_v57 = vsub.f32 %v8883_v5, %v989_v54  ;;  %v9021_v58 = vsub.f32 %v8885_v6, %v989_v54 }
 0x181   : > { %v979_v59 = vpop.xlane.xlu0 %978  ;;  %v985_v60 = vpop.xlane.xlu1 %984 }
 0x182   : > { %v988_v61 = vmul.f32 0.00390625, %v979_v59  ;;  %v990_v62 = vmul.f32 0.00390625, %v985_v60  ;;  %v999_v63 = vmul.f32 %v9012_v55, %v9012_v55  ;;  %v1000_v0 = vmul.f32 %v9015_v56, %v9015_v56 }
 0x183   : > { %v1003_v1 = vmul.f32 %v9018_v57, %v9018_v57  ;;  %v1004_v2 = vmul.f32 %v9021_v58, %v9021_v58 }
 0x184   : > { %v9032_v7 = vsub.f32 %v8890_v8, %v988_v61  ;;  %v9035_v12 = vsub.f32 %v8892_v9, %v988_v61  ;;  %v9038_v13 = vsub.f32 %v8894_v10, %v990_v62  ;;  %v9041_v14 = vsub.f32 %v8896_v11, %v990_v62 }
 0x185   : > { %v1007_v15 = vadd.f32 %v1000_v0, %v999_v63  ;;  %v1013_v20 = vadd.f32 %v1004_v2, %v1003_v1  ;;  %v1040_v0 = vlaneseq }
 0x186   : > { %v1001_v16 = vmul.f32 %v9032_v7, %v9032_v7  ;;  %v1002_v17 = vmul.f32 %v9035_v12, %v9035_v12  ;;  %v1005_v18 = vmul.f32 %v9038_v13, %v9038_v13  ;;  %v1006_v19 = vmul.f32 %v9041_v14, %v9041_v14 }
 0x187   : > { %1008 = vadd.xlane.f32.xlu0 %v1007_v15 }
 0x188   : > { %v1010_v21 = vadd.f32 %v1002_v17, %v1001_v16  ;;  %v1016_v22 = vadd.f32 %v1006_v19, %v1005_v18  ;;  %v9141_v17 = vshrl.u32 %v1040_v0, 7  ;;  %v7636_v0 = vld [vmem:[%s10591_s5 + $0x6c] ss:$24 sps:$4 sm:$0xff]  }
 0x18a   : > { %1011 = vadd.xlane.f32.xlu1 %v1010_v21  ;;  %v9144_v19 = vsub.s32 1, %v9141_v17  ;;  %v972_v21 = vld [vmem:[#allocation4] sm:$0x3] }
 0x18b   : > { %1014 = vadd.xlane.f32.xlu0 %v1013_v20  ;;  %v9147_v20 = vsub.s32 0, %v9141_v17 }
 0x18c   : > { %v1066_v30 = vrot.slane %v973_v25, %v9144_v19 }
 0x18d   : > { %v1043_v23 = vrot.slane %v972_v21, %v9147_v20  ;;  %v1062_v32 = vrot.slane %v973_v25, %v9147_v20  ;;  %v7651_v25 = vld [vmem:[%s10591_s5 + $0x27c] ss:$24 sps:$4 sm:$0xff]  }
 0x18e   : > { %1017 = vadd.xlane.f32.xlu1 %v1016_v22  ;;  %v1047_v22 = vrot.slane %v972_v21, %v9144_v19  ;;  %v7645_v21 = vld [vmem:[%s10591_s5 + $0x2dc] ss:$24 sps:$4 sm:$0xff]  }
 0x210   : > { %v1009_v53 = vpop.xlane.xlu0 %1008 }
 0x211   : > { %v1019_v54 = vmul.f32 0.00390625, %v1009_v53 }
 0x213   : > { %v1023_v59 = vadd.f32 1e-12, %v1019_v54  ;;  %v1012_v60 = vpop.xlane.xlu1 %1011  ;;  %v7625_v54 = vld [vmem:[%s10591_s5 + $0xf8] ss:$24 sps:$4 sm:$0xff]  }
 0x214   : > { %v1020_v61 = vmul.f32 0.00390625, %v1012_v60  ;;  %v1015_v62 = vpop.xlane.xlu0 %1014  ;;  %v7630_v60 = vld [vmem:[%s10591_s5 + $0xcc] ss:$24 sps:$4 sm:$0xff]  }
 0x215   : > { %7715 = vrsqrt.f32 %v1023_v59  ;;  %v1021_v63 = vmul.f32 0.00390625, %v1015_v62  ;;  %v7633_v62 = vld [vmem:[%s10591_s5 + $0x9c] ss:$24 sps:$4 sm:$0xff]  }
 0x216   : > { %v1024_v1 = vadd.f32 1e-12, %v1020_v61  ;;  %v7628_v61 = vld [vmem:[%s10591_s5 + $0xc8] ss:$24 sps:$4 sm:$0xff]  }
 0x217   : > { %v1025_v2 = vadd.f32 1e-12, %v1021_v63  ;;  %v1018_v15 = vpop.xlane.xlu1 %1017  ;;  %v7631_v63 = vld [vmem:[%s10591_s5 + $0x98] ss:$24 sps:$4 sm:$0xff]  }
 0x218   : > { %7717 = vrsqrt.f32 %v1024_v1  ;;  %v1022_v16 = vmul.f32 0.00390625, %v1018_v15  ;;  %v7634_v1 = vld [vmem:[%s10591_s5 + $0x68] ss:$24 sps:$4 sm:$0xff]   ;;  %v7637_v15 = vld [vmem:[%s10591_s5 + $0x38] ss:$24 sps:$4 sm:$0xff]  }
 0x219   : > { %7719 = vrsqrt.f32 %v1025_v2  ;;  %v7639_v2 = vld [vmem:[%s10591_s5 + $0x3c] ss:$24 sps:$4 sm:$0xff]  }
 0x21a   : > { %v1026_v18 = vadd.f32 1e-12, %v1022_v16  ;;  %v7642_v16 = vld [vmem:[%s10591_s5 + $0xc] ss:$24 sps:$4 sm:$0xff]  }
 0x21c   : > { %7721 = vrsqrt.f32 %v1026_v18  ;;  %v7640_v18 = vld [vmem:[%s10591_s5 + $0x8] ss:$24 sps:$4 sm:$0xff]  }
 0x222   : > { %v7716_v24 = vpop.eup %7715 }
 0x223   : > { %v1032_v26 = vmul.f32 %v7716_v24, %v9015_v56  ;;  %v1031_v27 = vmul.f32 %v7716_v24, %v9012_v55  ;;  %v7646_v24 = vld [vmem:[%s10591_s5 + $0x2a8] ss:$24 sps:$4 sm:$0xff]  }
 0x225   : > { %v7718_v28 = vpop.eup %7717  ;;  %v1051_v29 = vmul.f32 %v1047_v22, %v1032_v26  ;;  %v1050_v31 = vmul.f32 %v1043_v23, %v1031_v27  ;;  %v7649_v26 = vld [vmem:[%s10591_s5 + $0x278] ss:$24 sps:$4 sm:$0xff]   ;;  %v7654_v27 = vld [vmem:[%s10591_s5 + $0x24c] ss:$24 sps:$4 sm:$0xff]  }
 0x226   : > { %v7720_v33 = vpop.eup %7719  ;;  %v1034_v34 = vmul.f32 %v7718_v28, %v9035_v12  ;;  %v1033_v35 = vmul.f32 %v7718_v28, %v9032_v7  ;;  %v7619_v7 = vld [vmem:[%s10591_s5 + $0x158] ss:$24 sps:$4 sm:$0xff]   ;;  %v7652_v28 = vld [vmem:[%s10591_s5 + $0x248] ss:$24 sps:$4 sm:$0xff]  }
 0x227   : > { %v1036_v36 = vmul.f32 %v7720_v33, %v9021_v58  ;;  %v1070_v56 = vadd.f32 %v1066_v30, %v1051_v29  ;;  %v1069_v40 = vadd.f32 %v1062_v32, %v1050_v31  ;;  %v1035_v45 = vmul.f32 %v7720_v33, %v9018_v57  ;;  %v7657_v29 = vld [vmem:[%s10591_s5 + $0x21c] ss:$24 sps:$4 sm:$0xff]   ;;  %v7660_v31 = vld [vmem:[%s10591_s5 + $0x1ec] ss:$24 sps:$4 sm:$0xff]  }
 0x228   : > { %v1053_v37 = vmul.f32 %v1047_v22, %v1034_v34  ;;  %v1052_v38 = vmul.f32 %v1043_v23, %v1033_v35  ;;  %v7663_v33 = vld [vmem:[%s10591_s5 + $0x1bc] ss:$24 sps:$4 sm:$0xff]   ;;  %v7661_v34 = vld [vmem:[%s10591_s5 + $0x1b8] ss:$24 sps:$4 sm:$0xff]   ;;  %v7666_v35 = vld [vmem:[%s10591_s5 + $0x18c] ss:$24 sps:$4 sm:$0xff]  }
 0x229   : > { %v7722_v39 = vpop.eup %7721  ;;  %v1055_v55 = vmul.f32 %v1047_v22, %v1036_v36  ;;  %v1054_v57 = vmul.f32 %v1043_v23, %v1035_v45  ;;  %v7664_v36 = vld [vmem:[%s10591_s5 + $0x188] ss:$24 sps:$4 sm:$0xff]  }
 0x22a   : > { %v1072_v41 = vadd.f32 %v1066_v30, %v1053_v37  ;;  %v1071_v42 = vadd.f32 %v1062_v32, %v1052_v38  ;;  %v1038_v43 = vmul.f32 %v7722_v39, %v9041_v14  ;;  %v1037_v44 = vmul.f32 %v7722_v39, %v9038_v13  ;;  %v9274_v39 = vld [vmem:[%s10667_s29] sm:$0x3f] }
 0x22b   : > { %v1074_v14 = vadd.f32 %v1066_v30, %v1055_v55  ;;  %v1073_v53 = vadd.f32 %v1062_v32, %v1054_v57  ;;  %v10615_v37 = vmov 0.0   ;;  %v1201_v38 = vsub.s32 5, %v9141_v17 }
 0x22c   : > { %v1078_v46 = vpack.c.bf16 %v1072_v41, %v1070_v56  ;;  %v9164_v58 = vpack.c.bf16 %v1071_v42, %v1069_v40  ;;  %v1057_v12 = vmul.f32 %v1047_v22, %v1038_v43  ;;  %v1056_v48 = vmul.f32 %v1043_v23, %v1037_v44  ;;  %v7643_v22 = vld [vmem:[%s10591_s5 + $0x2d8] ss:$24 sps:$4 sm:$0xff]   ;;  %v7648_v23 = vld [vmem:[%s10591_s5 + $0x2ac] ss:$24 sps:$4 sm:$0xff]   ;;  %7275 = vmatprep.subr.bf16.mxu0 %v10615_v37 }
 0x22d   : > { %v1197_v40 = vsub.s32 4, %v9141_v17  ;;  %v9279_v41 = vrot.slane %v9274_v39, %v9144_v19  ;;  %v8435_v42 = vmov 1983009808   ;;  %v9283_v44 = vrot.slane %v9274_v39, %v9147_v20 }
 0x22e   : > { %1721 = vmatprep.mubr.bf16.mxu1 %v1078_v46  ;;  %1827 = vmatprep.mubr.bf16.mxu0 %v1078_v46  ;;  %v1076_v49 = vadd.f32 %v1066_v30, %v1057_v12  ;;  %v1075_v52 = vadd.f32 %v1062_v32, %v1056_v48  ;;  %v7655_v30 = vld [vmem:[%s10591_s5 + $0x218] ss:$24 sps:$4 sm:$0xff]   ;;  %v7658_v32 = vld [vmem:[%s10591_s5 + $0x1e8] ss:$24 sps:$4 sm:$0xff]   ;;  %v1850_v43 = vunpack.c.l.s4 %v8435_v42  ;;  %v8436_v48 = vmov 1934713408  }
 0x22f   : > { %1722 = vmatmul.mubr.bf16.vlgmr.msra.gmra.mxu1 %v9164_v58  ;;  %1828 = vmatmul.mubr.bf16.vlgmr.msra.gmra.mxu0 %v9164_v58 }
 0x230   : > { %1743 = vmatpush1.bf16.msra.mxu1 %v7619_v7  ;;  %v9171_v13 = vpack.c.bf16 %v1076_v49, %v1074_v14  ;;  %v1079_v59 = vpack.c.bf16 %v1075_v52, %v1073_v53  ;;  %v1881_v14 = vunpack.c.l.s4 %v8436_v48 }
 0x231   : > { %1744 = vmatprep.subr.bf16.mxu1 %v7624_v47  ;;  %v1851_v47 = vunpack.c.0.s8 %v1850_v43 }
 0x232   : > { %1731 = vmatprep.mubr.bf16.mxu1 %v9171_v13  ;;  %1837 = vmatprep.mubr.bf16.mxu0 %v9171_v13  ;;  %v1882_v53 = vunpack.c.0.s8 %v1881_v14 }
 0x234   : > { %1745 = vmatpush1.bf16.msra.mxu1 %v7622_v50 }
 0x235   : > { %1746 = vmatprep.subr.bf16.mxu1 %v7627_v51  ;;  %v9297_v51 = vsub.s32 %v1851_v47, %v9141_v17 }
 0x237   : > { %1732 = vmatmul.mubr.bf16.gmra.mxu1 %v1079_v59  ;;  %1838 = vmatmul.mubr.bf16.gmra.mxu0 %v1079_v59 }
 0x238   : > { %1747 = vmatpush1.bf16.msra.mxu1 %v7625_v54  ;;  %1774 = vmatprep.mubr.bf16.mxu1 %v1078_v46  ;;  %v9286_v46 = vrot.slane %v9274_v39, %v1201_v38 }
 0x239   : > { %1748 = vmatprep.subr.bf16.mxu1 %v7630_v60  ;;  %7277 = vmatprep.mubr.msk.bf16.mxu0 %vm8434_vm0, %v10615_v37 }
 0x23c   : > { %1749 = vmatpush1.bf16.msra.mxu1 %v7628_v61 }
 0x23d   : > { %1750 = vmatprep.subr.bf16.mxu1 %v7633_v62 }
 0x240   : > { %1751 = vmatpush1.bf16.msra.mxu1 %v7631_v63 }
 0x241   : > { %1752 = vmatprep.subr.bf16.mxu1 %v7636_v0 }
 0x244   : > { %1753 = vmatpush1.bf16.msra.mxu1 %v7634_v1 }
 0x245   : > { %1754 = vmatprep.subr.bf16.mxu1 %v7639_v2 }
 0x248   : > { %1755 = vmatpush1.bf16.msra.mxu1 %v7637_v15 }
 0x249   : > { %1756 = vmatprep.subr.bf16.mxu1 %v7642_v16  ;;  %v9308_v16 = vsub.s32 %v1882_v53, %v9141_v17 }
 0x24c   : > { %1757 = vmatpush1.bf16.msra.mxu1 %v7640_v18 }
 0x24d   : > { %1758 = vmatprep.subr.bf16.mxu1 %v7645_v21 }
 0x250   : > { %1759 = vmatpush2.bf16.msra.mxu1 %v7643_v22 }
 0x251   : > { %1760 = vmatprep.subr.bf16.mxu1 %v7648_v23 }
 0x254   : > { %1761 = vmatpush2.bf16.msra.mxu1 %v7646_v24 }
 0x255   : > { %1762 = vmatprep.subr.bf16.mxu1 %v7651_v25 }
 0x258   : > { %1763 = vmatpush2.bf16.msra.mxu1 %v7649_v26 }
 0x259   : > { %1764 = vmatprep.subr.bf16.mxu1 %v7654_v27 }
 0x25c   : > { %1765 = vmatpush2.bf16.msra.mxu1 %v7652_v28 }
 0x25d   : > { %1766 = vmatprep.subr.bf16.mxu1 %v7657_v29 }
 0x260   : > { %1767 = vmatpush2.bf16.msra.mxu1 %v7655_v30 }
 0x261   : > { %1768 = vmatprep.subr.bf16.mxu1 %v7660_v31  ;;  %v1189_v31 = vsub.s32 2, %v9141_v17 }
 0x264   : > { %1769 = vmatpush2.bf16.msra.mxu1 %v7658_v32  ;;  %v1193_v32 = vsub.s32 3, %v9141_v17 }
 0x265   : > { %1770 = vmatprep.subr.bf16.mxu1 %v7663_v33 }
 0x268   : > { %1771 = vmatpush2.bf16.msra.mxu1 %v7661_v34 }
 0x269   : > { %1772 = vmatprep.subr.bf16.mxu1 %v7666_v35 }
 0x26c   : > { %1773 = vmatpush2.bf16.msra.mxu1 %v7664_v36 }
 0x26d   : > { %7293 = vmatprep.subr.bf16.mxu1 %v10615_v37 }
 0x26f   : > { %1775 = vmatmul.mubr.bf16.vlgmr.msra.gmra.mxu1 %v9164_v58  ;;  %v9289_v58 = vrot.slane %v9274_v39, %v1197_v40 }
 0x270   : > { %1784 = vmatprep.mubr.bf16.mxu1 %v9171_v13 }
 0x277   : > { %1785 = vmatmul.mubr.bf16.gmra.mxu1 %v1079_v59 }
 0x278   : > { %7295 = vmatprep.mubr.msk.bf16.mxu1 %vm8434_vm0, %v10615_v37 }
 0x2ef   : > { %v1723_v56 = vpop.f32.mrf.mxu1  ;;  %v1829_v55 = vpop.f32.mrf.mxu0 }
 0x2f0   : > { %v1724_v49 = vadd.f32 %v1723_v56, %v9283_v44  ;;  %v1830_v13 = vadd.f32 %v1829_v55, %v9289_v58 }
 0x2f1   : > { %v1725_v45 = vpop.f32.mrf.mxu1  ;;  %v1831_v7 = vpop.f32.mrf.mxu0 }
 0x2f2   : > { %v1726_v12 = vadd.f32 %v1725_v45, %v9279_v41  ;;  %v1832_v57 = vadd.f32 %v1831_v7, %v9286_v46  ;;  %v1848_v54 = vcombine.high %v1724_v49, %v10615_v37  ;;  %v2784_v62 = vcombine.high %v1830_v13, %v10615_v37 }
 0x2f3   : > { %v1833_v52 = vpop.f32.mrf.mxu0  ;;  %v1855_v0 = vrot.slane %v1724_v49, %v9297_v51  ;;  %v2791_v1 = vrot.slane %v1830_v13, %v9297_v51  ;;  %v1727_v2 = vpop.f32.mrf.mxu1 }
 0x2f4   : > { %v1863_v50 = vcombine.high %v1726_v12, %v10615_v37  ;;  %v2799_v59 = vcombine.high %v1832_v57, %v10615_v37  ;;  %v1870_v60 = vrot.slane %v1726_v12, %v9297_v51  ;;  %v2806_v61 = vrot.slane %v1832_v57, %v9297_v51 }
 0x2f5   : > { %v1835_v15 = vpop.f32.mrf.mxu0  ;;  %v1862_v18 = vrot.slane %v1848_v54, %v9297_v51  ;;  %v2798_v26 = vrot.slane %v2784_v62, %v9297_v51  ;;  %v1729_v29 = vpop.f32.mrf.mxu1  ;;  %v1728_v35 = vadd.f32 %v1727_v2, %v9283_v44  ;;  %v1834_v36 = vadd.f32 %v1833_v52, %v9289_v58 }
 0x2f6   : > { %v1877_v63 = vrot.slane %v1863_v50, %v9297_v51  ;;  %v2813_v21 = vrot.slane %v2799_v59, %v9297_v51  ;;  %v1878_v22 = vcombine.low %v1855_v0, %v1870_v60  ;;  %v1879_v23 = vcombine.high %v1855_v0, %v1870_v60 }
 0x2f7   : > { %v2814_v24 = vcombine.low %v2791_v1, %v2806_v61  ;;  %v2815_v25 = vcombine.high %v2791_v1, %v2806_v61  ;;  %v1839_v30 = vpop.f32.mrf.mxu0  ;;  %v1730_v17 = vadd.f32 %v1729_v29, %v9279_v41  ;;  %v1836_v7 = vadd.f32 %v1835_v15, %v9286_v46  ;;  %v1733_v61 = vpop.f32.mrf.mxu1 }
 0x2f8   : > { %v1894_v27 = vcombine.low %v1862_v18, %v1877_v63  ;;  %v1895_v28 = vcombine.high %v1862_v18, %v1877_v63  ;;  %v2830_v33 = vcombine.low %v2798_v26, %v2813_v21  ;;  %v2831_v34 = vcombine.high %v2798_v26, %v2813_v21 }
 0x2f9   : > { %v1886_v38 = vrot.slane %v1878_v22, %v9308_v16  ;;  %v1893_v56 = vrot.slane %v1879_v23, %v9308_v16  ;;  %v2822_v40 = vrot.slane %v2814_v24, %v9308_v16  ;;  %v2829_v55 = vrot.slane %v2815_v25, %v9308_v16  ;;  %v1841_v62 = vpop.f32.mrf.mxu0 }
 0x2fa   : > { %v1902_v42 = vrot.slane %v1894_v27, %v9308_v16  ;;  %v1909_v43 = vrot.slane %v1895_v28, %v9308_v16  ;;  %v1840_v45 = vadd.f32 %v1839_v30, %v9289_v58  ;;  %v9327_v12 = vrot.slane %v9274_v39, %v1189_v31 }
 0x2fb   : > { %v2838_v47 = vrot.slane %v2830_v33, %v9308_v16  ;;  %v2845_v48 = vrot.slane %v2831_v34, %v9308_v16  ;;  %v1914_v14 = vcombine.high %v1728_v35, %v10615_v37  ;;  %v2850_v49 = vcombine.high %v1834_v36, %v10615_v37  ;;  %v1843_v30 = vpop.f32.mrf.mxu0 }
 0x2fc   : > { %v2112_v57 = vcombine.low %v1886_v38, %v1893_v56  ;;  %v6984_v13 = vcombine.high %v1886_v38, %v1893_v56  ;;  %v1921_v50 = vrot.slane %v1728_v35, %v9297_v51  ;;  %v9335_v52 = vrot.slane %v9274_v39, %v1193_v32 }
 0x2fd   : > { %v2128_v53 = vcombine.low %v1902_v42, %v1909_v43  ;;  %v3048_v54 = vcombine.low %v2822_v40, %v2829_v55  ;;  %v7000_v59 = vcombine.high %v2822_v40, %v2829_v55  ;;  %v1936_v60 = vrot.slane %v1730_v17, %v9297_v51 }
 0x2fe   : > { %v6985_v63 = vcombine.high %v1902_v42, %v1909_v43  ;;  %v2857_v0 = vrot.slane %v1834_v36, %v9297_v51  ;;  %v1929_v1 = vcombine.high %v1730_v17, %v10615_v37  ;;  %v2872_v2 = vrot.slane %v1836_v7, %v9297_v51 }
 0x2ff   : > { %v3064_v15 = vcombine.low %v2838_v47, %v2845_v48  ;;  %v7001_v18 = vcombine.high %v2838_v47, %v2845_v48  ;;  %v1928_v21 = vrot.slane %v1914_v14, %v9297_v51  ;;  %v9343_v39 = vrot.slane %v2850_v49, %v9297_v51  ;;  %v1735_v47 = vpop.f32.mrf.mxu1 }
 0x300   : > { %v9346_v22 = vrot.slane %v2112_v57, %v9297_v51  ;;  %v9349_v23 = vrot.slane %v6984_v13, %v9297_v51  ;;  %v2865_v24 = vcombine.high %v1836_v7, %v10615_v37  ;;  %v1734_v25 = vadd.f32 %v1733_v61, %v9283_v44 }
 0x301   : > { %v9354_v26 = vrot.slane %v2128_v53, %v9297_v51  ;;  %v9357_v27 = vrot.slane %v3048_v54, %v9297_v51  ;;  %v9360_v28 = vrot.slane %v7000_v59, %v9297_v51  ;;  %v1944_v29 = vcombine.low %v1921_v50, %v1936_v60 }
 0x302   : > { %v9363_v31 = vrot.slane %v6985_v63, %v9297_v51  ;;  %v1943_v32 = vrot.slane %v1929_v1, %v9297_v51  ;;  %v1945_v33 = vcombine.high %v1921_v50, %v1936_v60  ;;  %v2880_v34 = vcombine.low %v2857_v0, %v2872_v2 }
 0x303   : > { %v9367_v35 = vrot.slane %v3064_v15, %v9297_v51  ;;  %v9370_v36 = vrot.slane %v7001_v18, %v9297_v51  ;;  %v2916_v38 = vcombine.high %v1840_v45, %v10615_v37  ;;  %v1842_v56 = vadd.f32 %v1841_v62, %v9286_v46 }
 0x304   : > { %v2879_v40 = vrot.slane %v2865_v24, %v9297_v51  ;;  %v2881_v55 = vcombine.high %v2857_v0, %v2872_v2  ;;  %v1980_v42 = vcombine.high %v1734_v25, %v10615_v37  ;;  %v1844_v43 = vadd.f32 %v1843_v30, %v9289_v58 }
 0x305   : > { %v1952_v17 = vrot.slane %v1944_v29, %v9308_v16  ;;  %v2923_v7 = vrot.slane %v1840_v45, %v9297_v51  ;;  %v2931_v48 = vcombine.high %v1842_v56, %v10615_v37  ;;  %v2938_v14 = vrot.slane %v1842_v56, %v9297_v51  ;;  %v1845_v29 = vpop.f32.mrf.mxu0 }
 0x306   : > { %v1959_v49 = vrot.slane %v1945_v33, %v9308_v16  ;;  %v1960_v57 = vcombine.low %v1928_v21, %v1943_v32  ;;  %v1961_v13 = vcombine.high %v1928_v21, %v1943_v32  ;;  %v2888_v50 = vrot.slane %v2880_v34, %v9308_v16  ;;  %v1737_v34 = vpop.f32.mrf.mxu1 }
 0x307   : > { %v2930_v53 = vrot.slane %v2916_v38, %v9297_v51  ;;  %v2945_v54 = vrot.slane %v2931_v48, %v9297_v51  ;;  %v2946_v58 = vcombine.low %v2923_v7, %v2938_v14  ;;  %v2947_v59 = vcombine.high %v2923_v7, %v2938_v14 }
 0x308   : > { %v2895_v60 = vrot.slane %v2881_v55, %v9308_v16  ;;  %v2896_v45 = vcombine.low %v9343_v39, %v2879_v40  ;;  %v2897_v61 = vcombine.high %v9343_v39, %v2879_v40  ;;  %v1736_v62 = vadd.f32 %v1735_v47, %v9279_v41 }
 0x309   : > { %v9390_v63 = vrot.slane %v2946_v58, %v9308_v16  ;;  %v9393_v0 = vrot.slane %v2947_v59, %v9308_v16  ;;  %v2962_v1 = vcombine.low %v2930_v53, %v2945_v54  ;;  %v2963_v2 = vcombine.high %v2930_v53, %v2945_v54  ;;  %v1739_v58 = vpop.f32.mrf.mxu1 }
 0x30a   : > { %v1968_v15 = vrot.slane %v1960_v57, %v9308_v16  ;;  %v1975_v18 = vrot.slane %v1961_v13, %v9308_v16  ;;  %v2162_v21 = vcombine.low %v1952_v17, %v1959_v49  ;;  %v6986_v24 = vcombine.high %v1952_v17, %v1959_v49 }
 0x30b   : > { %v9398_v30 = vrot.slane %v2962_v1, %v9308_v16  ;;  %v9401_v39 = vrot.slane %v2963_v2, %v9308_v16  ;;  %v3148_v32 = vcombine.low %v9390_v63, %v9393_v0  ;;  %v7004_v33 = vcombine.high %v9390_v63, %v9393_v0 }
 0x30c   : > { %v3098_v56 = vcombine.low %v2888_v50, %v2895_v60  ;;  %v1987_v40 = vrot.slane %v1734_v25, %v9297_v51  ;;  %v2002_v55 = vrot.slane %v1736_v62, %v9297_v51  ;;  %v7002_v17 = vcombine.high %v2888_v50, %v2895_v60 }
 0x30d   : > { %v3164_v7 = vcombine.low %v9398_v30, %v9401_v39  ;;  %v7005_v47 = vcombine.high %v9398_v30, %v9401_v39  ;;  %v1846_v48 = vadd.f32 %v1845_v29, %v9286_v46  ;;  %v2904_v14 = vrot.slane %v2896_v45, %v9308_v16 }
 0x30e   : > { %v2911_v49 = vrot.slane %v2897_v61, %v9308_v16  ;;  %v1994_v57 = vrot.slane %v1980_v42, %v9297_v51  ;;  %v1995_v13 = vcombine.high %v1736_v62, %v10615_v37  ;;  %v9421_v25 = vrot.slane %v2162_v21, %v9297_v51 }
 0x30f   : > { %v9424_v50 = vrot.slane %v6986_v24, %v9297_v51  ;;  %v2178_v53 = vcombine.low %v1968_v15, %v1975_v18  ;;  %v2982_v54 = vcombine.high %v1844_v43, %v10615_v37  ;;  %v6987_v59 = vcombine.high %v1968_v15, %v1975_v18 }
 0x310   : > { %v9428_v46 = vrot.slane %v3098_v56, %v9297_v51  ;;  %v2010_v60 = vcombine.low %v1987_v40, %v2002_v55  ;;  %v1738_v45 = vadd.f32 %v1737_v34, %v9283_v44  ;;  %v9432_v42 = vrot.slane %v7002_v17, %v9297_v51 }
 0x311   : > { %v2989_v61 = vrot.slane %v1844_v43, %v9297_v51  ;;  %v2997_v62 = vcombine.high %v1846_v48, %v10615_v37  ;;  %v3004_v1 = vrot.slane %v1846_v48, %v9297_v51  ;;  %v3114_v2 = vcombine.low %v2904_v14, %v2911_v49 }
 0x312   : > { %v2009_v21 = vrot.slane %v1995_v13, %v9297_v51  ;;  %v2011_v24 = vcombine.high %v1987_v40, %v2002_v55  ;;  %v1740_v15 = vadd.f32 %v1739_v58, %v9279_v41  ;;  %v2996_v18 = vrot.slane %v2982_v54, %v9297_v51 }
 0x313   : > { %v3011_v29 = vrot.slane %v2997_v62, %v9297_v51  ;;  %v3012_v44 = vcombine.low %v2989_v61, %v3004_v1  ;;  %v3013_v30 = vcombine.high %v2989_v61, %v3004_v1  ;;  %v9442_v39 = vrot.slane %v2178_v53, %v9297_v51 }
 0x314   : > { %v7003_v43 = vcombine.high %v2904_v14, %v2911_v49  ;;  %v2018_v34 = vrot.slane %v2010_v60, %v9308_v16  ;;  %v2046_v56 = vcombine.high %v1738_v45, %v10615_v37  ;;  %v2025_v48 = vrot.slane %v2011_v24, %v9308_v16 }
 0x315   : > { %v3020_v17 = vrot.slane %v3012_v44, %v9308_v16  ;;  %v3027_v40 = vrot.slane %v3013_v30, %v9308_v16  ;;  %v3028_v55 = vcombine.low %v2996_v18, %v3011_v29  ;;  %v3029_v41 = vcombine.high %v2996_v18, %v3011_v29 }
 0x316   : > { %v2026_v13 = vcombine.low %v1994_v57, %v2009_v21  ;;  %v2027_v54 = vcombine.high %v1994_v57, %v2009_v21  ;;  %v2061_v58 = vcombine.high %v1740_v15, %v10615_v37  ;;  %v9453_v61 = vrot.slane %v6987_v59, %v9297_v51 }
 0x317   : > { %v3036_v53 = vrot.slane %v3028_v55, %v9308_v16  ;;  %v3043_v14 = vrot.slane %v3029_v41, %v9308_v16  ;;  %v3198_v49 = vcombine.low %v3020_v17, %v3027_v40  ;;  %v7006_v60 = vcombine.high %v3020_v17, %v3027_v40 }
 0x318   : > { %v3121_v1 = vrot.slane %v3114_v2, %v9297_v51  ;;  %v2068_v24 = vrot.slane %v1740_v15, %v9297_v51  ;;  %v3129_v57 = vrot.slane %v7003_v43, %v9297_v51  ;;  %v2053_v21 = vrot.slane %v1738_v45, %v9297_v51 }
 0x319   : > { %v3214_v18 = vcombine.low %v3036_v53, %v3043_v14  ;;  %v7007_v29 = vcombine.high %v3036_v53, %v3043_v14  ;;  %v9462_v44 = vrot.slane %v2026_v13, %v9308_v16  ;;  %v9465_v30 = vrot.slane %v2027_v54, %v9308_v16 }
 0x31a   : > { %v2212_v59 = vcombine.low %v2018_v34, %v2025_v48  ;;  %v2075_v17 = vrot.slane %v2061_v58, %v9297_v51  ;;  %v6988_v40 = vcombine.high %v2018_v34, %v2025_v48  ;;  %v3155_v2 = vrot.slane %v3148_v32, %v9297_v51 }
 0x31b   : > { %v3163_v45 = vrot.slane %v7004_v33, %v9297_v51  ;;  %v2060_v15 = vrot.slane %v2046_v56, %v9297_v51  ;;  %v3171_v43 = vrot.slane %v3164_v7, %v9297_v51  ;;  %v3179_v55 = vrot.slane %v7005_v47, %v9297_v51 }
 0x31c   : > { %v2076_v41 = vcombine.low %v2053_v21, %v2068_v24  ;;  %v3205_v34 = vrot.slane %v3198_v49, %v9297_v51  ;;  %v3213_v48 = vrot.slane %v7006_v60, %v9297_v51  ;;  %v3080_v32 = vcombine.low %v9357_v27, %v9360_v28 }
 0x31d   : > { %v3088_v13 = vcombine.low %v9367_v35, %v9370_v36  ;;  %v3130_v63 = vcombine.low %v9428_v46, %v9432_v42  ;;  %v2077_v0 = vcombine.high %v2053_v21, %v2068_v24  ;;  %v2092_v33 = vcombine.low %v2060_v15, %v2075_v17 }
 0x31e   : > { %v3221_v7 = vrot.slane %v3214_v18, %v9297_v51  ;;  %v3138_v56 = vcombine.low %v3121_v1, %v3129_v57  ;;  %v3229_v47 = vrot.slane %v7007_v29, %v9297_v51  ;;  %v9490_v54 = vrot.slane %v3080_v32, %v9308_v16 }
 0x31f   : > { %v9493_v58 = vrot.slane %v3088_v13, %v9308_v16  ;;  %v3180_v27 = vcombine.low %v3155_v2, %v3163_v45  ;;  %v2093_v28 = vcombine.high %v2060_v15, %v2075_v17  ;;  %v9496_v35 = vrot.slane %v3130_v63, %v9308_v16 }
 0x320   : > { %v9499_v36 = vrot.slane %v3138_v56, %v9308_v16  ;;  %v3188_v46 = vcombine.low %v3171_v43, %v3179_v55  ;;  %v9504_v53 = vrot.slane %v2212_v59, %v9297_v51  ;;  %v3230_v49 = vcombine.low %v3205_v34, %v3213_v48 }
 0x321   : > { %v3097_v14 = vcombine.high %v9490_v54, %v9493_v58  ;;  %v2228_v60 = vcombine.low %v9462_v44, %v9465_v30  ;;  %v9511_v1 = vrot.slane %v2076_v41, %v9308_v16  ;;  %v9514_v24 = vrot.slane %v2077_v0, %v9308_v16 }
 0x322   : > { %v3147_v57 = vcombine.high %v9496_v35, %v9499_v36  ;;  %v9519_v21 = vrot.slane %v6988_v40, %v9297_v51  ;;  %v3187_v18 = vrot.slane %v3180_v27, %v9308_v16  ;;  %v3195_v29 = vrot.slane %v3188_v46, %v9308_v16 }
 0x323   : > { %v3238_v59 = vcombine.low %v3221_v7, %v3229_v47  ;;  %v9526_v2 = vrot.slane %v2092_v33, %v9308_v16  ;;  %v9529_v45 = vrot.slane %v2093_v28, %v9308_v16  ;;  %v3237_v40 = vrot.slane %v3230_v49, %v9308_v16 }
 0x324   : > { %v3249_v15 = vpack.c.bf16 %v3147_v57, %v3097_v14  ;;  %v3196_v55 = vcombine.low %v3187_v18, %v3195_v29  ;;  %v3197_v34 = vcombine.high %v3187_v18, %v3195_v29  ;;  %v9534_v48 = vrot.slane %v2228_v60, %v9297_v51 }
 0x325   : > { %v3245_v41 = vrot.slane %v3238_v59, %v9308_v16  ;;  %v2278_v27 = vcombine.low %v9526_v2, %v9529_v45  ;;  %v6991_v28 = vcombine.high %v9526_v2, %v9529_v45 }
 0x326   : > { %v9540_v63 = vsel %vm3536_vm1, %v3249_v15, 0  ;;  %v4088_v47 = vrot.slane %v3249_v15, 4 }
 0x327   : > { %v3246_v7 = vcombine.low %v3237_v40, %v3245_v41  ;;  %v3247_v56 = vcombine.high %v3237_v40, %v3245_v41 }
 0x328   : > { %v9552_v29 = vsel %vm3536_vm1, %v4088_v47, 0 }
 0x329   : > { %v3250_v57 = vpack.c.bf16 %v3246_v7, %v3196_v55  ;;  %v3251_v18 = vpack.c.bf16 %v3247_v56, %v3197_v34 }
 0x32b   : > { %v9559_v40 = vsel %vm3536_vm1, %v3250_v57, 0  ;;  %v9562_v41 = vsel %vm3536_vm1, %v3251_v18, 0  ;;  %v4137_v55 = vrot.slane %v3250_v57, 4  ;;  %v4186_v34 = vrot.slane %v3251_v18, 4 }
 0x32d   : > { %v9572_v38 = vsel %vm3536_vm1, %v4186_v34, 0 }
 0x32f   : > { %v1776_v43 = vpop.f32.mrf.mxu1 }
 0x330   : > { %v1777_v13 = vadd.f32 %v1776_v43, %v9327_v12 }
 0x331   : > { %v1778_v33 = vpop.f32.mrf.mxu1 }
 0x332   : > { %v2316_v46 = vcombine.high %v1777_v13, %v10615_v37  ;;  %v1779_v14 = vadd.f32 %v1778_v33, %v9335_v52  ;;  %v2323_v49 = vrot.slane %v1777_v13, %v9297_v51 }
 0x333   : > { %v1780_v60 = vpop.f32.mrf.mxu1 }
 0x334   : > { %v2330_v59 = vrot.slane %v2316_v46, %v9297_v51  ;;  %v2331_v15 = vcombine.high %v1779_v14, %v10615_v37  ;;  %v2338_v43 = vrot.slane %v1779_v14, %v9297_v51  ;;  %v1781_v2 = vadd.f32 %v1780_v60, %v9327_v12 }
 0x335   : > { %v1782_v45 = vpop.f32.mrf.mxu1  ;;  %v9569_v60 = vsel %vm3536_vm1, %v4137_v55, 0 }
 0x336   : > { %v2345_v13 = vrot.slane %v2331_v15, %v9297_v51  ;;  %v2346_v33 = vcombine.low %v2323_v49, %v2338_v43  ;;  %v2347_v7 = vcombine.high %v2323_v49, %v2338_v43  ;;  %v2382_v56 = vcombine.high %v1781_v2, %v10615_v37 }
 0x337   : > { %v2389_v47 = vrot.slane %v1781_v2, %v9297_v51  ;;  %v1783_v46 = vadd.f32 %v1782_v45, %v9335_v52  ;;  %v1786_v14 = vpop.f32.mrf.mxu1 }
 0x338   : > { %v2354_v57 = vrot.slane %v2346_v33, %v9308_v16  ;;  %v2361_v18 = vrot.slane %v2347_v7, %v9308_v16  ;;  %v2362_v15 = vcombine.low %v2330_v59, %v2345_v13  ;;  %v2363_v62 = vcombine.high %v2330_v59, %v2345_v13 }
 0x339   : > { %v2396_v49 = vrot.slane %v2382_v56, %v9297_v51  ;;  %v2397_v43 = vcombine.high %v1783_v46, %v10615_v37  ;;  %v2404_v2 = vrot.slane %v1783_v46, %v9297_v51  ;;  %v1787_v45 = vadd.f32 %v1786_v14, %v9327_v12  ;;  %v1788_v42 = vpop.f32.mrf.mxu1 }
 0x33a   : > { %v2370_v55 = vrot.slane %v2362_v15, %v9308_v16  ;;  %v2377_v34 = vrot.slane %v2363_v62, %v9308_v16  ;;  %v2580_v0 = vcombine.low %v2354_v57, %v2361_v18  ;;  %v6992_v32 = vcombine.high %v2354_v57, %v2361_v18 }
 0x33b   : > { %v2411_v33 = vrot.slane %v2397_v43, %v9297_v51  ;;  %v2412_v7 = vcombine.low %v2389_v47, %v2404_v2  ;;  %v2413_v17 = vcombine.high %v2389_v47, %v2404_v2  ;;  %v2448_v59 = vcombine.high %v1787_v45, %v10615_v37  ;;  %v1790_v13 = vpop.f32.mrf.mxu1 }
 0x33c   : > { %v9585_v56 = vrot.slane %v2580_v0, %v9297_v51  ;;  %v9588_v46 = vrot.slane %v6992_v32, %v9297_v51  ;;  %v2596_v14 = vcombine.low %v2370_v55, %v2377_v34  ;;  %v6993_v11 = vcombine.high %v2370_v55, %v2377_v34 }
 0x33d   : > { %v2420_v15 = vrot.slane %v2412_v7, %v9308_v16  ;;  %v2427_v62 = vrot.slane %v2413_v17, %v9308_v16  ;;  %v2428_v57 = vcombine.low %v2396_v49, %v2411_v33  ;;  %v2429_v18 = vcombine.high %v2396_v49, %v2411_v33  ;;  %v1792_v43 = vpop.f32.mrf.mxu1 }
 0x33e   : > { %v9593_v47 = vrot.slane %v2278_v27, %v9297_v51  ;;  %v9596_v2 = vrot.slane %v6991_v28, %v9297_v51  ;;  %v9599_v0 = vrot.slane %v2596_v14, %v9297_v51  ;;  %v9602_v32 = vrot.slane %v6993_v11, %v9297_v51 }
 0x33f   : > { %v2436_v55 = vrot.slane %v2428_v57, %v9308_v16  ;;  %v2443_v34 = vrot.slane %v2429_v18, %v9308_v16  ;;  %v2630_v17 = vcombine.low %v2420_v15, %v2427_v62  ;;  %v6994_v7 = vcombine.high %v2420_v15, %v2427_v62 }
 0x340   : > { %v1789_v27 = vadd.f32 %v1788_v42, %v9335_v52  ;;  %v1791_v28 = vadd.f32 %v1790_v13, %v9327_v12  ;;  %v1793_v33 = vadd.f32 %v1792_v43, %v9335_v52  ;;  %v2455_v11 = vrot.slane %v1787_v45, %v9297_v51 }
 0x341   : > { %v2646_v14 = vcombine.low %v2436_v55, %v2443_v34  ;;  %v6995_v37 = vcombine.high %v2436_v55, %v2443_v34  ;;  %v2462_v10 = vrot.slane %v2448_v59, %v9297_v51  ;;  %v2637_v57 = vrot.slane %v2630_v17, %v9297_v51 }
 0x342   : > { %v10668_v18 = vmov 0.0   ;;  %v2470_v15 = vrot.slane %v1789_v27, %v9297_v51  ;;  %v2645_v42 = vrot.slane %v6994_v7, %v9297_v51  ;;  %v2521_v52 = vrot.slane %v1791_v28, %v9297_v51 }
 0x343   : > { %v2463_v6 = vcombine.high %v1789_v27, %v10668_v18  ;;  %v2514_v62 = vcombine.high %v1791_v28, %v10668_v18  ;;  %v2653_v12 = vrot.slane %v2646_v14, %v9297_v51  ;;  %v2529_v13 = vcombine.high %v1793_v33, %v10668_v18 }
 0x344   : > { %v2661_v45 = vrot.slane %v6995_v37, %v9297_v51  ;;  %v2478_v43 = vcombine.low %v2455_v11, %v2470_v15  ;;  %v2479_v55 = vcombine.high %v2455_v11, %v2470_v15  ;;  %v2536_v17 = vrot.slane %v1793_v33, %v9297_v51 }
 0x345   : > { %v2477_v59 = vrot.slane %v2463_v6, %v9297_v51  ;;  %v2528_v34 = vrot.slane %v2514_v62, %v9297_v51  ;;  %v2543_v27 = vrot.slane %v2529_v13, %v9297_v51  ;;  %v2620_v7 = vcombine.low %v9599_v0, %v9602_v32 }
 0x346   : > { %v2486_v14 = vrot.slane %v2478_v43, %v9308_v16  ;;  %v2493_v28 = vrot.slane %v2479_v55, %v9308_v16  ;;  %v2544_v37 = vcombine.low %v2521_v52, %v2536_v17  ;;  %v2545_v9 = vcombine.high %v2521_v52, %v2536_v17 }
 0x347   : > { %v2494_v49 = vcombine.low %v2462_v10, %v2477_v59  ;;  %v2495_v5 = vcombine.high %v2462_v10, %v2477_v59  ;;  %v2560_v6 = vcombine.low %v2528_v34, %v2543_v27  ;;  %v2561_v8 = vcombine.high %v2528_v34, %v2543_v27 }
 0x348   : > { %v2680_v33 = vcombine.low %v2486_v14, %v2493_v28  ;;  %v6996_v62 = vcombine.high %v2486_v14, %v2493_v28  ;;  %v2552_v13 = vrot.slane %v2544_v37, %v9308_v16  ;;  %v2559_v0 = vrot.slane %v2545_v9, %v9308_v16 }
 0x349   : > { %v2502_v11 = vrot.slane %v2494_v49, %v9308_v16  ;;  %v2509_v15 = vrot.slane %v2495_v5, %v9308_v16  ;;  %v2568_v32 = vrot.slane %v2560_v6, %v9308_v16  ;;  %v2575_v43 = vrot.slane %v2561_v8, %v9308_v16 }
 0x34a   : > { %v2687_v10 = vrot.slane %v2680_v33, %v9297_v51  ;;  %v2695_v52 = vrot.slane %v6996_v62, %v9297_v51  ;;  %v2730_v34 = vcombine.low %v2552_v13, %v2559_v0  ;;  %v6998_v49 = vcombine.high %v2552_v13, %v2559_v0 }
 0x34b   : > { %v2696_v59 = vcombine.low %v2502_v11, %v2509_v15  ;;  %v6997_v55 = vcombine.high %v2502_v11, %v2509_v15  ;;  %v2746_v17 = vcombine.low %v2568_v32, %v2575_v43  ;;  %v6999_v5 = vcombine.high %v2568_v32, %v2575_v43 }
 0x34c   : > { %v2662_v27 = vcombine.low %v2637_v57, %v2645_v42  ;;  %v2712_v9 = vcombine.low %v2687_v10, %v2695_v52  ;;  %v2737_v37 = vrot.slane %v2730_v34, %v9297_v51  ;;  %v2745_v8 = vrot.slane %v6998_v49, %v9297_v51 }
 0x34d   : > { %v2703_v14 = vrot.slane %v2696_v59, %v9297_v51  ;;  %v2711_v28 = vrot.slane %v6997_v55, %v9297_v51  ;;  %v2753_v6 = vrot.slane %v2746_v17, %v9297_v51  ;;  %v2761_v33 = vrot.slane %v6999_v5, %v9297_v51 }
 0x34e   : > { %v10669_v11 = vcombine.high %v9462_v44, %v9465_v30  ;;  %v10670_v57 = vcombine.low %v9511_v1, %v9514_v24  ;;  %v2627_v62 = vrot.slane %v2620_v7, %v9308_v16  ;;  %v2670_v13 = vcombine.low %v2653_v12, %v2661_v45 }
 0x34f   : > { %v10671_v0 = vcombine.high %v9511_v1, %v9514_v24  ;;  %v2762_v43 = vcombine.low %v2737_v37, %v2745_v8  ;;  %v2720_v10 = vcombine.low %v2703_v14, %v2711_v28  ;;  %v2770_v52 = vcombine.low %v2753_v6, %v2761_v33 }
 0x350   : > { %v2243_v15 = vrot.slane %v10669_v11, %v9297_v51  ;;  %v2269_v42 = vrot.slane %v10670_v57, %v9297_v51  ;;  %v2302_v44 = vcombine.low %v9593_v47, %v9596_v2  ;;  %v10672_v30 = vcombine.low %v9585_v56, %v9588_v46 }
 0x351   : > { %v2277_v32 = vrot.slane %v10671_v0, %v9297_v51  ;;  %v2669_v55 = vrot.slane %v2662_v27, %v9308_v16  ;;  %v2677_v12 = vrot.slane %v2670_v13, %v9308_v16  ;;  %v2719_v45 = vrot.slane %v2712_v9, %v9308_v16 }
 0x352   : > { %v2619_v59 = vrot.slane %v10672_v30, %v9308_v16  ;;  %v2727_v1 = vrot.slane %v2720_v10, %v9308_v16  ;;  %v2769_v24 = vrot.slane %v2762_v43, %v9308_v16  ;;  %v2777_v7 = vrot.slane %v2770_v52, %v9308_v16 }
 0x353   : > { %v2144_v47 = vcombine.low %v9346_v22, %v9349_v23  ;;  %v2678_v34 = vcombine.low %v2669_v55, %v2677_v12  ;;  %v10673_v56 = vcombine.low %v9442_v39, %v9453_v61  ;;  %v2252_v49 = vcombine.low %v9534_v48, %v2243_v15 }
 0x354   : > { %v2628_v2 = vcombine.low %v2619_v59, %v2627_v62  ;;  %v2294_v17 = vcombine.low %v2269_v42, %v2277_v32  ;;  %v2729_v5 = vcombine.high %v2719_v45, %v2727_v1  ;;  %v2779_v27 = vcombine.high %v2769_v24, %v2777_v7 }
 0x355   : > { %v2209_v46 = vrot.slane %v10673_v56, %v9308_v16  ;;  %v10674_v14 = vcombine.low %v9421_v25, %v9424_v50  ;;  %v2244_v22 = vcombine.low %v9504_v53, %v9519_v21  ;;  %v10675_v23 = vcombine.low %v9354_v26, %v9363_v31 }
 0x356   : > { %v2780_v9 = vpack.c.bf16 %v2678_v34, %v2628_v2  ;;  %v9686_v61 = vpack.c.bf16 %v2779_v27, %v2729_v5  ;;  %v2309_v48 = vrot.slane %v2302_v44, %v9308_v16  ;;  %v2151_v37 = vrot.slane %v2144_v47, %v9308_v16 }
 0x357   : > { %v2201_v28 = vrot.slane %v10674_v14, %v9308_v16  ;;  %v2159_v39 = vrot.slane %v10675_v23, %v9308_v16  ;;  %v2301_v25 = vrot.slane %v2294_v17, %v9308_v16  ;;  %v2259_v50 = vrot.slane %v2252_v49, %v9308_v16 }
 0x358   : > { %7276 = vmatpush3.bf16.xpose.msra.mxu0 %v2780_v9  ;;  %7294 = vmatpush3.bf16.xpose.msra.mxu1 %v9686_v61  ;;  %v3146_v26 = vcombine.low %v9496_v35, %v9499_v36  ;;  %v2679_v31 = vcombine.high %v2669_v55, %v2677_v12  ;;  %v2251_v53 = vrot.slane %v2244_v22, %v9308_v16  ;;  %v3731_v30 = vrot.slane %v2780_v9, 4 }
 0x359   : > { %v2210_v8 = vcombine.low %v2201_v28, %v2209_v46  ;;  %7281 = vmatprep.subr.bf16.mxu0 %v10668_v18  ;;  %7299 = vmatprep.subr.bf16.mxu1 %v10668_v18  ;;  %v2160_v21 = vcombine.low %v2151_v37, %v2159_v39  ;;  %v2311_v6 = vcombine.high %v2301_v25, %v2309_v48 }
 0x35a   : > { %v3096_v33 = vcombine.low %v9490_v54, %v9493_v58  ;;  %v2629_v11 = vcombine.high %v2619_v59, %v2627_v62  ;;  %v2261_v57 = vcombine.high %v2251_v53, %v2259_v50  ;;  %v2211_v35 = vcombine.high %v2201_v28, %v2209_v46 }
 0x35b   : > { %v2312_v15 = vpack.c.bf16 %v2210_v8, %v2160_v21  ;;  %v2778_v58 = vcombine.low %v2769_v24, %v2777_v7  ;;  %v2161_v36 = vcombine.high %v2151_v37, %v2159_v39  ;;  %v2728_v62 = vcombine.low %v2719_v45, %v2727_v1 }
 0x35c   : > { %v3248_v42 = vpack.c.bf16 %v3146_v26, %v3096_v33  ;;  %v9700_v13 = vpack.c.bf16 %v2679_v31, %v2629_v11  ;;  %v9702_v0 = vpack.c.bf16 %v2311_v6, %v2261_v57  ;;  %v2310_v10 = vcombine.low %v2301_v25, %v2309_v48 }
 0x35d   : > { %v9713_v32 = vpack.c.bf16 %v2211_v35, %v2161_v36  ;;  %v2782_v43 = vpack.c.bf16 %v2778_v58, %v2728_v62  ;;  %v2260_v52 = vcombine.low %v2251_v53, %v2259_v50 }
 0x35e   : > { %v3538_v54 = vsel %vm3536_vm1, %v3248_v42, 0  ;;  %v4039_v55 = vrot.slane %v3248_v42, 4 }
 0x35f   : > { %7278 = vmatmul.mubr.bf16.vlgmr.msra.gmra.mxu0 %v2312_v15  ;;  %7296 = vmatmul.mubr.bf16.vlgmr.msra.gmra.mxu1 %v9702_v0  ;;  %v2314_v44 = vpack.c.bf16 %v2310_v10, %v2260_v52  ;;  %v3819_v59 = vrot.slane %v2782_v43, 4 }
 0x360   : > { %7282 = vmatpush3.bf16.xpose.msra.mxu0 %v9700_v13  ;;  %7283 = vmatprep.mubr.msk.bf16.mxu0 %vm8434_vm0, %v10668_v18  ;;  %v4044_v12 = vsel %vm3536_vm1, %v4039_v55, 0 }
 0x361   : > { %7287 = vmatprep.subr.bf16.mxu0 %v10668_v18  ;;  %7300 = vmatpush3.bf16.msra.mxu1 %v3538_v54 }
 0x362   : > { %7301 = vmatprep.mubr.msk.bf16.mxu1 %vm8434_vm0, %v10668_v18  ;;  %7305 = vmatprep.subr.bf16.mxu1 %v10668_v18 }
 0x367   : > { %7284 = vmatmul.mubr.bf16.vlgmr.msra.gmra.mxu0 %v9713_v32 }
 0x368   : > { %7288 = vmatpush3.bf16.xpose.msra.mxu0 %v2782_v43  ;;  %7289 = vmatprep.mubr.msk.bf16.mxu0 %vm8434_vm0, %v10668_v18 }
 0x369   : > { %7323 = vmatprep.subr.bf16.mxu0 %v10668_v18 }
 0x36f   : > { %7290 = vmatmul.mubr.bf16.vlgmr.msra.gmra.mxu0 %v2314_v44 }
 0x370   : > { %7324 = vmatpush3.bf16.xpose.msra.mxu0 %v3731_v30  ;;  %7325 = vmatprep.mubr.msk.bf16.mxu0 %vm8434_vm0, %v10668_v18 }
 0x371   : > { %7335 = vmatprep.subr.bf16.mxu0 %v10668_v18 }
 0x377   : > { %7326 = vmatmul.mubr.bf16.vlgmr.msra.gmra.mxu0 %v2312_v15 }
 0x378   : > { %7336 = vmatpush3.bf16.xpose.msra.mxu0 %v3819_v59  ;;  %7337 = vmatprep.mubr.msk.bf16.mxu0 %vm8434_vm0, %v10668_v18 }
 0x379   : > { %7347 = vmatprep.subr.bf16.mxu0 %v10668_v18 }
 0x37f   : > { %7338 = vmatmul.mubr.bf16.vlgmr.msra.gmra.mxu0 %v2314_v44 }
 0x380   : > { %7348 = vmatpush3.bf16.msra.mxu0 %v4044_v12  ;;  %7349 = vmatprep.mubr.msk.bf16.mxu0 %vm8434_vm0, %v10668_v18 }
 0x381   : > { %7359 = vmatprep.subr.bf16.mxu0 %v10668_v18 }
 0x41f   : > { %v3286_v45 = vpop.f32.mrf.mxu0  ;;  %v9730_v7 = vpop.f32.mrf.mxu1 }
 0x420   : > { %v3417_v1 = vsel %vm3416_vm2, %v3286_v45, -inf  ;;  %v3435_v37 = vsel %vm3416_vm2, %v9730_v7, -inf }
 0x421   : > { %3418 = vmax.xlane.f32.xlu0 %v3417_v1  ;;  %v7279_v24 = vpop.f32.mrf.mxu0  ;;  %v7297_v2 = vpop.f32.mrf.mxu1 }
 0x423   : > { %v3289_v47 = vpop.f32.mrf.mxu0  ;;  %v9733_v46 = vpop.f32.mrf.mxu1 }
 0x424   : > { %v3420_v34 = vsel %vm3416_vm2, %v3289_v47, -inf  ;;  %v3438_v26 = vsel %vm3416_vm2, %v9733_v46, -inf }
 0x425   : > { %3421 = vmax.xlane.f32.xlu1 %v3420_v34  ;;  %v7280_v56 = vpop.f32.mrf.mxu0  ;;  %v7298_v17 = vpop.f32.mrf.mxu1 }
 0x427   : > { %v3327_v49 = vpop.f32.mrf.mxu0 }
 0x428   : > { %v3423_v5 = vsel %vm3416_vm2, %v3327_v49, -inf }
 0x429   : > { %3424 = vmax.xlane.f32.xlu0 %v3423_v5  ;;  %v7285_v27 = vpop.f32.mrf.mxu0 }
 0x42b   : > { %v3330_v14 = vpop.f32.mrf.mxu0 }
 0x42c   : > { %v3426_v28 = vsel %vm3416_vm2, %v3330_v14, -inf }
 0x42d   : > { %3427 = vmax.xlane.f32.xlu1 %v3426_v28  ;;  %v7286_v9 = vpop.f32.mrf.mxu0 }
 0x42f   : > { %v3368_v22 = vpop.f32.mrf.mxu0 }
 0x430   : > { %v3429_v23 = vsel %vm3416_vm2, %v3368_v22, -inf }
 0x431   : > { %3430 = vmax.xlane.f32.xlu0 %v3429_v23  ;;  %v7291_v39 = vpop.f32.mrf.mxu0 }
 0x433   : > { %v3371_v48 = vpop.f32.mrf.mxu0 }
 0x434   : > { %v3432_v8 = vsel %vm3416_vm2, %v3371_v48, -inf }
 0x435   : > { %3436 = vmax.xlane.f32.xlu0 %v3435_v37  ;;  %3433 = vmax.xlane.f32.xlu1 %v3432_v8  ;;  %v7292_v25 = vpop.f32.mrf.mxu0 }
 0x437   : > { %v3767_v50 = vpop.f32.mrf.mxu0 }
 0x438   : > { %v3906_v31 = vsel %vm3416_vm2, %v3767_v50, -inf }
 0x439   : > { %3439 = vmax.xlane.f32.xlu1 %v3438_v26  ;;  %3907 = vmax.xlane.f32.xlu0 %v3906_v31  ;;  %v7327_v53 = vpop.f32.mrf.mxu0 }
 0x43b   : > { %v3770_v21 = vpop.f32.mrf.mxu0 }
 0x43c   : > { %v3909_v6 = vsel %vm3416_vm2, %v3770_v21, -inf }
 0x43d   : > { %3910 = vmax.xlane.f32.xlu1 %v3909_v6  ;;  %v7328_v33 = vpop.f32.mrf.mxu0 }
 0x43f   : > { %v9745_v11 = vpop.f32.mrf.mxu0 }
 0x441   : > { %v7339_v15 = vpop.f32.mrf.mxu0 }
 0x443   : > { %v9747_v57 = vpop.f32.mrf.mxu0 }
 0x445   : > { %v7340_v42 = vpop.f32.mrf.mxu0 }
 0x4aa   : > { %v9749_v35 = vpop.xlane.xlu0 %3418 }
 0x4ab   : > { %v3465_v54 = vsub.f32 %v3286_v45, %v9749_v35 }
 0x4ad   : > { %v3473_v58 = vmul.f32 1.442695, %v3465_v54 }
 0x4ae   : > { %v9752_v36 = vpop.xlane.xlu1 %3421 }
 0x4af   : > { %v3466_v62 = vsub.f32 %v3289_v47, %v9752_v36  ;;  %7723 = vpow2.f32 %v3473_v58  ;;  %v3775_v58 = vrot.slane %v9700_v13, 4  ;;  %v3863_v13 = vrot.slane %v9686_v61, 4 }
 0x4b1   : > { %v3475_v43 = vmul.f32 1.442695, %v3466_v62 }
 0x4b2   : > { %v9755_v10 = vpop.xlane.xlu0 %3424 }
 0x4b3   : > { %7725 = vpow2.f32 %v3475_v43  ;;  %v3467_v52 = vsub.f32 %v3327_v49, %v9755_v10 }
 0x4b5   : > { %v3477_v44 = vmul.f32 1.442695, %v3467_v52 }
 0x4b6   : > { %v9758_v30 = vpop.xlane.xlu1 %3427 }
 0x4b7   : > { %v3468_v59 = vsub.f32 %v3330_v14, %v9758_v30  ;;  %7727 = vpow2.f32 %v3477_v44 }
 0x4b9   : > { %v3479_v55 = vmul.f32 1.442695, %v3468_v59 }
 0x4ba   : > { %v9761_v12 = vpop.xlane.xlu0 %3430 }
 0x4bb   : > { %7729 = vpow2.f32 %v3479_v55  ;;  %v3469_v45 = vsub.f32 %v3368_v22, %v9761_v12 }
 0x4bc   : > { %v9768_v47 = vpop.eup %7723 }
 0x4bd   : > { %v3481_v2 = vmul.f32 1.442695, %v3469_v45 }
 0x4be   : > { %v9764_v1 = vpop.xlane.xlu0 %3436  ;;  %v9766_v24 = vpop.xlane.xlu1 %3433 }
 0x4bf   : > { %v3470_v56 = vsub.f32 %v3371_v48, %v9766_v24  ;;  %7731 = vpow2.f32 %v3481_v2  ;;  %v3471_v9 = vsub.f32 %v9730_v7, %v9764_v1 }
 0x4c0   : > { %v9770_v34 = vpop.eup %7725 }
 0x4c1   : > { %v3529_v49 = vpack.c.bf16 %v9770_v34, %v9768_v47  ;;  %v3483_v17 = vmul.f32 1.442695, %v3470_v56  ;;  %v3485_v8 = vmul.f32 1.442695, %v3471_v9 }
 0x4c2   : > { %v9775_v5 = vpop.xlane.xlu1 %3439  ;;  %v3908_v27 = vpop.xlane.xlu0 %3907 }
 0x4c3   : > { %v3472_v14 = vsub.f32 %v9733_v46, %v9775_v5  ;;  %v9780_v28 = vmax.f32 %v9749_v35, %v3908_v27  ;;  %7302 = vmatmul.mubr.msk.bf16.vlgmr.msra.gmra.mxu1 %vm3416_vm2, %v3529_v49  ;;  %7733 = vpow2.f32 %v3483_v17 }
 0x4c4   : > { %7306 = vmatpush3.bf16.msra.mxu1 %v9540_v63  ;;  %7307 = vmatprep.mubr.msk.bf16.mxu1 %vm8434_vm0, %v10668_v18  ;;  %v9792_v48 = vpop.eup %7727 }
 0x4c5   : > { %v3938_v22 = vsub.f32 %v9749_v35, %v9780_v28  ;;  %v3962_v23 = vsub.f32 %v3767_v50, %v9780_v28  ;;  %7311 = vmatprep.subr.bf16.mxu1 %v10668_v18  ;;  %v3487_v46 = vmul.f32 1.442695, %v3472_v14 }
 0x4c6   : > { %v3911_v39 = vpop.xlane.xlu1 %3910 }
 0x4c7   : > { %v3931_v37 = vmax.f32 %v9752_v36, %v3911_v39  ;;  %v3970_v63 = vmul.f32 1.442695, %v3962_v23  ;;  %7735 = vpow2.f32 %v3487_v46  ;;  %v3946_v43 = vmul.f32 1.442695, %v3938_v22 }
 0x4c8   : > { %v9795_v7 = vpop.eup %7729  ;;  %7737 = vpow2.f32 %v3485_v8 }
 0x4c9   : > { %v3939_v25 = vsub.f32 %v9752_v36, %v3931_v37  ;;  %v3963_v26 = vsub.f32 %v3770_v21, %v3931_v37  ;;  %v3530_v31 = vpack.c.bf16 %v9795_v7, %v9792_v48  ;;  %7739 = vpow2.f32 %v3970_v63 }
 0x4cb   : > { %v3972_v50 = vmul.f32 1.442695, %v3963_v26  ;;  %7308 = vmatmul.mubr.msk.bf16.vlgmr.msra.gmra.mxu1 %vm3416_vm2, %v3530_v31  ;;  %v3948_v52 = vmul.f32 1.442695, %v3939_v25 }
 0x4cc   : > { %7312 = vmatpush3.bf16.msra.mxu1 %v9559_v40  ;;  %7313 = vmatprep.mubr.msk.bf16.mxu1 %vm8434_vm0, %v10668_v18  ;;  %v9805_v53 = vpop.eup %7731 }
 0x4cd   : > { %7317 = vmatprep.subr.bf16.mxu1 %v10668_v18  ;;  %7741 = vpow2.f32 %v3972_v50 }
 0x4d0   : > { %v9807_v21 = vpop.eup %7733 }
 0x4d1   : > { %v3531_v6 = vpack.c.bf16 %v9807_v21, %v9805_v53 }
 0x4d3   : > { %7314 = vmatmul.mubr.msk.bf16.vlgmr.msra.gmra.mxu1 %vm3416_vm2, %v3531_v6 }
 0x4d4   : > { %7318 = vmatpush3.bf16.msra.mxu1 %v9562_v41  ;;  %7319 = vmatprep.mubr.msk.bf16.mxu1 %vm8434_vm0, %v10668_v18  ;;  %v9816_v40 = vpop.eup %7735 }
 0x4d5   : > { %7329 = vmatprep.subr.bf16.mxu1 %v10668_v18  ;;  %v9818_v33 = vpop.eup %7737 }
 0x4d6   : > { %v9820_v15 = vpop.eup %7739  ;;  %v3532_v42 = vpack.c.bf16 %v9816_v40, %v9818_v33 }
 0x4da   : > { %v9824_v54 = vpop.eup %7741 }
 0x4db   : > { %7320 = vmatmul.mubr.msk.bf16.vlgmr.msra.gmra.mxu1 %vm3416_vm2, %v3532_v42  ;;  %v4034_v41 = vpack.c.bf16 %v9824_v54, %v9820_v15 }
 0x4dc   : > { %7330 = vmatpush3.bf16.xpose.msra.mxu1 %v3775_v58  ;;  %7331 = vmatprep.mubr.msk.bf16.mxu1 %vm8434_vm0, %v10668_v18 }
 0x4dd   : > { %7350 = vmatmul.mubr.msk.bf16.vlgmr.msra.gmra.mxu0 %vm3416_vm2, %v4034_v41  ;;  %7341 = vmatprep.subr.bf16.mxu1 %v10668_v18 }
 0x4de   : > { %7360 = vmatpush3.bf16.msra.mxu0 %v9569_v60  ;;  %7361 = vmatprep.mubr.msk.bf16.mxu0 %vm8434_vm0, %v10668_v18  ;;  %v3441_v60 = vsub.f32 -inf, %v9749_v35 }
 0x4e0   : > { %v3449_v61 = vmul.f32 1.442695, %v3441_v60 }
 0x4e2   : > { %7743 = vpow2.f32 %v3449_v61 }
 0x4e3   : > { %7332 = vmatmul.mubr.bf16.vlgmr.msra.gmra.mxu1 %v9713_v32  ;;  %v3442_v32 = vsub.f32 -inf, %v9752_v36 }
 0x4e4   : > { %7342 = vmatpush3.bf16.xpose.msra.mxu1 %v3863_v13  ;;  %7343 = vmatprep.mubr.msk.bf16.mxu1 %vm8434_vm0, %v10668_v18 }
 0x4e5   : > { %7353 = vmatprep.subr.bf16.mxu1 %v10668_v18  ;;  %v3451_v62 = vmul.f32 1.442695, %v3442_v32 }
 0x4e7   : > { %7745 = vpow2.f32 %v3451_v62 }
 0x4e8   : > { %7747 = vpow2.f32 %v3946_v43 }
 0x4e9   : > { %7749 = vpow2.f32 %v3948_v52  ;;  %v3918_v52 = vsel %vm3416_vm2, %v9745_v11, -inf }
 0x4eb   : > { %7344 = vmatmul.mubr.bf16.vlgmr.msra.gmra.mxu1 %v9702_v0 }
 0x4ec   : > { %7354 = vmatpush3.bf16.msra.mxu1 %v9552_v29  ;;  %7355 = vmatprep.mubr.msk.bf16.mxu1 %vm8434_vm0, %v10668_v18 }
 0x4ed   : > { %7365 = vmatprep.subr.bf16.mxu1 %v10668_v18 }
 0x4ef   : > { %v7744_v0 = vpop.eup %7743 }
 0x4f0   : > { %v9849_v44 = vmul.f32 0.0, %v7744_v0 }
 0x4f4   : > { %v7746_v29 = vpop.eup %7745 }
 0x4f5   : > { %v9852_v45 = vpop.eup %7747  ;;  %v9854_v2 = vmul.f32 0.0, %v7746_v29 }
 0x4f6   : > { %v9858_v17 = vpop.eup %7749 }
 0x583   : > { %v3574_v59 = vpop.f32.mrf.mxu1 }
 0x584   : > { %v3722_v55 = vadd.f32 %v3574_v59, %v9849_v44 }
 0x585   : > { %v7303_v35 = vpop.f32.mrf.mxu1 }
 0x586   : > { %v4026_v36 = vmul.f32 %v9852_v45, %v3722_v55  ;;  %v3921_v55 = vsel %vm3416_vm2, %v9747_v57, -inf }
 0x587   : > { %v3577_v56 = vpop.f32.mrf.mxu1 }
 0x588   : > { %v3723_v49 = vadd.f32 %v3577_v56, %v9854_v2  ;;  %v3497_v56 = vsel %vm3416_vm2, %v9768_v47, 0.0  ;;  %v3506_v47 = vsel %vm3416_vm2, %v9795_v7, 0.0  ;;  %v3518_v7 = vsel %vm3416_vm2, %v9816_v40, 0.0 }
 0x589   : > { %v7304_v27 = vpop.f32.mrf.mxu1 }
 0x58a   : > { %v4027_v14 = vmul.f32 %v9858_v17, %v3723_v49 }
 0x58b   : > { %v9861_v28 = vpop.f32.mrf.mxu1 }
 0x58d   : > { %v7309_v9 = vpop.f32.mrf.mxu1 }
 0x58e   : > { %v3500_v9 = vsel %vm3416_vm2, %v9770_v34, 0.0  ;;  %v3515_v34 = vsel %vm3416_vm2, %v9818_v33, 0.0  ;;  %v3447_v33 = vsub.f32 -inf, %v9764_v1 }
 0x58f   : > { %v9863_v22 = vpop.f32.mrf.mxu1 }
 0x590   : > { %v3461_v40 = vmul.f32 1.442695, %v3447_v33 }
 0x591   : > { %v7310_v23 = vpop.f32.mrf.mxu1 }
 0x592   : > { %v3994_v23 = vsel %vm3416_vm2, %v9820_v15, 0.0  ;;  %v3443_v15 = vsub.f32 -inf, %v9755_v10 }
 0x593   : > { %v9865_v46 = vpop.f32.mrf.mxu1 }
 0x595   : > { %v7315_v39 = vpop.f32.mrf.mxu1 }
 0x596   : > { %v3509_v39 = vsel %vm3416_vm2, %v9805_v53, 0.0  ;;  %v3444_v53 = vsub.f32 -inf, %v9758_v30 }
 0x597   : > { %v9867_v37 = vpop.f32.mrf.mxu1 }
 0x599   : > { %v7316_v8 = vpop.f32.mrf.mxu1 }
 0x59a   : > { %v3997_v8 = vsel %vm3416_vm2, %v9824_v54, 0.0  ;;  %v3445_v54 = vsub.f32 -inf, %v9761_v12 }
 0x59b   : > { %v9869_v63 = vpop.f32.mrf.mxu1 }
 0x59d   : > { %v7321_v25 = vpop.f32.mrf.mxu1  ;;  %v4080_v26 = vpop.f32.mrf.mxu0 }
 0x59e   : > { %v9871_v31 = vadd.f32 %v4080_v26, %v4026_v36  ;;  %v3446_v25 = vsub.f32 -inf, %v9766_v24  ;;  %v3453_v26 = vmul.f32 1.442695, %v3443_v15 }
 0x59f   : > { %v9873_v50 = vpop.f32.mrf.mxu1  ;;  %v7351_v6 = vpop.f32.mrf.mxu0 }
 0x5a0   : > { %v3455_v6 = vmul.f32 1.442695, %v3444_v53  ;;  %7751 = vpow2.f32 %v3453_v26 }
 0x5a1   : > { %v7322_v42 = vpop.f32.mrf.mxu1  ;;  %v4083_v58 = vpop.f32.mrf.mxu0 }
 0x5a2   : > { %v9875_v41 = vadd.f32 %v4083_v58, %v4027_v14  ;;  %v3503_v14 = vsel %vm3416_vm2, %v9792_v48, 0.0  ;;  %v3512_v48 = vsel %vm3416_vm2, %v9807_v21, 0.0  ;;  %v3457_v42 = vmul.f32 1.442695, %v3445_v54 }
 0x5a3   : > { %v9877_v13 = vpop.f32.mrf.mxu1  ;;  %v7352_v60 = vpop.f32.mrf.mxu0  ;;  %v3459_v21 = vmul.f32 1.442695, %v3446_v25  ;;  %7753 = vpow2.f32 %v3455_v6 }
 0x5a4   : > { %v3912_v61 = vsel %vm3416_vm2, %v9877_v13, -inf  ;;  %7755 = vpow2.f32 %v3457_v42 }
 0x5a5   : > { %v7333_v32 = vpop.f32.mrf.mxu1  ;;  %3913 = vmax.xlane.f32.xlu0 %v3912_v61  ;;  %v3448_v61 = vsub.f32 -inf, %v9775_v5  ;;  %7757 = vpow2.f32 %v3459_v21 }
 0x5a6   : > { %7759 = vpow2.f32 %v3461_v40 }
 0x5a7   : > { %v9881_v62 = vpop.f32.mrf.mxu1 }
 0x5a8   : > { %v3915_v43 = vsel %vm3416_vm2, %v9881_v62, -inf }
 0x5a9   : > { %v7334_v0 = vpop.f32.mrf.mxu1  ;;  %3916 = vmax.xlane.f32.xlu1 %v3915_v43  ;;  %3919 = vmax.xlane.f32.xlu0 %v3918_v52 }
 0x5ab   : > { %v9887_v29 = vpop.f32.mrf.mxu1 }
 0x5ac   : > { %v3924_v59 = vsel %vm3416_vm2, %v9887_v29, -inf }
 0x5ad   : > { %v7345_v35 = vpop.f32.mrf.mxu1  ;;  %3925 = vmax.xlane.f32.xlu0 %v3924_v59  ;;  %3922 = vmax.xlane.f32.xlu1 %v3921_v55  ;;  %v7752_v6 = vpop.eup %7751 }
 0x5af   : > { %v9893_v36 = vpop.f32.mrf.mxu1 }
 0x5b0   : > { %v3927_v49 = vsel %vm3416_vm2, %v9893_v36, -inf  ;;  %v7754_v21 = vpop.eup %7753 }
 0x5b1   : > { %v7346_v27 = vpop.f32.mrf.mxu1  ;;  %3498 = vadd.xlane.f32.xlu0 %v3497_v56  ;;  %3928 = vmax.xlane.f32.xlu1 %v3927_v49  ;;  %v3463_v49 = vmul.f32 1.442695, %v3448_v61 }
 0x5b5   : > { %3504 = vadd.xlane.f32.xlu0 %v3503_v14  ;;  %3501 = vadd.xlane.f32.xlu1 %v3500_v9 }
 0x5b9   : > { %3995 = vadd.xlane.f32.xlu0 %v3994_v23  ;;  %3507 = vadd.xlane.f32.xlu1 %v3506_v47 }
 0x5bd   : > { %3510 = vadd.xlane.f32.xlu0 %v3509_v39  ;;  %3998 = vadd.xlane.f32.xlu1 %v3997_v8 }
 0x5c1   : > { %3516 = vadd.xlane.f32.xlu0 %v3515_v34  ;;  %3513 = vadd.xlane.f32.xlu1 %v3512_v48 }
 0x5c5   : > { %3519 = vadd.xlane.f32.xlu1 %v3518_v7 }
 0x62e   : > { %v3914_v58 = vpop.xlane.xlu0 %3913 }
 0x62f   : > { %v3932_v60 = vmax.f32 %v9755_v10, %v3914_v58 }
 0x631   : > { %v3940_v32 = vsub.f32 %v9755_v10, %v3932_v60  ;;  %v3964_v43 = vsub.f32 %v9877_v13, %v3932_v60 }
 0x632   : > { %v3917_v52 = vpop.xlane.xlu1 %3916  ;;  %v3920_v0 = vpop.xlane.xlu0 %3919 }
 0x633   : > { %v3950_v59 = vmul.f32 1.442695, %v3940_v32  ;;  %v3974_v55 = vmul.f32 1.442695, %v3964_v43  ;;  %v3933_v35 = vmax.f32 %v9758_v30, %v3917_v52  ;;  %v3934_v56 = vmax.f32 %v9761_v12, %v3920_v0 }
 0x634   : > { %v9946_v32 = vmul.f32 0.0, %v7752_v6 }
 0x635   : > { %7761 = vpow2.f32 %v3950_v59  ;;  %v3941_v27 = vsub.f32 %v9758_v30, %v3933_v35  ;;  %v3965_v14 = vsub.f32 %v9881_v62, %v3933_v35  ;;  %v3942_v10 = vsub.f32 %v9761_v12, %v3934_v56 }
 0x636   : > { %7763 = vpow2.f32 %v3974_v55  ;;  %v3966_v13 = vsub.f32 %v9745_v11, %v3934_v56  ;;  %v3926_v9 = vpop.xlane.xlu0 %3925  ;;  %v3923_v23 = vpop.xlane.xlu1 %3922  ;;  %v9955_v56 = vmul.f32 0.0, %v7754_v21 }
 0x637   : > { %v3952_v47 = vmul.f32 1.442695, %v3941_v27  ;;  %v3976_v39 = vmul.f32 1.442695, %v3965_v14  ;;  %v3954_v8 = vmul.f32 1.442695, %v3942_v10  ;;  %v3936_v34 = vmax.f32 %v9764_v1, %v3926_v9 }
 0x638   : > { %7765 = vpow2.f32 %v3463_v49  ;;  %v3978_v48 = vmul.f32 1.442695, %v3966_v13  ;;  %v3935_v7 = vmax.f32 %v9766_v24, %v3923_v23  ;;  %v3725_v14 = vadd.f32 %v9863_v22, %v9955_v56 }
 0x639   : > { %7767 = vpow2.f32 %v3952_v47  ;;  %v3944_v30 = vsub.f32 %v9764_v1, %v3936_v34  ;;  %v3968_v62 = vsub.f32 %v9887_v29, %v3936_v34 }
 0x63a   : > { %7769 = vpow2.f32 %v3976_v39  ;;  %v3943_v12 = vsub.f32 %v9766_v24, %v3935_v7  ;;  %v3967_v11 = vsub.f32 %v9747_v57, %v3935_v7  ;;  %v3499_v15 = vpop.xlane.xlu0 %3498  ;;  %v3929_v53 = vpop.xlane.xlu1 %3928 }
 0x63b   : > { %7771 = vpow2.f32 %v3954_v8  ;;  %v3958_v54 = vmul.f32 1.442695, %v3944_v30  ;;  %v3982_v25 = vmul.f32 1.442695, %v3968_v62  ;;  %v3521_v26 = vadd.f32 %v3499_v15, %v9849_v44  ;;  %v7756_v24 = vpop.eup %7755 }
 0x63c   : > { %7773 = vpow2.f32 %v3978_v48  ;;  %v3956_v33 = vmul.f32 1.442695, %v3943_v12  ;;  %v3980_v42 = vmul.f32 1.442695, %v3967_v11  ;;  %v3937_v1 = vmax.f32 %v9775_v5, %v3929_v53  ;;  %v7758_v44 = vpop.eup %7757 }
 0x63d   : > { %7775 = vpow2.f32 %v3958_v54  ;;  %v3986_v29 = vmul.f32 %v9852_v45, %v3521_v26  ;;  %v7760_v0 = vpop.eup %7759  ;;  %v9963_v10 = vmul.f32 0.0, %v7756_v24  ;;  %v9977_v30 = vmul.f32 0.0, %v7758_v44 }
 0x63e   : > { %7777 = vpow2.f32 %v3982_v25  ;;  %v3945_v57 = vsub.f32 %v9775_v5, %v3937_v1  ;;  %v3969_v58 = vsub.f32 %v9893_v36, %v3937_v1  ;;  %v9943_v60 = vpop.xlane.xlu0 %3504  ;;  %v3502_v40 = vpop.xlane.xlu1 %3501  ;;  %v3724_v5 = vadd.f32 %v9861_v28, %v9946_v32 }
 0x63f   : > { %7779 = vpow2.f32 %v3956_v33  ;;  %v3522_v61 = vadd.f32 %v3502_v40, %v9854_v2  ;;  %v3726_v23 = vadd.f32 %v9865_v46, %v9963_v10  ;;  %v9969_v47 = vmul.f32 0.0, %v7760_v0  ;;  %v7673_v0 = vld [vmem:[%s10676_s4 + $0x50] ss:$8 sps:$4 sm:$0xff]  }
 0x640   : > { %7781 = vpow2.f32 %v3980_v42  ;;  %v3960_v43 = vmul.f32 1.442695, %v3945_v57  ;;  %v3984_v52 = vmul.f32 1.442695, %v3969_v58  ;;  %v3727_v53 = vadd.f32 %v9867_v37, %v9977_v30 }
 0x641   : > { %v3987_v45 = vmul.f32 %v9858_v17, %v3522_v61  ;;  %v3728_v62 = vadd.f32 %v9869_v63, %v9969_v47  ;;  %v7667_v61 = vld [vmem:[%s10676_s4 + $0x70] ss:$8 sps:$4 sm:$0xff]  }
 0x642   : > { %v9949_v59 = vpop.eup %7761  ;;  %7783 = vpow2.f32 %v3960_v43  ;;  %v3996_v36 = vpop.xlane.xlu0 %3995  ;;  %v7669_v43 = vld [vmem:[%s10676_s4 + $0x74] ss:$8 sps:$4 sm:$0xff]  }
 0x643   : > { %v9953_v55 = vpop.xlane.xlu1 %3507  ;;  %v7764_v35 = vpop.eup %7763  ;;  %7785 = vpow2.f32 %v3984_v52  ;;  %v4018_v2 = vadd.f32 %v3996_v36, %v3986_v29  ;;  %v9959_v27 = vmul.f32 %v9949_v59, %v3724_v5  ;;  %v7672_v52 = vld [vmem:[%s10676_s4 + $0x64] ss:$8 sps:$4 sm:$0xff]   ;;  %4930 = vmatprep.subr.bf16.mxu0 %v7669_v43  ;;  %v7676_v5 = vld [vmem:[%s10676_s4 + $0x40] ss:$8 sps:$4 sm:$0xff]   ;;  %v7681_v36 = vld [vmem:[%s10676_s4 + $0x34] ss:$8 sps:$4 sm:$0xff]  }
 0x644   : > { %v4000_v49 = vsel %vm3416_vm2, %v7764_v35, 0.0 }
 0x645   : > { %v7766_v17 = vpop.eup %7765  ;;  %7787 = vrcp.f32 %v4018_v2  ;;  %4001 = vadd.xlane.f32.xlu0 %v4000_v49  ;;  %v7684_v2 = vld [vmem:[%s10676_s4 + $0x24] ss:$8 sps:$4 sm:$0xff]   ;;  %v7682_v49 = vld [vmem:[%s10676_s4 + $0x20] ss:$8 sps:$4 sm:$0xff]  }
 0x646   : > { %v9965_v28 = vpop.eup %7767  ;;  %v9996_v25 = vmul.f32 0.0, %v7766_v17  ;;  %v7687_v17 = vld [vmem:[%s10676_s4 + $0x14] ss:$8 sps:$4 sm:$0xff]  }
 0x647   : > { %v3999_v13 = vpop.xlane.xlu1 %3998  ;;  %v7770_v9 = vpop.eup %7769  ;;  %v9972_v8 = vmul.f32 %v9965_v28, %v3725_v14  ;;  %v7685_v14 = vld [vmem:[%s10676_s4 + $0x10] ss:$8 sps:$4 sm:$0xff]  }
 0x648   : > { %v4019_v39 = vadd.f32 %v3999_v13, %v3987_v45  ;;  %v9974_v34 = vpop.eup %7771  ;;  %v4003_v22 = vsel %vm3416_vm2, %v7770_v9, 0.0  ;;  %v4035_v48 = vpack.c.bf16 %v7770_v9, %v7764_v35  ;;  %v3729_v37 = vadd.f32 %v9873_v50, %v9996_v25  ;;  %v7678_v45 = vld [vmem:[%s10676_s4 + $0x44] ss:$8 sps:$4 sm:$0xff]   ;;  %v7679_v35 = vld [vmem:[%s10676_s4 + $0x30] ss:$8 sps:$4 sm:$0xff]  }
 0x649   : > { %v7774_v7 = vpop.eup %7773  ;;  %4004 = vadd.xlane.f32.xlu1 %v4003_v22  ;;  %v9982_v46 = vmul.f32 %v9974_v34, %v3726_v23  ;;  %v7690_v13 = vld [vmem:[%s10676_s4 + $0x4] ss:$8 sps:$4 sm:$0xff]   ;;  %v7688_v9 = vld [vmem:[%s10676_s4] ss:$8 sps:$4 sm:$0xff]   ;;  %v7693_v23 = vld [vmem:[%s10676_s4 + $0xf4] ss:$8 sps:$4 sm:$0xff]  }
 0x64a   : > { %7789 = vrcp.f32 %v4019_v39  ;;  %v9984_v12 = vpop.eup %7775  ;;  %v4006_v11 = vsel %vm3416_vm2, %v7774_v7, 0.0  ;;  %7356 = vmatmul.mubr.msk.bf16.vlgmr.msra.gmra.mxu1 %vm3416_vm2, %v4035_v48  ;;  %v7691_v39 = vld [vmem:[%s10676_s4 + $0xf0] ss:$8 sps:$4 sm:$0xff]   ;;  %v7694_v22 = vld [vmem:[%s10676_s4 + $0xe0] ss:$8 sps:$4 sm:$0xff]  }
 0x64b   : > { %v7778_v15 = vpop.eup %7777  ;;  %4007 = vadd.xlane.f32.xlu0 %v4006_v11  ;;  %7366 = vmatpush3.bf16.msra.mxu1 %v9572_v38  ;;  %v9992_v63 = vmul.f32 %v9984_v12, %v3728_v62  ;;  %v7696_v48 = vld [vmem:[%s10676_s4 + $0xe4] ss:$8 sps:$4 sm:$0xff]   ;;  %v7699_v62 = vld [vmem:[%s10676_s4 + $0xd4] ss:$8 sps:$4 sm:$0xff]   ;;  %v7700_v11 = vld [vmem:[%s10676_s4 + $0xc0] ss:$8 sps:$4 sm:$0xff]  }
 0x64c   : > { %v9994_v54 = vpop.eup %7779  ;;  %v4012_v26 = vsel %vm3416_vm2, %v7778_v15, 0.0  ;;  %7367 = vmatprep.mubr.msk.bf16.mxu1 %vm8434_vm0, %v10668_v18 }
 0x64d   : > { %v7782_v6 = vpop.eup %7781  ;;  %v10002_v33 = vmul.f32 %v9994_v54, %v3727_v53  ;;  %v7703_v53 = vld [vmem:[%s10676_s4 + $0xb0] ss:$8 sps:$4 sm:$0xff]  }
 0x64e   : > { %v4009_v38 = vsel %vm3416_vm2, %v7782_v6, 0.0  ;;  %v4036_v42 = vpack.c.bf16 %v7782_v6, %v7774_v7  ;;  %v7697_v7 = vld [vmem:[%s10676_s4 + $0xd0] ss:$8 sps:$4 sm:$0xff]   ;;  %v7708_v6 = vld [vmem:[%s10676_s4 + $0xa4] ss:$8 sps:$4 sm:$0xff]  }
 0x64f   : > { %v10007_v1 = vpop.eup %7783  ;;  %4013 = vadd.xlane.f32.xlu0 %v4012_v26  ;;  %4010 = vadd.xlane.f32.xlu1 %v4009_v38  ;;  %v7705_v26 = vld [vmem:[%s10676_s4 + $0xb4] ss:$8 sps:$4 sm:$0xff]  }
 0x650   : > { %v7786_v21 = vpop.eup %7785  ;;  %7362 = vmatmul.mubr.msk.bf16.vlgmr.msra.gmra.mxu0 %vm3416_vm2, %v4036_v42  ;;  %v10011_v29 = vmul.f32 %v10007_v1, %v3729_v37  ;;  %v7706_v37 = vld [vmem:[%s10676_s4 + $0xa0] ss:$8 sps:$4 sm:$0xff]   ;;  %v7711_v38 = vld [vmem:[%s10676_s4 + $0x94] ss:$8 sps:$4 sm:$0xff]   ;;  %v7709_v42 = vld [vmem:[%s10676_s4 + $0x90] ss:$8 sps:$4 sm:$0xff]  }
 0x651   : > { %v4015_v24 = vsel %vm3416_vm2, %v7786_v21, 0.0  ;;  %v4037_v57 = vpack.c.bf16 %v7786_v21, %v7778_v15  ;;  %4931 = vmatpush1.bf16.msra.mxu0 %v7667_v61  ;;  %v7702_v15 = vld [vmem:[%s10676_s4 + $0xc4] ss:$8 sps:$4 sm:$0xff]   ;;  %v3523_v61 = vadd.f32 %v9943_v60, %v9946_v32 }
 0x652   : > { %v7788_v58 = vpop.eup %7787  ;;  %4932 = vmatprep.subr.bf16.mxu0 %v7672_v52  ;;  %v7714_v21 = vld [vmem:[%s10676_s4 + $0x84] ss:$8 sps:$4 sm:$0xff]  }
 0x653   : > { %4016 = vadd.xlane.f32.xlu1 %v4015_v24  ;;  %7368 = vmatmul.mubr.msk.bf16.vlgmr.msra.gmra.mxu1 %vm3416_vm2, %v4037_v57  ;;  %v10016_v50 = vmul.f32 %v7788_v58, %v9871_v31  ;;  %v7670_v31 = vld [vmem:[%s10676_s4 + $0x60] ss:$8 sps:$4 sm:$0xff]   ;;  %v3511_v57 = vpop.xlane.xlu0 %3510  ;;  %v3514_v58 = vpop.xlane.xlu1 %3513 }
 0x654   : > { %v7712_v24 = vld [vmem:[%s10676_s4 + $0x80] ss:$8 sps:$4 sm:$0xff]   ;;  %v3526_v32 = vadd.f32 %v3514_v58, %v9977_v30 }
 0x655   : > { %4933 = vmatpush1.bf16.msra.mxu0 %v7670_v31  ;;  %v3988_v31 = vmul.f32 %v9949_v59, %v3523_v61 }
 0x657   : > { %v7790_v40 = vpop.eup %7789  ;;  %v3520_v43 = vpop.xlane.xlu1 %3519 }
 0x658   : > { %v10019_v44 = vmul.f32 %v7790_v40, %v9875_v41  ;;  %v7675_v41 = vld [vmem:[%s10676_s4 + $0x54] ss:$8 sps:$4 sm:$0xff]   ;;  %v3517_v40 = vpop.xlane.xlu0 %3516 }
 0x659   : > { %4934 = vmatprep.subr.bf16.mxu0 %v7675_v41  ;;  %v3524_v41 = vadd.f32 %v9953_v55, %v9955_v56  ;;  %v3528_v55 = vadd.f32 %v3520_v43, %v9996_v25  ;;  %v4258_v25 = vcombine.high %v10016_v50, %v10668_v18 }
 0x65a   : > { %4935 = vmatpush1.bf16.msra.mxu0 %v7673_v0 }
 0x65b   : > { %4936 = vmatprep.subr.bf16.mxu0 %v7678_v45 }
 0x65e   : > { %4937 = vmatpush1.bf16.msra.mxu0 %v7676_v5  ;;  %v3525_v5 = vadd.f32 %v3511_v57, %v9963_v10  ;;  %v3991_v10 = vmul.f32 %v9994_v54, %v3526_v32 }
 0x65f   : > { %4938 = vmatprep.subr.bf16.mxu0 %v7681_v36 }
 0x660   : > { %v3990_v60 = vmul.f32 %v9974_v34, %v3525_v5 }
 0x662   : > { %4939 = vmatpush1.bf16.msra.mxu0 %v7679_v35  ;;  %v3989_v35 = vmul.f32 %v9965_v28, %v3524_v41 }
 0x663   : > { %4940 = vmatprep.subr.bf16.mxu0 %v7684_v2 }
 0x666   : > { %4941 = vmatpush1.bf16.msra.mxu0 %v7682_v49  ;;  %v3527_v49 = vadd.f32 %v3517_v40, %v9969_v47  ;;  %v3993_v47 = vmul.f32 %v10007_v1, %v3528_v55  ;;  %v4265_v1 = vrot.slane %v10016_v50, %v9297_v51 }
 0x667   : > { %4942 = vmatprep.subr.bf16.mxu0 %v7687_v17 }
 0x668   : > { %v3992_v56 = vmul.f32 %v9984_v12, %v3527_v49 }
 0x66a   : > { %4943 = vmatpush1.bf16.msra.mxu0 %v7685_v14 }
 0x66b   : > { %4944 = vmatprep.subr.bf16.mxu0 %v7690_v13 }
 0x66e   : > { %4945 = vmatpush1.bf16.msra.mxu0 %v7688_v9 }
 0x66f   : > { %4946 = vmatprep.subr.bf16.mxu0 %v7693_v23 }
 0x672   : > { %4947 = vmatpush2.bf16.msra.mxu0 %v7691_v39 }
 0x673   : > { %4948 = vmatprep.subr.bf16.mxu0 %v7696_v48  ;;  %v4324_v48 = vcombine.high %v10019_v44, %v10668_v18 }
 0x675   : > { %v4338_v50 = vrot.slane %v4324_v48, %v9297_v51 }
 0x676   : > { %4949 = vmatpush2.bf16.msra.mxu0 %v7694_v22 }
 0x677   : > { %4950 = vmatprep.subr.bf16.mxu0 %v7699_v62 }
 0x67a   : > { %4951 = vmatpush2.bf16.msra.mxu0 %v7697_v7 }
 0x67b   : > { %4952 = vmatprep.subr.bf16.mxu0 %v7702_v15  ;;  %v4272_v15 = vrot.slane %v4258_v25, %v9297_v51 }
 0x67e   : > { %4953 = vmatpush2.bf16.msra.mxu0 %v7700_v11 }
 0x67f   : > { %4954 = vmatprep.subr.bf16.mxu0 %v7705_v26 }
 0x682   : > { %4955 = vmatpush2.bf16.msra.mxu0 %v7703_v53 }
 0x683   : > { %4956 = vmatprep.subr.bf16.mxu0 %v7708_v6 }
 0x686   : > { %4957 = vmatpush2.bf16.msra.mxu0 %v7706_v37 }
 0x687   : > { %4958 = vmatprep.subr.bf16.mxu0 %v7711_v38 }
 0x68a   : > { %4959 = vmatpush2.bf16.msra.mxu0 %v7709_v42 }
 0x68b   : > { %4960 = vmatprep.subr.bf16.mxu0 %v7714_v21  ;;  %v4331_v21 = vrot.slane %v10019_v44, %v9297_v51 }
 0x68e   : > { %4961 = vmatpush2.bf16.msra.mxu0 %v7712_v24 }
 0x6ce   : > { %v4002_v52 = vpop.xlane.xlu0 %4001 }
 0x6cf   : > { %v4020_v0 = vadd.f32 %v4002_v52, %v3988_v31 }
 0x6d1   : > { %7791 = vrcp.f32 %v4020_v0 }
 0x6d2   : > { %v4005_v45 = vpop.xlane.xlu1 %4004 }
 0x6d3   : > { %v4021_v2 = vadd.f32 %v4005_v45, %v3989_v35 }
 0x6d4   : > { %v4008_v36 = vpop.xlane.xlu0 %4007 }
 0x6d5   : > { %v4022_v59 = vadd.f32 %v4008_v36, %v3990_v60  ;;  %7793 = vrcp.f32 %v4021_v2 }
 0x6d7   : > { %7795 = vrcp.f32 %v4022_v59 }
 0x6d8   : > { %v4011_v17 = vpop.xlane.xlu1 %4010  ;;  %v4014_v14 = vpop.xlane.xlu0 %4013 }
 0x6d9   : > { %v4024_v28 = vadd.f32 %v4014_v14, %v3992_v56  ;;  %v4023_v13 = vadd.f32 %v4011_v17, %v3991_v10 }
 0x6db   : > { %7797 = vrcp.f32 %v4024_v28 }
 0x6dc   : > { %v4017_v9 = vpop.xlane.xlu1 %4016  ;;  %7799 = vrcp.f32 %v4023_v13 }
 0x6dd   : > { %v4025_v34 = vadd.f32 %v4017_v9, %v3993_v47 }
 0x6de   : > { %v7792_v39 = vpop.eup %7791 }
 0x6df   : > { %7801 = vrcp.f32 %v4025_v34 }
 0x6e2   : > { %v7794_v11 = vpop.eup %7793 }
 0x6e4   : > { %v7796_v58 = vpop.eup %7795 }
 0x6e8   : > { %v7798_v14 = vpop.eup %7797 }
 0x6e9   : > { %v7800_v13 = vpop.eup %7799 }
 0x70a   : > { %v4129_v23 = vpop.f32.mrf.mxu1 }
 0x70b   : > { %v4236_v30 = vadd.f32 %v4129_v23, %v9959_v27 }
 0x70c   : > { %v7357_v22 = vpop.f32.mrf.mxu1 }
 0x70d   : > { %v4252_v12 = vmul.f32 %v7792_v39, %v4236_v30 }
 0x70e   : > { %v4132_v54 = vpop.f32.mrf.mxu1 }
 0x70f   : > { %v4273_v7 = vcombine.high %v4252_v12, %v10668_v18  ;;  %v4280_v62 = vrot.slane %v4252_v12, %v9297_v51  ;;  %v4237_v27 = vadd.f32 %v4132_v54, %v9972_v8 }
 0x710   : > { %v4178_v53 = vpop.f32.mrf.mxu0  ;;  %v7358_v26 = vpop.f32.mrf.mxu1 }
 0x711   : > { %v4287_v6 = vrot.slane %v4273_v7, %v9297_v51  ;;  %v4288_v37 = vcombine.low %v4265_v1, %v4280_v62  ;;  %v4289_v38 = vcombine.high %v4265_v1, %v4280_v62  ;;  %v4253_v42 = vmul.f32 %v7794_v11, %v4237_v27  ;;  %v7802_v7 = vpop.eup %7801 }
 0x712   : > { %v4238_v24 = vadd.f32 %v4178_v53, %v9982_v46  ;;  %v7363_v57 = vpop.f32.mrf.mxu0 }
 0x713   : > { %v4296_v8 = vrot.slane %v4288_v37, %v9308_v16  ;;  %v4303_v40 = vrot.slane %v4289_v38, %v9308_v16  ;;  %v4304_v61 = vcombine.low %v4272_v15, %v4287_v6  ;;  %v4305_v43 = vcombine.high %v4272_v15, %v4287_v6  ;;  %v4227_v52 = vpop.f32.mrf.mxu1 }
 0x714   : > { %v4339_v31 = vcombine.high %v4253_v42, %v10668_v18  ;;  %v4346_v41 = vrot.slane %v4253_v42, %v9297_v51  ;;  %v4254_v0 = vmul.f32 %v7796_v58, %v4238_v24  ;;  %v4181_v45 = vpop.f32.mrf.mxu0  ;;  %v4240_v44 = vadd.f32 %v4227_v52, %v9992_v63 }
 0x715   : > { %v4312_v5 = vrot.slane %v4304_v61, %v9308_v16  ;;  %v4319_v46 = vrot.slane %v4305_v43, %v9308_v16  ;;  %v4522_v36 = vcombine.low %v4296_v8, %v4303_v40  ;;  %v7016_v35 = vcombine.high %v4296_v8, %v4303_v40  ;;  %v7369_v2 = vpop.f32.mrf.mxu1 }
 0x716   : > { %v4353_v49 = vrot.slane %v4339_v31, %v9297_v51  ;;  %v4354_v60 = vcombine.low %v4331_v21, %v4346_v41  ;;  %v4355_v32 = vcombine.high %v4331_v21, %v4346_v41  ;;  %v4390_v17 = vcombine.high %v4254_v0, %v10668_v18  ;;  %v7364_v59 = vpop.f32.mrf.mxu0 }
 0x717   : > { %v4538_v55 = vcombine.low %v4312_v5, %v4319_v46  ;;  %v7017_v56 = vcombine.high %v4312_v5, %v4319_v46  ;;  %v4397_v10 = vrot.slane %v4254_v0, %v9297_v51  ;;  %v4239_v63 = vadd.f32 %v4181_v45, %v10002_v33  ;;  %v4230_v28 = vpop.f32.mrf.mxu1 }
 0x718   : > { %v4362_v9 = vrot.slane %v4354_v60, %v9308_v16  ;;  %v4369_v47 = vrot.slane %v4355_v32, %v9308_v16  ;;  %v4370_v34 = vcombine.low %v4338_v50, %v4353_v49  ;;  %v4371_v23 = vcombine.high %v4338_v50, %v4353_v49 }
 0x719   : > { %v4404_v30 = vrot.slane %v4390_v17, %v9297_v51  ;;  %v4255_v39 = vmul.f32 %v7800_v13, %v4239_v63  ;;  %v4256_v25 = vmul.f32 %v7798_v14, %v4240_v44  ;;  %v4241_v22 = vadd.f32 %v4230_v28, %v10011_v29  ;;  %v7370_v12 = vpop.f32.mrf.mxu1 }
 0x71a   : > { %v4378_v54 = vrot.slane %v4370_v34, %v9308_v16  ;;  %v4385_v48 = vrot.slane %v4371_v23, %v9308_v16  ;;  %v4572_v33 = vcombine.low %v4362_v9, %v4369_v47  ;;  %v7018_v1 = vcombine.high %v4362_v9, %v4369_v47 }
 0x71b   : > { %v4456_v62 = vcombine.high %v4255_v39, %v10668_v18  ;;  %v4463_v27 = vrot.slane %v4255_v39, %v9297_v51  ;;  %v4405_v11 = vcombine.high %v4256_v25, %v10668_v18  ;;  %v4412_v15 = vrot.slane %v4256_v25, %v9297_v51 }
 0x71c   : > { %v4588_v53 = vcombine.low %v4378_v54, %v4385_v48  ;;  %v7019_v26 = vcombine.high %v4378_v54, %v4385_v48  ;;  %v4257_v6 = vmul.f32 %v7802_v7, %v4241_v22  ;;  %v4529_v29 = vrot.slane %v4522_v36, %v9297_v51 }
 0x71d   : > { %v4470_v37 = vrot.slane %v4456_v62, %v9297_v51  ;;  %v4419_v38 = vrot.slane %v4405_v11, %v9297_v51  ;;  %v4420_v42 = vcombine.low %v4397_v10, %v4412_v15  ;;  %v4421_v21 = vcombine.high %v4397_v10, %v4412_v15 }
 0x71e   : > { %v4471_v50 = vcombine.high %v4257_v6, %v10668_v18  ;;  %v4478_v24 = vrot.slane %v4257_v6, %v9297_v51  ;;  %v4537_v57 = vrot.slane %v7016_v35, %v9297_v51  ;;  %v4545_v58 = vrot.slane %v4538_v55, %v9297_v51 }
 0x71f   : > { %v4428_v8 = vrot.slane %v4420_v42, %v9308_v16  ;;  %v4435_v40 = vrot.slane %v4421_v21, %v9308_v16  ;;  %v4436_v61 = vcombine.low %v4404_v30, %v4419_v38  ;;  %v4437_v43 = vcombine.high %v4404_v30, %v4419_v38 }
 0x720   : > { %v4485_v52 = vrot.slane %v4471_v50, %v9297_v51  ;;  %v4486_v31 = vcombine.low %v4463_v27, %v4478_v24  ;;  %v4487_v41 = vcombine.high %v4463_v27, %v4478_v24  ;;  %v4553_v0 = vrot.slane %v7017_v56, %v9297_v51 }
 0x721   : > { %v4444_v18 = vrot.slane %v4436_v61, %v9308_v16  ;;  %v4451_v45 = vrot.slane %v4437_v43, %v9308_v16  ;;  %v4622_v44 = vcombine.low %v4428_v8, %v4435_v40  ;;  %v7020_v5 = vcombine.high %v4428_v8, %v4435_v40 }
 0x722   : > { %v4494_v46 = vrot.slane %v4486_v31, %v9308_v16  ;;  %v4501_v36 = vrot.slane %v4487_v41, %v9308_v16  ;;  %v4502_v35 = vcombine.low %v4470_v37, %v4485_v52  ;;  %v4503_v2 = vcombine.high %v4470_v37, %v4485_v52  ;;  %v4758_v31 = vld [vmem:[#allocation9] sm:$0x3] }
 0x723   : > { %v4638_v49 = vcombine.low %v4444_v18, %v4451_v45  ;;  %v7021_v60 = vcombine.high %v4444_v18, %v4451_v45  ;;  %v4554_v32 = vcombine.low %v4529_v29, %v4537_v57  ;;  %v4562_v17 = vcombine.low %v4545_v58, %v4553_v0  ;;  %v5123_v0 = vld [vmem:[#allocation16] sm:$0x3] }
 0x724   : > { %v4510_v59 = vrot.slane %v4502_v35, %v9308_v16  ;;  %v4517_v14 = vrot.slane %v4503_v2, %v9308_v16  ;;  %v4672_v55 = vcombine.low %v4494_v46, %v4501_v36  ;;  %v7022_v56 = vcombine.high %v4494_v46, %v4501_v36 }
 0x725   : > { %v4561_v10 = vrot.slane %v4554_v32, %v9308_v16  ;;  %v4569_v63 = vrot.slane %v4562_v17, %v9308_v16  ;;  %v4579_v28 = vrot.slane %v4572_v33, %v9297_v51  ;;  %v4587_v13 = vrot.slane %v7018_v1, %v9297_v51 }
 0x726   : > { %v4688_v9 = vcombine.low %v4510_v59, %v4517_v14  ;;  %v7023_v47 = vcombine.high %v4510_v59, %v4517_v14  ;;  %v4595_v34 = vrot.slane %v4588_v53, %v9297_v51  ;;  %v4603_v23 = vrot.slane %v7019_v26, %v9297_v51  ;;  %v10677_v14 = vld [vmem:[#allocation35_spill] sm:$0xff] }
 0x727   : > { %v4571_v30 = vcombine.high %v4561_v10, %v4569_v63  ;;  %v4604_v39 = vcombine.low %v4579_v28, %v4587_v13  ;;  %v4570_v25 = vcombine.low %v4561_v10, %v4569_v63  ;;  %v4629_v22 = vrot.slane %v4622_v44, %v9297_v51  ;;  %v10678_v13 = vld [vmem:[#allocation36_spill] sm:$0xff] }
 0x728   : > { %v4612_v12 = vcombine.low %v4595_v34, %v4603_v23  ;;  %v4637_v54 = vrot.slane %v7020_v5, %v9297_v51  ;;  %v4645_v48 = vrot.slane %v4638_v49, %v9297_v51  ;;  %v4653_v33 = vrot.slane %v7021_v60, %v9297_v51  ;;  %v10679_v23 = vld [vmem:[#allocation33_spill] sm:$0xff] }
 0x729   : > { %v4611_v1 = vrot.slane %v4604_v39, %v9308_v16  ;;  %v4679_v7 = vrot.slane %v4672_v55, %v9297_v51  ;;  %v4687_v62 = vrot.slane %v7022_v56, %v9297_v51  ;;  %v4695_v27 = vrot.slane %v4688_v9, %v9297_v51 }
 0x72a   : > { %v4619_v11 = vrot.slane %v4612_v12, %v9308_v16  ;;  %v4654_v15 = vcombine.low %v4629_v22, %v4637_v54  ;;  %v4662_v53 = vcombine.low %v4645_v48, %v4653_v33  ;;  %v4703_v26 = vrot.slane %v7023_v47, %v9297_v51  ;;  %v10680_v12 = vld [vmem:[#allocation34_spill] sm:$0xff] }
 0x72b   : > { %v4704_v6 = vcombine.low %v4679_v7, %v4687_v62  ;;  %v4763_v41 = vrot.slane %v4758_v31, %v9147_v20  ;;  %v4767_v18 = vrot.slane %v4758_v31, %v9144_v19  ;;  %v5128_v5 = vrot.slane %v5123_v0, %v9147_v20  ;;  %v10681_v7 = vld [vmem:[#allocation37_spill] sm:$0xff] }
 0x72c   : > { %v4621_v29 = vcombine.high %v4611_v1, %v4619_v11  ;;  %v4620_v37 = vcombine.low %v4611_v1, %v4619_v11  ;;  %v4661_v38 = vrot.slane %v4654_v15, %v9308_v16  ;;  %v4669_v42 = vrot.slane %v4662_v53, %v9308_v16  ;;  %v10682_v53 = vld [vmem:[#allocation38_spill] sm:$0xff] }
 0x72d   : > { %v4712_v21 = vcombine.low %v4695_v27, %v4703_v26  ;;  %v4711_v8 = vrot.slane %v4704_v6, %v9308_v16  ;;  %v5132_v35 = vrot.slane %v5123_v0, %v9144_v19 }
 0x72e   : > { %v4723_v50 = vpack.c.bf16 %v4621_v29, %v4571_v30  ;;  %v4722_v24 = vpack.c.bf16 %v4620_v37, %v4570_v25  ;;  %v4671_v57 = vcombine.high %v4661_v38, %v4669_v42  ;;  %v4670_v58 = vcombine.low %v4661_v38, %v4669_v42 }
 0x72f   : > { %v4719_v40 = vrot.slane %v4712_v21, %v9308_v16 }
 0x730   : > { %4962 = vmatprep.mubr.bf16.mxu0 %v4723_v50 }
 0x731   : > { %4963 = vmatmul.mubr.bf16.vlgmr.msra.gmra.mxu0 %v4722_v24  ;;  %v4721_v61 = vcombine.high %v4711_v8, %v4719_v40  ;;  %v4720_v51 = vcombine.low %v4711_v8, %v4719_v40 }
 0x733   : > { %v4725_v43 = vpack.c.bf16 %v4721_v61, %v4671_v57  ;;  %v4724_v52 = vpack.c.bf16 %v4720_v51, %v4670_v58 }
 0x735   : > { %4972 = vmatprep.mubr.bf16.mxu0 %v4725_v43 }
 0x739   : > { %4973 = vmatmul.mubr.bf16.gmra.mxu0 %v4724_v52 }
 0x7f1   : > { %v4964_v45 = vpop.f32.mrf.mxu0 }
 0x7f2   : > { %v4965_v44 = vadd.f32 %v4964_v45, %v4763_v41 }
 0x7f3   : > { %v4966_v46 = vpop.f32.mrf.mxu0 }
 0x7f4   : > { %v4983_v16 = vadd.f32 %v4965_v44, %v8879_v3  ;;  %v4967_v36 = vadd.f32 %v4966_v46, %v4767_v18 }
 0x7f5   : > { %v4968_v2 = vpop.f32.mrf.mxu0 }
 0x7f6   : > { %v5135_v49 = vadd.f32 %v5128_v5, %v4983_v16  ;;  %v4984_v60 = vadd.f32 %v4967_v36, %v8881_v4  ;;  %v4969_v32 = vadd.f32 %v4968_v2, %v4763_v41 }
 0x7f7   : > { %v4970_v17 = vpop.f32.mrf.mxu0 }
 0x7f8   : > { %5143 = vst [vmem:[#allocation3] sm:$0xff] %v5135_v49  ;;  %v5136_v59 = vadd.f32 %v5132_v35, %v4984_v60  ;;  %v4985_v55 = vadd.f32 %v4969_v32, %v10677_v14  ;;  %v4971_v56 = vadd.f32 %v4970_v17, %v4767_v18  ;;  %v4993_v10 = vadd.f32 %v4984_v60, %v4983_v16 }
 0x7f9   : > { %v4974_v63 = vpop.f32.mrf.mxu0 }
 0x7fa   : > { %5144 = vst [vmem:[#allocation3 + $0x38] sm:$0xff] %v5136_v59  ;;  %v5137_v28 = vadd.f32 %v5128_v5, %v4985_v55  ;;  %v4986_v3 = vadd.f32 %v4971_v56, %v10678_v13  ;;  %v4975_v9 = vadd.f32 %v4974_v63, %v4763_v41  ;;  %4994 = vadd.xlane.f32.xlu0 %v4993_v10 }
 0x7fb   : > { %v4976_v47 = vpop.f32.mrf.mxu0 }
 0x7fc   : > { %5145 = vst [vmem:[#allocation3 + $0x8] sm:$0xff] %v5137_v28  ;;  %v5138_v34 = vadd.f32 %v5132_v35, %v4986_v3  ;;  %v4987_v4 = vadd.f32 %v4975_v9, %v10679_v23  ;;  %v4977_v30 = vadd.f32 %v4976_v47, %v4767_v18  ;;  %v4996_v39 = vadd.f32 %v4986_v3, %v4985_v55  ;;  %v4991_v9 = vld [vmem:[#allocation10] sm:$0x3] }
 0x7fd   : > { %v4978_v25 = vpop.f32.mrf.mxu0  ;;  %v5061_v23 = vrot.slane %v4991_v9, %v9147_v20 }
 0x7fe   : > { %5146 = vst [vmem:[#allocation3 + $0x18] sm:$0xff] %v5138_v34  ;;  %v5139_v22 = vadd.f32 %v5128_v5, %v4987_v4  ;;  %v4988_v54 = vadd.f32 %v4977_v30, %v10680_v12  ;;  %v4979_v48 = vadd.f32 %v4978_v25, %v4763_v41  ;;  %4997 = vadd.xlane.f32.xlu1 %v4996_v39  ;;  %v4992_v34 = vld [vmem:[#allocation12] sm:$0x3] }
 0x7ff   : > { %v4980_v33 = vpop.f32.mrf.mxu0  ;;  %v5080_v39 = vrot.slane %v4992_v34, %v9147_v20  ;;  %v5084_v25 = vrot.slane %v4992_v34, %v9144_v19 }
 0x800   : > { %5147 = vst [vmem:[#allocation3 + $0x20] sm:$0xff] %v5139_v22  ;;  %v5140_v1 = vadd.f32 %v5132_v35, %v4988_v54  ;;  %v4989_v62 = vadd.f32 %v4979_v48, %v10681_v7  ;;  %v4981_v27 = vadd.f32 %v4980_v33, %v4767_v18  ;;  %v4999_v11 = vadd.f32 %v4988_v54, %v4987_v4 }
 0x802   : > { %5148 = vst [vmem:[#allocation3 + $0x10] sm:$0xff] %v5140_v1  ;;  %v5141_v15 = vadd.f32 %v5128_v5, %v4989_v62  ;;  %v4990_v26 = vadd.f32 %v4981_v27, %v10682_v53  ;;  %5000 = vadd.xlane.f32.xlu0 %v4999_v11 }
 0x804   : > { %5149 = vst [vmem:[#allocation3 + $0x30] sm:$0xff] %v5141_v15  ;;  %v5142_v6 = vadd.f32 %v5132_v35, %v4990_v26  ;;  %v5002_v29 = vadd.f32 %v4990_v26, %v4989_v62 }
 0x806   : > { %5150 = vst [vmem:[#allocation3 + $0x28] sm:$0xff] %v5142_v6  ;;  %5003 = vadd.xlane.f32.xlu1 %v5002_v29 }
 0x883   : > { %v4995_v37 = vpop.xlane.xlu0 %4994 }
 0x884   : > { %v5005_v38 = vmul.f32 0.00390625, %v4995_v37 }
 0x886   : > { %v5009_v42 = vsub.f32 %v4983_v16, %v5005_v38  ;;  %v5010_v21 = vsub.f32 %v4984_v60, %v5005_v38 }
 0x887   : > { %v4998_v50 = vpop.xlane.xlu1 %4997 }
 0x888   : > { %v5006_v24 = vmul.f32 0.00390625, %v4998_v50  ;;  %v5017_v57 = vmul.f32 %v5009_v42, %v5009_v42  ;;  %v5018_v58 = vmul.f32 %v5010_v21, %v5010_v21 }
 0x88a   : > { %v5011_v8 = vsub.f32 %v4985_v55, %v5006_v24  ;;  %v5012_v40 = vsub.f32 %v4986_v3, %v5006_v24  ;;  %v5025_v61 = vadd.f32 %v5018_v58, %v5017_v57 }
 0x88b   : > { %v5001_v51 = vpop.xlane.xlu0 %5000 }
 0x88c   : > { %v5007_v43 = vmul.f32 0.00390625, %v5001_v51  ;;  %5026 = vadd.xlane.f32.xlu0 %v5025_v61  ;;  %v5019_v52 = vmul.f32 %v5011_v8, %v5011_v8  ;;  %v5020_v31 = vmul.f32 %v5012_v40, %v5012_v40 }
 0x88e   : > { %v5013_v41 = vsub.f32 %v4987_v4, %v5007_v43  ;;  %v5014_v0 = vsub.f32 %v4988_v54, %v5007_v43  ;;  %v5028_v18 = vadd.f32 %v5020_v31, %v5019_v52  ;;  %v5065_v4 = vrot.slane %v4991_v9, %v9144_v19 }
 0x88f   : > { %v5004_v45 = vpop.xlane.xlu1 %5003 }
 0x890   : > { %v5008_v44 = vmul.f32 0.00390625, %v5004_v45  ;;  %5029 = vadd.xlane.f32.xlu1 %v5028_v18  ;;  %v5021_v5 = vmul.f32 %v5013_v41, %v5013_v41  ;;  %v5022_v46 = vmul.f32 %v5014_v0, %v5014_v0 }
 0x892   : > { %v5015_v16 = vsub.f32 %v4989_v62, %v5008_v44  ;;  %v5016_v36 = vsub.f32 %v4990_v26, %v5008_v44  ;;  %v5031_v35 = vadd.f32 %v5022_v46, %v5021_v5 }
 0x894   : > { %5032 = vadd.xlane.f32.xlu0 %v5031_v35  ;;  %v5023_v2 = vmul.f32 %v5015_v16, %v5015_v16  ;;  %v5024_v49 = vmul.f32 %v5016_v36, %v5016_v36 }
 0x896   : > { %v5034_v60 = vadd.f32 %v5024_v49, %v5023_v2 }
 0x898   : > { %5035 = vadd.xlane.f32.xlu1 %v5034_v60 }
 0x915   : > { %v5027_v32 = vpop.xlane.xlu0 %5026 }
 0x916   : > { %v5037_v17 = vmul.f32 0.00390625, %v5027_v32 }
 0x918   : > { %v5041_v59 = vadd.f32 1e-12, %v5037_v17 }
 0x919   : > { %v5030_v14 = vpop.xlane.xlu1 %5029 }
 0x91a   : > { %7803 = vrsqrt.f32 %v5041_v59  ;;  %v5038_v55 = vmul.f32 0.00390625, %v5030_v14 }
 0x91c   : > { %v5042_v56 = vadd.f32 1e-12, %v5038_v55 }
 0x91d   : > { %v5033_v10 = vpop.xlane.xlu0 %5032 }
 0x91e   : > { %7805 = vrsqrt.f32 %v5042_v56  ;;  %v5039_v63 = vmul.f32 0.00390625, %v5033_v10 }
 0x920   : > { %v5043_v28 = vadd.f32 1e-12, %v5039_v63 }
 0x921   : > { %v5036_v13 = vpop.xlane.xlu1 %5035 }
 0x922   : > { %7807 = vrsqrt.f32 %v5043_v28  ;;  %v5040_v3 = vmul.f32 0.00390625, %v5036_v13 }
 0x924   : > { %v5044_v47 = vadd.f32 1e-12, %v5040_v3 }
 0x926   : > { %7809 = vrsqrt.f32 %v5044_v47 }
 0x927   : > { %v7804_v30 = vpop.eup %7803 }
 0x928   : > { %v5049_v22 = vmul.f32 %v7804_v30, %v5009_v42  ;;  %v5050_v12 = vmul.f32 %v7804_v30, %v5010_v21 }
 0x92a   : > { %v5068_v54 = vmul.f32 %v5061_v23, %v5049_v22  ;;  %v5069_v48 = vmul.f32 %v5065_v4, %v5050_v12 }
 0x92b   : > { %v7806_v33 = vpop.eup %7805 }
 0x92c   : > { %v5087_v1 = vadd.f32 %v5080_v39, %v5068_v54  ;;  %v5088_v7 = vadd.f32 %v5084_v25, %v5069_v48  ;;  %v5051_v62 = vmul.f32 %v7806_v33, %v5011_v8  ;;  %v5052_v27 = vmul.f32 %v7806_v33, %v5012_v40 }
 0x92e   : > { %v7217_v11 = vpack.c.bf16 %v5088_v7, %v5087_v1  ;;  %v5070_v15 = vmul.f32 %v5061_v23, %v5051_v62  ;;  %v5071_v53 = vmul.f32 %v5065_v4, %v5052_v27 }
 0x92f   : > { %v7808_v26 = vpop.eup %7807 }
 0x930   : > { %5119 = vst [vmem:[#allocation2 + $0x10] sm:$0xff] %v7217_v11  ;;  %v5089_v6 = vadd.f32 %v5080_v39, %v5070_v15  ;;  %v5090_v29 = vadd.f32 %v5084_v25, %v5071_v53  ;;  %v5053_v37 = vmul.f32 %v7808_v26, %v5013_v41  ;;  %v5054_v20 = vmul.f32 %v7808_v26, %v5014_v0 }
 0x932   : > { %v7218_v38 = vpack.c.bf16 %v5090_v29, %v5089_v6  ;;  %v5072_v19 = vmul.f32 %v5061_v23, %v5053_v37  ;;  %v5073_v42 = vmul.f32 %v5065_v4, %v5054_v20 }
 0x933   : > { %v7810_v21 = vpop.eup %7809 }
 0x934   : > { %5120 = vst [vmem:[#allocation2] sm:$0xff] %v7218_v38  ;;  %v5091_v50 = vadd.f32 %v5080_v39, %v5072_v19  ;;  %v5092_v24 = vadd.f32 %v5084_v25, %v5073_v42  ;;  %v5055_v57 = vmul.f32 %v7810_v21, %v5015_v16  ;;  %v5056_v58 = vmul.f32 %v7810_v21, %v5016_v36 }
 0x936   : > { %v7219_v8 = vpack.c.bf16 %v5092_v24, %v5091_v50  ;;  %v5074_v40 = vmul.f32 %v5061_v23, %v5055_v57  ;;  %v5075_v61 = vmul.f32 %v5065_v4, %v5056_v58 }
 0x938   : > { %5121 = vst [vmem:[#allocation2 + $0x18] sm:$0xff] %v7219_v8  ;;  %v5093_v51 = vadd.f32 %v5080_v39, %v5074_v40  ;;  %v5094_v43 = vadd.f32 %v5084_v25, %v5075_v61 }
 0x93a   : > { %v7220_v52 = vpack.c.bf16 %v5094_v43, %v5093_v51 }
 0x93c   : > { %5122 = vst [vmem:[#allocation2 + $0x8] sm:$0xff] %v7220_v52 }
 0x93d PF: > { %v7811_v31 = vld [vmem:[%s8844_s28 + $0xe4] ss:$16 sps:$4 sm:$0xff]   ;;  %v7813_v41 = vld [vmem:[%s8844_s28 + $0xec] ss:$16 sps:$4 sm:$0xff]   ;;  %v7815_v0 = vld [vmem:[%s8844_s28 + $0xe0] ss:$16 sps:$4 sm:$0xff]  }
 0x93e   : > { %5581 = vmatprep.subr.bf16.mxu0 %v7811_v31  ;;  %v7816_v18 = vld [vmem:[%s8844_s28 + $0xe8] ss:$16 sps:$4 sm:$0xff]   ;;  %5634 = vmatprep.subr.bf16.mxu1 %v7813_v41  ;;  %v7817_v45 = vld [vmem:[%s8844_s28 + $0xc4] ss:$16 sps:$4 sm:$0xff]   ;;  %v7819_v44 = vld [vmem:[%s8844_s28 + $0xcc] ss:$16 sps:$4 sm:$0xff]  }
 0x93f   : > { %5582 = vmatpush1.bf16.msra.mxu0 %v7815_v0  ;;  %5635 = vmatpush1.bf16.msra.mxu1 %v7816_v18  ;;  %v7821_v5 = vld [vmem:[%s8844_s28 + $0xc0] ss:$16 sps:$4 sm:$0xff]   ;;  %v7822_v46 = vld [vmem:[%s8844_s28 + $0xc8] ss:$16 sps:$4 sm:$0xff]   ;;  %v7823_v16 = vld [vmem:[%s8844_s28 + $0xa4] ss:$16 sps:$4 sm:$0xff]  }
 0x940   : > { %5583 = vmatprep.subr.bf16.mxu0 %v7817_v45  ;;  %5636 = vmatprep.subr.bf16.mxu1 %v7819_v44  ;;  %v7825_v36 = vld [vmem:[%s8844_s28 + $0xac] ss:$16 sps:$4 sm:$0xff]   ;;  %v7827_v35 = vld [vmem:[%s8844_s28 + $0xa0] ss:$16 sps:$4 sm:$0xff]   ;;  %v7828_v2 = vld [vmem:[%s8844_s28 + $0xa8] ss:$16 sps:$4 sm:$0xff]  }
 0x941   : > { %v7829_v49 = vld [vmem:[%s8844_s28 + $0x84] ss:$16 sps:$4 sm:$0xff]   ;;  %v7831_v60 = vld [vmem:[%s8844_s28 + $0x8c] ss:$16 sps:$4 sm:$0xff]   ;;  %v7833_v32 = vld [vmem:[%s8844_s28 + $0x80] ss:$16 sps:$4 sm:$0xff]  }
 0x942   : > { %v7834_v17 = vld [vmem:[%s8844_s28 + $0x88] ss:$16 sps:$4 sm:$0xff]   ;;  %v7835_v59 = vld [vmem:[%s8844_s28 + $0x64] ss:$16 sps:$4 sm:$0xff]   ;;  %v7837_v14 = vld [vmem:[%s8844_s28 + $0x6c] ss:$16 sps:$4 sm:$0xff]  }
 0x943   : > { %5584 = vmatpush1.bf16.msra.mxu0 %v7821_v5  ;;  %5637 = vmatpush1.bf16.msra.mxu1 %v7822_v46  ;;  %v7839_v55 = vld [vmem:[%s8844_s28 + $0x60] ss:$16 sps:$4 sm:$0xff]   ;;  %v7840_v56 = vld [vmem:[%s8844_s28 + $0x68] ss:$16 sps:$4 sm:$0xff]   ;;  %v7841_v10 = vld [vmem:[%s8844_s28 + $0x44] ss:$16 sps:$4 sm:$0xff]  }
 0x944   : > { %5585 = vmatprep.subr.bf16.mxu0 %v7823_v16  ;;  %5638 = vmatprep.subr.bf16.mxu1 %v7825_v36  ;;  %v7843_v63 = vld [vmem:[%s8844_s28 + $0x4c] ss:$16 sps:$4 sm:$0xff]   ;;  %v7845_v28 = vld [vmem:[%s8844_s28 + $0x40] ss:$16 sps:$4 sm:$0xff]   ;;  %v7846_v13 = vld [vmem:[%s8844_s28 + $0x48] ss:$16 sps:$4 sm:$0xff]  }
 0x945   : > { %v7847_v3 = vld [vmem:[%s8844_s28 + $0x24] ss:$16 sps:$4 sm:$0xff]   ;;  %v7849_v9 = vld [vmem:[%s8844_s28 + $0x2c] ss:$16 sps:$4 sm:$0xff]   ;;  %v7851_v47 = vld [vmem:[%s8844_s28 + $0x20] ss:$16 sps:$4 sm:$0xff]  }
 0x946   : > { %v7852_v34 = vld [vmem:[%s8844_s28 + $0x28] ss:$16 sps:$4 sm:$0xff]   ;;  %v7853_v23 = vld [vmem:[%s8844_s28 + $0x4] ss:$16 sps:$4 sm:$0xff]   ;;  %v7855_v4 = vld [vmem:[%s8844_s28 + $0xc] ss:$16 sps:$4 sm:$0xff]  }
 0x947   : > { %5586 = vmatpush1.bf16.msra.mxu0 %v7827_v35  ;;  %5639 = vmatpush1.bf16.msra.mxu1 %v7828_v2  ;;  %v7857_v30 = vld [vmem:[%s8844_s28] ss:$16 sps:$4 sm:$0xff]   ;;  %v7858_v39 = vld [vmem:[%s8844_s28 + $0x8] ss:$16 sps:$4 sm:$0xff]   ;;  %v7859_v25 = vld [vmem:[%s8844_s28 + $0x1e4] ss:$16 sps:$4 sm:$0xff]  }
 0x948   : > { %5587 = vmatprep.subr.bf16.mxu0 %v7829_v49  ;;  %5640 = vmatprep.subr.bf16.mxu1 %v7831_v60  ;;  %v7861_v22 = vld [vmem:[%s8844_s28 + $0x1ec] ss:$16 sps:$4 sm:$0xff]   ;;  %v7863_v12 = vld [vmem:[%s8844_s28 + $0x1e0] ss:$16 sps:$4 sm:$0xff]   ;;  %v7864_v54 = vld [vmem:[%s8844_s28 + $0x1e8] ss:$16 sps:$4 sm:$0xff]  }
 0x949   : > { %v7865_v48 = vld [vmem:[%s8844_s28 + $0x1c4] ss:$16 sps:$4 sm:$0xff]   ;;  %v7867_v33 = vld [vmem:[%s8844_s28 + $0x1cc] ss:$16 sps:$4 sm:$0xff]   ;;  %v7869_v1 = vld [vmem:[%s8844_s28 + $0x1c0] ss:$16 sps:$4 sm:$0xff]  }
 0x94a   : > { %v7870_v7 = vld [vmem:[%s8844_s28 + $0x1c8] ss:$16 sps:$4 sm:$0xff]   ;;  %v7871_v62 = vld [vmem:[%s8844_s28 + $0x1a4] ss:$16 sps:$4 sm:$0xff]   ;;  %v7873_v27 = vld [vmem:[%s8844_s28 + $0x1ac] ss:$16 sps:$4 sm:$0xff]  }
 0x94b   : > { %5588 = vmatpush1.bf16.msra.mxu0 %v7833_v32  ;;  %5641 = vmatpush1.bf16.msra.mxu1 %v7834_v17  ;;  %v7875_v11 = vld [vmem:[%s8844_s28 + $0x1a0] ss:$16 sps:$4 sm:$0xff]   ;;  %v7876_v15 = vld [vmem:[%s8844_s28 + $0x1a8] ss:$16 sps:$4 sm:$0xff]   ;;  %v7877_v53 = vld [vmem:[%s8844_s28 + $0x184] ss:$16 sps:$4 sm:$0xff]  }
 0x94c   : > { %5589 = vmatprep.subr.bf16.mxu0 %v7835_v59  ;;  %5642 = vmatprep.subr.bf16.mxu1 %v7837_v14  ;;  %v7879_v26 = vld [vmem:[%s8844_s28 + $0x18c] ss:$16 sps:$4 sm:$0xff]   ;;  %v7881_v6 = vld [vmem:[%s8844_s28 + $0x180] ss:$16 sps:$4 sm:$0xff]   ;;  %v7882_v29 = vld [vmem:[%s8844_s28 + $0x188] ss:$16 sps:$4 sm:$0xff]  }
 0x94d   : > { %v7909_v37 = vld [vmem:[#allocation2 + $0x14] ss:$-16 sps:$4 sm:$0xff]   ;;  %v7883_v20 = vld [vmem:[%s8844_s28 + $0x164] ss:$16 sps:$4 sm:$0xff]   ;;  %v7887_v19 = vld [vmem:[%s8844_s28 + $0x160] ss:$16 sps:$4 sm:$0xff]  }
 0x94e   : > { %v7885_v38 = vld [vmem:[%s8844_s28 + $0x16c] ss:$16 sps:$4 sm:$0xff]   ;;  %5613 = vmatprep.mubr.bf16.mxu0 %v7909_v37  ;;  %5666 = vmatprep.mubr.bf16.mxu1 %v7909_v37  ;;  %v7888_v42 = vld [vmem:[%s8844_s28 + $0x168] ss:$16 sps:$4 sm:$0xff]   ;;  %v7889_v21 = vld [vmem:[%s8844_s28 + $0x144] ss:$16 sps:$4 sm:$0xff]  }
 0x94f   : > { %5590 = vmatpush1.bf16.msra.mxu0 %v7839_v55  ;;  %5643 = vmatpush1.bf16.msra.mxu1 %v7840_v56  ;;  %v7891_v50 = vld [vmem:[%s8844_s28 + $0x14c] ss:$16 sps:$4 sm:$0xff]   ;;  %v7893_v24 = vld [vmem:[%s8844_s28 + $0x140] ss:$16 sps:$4 sm:$0xff]   ;;  %v7894_v57 = vld [vmem:[%s8844_s28 + $0x148] ss:$16 sps:$4 sm:$0xff]  }
 0x950   : > { %5591 = vmatprep.subr.bf16.mxu0 %v7841_v10  ;;  %5644 = vmatprep.subr.bf16.mxu1 %v7843_v63  ;;  %v7895_v58 = vld [vmem:[%s8844_s28 + $0x124] ss:$16 sps:$4 sm:$0xff]   ;;  %v7897_v8 = vld [vmem:[%s8844_s28 + $0x12c] ss:$16 sps:$4 sm:$0xff]   ;;  %v7899_v40 = vld [vmem:[%s8844_s28 + $0x120] ss:$16 sps:$4 sm:$0xff]  }
 0x951   : > { %v7900_v61 = vld [vmem:[%s8844_s28 + $0x128] ss:$16 sps:$4 sm:$0xff]   ;;  %v7901_v51 = vld [vmem:[%s8844_s28 + $0x104] ss:$16 sps:$4 sm:$0xff]   ;;  %v7903_v43 = vld [vmem:[%s8844_s28 + $0x10c] ss:$16 sps:$4 sm:$0xff]  }
 0x952   : > { %v7905_v52 = vld [vmem:[%s8844_s28 + $0x100] ss:$16 sps:$4 sm:$0xff]   ;;  %v7906_v31 = vld [vmem:[%s8844_s28 + $0x108] ss:$16 sps:$4 sm:$0xff]   ;;  %p7192_p1 = scmp.ne.s32.totalorder %s8413_s21, 1 }
 0x953   : > { %5592 = vmatpush1.bf16.msra.mxu0 %v7845_v28  ;;  %5645 = vmatpush1.bf16.msra.mxu1 %v7846_v13  ;;  %v7907_v41 = vld [vmem:[#allocation2 + $0x10] ss:$-16 sps:$4 sm:$0xff]   ;;  %v7915_v0 = vld [vmem:[%s8867_s0 + $0x74] ss:$8 sps:$4 sm:$0xff]   ;;  %v7921_v46 = vld [vmem:[%s8867_s0 + $0x64] ss:$8 sps:$4 sm:$0xff]  }
 0x954   : > { %5593 = vmatprep.subr.bf16.mxu0 %v7847_v3  ;;  %5646 = vmatprep.subr.bf16.mxu1 %v7849_v9  ;;  %v7918_v18 = vld [vmem:[%s8867_s0 + $0x174] ss:$8 sps:$4 sm:$0xff]   ;;  %v7913_v44 = vld [vmem:[%s8867_s0 + $0x70] ss:$8 sps:$4 sm:$0xff]   ;;  %v7924_v16 = vld [vmem:[%s8867_s0 + $0x164] ss:$8 sps:$4 sm:$0xff]  }
 0x955   : > { %v7910_v45 = vld [vmem:[#allocation2 + $0x1c] ss:$-16 sps:$4 sm:$0xff]   ;;  %v7916_v5 = vld [vmem:[%s8867_s0 + $0x170] ss:$8 sps:$4 sm:$0xff]   ;;  %v7919_v36 = vld [vmem:[%s8867_s0 + $0x60] ss:$8 sps:$4 sm:$0xff]  }
 0x956   : > { %v7922_v35 = vld [vmem:[%s8867_s0 + $0x160] ss:$8 sps:$4 sm:$0xff]   ;;  %v7927_v2 = vld [vmem:[%s8867_s0 + $0x54] ss:$8 sps:$4 sm:$0xff]   ;;  %v7925_v32 = vld [vmem:[%s8867_s0 + $0x50] ss:$8 sps:$4 sm:$0xff]  }
 0x957   : > { %5594 = vmatpush1.bf16.msra.mxu0 %v7851_v47  ;;  %5647 = vmatpush1.bf16.msra.mxu1 %v7852_v34  ;;  %v7930_v49 = vld [vmem:[%s8867_s0 + $0x154] ss:$8 sps:$4 sm:$0xff]   ;;  %v7912_v60 = vld [vmem:[#allocation2 + $0x18] ss:$-16 sps:$4 sm:$0xff]   ;;  %v7933_v59 = vld [vmem:[%s8867_s0 + $0x44] ss:$8 sps:$4 sm:$0xff]  }
 0x958   : > { %5595 = vmatprep.subr.bf16.mxu0 %v7853_v23  ;;  %5648 = vmatprep.subr.bf16.mxu1 %v7855_v4  ;;  %v7928_v17 = vld [vmem:[%s8867_s0 + $0x150] ss:$8 sps:$4 sm:$0xff]   ;;  %v7936_v14 = vld [vmem:[%s8867_s0 + $0x144] ss:$8 sps:$4 sm:$0xff]   ;;  %v7931_v55 = vld [vmem:[%s8867_s0 + $0x40] ss:$8 sps:$4 sm:$0xff]  }
 0x959   : > { %v7934_v56 = vld [vmem:[%s8867_s0 + $0x140] ss:$8 sps:$4 sm:$0xff]   ;;  %v7939_v10 = vld [vmem:[%s8867_s0 + $0x34] ss:$8 sps:$4 sm:$0xff]   ;;  %v7937_v28 = vld [vmem:[%s8867_s0 + $0x30] ss:$8 sps:$4 sm:$0xff]  }
 0x95a   : > { %v7942_v63 = vld [vmem:[%s8867_s0 + $0x134] ss:$8 sps:$4 sm:$0xff]   ;;  %v7940_v13 = vld [vmem:[%s8867_s0 + $0x130] ss:$8 sps:$4 sm:$0xff]   ;;  %v7945_v3 = vld [vmem:[%s8867_s0 + $0x24] ss:$8 sps:$4 sm:$0xff]  }
 0x95b   : > { %5596 = vmatpush1.bf16.msra.mxu0 %v7857_v30  ;;  %5649 = vmatpush1.bf16.msra.mxu1 %v7858_v39  ;;  %v7948_v9 = vld [vmem:[%s8867_s0 + $0x124] ss:$8 sps:$4 sm:$0xff]   ;;  %v7943_v47 = vld [vmem:[%s8867_s0 + $0x20] ss:$8 sps:$4 sm:$0xff]   ;;  %v7951_v23 = vld [vmem:[%s8867_s0 + $0x14] ss:$8 sps:$4 sm:$0xff]  }
 0x95c   : > { %5597 = vmatprep.subr.bf16.mxu0 %v7859_v25  ;;  %5650 = vmatprep.subr.bf16.mxu1 %v7861_v22  ;;  %v7946_v34 = vld [vmem:[%s8867_s0 + $0x120] ss:$8 sps:$4 sm:$0xff]   ;;  %v7954_v4 = vld [vmem:[%s8867_s0 + $0x114] ss:$8 sps:$4 sm:$0xff]   ;;  %v7949_v30 = vld [vmem:[%s8867_s0 + $0x10] ss:$8 sps:$4 sm:$0xff]  }
 0x95d   : > { %v7952_v39 = vld [vmem:[%s8867_s0 + $0x110] ss:$8 sps:$4 sm:$0xff]   ;;  %v7957_v25 = vld [vmem:[%s8867_s0 + $0x4] ss:$8 sps:$4 sm:$0xff]   ;;  %s10683_s28 = sld [smem:[#allocation47_spill]] (!%p7192_p1) }
 0x95e   : > { %v7960_v22 = vld [vmem:[%s8867_s0 + $0x104] ss:$8 sps:$4 sm:$0xff]  }
 0x95f   : > { %5598 = vmatpush2.bf16.msra.mxu0 %v7863_v12  ;;  %5651 = vmatpush2.bf16.msra.mxu1 %v7864_v54  ;;  %v7955_v12 = vld [vmem:[%s8867_s0] ss:$8 sps:$4 sm:$0xff]   ;;  %v7981_v37 = vld [vmem:[%s8867_s0 + $0xc4] ss:$8 sps:$4 sm:$0xff]  }
 0x960   : > { %5599 = vmatprep.subr.bf16.mxu0 %v7865_v48  ;;  %5652 = vmatprep.subr.bf16.mxu1 %v7867_v33  ;;  %v7958_v54 = vld [vmem:[%s8867_s0 + $0x100] ss:$8 sps:$4 sm:$0xff]   ;;  %v7963_v48 = vld [vmem:[%s8867_s0 + $0xf4] ss:$8 sps:$4 sm:$0xff]  }
 0x961   : > { %v7966_v33 = vld [vmem:[%s8867_s0 + $0x1f4] ss:$8 sps:$4 sm:$0xff]  }
 0x963   : > { %5600 = vmatpush2.bf16.msra.mxu0 %v7869_v1  ;;  %5653 = vmatpush2.bf16.msra.mxu1 %v7870_v7  ;;  %v7961_v1 = vld [vmem:[%s8867_s0 + $0xf0] ss:$8 sps:$4 sm:$0xff]  }
 0x964   : > { %5601 = vmatprep.subr.bf16.mxu0 %v7871_v62  ;;  %5654 = vmatprep.subr.bf16.mxu1 %v7873_v27  ;;  %v7964_v7 = vld [vmem:[%s8867_s0 + $0x1f0] ss:$8 sps:$4 sm:$0xff]   ;;  %v7969_v62 = vld [vmem:[%s8867_s0 + $0xe4] ss:$8 sps:$4 sm:$0xff]  }
 0x965   : > { %v7972_v27 = vld [vmem:[%s8867_s0 + $0x1e4] ss:$8 sps:$4 sm:$0xff]  }
 0x967   : > { %5602 = vmatpush2.bf16.msra.mxu0 %v7875_v11  ;;  %5655 = vmatpush2.bf16.msra.mxu1 %v7876_v15  ;;  %v7967_v11 = vld [vmem:[%s8867_s0 + $0xe0] ss:$8 sps:$4 sm:$0xff]  }
 0x968   : > { %5603 = vmatprep.subr.bf16.mxu0 %v7877_v53  ;;  %5656 = vmatprep.subr.bf16.mxu1 %v7879_v26  ;;  %v7970_v15 = vld [vmem:[%s8867_s0 + $0x1e0] ss:$8 sps:$4 sm:$0xff]   ;;  %v7975_v53 = vld [vmem:[%s8867_s0 + $0xd4] ss:$8 sps:$4 sm:$0xff]  }
 0x969   : > { %v7978_v26 = vld [vmem:[%s8867_s0 + $0x1d4] ss:$8 sps:$4 sm:$0xff]  }
 0x96b   : > { %5604 = vmatpush2.bf16.msra.mxu0 %v7881_v6  ;;  %5657 = vmatpush2.bf16.msra.mxu1 %v7882_v29  ;;  %v7973_v6 = vld [vmem:[%s8867_s0 + $0xd0] ss:$8 sps:$4 sm:$0xff]  }
 0x96c   : > { %5605 = vmatprep.subr.bf16.mxu0 %v7883_v20  ;;  %5658 = vmatprep.subr.bf16.mxu1 %v7885_v38  ;;  %v7976_v29 = vld [vmem:[%s8867_s0 + $0x1d0] ss:$8 sps:$4 sm:$0xff]   ;;  %v7984_v20 = vld [vmem:[%s8867_s0 + $0x1c4] ss:$8 sps:$4 sm:$0xff]   ;;  %v7979_v38 = vld [vmem:[%s8867_s0 + $0xc0] ss:$8 sps:$4 sm:$0xff]  }
 0x96f   : > { %5606 = vmatpush2.bf16.msra.mxu0 %v7887_v19  ;;  %5659 = vmatpush2.bf16.msra.mxu1 %v7888_v42  ;;  %v7982_v19 = vld [vmem:[%s8867_s0 + $0x1c0] ss:$8 sps:$4 sm:$0xff]   ;;  %v7987_v42 = vld [vmem:[%s8867_s0 + $0xb4] ss:$8 sps:$4 sm:$0xff]  }
 0x970   : > { %5607 = vmatprep.subr.bf16.mxu0 %v7889_v21  ;;  %5660 = vmatprep.subr.bf16.mxu1 %v7891_v50  ;;  %v7990_v21 = vld [vmem:[%s8867_s0 + $0x1b4] ss:$8 sps:$4 sm:$0xff]   ;;  %v7985_v50 = vld [vmem:[%s8867_s0 + $0xb0] ss:$8 sps:$4 sm:$0xff]  }
 0x973   : > { %5608 = vmatpush2.bf16.msra.mxu0 %v7893_v24  ;;  %5661 = vmatpush2.bf16.msra.mxu1 %v7894_v57  ;;  %v7988_v24 = vld [vmem:[%s8867_s0 + $0x1b0] ss:$8 sps:$4 sm:$0xff]   ;;  %v7993_v57 = vld [vmem:[%s8867_s0 + $0xa4] ss:$8 sps:$4 sm:$0xff]  }
 0x974   : > { %5609 = vmatprep.subr.bf16.mxu0 %v7895_v58  ;;  %5662 = vmatprep.subr.bf16.mxu1 %v7897_v8  ;;  %v7996_v58 = vld [vmem:[%s8867_s0 + $0x1a4] ss:$8 sps:$4 sm:$0xff]   ;;  %v7991_v8 = vld [vmem:[%s8867_s0 + $0xa0] ss:$8 sps:$4 sm:$0xff]  }
 0x977   : > { %5610 = vmatpush2.bf16.msra.mxu0 %v7899_v40  ;;  %5663 = vmatpush2.bf16.msra.mxu1 %v7900_v61  ;;  %v7994_v40 = vld [vmem:[%s8867_s0 + $0x1a0] ss:$8 sps:$4 sm:$0xff]   ;;  %v7999_v61 = vld [vmem:[%s8867_s0 + $0x94] ss:$8 sps:$4 sm:$0xff]  }
 0x978   : > { %5611 = vmatprep.subr.bf16.mxu0 %v7901_v51  ;;  %5664 = vmatprep.subr.bf16.mxu1 %v7903_v43  ;;  %v7997_v51 = vld [vmem:[%s8867_s0 + $0x90] ss:$8 sps:$4 sm:$0xff]  }
 0x979   : > { %v8000_v43 = vld [vmem:[%s8867_s0 + $0x190] ss:$8 sps:$4 sm:$0xff]  }
 0x97b   : > { %5612 = vmatpush2.bf16.msra.mxu0 %v7905_v52  ;;  %5665 = vmatpush2.bf16.msra.mxu1 %v7906_v31  ;;  %v8002_v52 = vld [vmem:[%s8867_s0 + $0x194] ss:$8 sps:$4 sm:$0xff]   ;;  %v8005_v31 = vld [vmem:[%s8867_s0 + $0x84] ss:$8 sps:$4 sm:$0xff]  }
 0x97c   : > { %6231 = vmatprep.subr.bf16.mxu0 %v7915_v0  ;;  %6284 = vmatprep.subr.bf16.mxu1 %v7918_v18  ;;  %v8003_v0 = vld [vmem:[%s8867_s0 + $0x80] ss:$8 sps:$4 sm:$0xff]  }
 0x97d   : > { %v8006_v18 = vld [vmem:[%s8867_s0 + $0x180] ss:$8 sps:$4 sm:$0xff]  }
 0x97e   : > { %5614 = vmatmul.mubr.bf16.vlgmr.msra.gmra.mxu0 %v7907_v41  ;;  %5667 = vmatmul.mubr.bf16.vlgmr.msra.gmra.mxu1 %v7907_v41  ;;  %v8008_v41 = vld [vmem:[%s8867_s0 + $0x184] ss:$8 sps:$4 sm:$0xff]  }
 0x97f   : > { %5623 = vmatprep.mubr.bf16.mxu0 %v7910_v45  ;;  %5676 = vmatprep.mubr.bf16.mxu1 %v7910_v45  ;;  %v5221_v45 = vlaneseq }
 0x980   : > { %6232 = vmatpush1.bf16.msra.mxu0 %v7913_v44  ;;  %6285 = vmatpush1.bf16.msra.mxu1 %v7916_v5 }
 0x981   : > { %6233 = vmatprep.subr.bf16.mxu0 %v7921_v46  ;;  %6286 = vmatprep.subr.bf16.mxu1 %v7924_v16  ;;  %v5222_v44 = vshrl.u32 %v5221_v45, 7  ;;  %v5219_v16 = vld [vmem:[%s857_s24] sm:$0xf] }
 0x983   : > { %v10349_v5 = vsub.s32 0, %v5222_v44  ;;  %v5231_v46 = vsub.s32 2, %v5222_v44 }
 0x984   : > { %6234 = vmatpush1.bf16.msra.mxu0 %v7919_v36  ;;  %6287 = vmatpush1.bf16.msra.mxu1 %v7922_v35  ;;  %v10353_v36 = vsub.s32 1, %v5222_v44  ;;  %v5235_v35 = vsub.s32 3, %v5222_v44 }
 0x985   : > { %6235 = vmatprep.subr.bf16.mxu0 %v7927_v2  ;;  %6288 = vmatprep.subr.bf16.mxu1 %v7930_v49  ;;  %v10356_v2 = vrot.slane %v5219_v16, %v10349_v5  ;;  %v10358_v49 = vrot.slane %v5219_v16, %v5231_v46 }
 0x986   : > { %5624 = vmatmul.mubr.bf16.gmra.mxu0 %v7912_v60  ;;  %5677 = vmatmul.mubr.bf16.gmra.mxu1 %v7912_v60  ;;  %v10361_v60 = vrot.slane %v5219_v16, %v10353_v36 }
 0x988   : > { %6236 = vmatpush1.bf16.msra.mxu0 %v7925_v32  ;;  %6289 = vmatpush1.bf16.msra.mxu1 %v7928_v17  ;;  %v10363_v32 = vrot.slane %v5219_v16, %v5235_v35 }
 0x989   : > { %6237 = vmatprep.subr.bf16.mxu0 %v7933_v59  ;;  %6290 = vmatprep.subr.bf16.mxu1 %v7936_v14 }
 0x98c   : > { %6238 = vmatpush1.bf16.msra.mxu0 %v7931_v55  ;;  %6291 = vmatpush1.bf16.msra.mxu1 %v7934_v56 }
 0x98d   : > { %6239 = vmatprep.subr.bf16.mxu0 %v7939_v10  ;;  %6292 = vmatprep.subr.bf16.mxu1 %v7942_v63 }
 0x990   : > { %6240 = vmatpush1.bf16.msra.mxu0 %v7937_v28  ;;  %6293 = vmatpush1.bf16.msra.mxu1 %v7940_v13 }
 0x991   : > { %6241 = vmatprep.subr.bf16.mxu0 %v7945_v3  ;;  %6294 = vmatprep.subr.bf16.mxu1 %v7948_v9 }
 0x994   : > { %6242 = vmatpush1.bf16.msra.mxu0 %v7943_v47  ;;  %6295 = vmatpush1.bf16.msra.mxu1 %v7946_v34 }
 0x995   : > { %6243 = vmatprep.subr.bf16.mxu0 %v7951_v23  ;;  %6296 = vmatprep.subr.bf16.mxu1 %v7954_v4 }
 0x998   : > { %6244 = vmatpush1.bf16.msra.mxu0 %v7949_v30  ;;  %6297 = vmatpush1.bf16.msra.mxu1 %v7952_v39 }
 0x999   : > { %6245 = vmatprep.subr.bf16.mxu0 %v7957_v25  ;;  %6298 = vmatprep.subr.bf16.mxu1 %v7960_v22 }
 0x99c   : > { %6246 = vmatpush1.bf16.msra.mxu0 %v7955_v12  ;;  %6299 = vmatpush1.bf16.msra.mxu1 %v7958_v54 }
 0x99d   : > { %6247 = vmatprep.subr.bf16.mxu0 %v7963_v48  ;;  %6300 = vmatprep.subr.bf16.mxu1 %v7966_v33 }
 0x9a0   : > { %6248 = vmatpush2.bf16.msra.mxu0 %v7961_v1  ;;  %6301 = vmatpush2.bf16.msra.mxu1 %v7964_v7 }
 0x9a1   : > { %6249 = vmatprep.subr.bf16.mxu0 %v7969_v62  ;;  %6302 = vmatprep.subr.bf16.mxu1 %v7972_v27 }
 0x9a4   : > { %6250 = vmatpush2.bf16.msra.mxu0 %v7967_v11  ;;  %6303 = vmatpush2.bf16.msra.mxu1 %v7970_v15 }
 0x9a5   : > { %6251 = vmatprep.subr.bf16.mxu0 %v7975_v53  ;;  %6304 = vmatprep.subr.bf16.mxu1 %v7978_v26 }
 0x9a8   : > { %6252 = vmatpush2.bf16.msra.mxu0 %v7973_v6  ;;  %6305 = vmatpush2.bf16.msra.mxu1 %v7976_v29 }
 0x9a9   : > { %6253 = vmatprep.subr.bf16.mxu0 %v7981_v37  ;;  %6306 = vmatprep.subr.bf16.mxu1 %v7984_v20 }
 0x9ac   : > { %6254 = vmatpush2.bf16.msra.mxu0 %v7979_v38  ;;  %6307 = vmatpush2.bf16.msra.mxu1 %v7982_v19 }
 0x9ad   : > { %6255 = vmatprep.subr.bf16.mxu0 %v7987_v42  ;;  %6308 = vmatprep.subr.bf16.mxu1 %v7990_v21 }
 0x9b0   : > { %6256 = vmatpush2.bf16.msra.mxu0 %v7985_v50  ;;  %6309 = vmatpush2.bf16.msra.mxu1 %v7988_v24 }
 0x9b1   : > { %6257 = vmatprep.subr.bf16.mxu0 %v7993_v57  ;;  %6310 = vmatprep.subr.bf16.mxu1 %v7996_v58 }
 0x9b4   : > { %6258 = vmatpush2.bf16.msra.mxu0 %v7991_v8  ;;  %6311 = vmatpush2.bf16.msra.mxu1 %v7994_v40 }
 0x9b5   : > { %6259 = vmatprep.subr.bf16.mxu0 %v7999_v61  ;;  %6312 = vmatprep.subr.bf16.mxu1 %v8002_v52 }
 0x9b8   : > { %6260 = vmatpush2.bf16.msra.mxu0 %v7997_v51  ;;  %6313 = vmatpush2.bf16.msra.mxu1 %v8000_v43 }
 0x9b9   : > { %6261 = vmatprep.subr.bf16.mxu0 %v8005_v31  ;;  %6314 = vmatprep.subr.bf16.mxu1 %v8008_v41 }
 0x9bc   : > { %6262 = vmatpush2.bf16.msra.mxu0 %v8003_v0  ;;  %6315 = vmatpush2.bf16.msra.mxu1 %v8006_v18 }
 0xa3e   : > { %v5615_v17 = vpop.f32.mrf.mxu0  ;;  %v5668_v59 = vpop.f32.mrf.mxu1 }
 0xa3f   : > { %v10366_v14 = vadd.f32 %v5615_v17, %v10356_v2  ;;  %v10369_v55 = vadd.f32 %v5668_v59, %v10358_v49 }
 0xa40   : > { %v5617_v56 = vpop.f32.mrf.mxu0  ;;  %v5670_v10 = vpop.f32.mrf.mxu1 }
 0xa41   : > { %v5687_v63 = vmul.f32 %v10366_v14, %v10366_v14  ;;  %v5689_v28 = vmul.f32 %v10369_v55, %v10369_v55  ;;  %v10376_v13 = vadd.f32 %v5617_v56, %v10361_v60  ;;  %v10379_v3 = vadd.f32 %v5670_v10, %v10363_v32 }
 0xa42   : > { %v5619_v9 = vpop.f32.mrf.mxu0  ;;  %v5672_v47 = vpop.f32.mrf.mxu1 }
 0xa43   : > { %v5703_v34 = vmul.f32 %v5687_v63, %v10366_v14  ;;  %v5705_v23 = vmul.f32 %v5689_v28, %v10369_v55  ;;  %v5688_v4 = vmul.f32 %v10376_v13, %v10376_v13  ;;  %v5690_v30 = vmul.f32 %v10379_v3, %v10379_v3 }
 0xa44   : > { %v10388_v39 = vadd.f32 %v5619_v9, %v10356_v2  ;;  %v10391_v25 = vadd.f32 %v5672_v47, %v10358_v49  ;;  %v5621_v22 = vpop.f32.mrf.mxu0  ;;  %v5674_v12 = vpop.f32.mrf.mxu1 }
 0xa45   : > { %v5719_v54 = vmul.f32 0.044715, %v5703_v34  ;;  %v5721_v48 = vmul.f32 0.044715, %v5705_v23  ;;  %v5704_v33 = vmul.f32 %v5688_v4, %v10376_v13  ;;  %v5706_v1 = vmul.f32 %v5690_v30, %v10379_v3 }
 0xa46   : > { %v5691_v7 = vmul.f32 %v10388_v39, %v10388_v39  ;;  %v5693_v62 = vmul.f32 %v10391_v25, %v10391_v25  ;;  %v10400_v27 = vadd.f32 %v5621_v22, %v10361_v60  ;;  %v10403_v11 = vadd.f32 %v5674_v12, %v10363_v32  ;;  %v5625_v15 = vpop.f32.mrf.mxu0  ;;  %v5678_v53 = vpop.f32.mrf.mxu1 }
 0xa47   : > { %v5735_v26 = vadd.f32 %v5719_v54, %v10366_v14  ;;  %v5737_v6 = vadd.f32 %v5721_v48, %v10369_v55  ;;  %v5720_v29 = vmul.f32 0.044715, %v5704_v33  ;;  %v5722_v37 = vmul.f32 0.044715, %v5706_v1 }
 0xa48   : > { %v5707_v20 = vmul.f32 %v5691_v7, %v10388_v39  ;;  %v5709_v38 = vmul.f32 %v5693_v62, %v10391_v25  ;;  %v5692_v19 = vmul.f32 %v10400_v27, %v10400_v27  ;;  %v5694_v42 = vmul.f32 %v10403_v11, %v10403_v11  ;;  %v5627_v58 = vpop.f32.mrf.mxu0  ;;  %v5680_v43 = vpop.f32.mrf.mxu1 }
 0xa49   : > { %v5751_v21 = vmul.f32 0.7978846, %v5735_v26  ;;  %v5753_v50 = vmul.f32 0.7978846, %v5737_v6  ;;  %v5736_v24 = vadd.f32 %v5720_v29, %v10376_v13  ;;  %v5738_v57 = vadd.f32 %v5722_v37, %v10379_v3 }
 0xa4a   : > { %v5723_v8 = vmul.f32 0.044715, %v5707_v20  ;;  %v5725_v40 = vmul.f32 0.044715, %v5709_v38  ;;  %v5708_v61 = vmul.f32 %v5692_v19, %v10400_v27  ;;  %v5710_v51 = vmul.f32 %v5694_v42, %v10403_v11  ;;  %v5629_v35 = vpop.f32.mrf.mxu0  ;;  %v5682_v10 = vpop.f32.mrf.mxu1 }
 0xa4b   : > { %8009 = vtanh.f32 %v5751_v21  ;;  %v5752_v52 = vmul.f32 0.7978846, %v5736_v24  ;;  %v5754_v31 = vmul.f32 0.7978846, %v5738_v57  ;;  %v10418_v41 = vadd.f32 %v5625_v15, %v10356_v2 }
 0xa4c   : > { %8011 = vtanh.f32 %v5753_v50  ;;  %v5739_v0 = vadd.f32 %v5723_v8, %v10388_v39  ;;  %v5741_v18 = vadd.f32 %v5725_v40, %v10391_v25  ;;  %v5724_v45 = vmul.f32 0.044715, %v5708_v61  ;;  %v5631_v54 = vpop.f32.mrf.mxu0  ;;  %v5684_v7 = vpop.f32.mrf.mxu1 }
 0xa4d   : > { %8013 = vtanh.f32 %v5752_v52  ;;  %v5726_v44 = vmul.f32 0.044715, %v5710_v51  ;;  %v5695_v46 = vmul.f32 %v10418_v41, %v10418_v41  ;;  %v10425_v16 = vadd.f32 %v5678_v53, %v10358_v49 }
 0xa4e   : > { %8015 = vtanh.f32 %v5754_v31  ;;  %v5755_v17 = vmul.f32 0.7978846, %v5739_v0  ;;  %v5757_v59 = vmul.f32 0.7978846, %v5741_v18  ;;  %v5740_v56 = vadd.f32 %v5724_v45, %v10400_v27 }
 0xa4f   : > { %v5742_v63 = vadd.f32 %v5726_v44, %v10403_v11  ;;  %v5711_v28 = vmul.f32 %v5695_v46, %v10418_v41  ;;  %v5697_v9 = vmul.f32 %v10425_v16, %v10425_v16  ;;  %v10433_v47 = vadd.f32 %v5627_v58, %v10361_v60 }
 0xa50   : > { %8017 = vtanh.f32 %v5755_v17  ;;  %v5756_v34 = vmul.f32 0.7978846, %v5740_v56  ;;  %v10436_v23 = vadd.f32 %v5680_v43, %v10363_v32  ;;  %v10439_v4 = vadd.f32 %v5629_v35, %v10356_v2 }
 0xa51   : > { %8019 = vtanh.f32 %v5757_v59  ;;  %v5758_v30 = vmul.f32 0.7978846, %v5742_v63  ;;  %v5727_v22 = vmul.f32 0.044715, %v5711_v28  ;;  %v5713_v12 = vmul.f32 %v5697_v9, %v10425_v16 }
 0xa52   : > { %8021 = vtanh.f32 %v5756_v34  ;;  %v5696_v48 = vmul.f32 %v10433_v47, %v10433_v47  ;;  %v5698_v33 = vmul.f32 %v10436_v23, %v10436_v23  ;;  %v5699_v1 = vmul.f32 %v10439_v4, %v10439_v4 }
 0xa53   : > { %8023 = vtanh.f32 %v5758_v30  ;;  %v5743_v2 = vadd.f32 %v5727_v22, %v10418_v41  ;;  %v5729_v62 = vmul.f32 0.044715, %v5713_v12  ;;  %v10450_v15 = vadd.f32 %v5682_v10, %v10358_v49 }
 0xa54   : > { %v5712_v53 = vmul.f32 %v5696_v48, %v10433_v47  ;;  %v5714_v26 = vmul.f32 %v5698_v33, %v10436_v23  ;;  %v5715_v6 = vmul.f32 %v5699_v1, %v10439_v4  ;;  %v10456_v29 = vadd.f32 %v5631_v54, %v10361_v60 }
 0xa55   : > { %v5759_v37 = vmul.f32 0.7978846, %v5743_v2  ;;  %v5745_v20 = vadd.f32 %v5729_v62, %v10425_v16  ;;  %v5701_v38 = vmul.f32 %v10450_v15, %v10450_v15  ;;  %v10462_v19 = vadd.f32 %v5684_v7, %v10363_v32 }
 0xa56   : > { %v5728_v49 = vmul.f32 0.044715, %v5712_v53  ;;  %v5730_v42 = vmul.f32 0.044715, %v5714_v26  ;;  %v5731_v21 = vmul.f32 0.044715, %v5715_v6  ;;  %v5700_v50 = vmul.f32 %v10456_v29, %v10456_v29 }
 0xa57   : > { %v5761_v24 = vmul.f32 0.7978846, %v5745_v20  ;;  %v5717_v57 = vmul.f32 %v5701_v38, %v10450_v15  ;;  %v5702_v60 = vmul.f32 %v10462_v19, %v10462_v19  ;;  %8025 = vtanh.f32 %v5759_v37 }
 0xa58   : > { %v8010_v58 = vpop.eup %8009  ;;  %v5744_v8 = vadd.f32 %v5728_v49, %v10433_v47  ;;  %v5746_v40 = vadd.f32 %v5730_v42, %v10436_v23  ;;  %v5747_v32 = vadd.f32 %v5731_v21, %v10439_v4  ;;  %v5716_v61 = vmul.f32 %v5700_v50, %v10456_v29 }
 0xa59   : > { %v8012_v51 = vpop.eup %8011  ;;  %v5733_v43 = vmul.f32 0.044715, %v5717_v57  ;;  %v5718_v52 = vmul.f32 %v5702_v60, %v10462_v19  ;;  %8027 = vtanh.f32 %v5761_v24  ;;  %v5783_v10 = vadd.f32 1.0, %v8010_v58 }
 0xa5a   : > { %v8014_v31 = vpop.eup %8013  ;;  %v5760_v0 = vmul.f32 0.7978846, %v5744_v8  ;;  %v5762_v18 = vmul.f32 0.7978846, %v5746_v40  ;;  %v5763_v44 = vmul.f32 0.7978846, %v5747_v32 }
 0xa5b   : > { %v8016_v45 = vpop.eup %8015  ;;  %v5749_v46 = vadd.f32 %v5733_v43, %v10450_v15  ;;  %v5732_v35 = vmul.f32 0.044715, %v5716_v61  ;;  %v5734_v17 = vmul.f32 0.044715, %v5718_v52  ;;  %v5784_v59 = vadd.f32 1.0, %v8014_v31 }
 0xa5c   : > { %8029 = vtanh.f32 %v5760_v0  ;;  %v5785_v34 = vadd.f32 1.0, %v8012_v51  ;;  %v5786_v53 = vadd.f32 1.0, %v8016_v45  ;;  %v5799_v26 = vmul.f32 0.5, %v5783_v10 }
 0xa5d   : > { %v8018_v56 = vpop.eup %8017  ;;  %8031 = vtanh.f32 %v5762_v18  ;;  %v5765_v63 = vmul.f32 0.7978846, %v5749_v46  ;;  %v5748_v28 = vadd.f32 %v5732_v35, %v10456_v29  ;;  %v5750_v22 = vadd.f32 %v5734_v17, %v10462_v19 }
 0xa5e   : > { %v8020_v9 = vpop.eup %8019  ;;  %v5787_v30 = vadd.f32 1.0, %v8018_v56  ;;  %8033 = vtanh.f32 %v5763_v44  ;;  %v5800_v33 = vmul.f32 0.5, %v5784_v59  ;;  %v5801_v20 = vmul.f32 0.5, %v5785_v34 }
 0xa5f   : > { %v8022_v12 = vpop.eup %8021  ;;  %v5789_v54 = vadd.f32 1.0, %v8020_v9  ;;  %8035 = vtanh.f32 %v5765_v63  ;;  %v5764_v48 = vmul.f32 0.7978846, %v5748_v28  ;;  %v5766_v2 = vmul.f32 0.7978846, %v5750_v22 }
 0xa60   : > { %v8024_v1 = vpop.eup %8023  ;;  %v5803_v7 = vmul.f32 0.5, %v5787_v30  ;;  %v5788_v62 = vadd.f32 1.0, %v8022_v12  ;;  %v5802_v49 = vmul.f32 0.5, %v5786_v53  ;;  %v5816_v24 = vmul.f32 %v5800_v33, %v10376_v13 }
 0xa61   : > { %v5805_v6 = vmul.f32 0.5, %v5789_v54  ;;  %8037 = vtanh.f32 %v5764_v48  ;;  %v5790_v37 = vadd.f32 1.0, %v8024_v1  ;;  %v5815_v60 = vmul.f32 %v5799_v26, %v10366_v14 }
 0xa62   : > { %8039 = vtanh.f32 %v5766_v2  ;;  %v5804_v38 = vmul.f32 0.5, %v5788_v62  ;;  %v5819_v42 = vmul.f32 %v5803_v7, %v10388_v39  ;;  %v5818_v58 = vmul.f32 %v5802_v49, %v10379_v3 }
 0xa63   : > { %v5806_v21 = vmul.f32 0.5, %v5790_v37  ;;  %v5821_v50 = vmul.f32 %v5805_v6, %v10391_v25  ;;  %v5817_v40 = vmul.f32 %v5801_v20, %v10369_v55 }
 0xa64   : > { %v5820_v57 = vmul.f32 %v5804_v38, %v10400_v27  ;;  %v8026_v61 = vpop.eup %8025  ;;  %v5839_v51 = vpack.c.bf16 %v5819_v42, %v5815_v60  ;;  %v5833_v38 = vld [vmem:[#allocation3 + $0x8] sm:$0xff] }
 0xa65   : > { %v5822_v8 = vmul.f32 %v5806_v21, %v10403_v11  ;;  %v5841_v52 = vpack.c.bf16 %v5821_v50, %v5817_v40  ;;  %v5791_v0 = vadd.f32 1.0, %v8026_v61  ;;  %v5834_v50 = vld [vmem:[#allocation3 + $0x18] sm:$0xff]  ;;  %v5835_v40 = vld [vmem:[#allocation3 + $0x20] sm:$0xff] }
 0xa66   : > { %v5840_v32 = vpack.c.bf16 %v5820_v57, %v5816_v24  ;;  %v8028_v39 = vpop.eup %8027 }
 0xa67   : > { %v5842_v43 = vpack.c.bf16 %v5822_v8, %v5818_v58  ;;  %v5793_v18 = vadd.f32 1.0, %v8028_v39  ;;  %v5807_v63 = vmul.f32 0.5, %v5791_v0 }
 0xa68   : > { %6263 = vmatprep.mubr.bf16.mxu0 %v5840_v32 }
 0xa69   : > { %v8030_v25 = vpop.eup %8029  ;;  %6316 = vmatprep.mubr.bf16.mxu1 %v5842_v43  ;;  %6264 = vmatmul.mubr.bf16.vlgmr.msra.gmra.mxu0 %v5839_v51  ;;  %v5809_v9 = vmul.f32 0.5, %v5793_v18  ;;  %v5823_v1 = vmul.f32 %v5807_v63, %v10418_v41  ;;  %v5836_v43 = vld [vmem:[#allocation3 + $0x10] sm:$0xff] }
 0xa6a   : > { %v8032_v13 = vpop.eup %8031  ;;  %6317 = vmatmul.mubr.bf16.vlgmr.msra.gmra.mxu1 %v5841_v52  ;;  %v5792_v14 = vadd.f32 1.0, %v8030_v25 }
 0xa6b   : > { %v8034_v27 = vpop.eup %8033  ;;  %v5794_v3 = vadd.f32 1.0, %v8032_v13  ;;  %v5825_v2 = vmul.f32 %v5809_v9, %v10425_v16 }
 0xa6c   : > { %v8036_v31 = vpop.eup %8035  ;;  %v5795_v11 = vadd.f32 1.0, %v8034_v27  ;;  %v5808_v17 = vmul.f32 0.5, %v5792_v14  ;;  %v5837_v27 = vld [vmem:[#allocation3 + $0x30] sm:$0xff] }
 0xa6d   : > { %v5797_v55 = vadd.f32 1.0, %v8036_v31  ;;  %v5810_v10 = vmul.f32 0.5, %v5794_v3 }
 0xa6e   : > { %v8038_v45 = vpop.eup %8037  ;;  %v5811_v44 = vmul.f32 0.5, %v5795_v11  ;;  %v5824_v22 = vmul.f32 %v5808_v17, %v10433_v47  ;;  %v5838_v11 = vld [vmem:[#allocation3 + $0x28] sm:$0xff] }
 0xa6f   : > { %v8040_v46 = vpop.eup %8039  ;;  %v5796_v35 = vadd.f32 1.0, %v8038_v45  ;;  %v5813_v59 = vmul.f32 0.5, %v5797_v55  ;;  %v5826_v48 = vmul.f32 %v5810_v10, %v10436_v23  ;;  %v5832_v23 = vld [vmem:[#allocation3 + $0x38] sm:$0xff] }
 0xa70   : > { %v5798_v56 = vadd.f32 1.0, %v8040_v46  ;;  %v5827_v30 = vmul.f32 %v5811_v44, %v10439_v4  ;;  %v5831_v4 = vld [vmem:[#allocation3] sm:$0xff] }
 0xa71   : > { %v5812_v28 = vmul.f32 0.5, %v5796_v35  ;;  %v5829_v54 = vmul.f32 %v5813_v59, %v10450_v15 }
 0xa72   : > { %v5814_v34 = vmul.f32 0.5, %v5798_v56  ;;  %v5843_v53 = vpack.c.bf16 %v5827_v30, %v5823_v1 }
 0xa73   : > { %v5828_v12 = vmul.f32 %v5812_v28, %v10456_v29  ;;  %v5845_v26 = vpack.c.bf16 %v5829_v54, %v5825_v2 }
 0xa74   : > { %v5830_v33 = vmul.f32 %v5814_v34, %v10462_v19 }
 0xa75   : > { %v5844_v7 = vpack.c.bf16 %v5828_v12, %v5824_v22 }
 0xa76   : > { %v5846_v62 = vpack.c.bf16 %v5830_v33, %v5826_v48 }
 0xa77   : > { %6273 = vmatprep.mubr.bf16.mxu0 %v5844_v7 }
 0xa78   : > { %6326 = vmatprep.mubr.bf16.mxu1 %v5846_v62  ;;  %6274 = vmatmul.mubr.bf16.gmra.mxu0 %v5843_v53 }
 0xa79   : > { %6327 = vmatmul.mubr.bf16.gmra.mxu1 %v5845_v26 }
 0xb29   : > { %v6265_v47 = vpop.f32.mrf.mxu0 }
 0xb2a   : > { %v6318_v29 = vpop.f32.mrf.mxu1 }
 0xb2b   : > { %v6319_v15 = vadd.f32 %v6318_v29, %v6265_v47  ;;  %v6267_v6 = vpop.f32.mrf.mxu0 }
 0xb2c   : > { %v6320_v37 = vpop.f32.mrf.mxu1 }
 0xb2d   : > { %v6337_v19 = vadd.f32 %v6319_v15, %v5831_v4  ;;  %v6321_v20 = vadd.f32 %v6320_v37, %v6267_v6  ;;  %v6269_v41 = vpop.f32.mrf.mxu0 }
 0xb2e   : > { %v6322_v49 = vpop.f32.mrf.mxu1 }
 0xb2f   : > { %6345 = vst [vmem:[#allocation3] sm:$0xff] %v6337_v19  ;;  %v6338_v16 = vadd.f32 %v6321_v20, %v5832_v23  ;;  %v6323_v42 = vadd.f32 %v6322_v49, %v6269_v41  ;;  %v6271_v21 = vpop.f32.mrf.mxu0 }
 0xb30   : > { %v6324_v24 = vpop.f32.mrf.mxu1 }
 0xb31   : > { %6346 = vst [vmem:[#allocation3 + $0x38] sm:$0xff] %v6338_v16  ;;  %v6339_v57 = vadd.f32 %v6323_v42, %v5833_v38  ;;  %v6325_v60 = vadd.f32 %v6324_v24, %v6271_v21 }
 0xb33   : > { %6347 = vst [vmem:[#allocation3 + $0x8] sm:$0xff] %v6339_v57  ;;  %v6340_v58 = vadd.f32 %v6325_v60, %v5834_v50 }
 0xb35   : > { %6348 = vst [vmem:[#allocation3 + $0x18] sm:$0xff] %v6340_v58 }
 0xb38   : > { %v6275_v8 = vpop.f32.mrf.mxu0 }
 0xb39   : > { %v6328_v32 = vpop.f32.mrf.mxu1 }
 0xb3a   : > { %v6329_v61 = vadd.f32 %v6328_v32, %v6275_v8  ;;  %v6277_v51 = vpop.f32.mrf.mxu0 }
 0xb3b   : > { %v6330_v39 = vpop.f32.mrf.mxu1 }
 0xb3c   : > { %v6341_v52 = vadd.f32 %v6329_v61, %v5835_v40  ;;  %v6331_v25 = vadd.f32 %v6330_v39, %v6277_v51  ;;  %v6279_v13 = vpop.f32.mrf.mxu0 }
 0xb3d   : > { %v6332_v14 = vpop.f32.mrf.mxu1 }
 0xb3e   : > { %6349 = vst [vmem:[#allocation3 + $0x20] sm:$0xff] %v6341_v52  ;;  %v6342_v31 = vadd.f32 %v6331_v25, %v5836_v43  ;;  %v6333_v3 = vadd.f32 %v6332_v14, %v6279_v13  ;;  %v6281_v0 = vpop.f32.mrf.mxu0 }
 0xb3f   : > { %v6334_v18 = vpop.f32.mrf.mxu1 }
 0xb40   : > { %6350 = vst [vmem:[#allocation3 + $0x10] sm:$0xff] %v6342_v31  ;;  %v6343_v55 = vadd.f32 %v6333_v3, %v5837_v27  ;;  %v6335_v45 = vadd.f32 %v6334_v18, %v6281_v0  ;;  %6356 = sbr.rel (%p7192_p1) target bundleno = 3422 (0xd5e), region = 167 }
 0xb42   : > { %6351 = vst [vmem:[#allocation3 + $0x30] sm:$0xff] %v6343_v55  ;;  %v6344_v44 = vadd.f32 %v6335_v45, %v5838_v11 }
 0xb44   : > { %6352 = vst [vmem:[#allocation3 + $0x28] sm:$0xff] %v6344_v44 }
 0xb45   : > { %v6357_v46 = vld [vmem:[#allocation3] sm:$0xff]  ;;  %v6358_v35 = vld [vmem:[#allocation3 + $0x38] sm:$0xff]  ;;  %vm6368_vm3 = vcmask 1041409   ;;  %vm6374_vm4 = vcmask 1041408   ;;  %v8043_v41 = vld [vmem:[%s10683_s28 + $0x70] sm:$0xff]  }
 0xb46   : > { %v6359_v17 = vld [vmem:[#allocation3 + $0x20] sm:$0xff]  ;;  %v8041_v19 = vld [vmem:[%s10683_s28 + $0x78] sm:$0xff]   ;;  %v8044_v38 = vld [vmem:[%s10683_s28 + $0x30] sm:$0xff]  }
 0xb47   : > { %v6360_v59 = vld [vmem:[#allocation3 + $0x10] sm:$0xff]  ;;  %v6367_v56 = vrot.slane %v6359_v17, 7  ;;  %v8042_v20 = vld [vmem:[%s10683_s28 + $0x38] sm:$0xff]   ;;  %7253 = vmatprep.subr.bf16.mxu0 %v8041_v19  ;;  %v8045_v49 = vld [vmem:[%s10683_s28 + $0x68] sm:$0xff]  }
 0xb48   : > { %v6370_v10 = vrot.slane %v6360_v59, 7  ;;  %7254 = vmatpush3.bf16.msra.mxu0 %v8042_v20  ;;  %v8046_v16 = vld [vmem:[%s10683_s28 + $0x28] sm:$0xff]   ;;  %v8047_v42 = vld [vmem:[%s10683_s28 + $0x60] sm:$0xff]   ;;  %v8049_v50 = vld [vmem:[%s10683_s28 + $0x58] sm:$0xff]  }
 0xb49   : > { %v6369_v63 = vsel %vm6368_vm3, %v6367_v56, %v6357_v46  ;;  %7255 = vmatprep.subr.bf16.mxu0 %v8043_v41  ;;  %v8048_v21 = vld [vmem:[%s10683_s28 + $0x20] sm:$0xff]   ;;  %v8050_v24 = vld [vmem:[%s10683_s28 + $0x18] sm:$0xff]   ;;  %v8051_v57 = vld [vmem:[%s10683_s28 + $0x50] sm:$0xff]  }
 0xb4a   : > { %v6371_v28 = vsel %vm6368_vm3, %v6370_v10, %v6358_v35  ;;  %v6375_v9 = vsel %vm6374_vm4, %v6369_v63, 0.0  ;;  %v8052_v60 = vld [vmem:[%s10683_s28 + $0x10] sm:$0xff]   ;;  %v8053_v58 = vld [vmem:[%s10683_s28 + $0x48] sm:$0xff]   ;;  %v8055_v40 = vld [vmem:[%s10683_s28 + $0x40] sm:$0xff]  }
 0xb4b   : > { %v6376_v34 = vsel %vm6374_vm4, %v6371_v28, 0.0  ;;  %v8054_v8 = vld [vmem:[%s10683_s28 + $0x8] sm:$0xff]   ;;  %v8056_v32 = vld [vmem:[%s10683_s28] sm:$0xff]   ;;  %v6361_v39 = vld [vmem:[#allocation17] sm:$0x3] }
 0xb4c   : > { %v6377_v30 = vadd.f32 %v6376_v34, %v6375_v9  ;;  %7256 = vmatpush3.bf16.msra.mxu0 %v8044_v38  ;;  %v6362_v52 = vld [vmem:[#allocation19] sm:$0x3]  ;;  %v6424_v25 = vrot.slane %v6361_v39, %v10349_v5  ;;  %v6428_v13 = vrot.slane %v6361_v39, %v10353_v36 }
 0xb4d   : > { %7257 = vmatprep.subr.bf16.mxu0 %v8045_v49  ;;  %v6439_v14 = vrot.slane %v6362_v52, %v10349_v5  ;;  %v6443_v0 = vrot.slane %v6362_v52, %v10353_v36 }
 0xb4e   : > { %6378 = vadd.xlane.f32.xlu0 %v6377_v30 }
 0xb50   : > { %7258 = vmatpush3.bf16.msra.mxu0 %v8046_v16 }
 0xb51   : > { %7259 = vmatprep.subr.bf16.mxu0 %v8047_v42 }
 0xb54   : > { %7260 = vmatpush3.bf16.msra.mxu0 %v8048_v21 }
 0xb55   : > { %7261 = vmatprep.subr.bf16.mxu0 %v8049_v50 }
 0xb58   : > { %7262 = vmatpush3.bf16.msra.mxu0 %v8050_v24 }
 0xb59   : > { %7263 = vmatprep.subr.bf16.mxu0 %v8051_v57 }
 0xb5c   : > { %7264 = vmatpush3.bf16.msra.mxu0 %v8052_v60 }
 0xb5d   : > { %7265 = vmatprep.subr.bf16.mxu0 %v8053_v58 }
 0xb60   : > { %7266 = vmatpush3.bf16.msra.mxu0 %v8054_v8 }
 0xb61   : > { %7267 = vmatprep.subr.bf16.mxu0 %v8055_v40 }
 0xb64   : > { %7268 = vmatpush3.bf16.msra.mxu0 %v8056_v32 }
 0xbd7   : > { %v6379_v22 = vpop.xlane.xlu0 %6378 }
 0xbd8   : > { %v6381_v12 = vmul.f32 0.00390625, %v6379_v22 }
 0xbda   : > { %v6383_v54 = vrot.slane %v6381_v12, 1  ;;  %v6386_v48 = vsub.f32 %v6357_v46, %v6381_v12  ;;  %v6387_v33 = vsub.f32 %v6358_v35, %v6381_v12 }
 0xbdc   : > { %v6388_v1 = vsub.f32 %v6359_v17, %v6383_v54  ;;  %v6389_v7 = vsub.f32 %v6360_v59, %v6383_v54  ;;  %v6390_v53 = vmul.f32 %v6386_v48, %v6386_v48  ;;  %v6391_v26 = vmul.f32 %v6387_v33, %v6387_v33 }
 0xbde   : > { %v6392_v2 = vmul.f32 %v6388_v1, %v6388_v1  ;;  %v6393_v62 = vmul.f32 %v6389_v7, %v6389_v7 }
 0xbe0   : > { %v6398_v47 = vrot.slane %v6392_v2, 7  ;;  %v6400_v4 = vrot.slane %v6393_v62, 7 }
 0xbe2   : > { %v6399_v29 = vsel %vm6368_vm3, %v6398_v47, %v6390_v53  ;;  %v6401_v15 = vsel %vm6368_vm3, %v6400_v4, %v6391_v26  ;;  %v7193_v4 = vld [vmem:[#allocation20] ss:$0 sm:$0xff] }
 0xbe3   : > { %v6404_v6 = vsel %vm6374_vm4, %v6399_v29, 0.0  ;;  %v6405_v23 = vsel %vm6374_vm4, %v6401_v15, 0.0 }
 0xbe4   : > { %v6406_v37 = vadd.f32 %v6405_v23, %v6404_v6 }
 0xbe6   : > { %6407 = vadd.xlane.f32.xlu0 %v6406_v37 }
 0xc6f   : > { %v6408_v61 = vpop.xlane.xlu0 %6407 }
 0xc70   : > { %v6409_v51 = vmul.f32 0.00390625, %v6408_v61 }
 0xc72   : > { %v6410_v43 = vadd.f32 1e-12, %v6409_v51 }
 0xc74   : > { %8057 = vrsqrt.f32 %v6410_v43 }
 0xc81   : > { %v8058_v27 = vpop.eup %8057 }
 0xc82   : > { %v6413_v31 = vrot.slane %v8058_v27, 1  ;;  %v6417_v3 = vmul.f32 %v8058_v27, %v6387_v33  ;;  %v6416_v11 = vmul.f32 %v8058_v27, %v6386_v48 }
 0xc84   : > { %v6419_v18 = vmul.f32 %v6413_v31, %v6389_v7  ;;  %v6432_v55 = vmul.f32 %v6428_v13, %v6417_v3  ;;  %v6418_v45 = vmul.f32 %v6413_v31, %v6388_v1  ;;  %v6431_v44 = vmul.f32 %v6424_v25, %v6416_v11 }
 0xc86   : > { %v6434_v46 = vmul.f32 %v6428_v13, %v6419_v18  ;;  %v6447_v35 = vadd.f32 %v6443_v0, %v6432_v55  ;;  %v6433_v17 = vmul.f32 %v6424_v25, %v6418_v45  ;;  %v6446_v59 = vadd.f32 %v6439_v14, %v6431_v44 }
 0xc88   : > { %v6449_v56 = vadd.f32 %v6443_v0, %v6434_v46  ;;  %v6451_v10 = vmax.f32 %v6447_v35, 0.0  ;;  %v6448_v63 = vadd.f32 %v6439_v14, %v6433_v17  ;;  %v6450_v28 = vmax.f32 %v6446_v59, 0.0 }
 0xc8a   : > { %v6453_v9 = vmax.f32 %v6449_v56, 0.0  ;;  %v6452_v34 = vmax.f32 %v6448_v63, 0.0  ;;  %v6455_v5 = vpack.c.bf16 %v6451_v10, %v6451_v10  ;;  %v6454_v22 = vpack.c.bf16 %v6450_v28, %v6450_v28 }
 0xc8c   : > { %v6457_v30 = vpack.c.bf16 %v6453_v9, %v6453_v9  ;;  %v6456_v12 = vpack.c.bf16 %v6452_v34, %v6452_v34  ;;  %v6502_v48 = vunpack.c.l.b16 %v6455_v5  ;;  %v6501_v1 = vunpack.c.l.b16 %v6454_v22 }
 0xc8e   : > { %v6504_v36 = vunpack.c.l.b16 %v6457_v30  ;;  %v6503_v54 = vunpack.c.l.b16 %v6456_v12 }
 0xc90   : > { %v6507_v33 = vrot.slane %v6504_v36, 7  ;;  %v6505_v7 = vrot.slane %v6503_v54, 7 }
 0xc92   : > { %v6508_v2 = vsel %vm6368_vm3, %v6507_v33, %v6502_v48  ;;  %v6506_v62 = vsel %vm6368_vm3, %v6505_v7, %v6501_v1 }
 0xc93   : > { %v6510_v53 = vpack.c.b16 %v6508_v2, %v6508_v2  ;;  %v6509_v26 = vpack.c.b16 %v6506_v62, %v6506_v62 }
 0xc95   : > { %6641 = vmatprep.mubr.bf16.mxu0 %v6510_v53 }
 0xc96   : > { %6642 = vmatmul.mubr.bf16.vlgmr.msra.gmra.mxu0 %v6509_v26 }
 0xd56   : > { %v7269_v47 = vpop.f32.mrf.mxu0 }
 0xd58   : > { %v7270_v29 = vpop.f32.mrf.mxu0 }
 0xd59   : > { %v7271_v15 = vadd.f32 %v7270_v29, %v7269_v47 }
 0xd5a   : > { %v7272_v6 = vpop.f32.mrf.mxu0 }
 0xd5b   : > { %v6644_v23 = vadd.f32 %v7271_v15, %v7193_v4 }
 0xd5c   : > { %v7273_v37 = vpop.f32.mrf.mxu0 }
 0xd5d   : > { %6649 = vst [vmem:[#allocation22] sm:$0x3] %v6644_v23 }
 0xd5e PF: > { %p7459_p2 = scmp.eq.s32.totalorder %s8567_s23, 1  ;;  %s8437_s24 = smov [#allocation22]  }
 0xd5f   : > { %s6659_s0 = sshll.u32 %s8437_s24, 4  ;;  %s6660_s0 = int_to_ptr.vmem [resolvable:$true] %s6659_s0 }
 0xd60   : > { %s8319_s2 = scalar_lea.vmem %s6660_s0, 32  ;;  %p8326_p13 = scmp.lt.s32.totalorder %s6660_s0, %s6660_s0 }
 0xd61   : > { %p8320_p4 = scmp.ne.s32.totalorder %s6660_s0, %s8319_s2  ;;  %p8327_p7 = scmp.lt.s32.totalorder %s8319_s2, %s8319_s2 }
 0xd63   : > { %p8321_p6 = pnand %p8320_p4, %p7459_p2  ;;  %p8328_p5 = por %p8327_p7, %p8326_p13 }
 0xd65   : > { %p8322_p12 = pneg %p8321_p6 }
 0xd67   : > { %p8329_p9 = pnand %p8328_p5, %p8322_p12 }
 0xd69   : > { %8332 = shalt.err (!%p8329_p9)
}
 0xd6a   : > { %s10684_s7 = sld [smem:[#allocation48_spill]] }
 0xd70   : > { %7410 = dma.vmem_to_hbm [thread:$0]  (%p7459_p2), %s6660_s0, 32, %s10684_s7, [#allocation6]  }
 0xd71   : > { %8396 = dma.done.wait (%p7459_p2), [#allocation6], 32  }
 0xd72   : > { %8398 = vsyncadd (%p7459_p2), [#allocation6], 4294967264 }
 0xd73 PF: > { %s38_s22 = sadd.s32 1, %s8421_s22   ;;  %s10685_s6 = sld [smem:[#allocation32_spill]] }
 0xd74   : > { %p35_p11 = scmp.ge.s32.totalorder %s38_s22, 4   ;;  %s10686_s19 = sld [smem:[#allocation31_spill]] }
 0xd75   : > { %s10687_s0 = smov %s8405_s30  ;;  %s10688_s30 = smov %s8409_s20 }
 0xd76   : > { %s10690_s21 = smov %s8417_s1  ;;  %37 = sbr.rel (!%p35_p11) target bundleno = 21 (0x15), region = 216 }
 0xd79   : > { %s10689_s20 = smov %s10685_s6 }
 0xd7a   : > { %s10691_s1 = smov %s10686_s19 }
 0xd7b   :  { %6672 = vsyncpa [#allocation5], 1 }
 0xd7c   :  { %6674 = vsyncpa [#allocation5 + $0x1], 1 }
 0xd7d   :  { %6675 = vsyncpa [#allocation8], 1 }
 0xd7e   :  { %6676 = vsyncpa [#allocation11], 1 }
 0xd7f   :  { %6677 = vsyncpa [#allocation15], 1 }
 0xd80   :  { %6679 = vsyncpa [#allocation15 + $0x1], 1 }
 0xd81   :  { %6680 = vsyncpa [#allocation18], 1 }
 0xd82   :  { %6681 = vsyncpa [#allocation21], 1 }
 0xd83   :  { %6682 = vsyncpa [#allocation6], 1 }
 0xd84   :  { %6684 = vsyncpa [#allocation6 + $0x1], 1 }

</bundles_post_ra>
